<compile_context>
chip_gen: v7x
topology: tpu7x:2x2x1
jax: 0.10.0
libtpu: 0.0.40
codegen_flags: <defaults>
</compile_context>

<pallas_src>
import jax
import jax.numpy as jnp
import numpy as np
from jax.experimental import pallas as pl
from jax.experimental.pallas import tpu as pltpu

EPS = 1e-5                      # nn.BatchNorm2d default eps
LANE = 128                      # TPU lane width -> channel padding target
VMEM_LIMIT = 32 * 1024 * 1024   # comfortable for these tile sizes on v5e/v6e/v7x


def _round_up(x, m):
    return (x + m - 1) // m * m


# ---------------------------------------------------------------------------
# Kernel bodies
# ---------------------------------------------------------------------------
def _conv3x3_body(x_hwc_bf16, w_ref, y_ref, stats_ref, xpad_ref, patches_ref):
    """3x3 'same' conv of one image + per-image BN partial stats.

    x_hwc_bf16 : (H, W, Cp) bf16 value (input activation, already pre-processed)
    w_ref      : (9*Cp, Cp) bf16 im2col weight matrix (resident across the grid)
    y_ref      : (1, H, W, Cp) f32 output block (raw conv result)
    stats_ref  : (1, 2, Cp) f32 output block: [sum, sum_of_squares] over H*W
    xpad_ref   : (H+2, W+2, Cp) bf16 VMEM scratch (spatial zero padding)
    patches_ref: (H*W, 9*Cp) bf16 VMEM scratch (im2col matrix)
    """
    H, W, Cp = x_hwc_bf16.shape

    # Spatial zero padding inside VMEM (replaces the XLA jnp.pad round trip).
    xpad_ref[...] = jnp.zeros_like(xpad_ref)
    xpad_ref[1:H + 1, 1:W + 1, :] = x_hwc_bf16

    # im2col: nine shifted (H, W, Cp) windows laid out lane-contiguously.
    for ky in range(3):
        for kx in range(3):
            t = ky * 3 + kx
            patches_ref[:, t * Cp:(t + 1) * Cp] = (
                xpad_ref[ky:ky + H, kx:kx + W, :].reshape(H * W, Cp))

    # Single MXU matmul: bf16 operands, f32 accumulation, K = 9*Cp.
    acc = jnp.dot(patches_ref[...], w_ref[...],
                  preferred_element_type=jnp.float32)

    y_ref[...] = acc.reshape(1, H, W, Cp)

    # Exact f32 BatchNorm partials for this image (reduced across N in XLA).
    s = jnp.sum(acc, axis=0, keepdims=True)
    sq = jnp.sum(acc * acc, axis=0, keepdims=True)
    stats_ref[...] = jnp.concatenate([s, sq], axis=0).reshape(1, 2, Cp)


def _conv_stats_kernel(x_ref, w_ref, y_ref, stats_ref, xpad_ref, patches_ref):
    """Stage 1: y1 = conv1(x), plus per-image BN1 partial stats."""
    _conv3x3_body(x_ref[0].astype(jnp.bfloat16), w_ref, y_ref, stats_ref,
                  xpad_ref, patches_ref)


def _bn_relu_conv_stats_kernel(y_prev_ref, scale_ref, shift_ref, w_ref,
                               y_ref, stats_ref, xpad_ref, patches_ref):
    """Stage 2: y2 = conv2(relu(bn1(y1))), plus per-image BN2 partial stats.

    bn1 is applied on the fly from the globally folded (scale, shift), so the
    normalized activation never touches HBM.
    """
    Cp = y_prev_ref.shape[-1]
    scale = scale_ref[...].reshape(1, 1, Cp)
    shift = shift_ref[...].reshape(1, 1, Cp)
    x = jnp.maximum(y_prev_ref[0] * scale + shift, 0.0).astype(jnp.bfloat16)
    _conv3x3_body(x, w_ref, y_ref, stats_ref, xpad_ref, patches_ref)


def _bn_add_relu_kernel(y_ref, scale_ref, shift_ref, res_ref, out_ref):
    """Stage 3: out = relu(bn2(y2) + residual)."""
    Cp = y_ref.shape[-1]
    scale = scale_ref[...].reshape(1, 1, 1, Cp)
    shift = shift_ref[...].reshape(1, 1, 1, Cp)
    out_ref[...] = jnp.maximum(y_ref[...] * scale + shift + res_ref[...], 0.0)


# ---------------------------------------------------------------------------
# pallas_call builders and XLA glue
# ---------------------------------------------------------------------------
def _conv_call(kernel, n_vec_inputs, N, H, W, Cp):
    """Gridded conv+stats pallas_call: one padded image per grid step."""
    img_spec = pl.BlockSpec((1, H, W, Cp), lambda n: (n, 0, 0, 0))
    vec_spec = pl.BlockSpec((1, Cp), lambda n: (0, 0))
    w_spec = pl.BlockSpec((9 * Cp, Cp), lambda n: (0, 0))
    stats_spec = pl.BlockSpec((1, 2, Cp), lambda n: (n, 0, 0))
    return pl.pallas_call(
        kernel,
        grid=(N,),
        in_specs=[img_spec] + [vec_spec] * n_vec_inputs + [w_spec],
        out_specs=(img_spec, stats_spec),
        out_shape=(jax.ShapeDtypeStruct((N, H, W, Cp), jnp.float32),
                   jax.ShapeDtypeStruct((N, 2, Cp), jnp.float32)),
        scratch_shapes=[
            pltpu.VMEM((H + 2, W + 2, Cp), jnp.bfloat16),   # padded image
            pltpu.VMEM((H * W, 9 * Cp), jnp.bfloat16),       # im2col matrix
        ],
        compiler_params=pltpu.CompilerParams(
            dimension_semantics=("parallel",),
            vmem_limit_bytes=VMEM_LIMIT),
    )


def _fold_bn_scale_shift(stats, gamma, beta, count):
    """Reduce per-image (sum, sumsq) partials -> folded BN (scale, shift), f32."""
    total = jnp.sum(stats[:, 0, :], axis=0)        # (Cp,)
    total_sq = jnp.sum(stats[:, 1, :], axis=0)     # (Cp,)
    mean = total / count
    var = jnp.maximum(total_sq / count - mean * mean, 0.0)
    inv_std = jax.lax.rsqrt(var + EPS)
    scale = gamma * inv_std
    shift = beta - mean * scale
    return scale.reshape(1, -1), shift.reshape(1, -1)


def basic_block_forward(x_nchw, w1, g1, b1, w2, g2, b2):
    """BasicBlock forward (stride=1, downsample=None).

    x_nchw : (N, C, H, W) f32;  w1, w2 : (3, 3, C, C) f32 HWIO (bias=False)
    g*, b* : (C,) f32 BatchNorm affine params.  Returns (N, C, H, W) f32.
    """
    N, C, H, W = x_nchw.shape
    planes = w1.shape[-1]
    assert planes == C and w2.shape == (3, 3, planes, planes), (
        "only stride=1 / downsample=None BasicBlock is supported")
    Cp = _round_up(C, LANE)

    x = jnp.transpose(x_nchw, (0, 2, 3, 1))                    # NCHW -> NHWC
    x_p = jnp.pad(x, ((0, 0), (0, 0), (0, 0), (0, Cp - C)))    # lane-dense channels

    def pad_w(w):
        wp = jnp.pad(w, ((0, 0), (0, 0), (0, Cp - C), (0, Cp - planes)))
        return wp.reshape(9 * Cp, Cp).astype(jnp.bfloat16)      # im2col layout

    def pad_gb(g, b):
        return (jnp.pad(g.reshape(-1), (0, Cp - planes), constant_values=1.0),
                jnp.pad(b.reshape(-1), (0, Cp - planes)))

    w1_m, w2_m = pad_w(w1), pad_w(w2)
    g1_p, b1_p = pad_gb(g1, b1)
    g2_p, b2_p = pad_gb(g2, b2)
    count = float(N * H * W)

    # Stage 1: raw conv1 + BN1 partials.
    y1, stats1 = _conv_call(_conv_stats_kernel, 0, N, H, W, Cp)(x_p, w1_m)
    scale1, shift1 = _fold_bn_scale_shift(stats1, g1_p, b1_p, count)

    # Stage 2: bn1+relu fused into conv2's input path, raw conv2 + BN2 partials.
    y2, stats2 = _conv_call(_bn_relu_conv_stats_kernel, 2, N, H, W, Cp)(
        y1, scale1, shift1, w2_m)
    scale2, shift2 = _fold_bn_scale_shift(stats2, g2_p, b2_p, count)

    # Stage 3: bn2 + residual add + relu.
    img_spec = pl.BlockSpec((1, H, W, Cp), lambda n: (n, 0, 0, 0))
    vec_spec = pl.BlockSpec((1, Cp), lambda n: (0, 0))
    out_p = pl.pallas_call(
        _bn_add_relu_kernel,
        grid=(N,),
        in_specs=[img_spec, vec_spec, vec_spec, img_spec],
        out_specs=img_spec,
        out_shape=jax.ShapeDtypeStruct((N, H, W, Cp), jnp.float32),
        compiler_params=pltpu.CompilerParams(
            dimension_semantics=("parallel",),
            vmem_limit_bytes=VMEM_LIMIT),
    )(y2, scale2, shift2, x_p)

    out = out_p[..., :C]
    return jnp.transpose(out, (0, 3, 1, 2))                    # NHWC -> NCHW


# ---------------------------------------------------------------------------
# Plain-XLA reference
# ---------------------------------------------------------------------------
def _reference(x_nchw, w1, g1, b1, w2, g2, b2, matmul_dtype=jnp.float32):
    """Reference forward.  `matmul_dtype` controls the conv *operand* precision
    (accumulation is always f32) so the kernel's bf16 MXU operands can be
    modelled exactly; BN statistics / normalization stay in f32."""
    x = jnp.transpose(x_nchw, (0, 2, 3, 1))

    def conv(v, w):
        return jax.lax.conv_general_dilated(
            v.astype(matmul_dtype), w.astype(matmul_dtype),
            window_strides=(1, 1), padding=((1, 1), (1, 1)),
            dimension_numbers=("NHWC", "HWIO", "NHWC"),
            preferred_element_type=jnp.float32)

    def bn(v, g, b):
        mean = jnp.mean(v, axis=(0, 1, 2), keepdims=True)
        var = jnp.mean((v - mean) ** 2, axis=(0, 1, 2), keepdims=True)
        return (v - mean) * jax.lax.rsqrt(var + EPS) * g + b

    out = jax.nn.relu(bn(conv(x, w1), g1, b1))
    out = jax.nn.relu(bn(conv(out, w2), g2, b2) + x)
    return jnp.transpose(out, (0, 3, 1, 2))


if __name__ == "__main__":
    # Small shapes: batch=2, inplanes=planes=4, spatial=16x16 (stride=1).
    N, C, H, W = 2, 4, 16, 16
    planes = C

    key = jax.random.PRNGKey(0)
    k_x, k_w1, k_w2, k_g1, k_g2 = jax.random.split(key, 5)

    x = jax.random.normal(k_x, (N, C, H, W), jnp.float32)
    w1 = jax.random.normal(k_w1, (3, 3, C, planes), jnp.float32) * 0.1
    w2 = jax.random.normal(k_w2, (3, 3, planes, planes), jnp.float32) * 0.1
    g1 = 1.0 + 0.1 * jax.random.normal(k_g1, (planes,), jnp.float32)
    b1 = jnp.full((planes,), 0.05, jnp.float32)
    g2 = 1.0 + 0.1 * jax.random.normal(k_g2, (planes,), jnp.float32)
    b2 = jnp.full((planes,), -0.05, jnp.float32)

    fwd = jax.jit(basic_block_forward)
    out = jax.block_until_ready(fwd(x, w1, g1, b1, w2, g2, b2))

    # Primary check: reference with matched (bf16) conv-operand precision.
    ref_bf16 = jax.block_until_ready(
        _reference(x, w1, g1, b1, w2, g2, b2, matmul_dtype=jnp.bfloat16))
    np.testing.assert_allclose(np.asarray(out), np.asarray(ref_bf16),
                               rtol=1e-2, atol=1e-2)

    # Sanity check vs pure-f32 reference (loose: kernel uses bf16 MXU operands).
    ref_f32 = jax.block_until_ready(
        _reference(x, w1, g1, b1, w2, g2, b2, matmul_dtype=jnp.float32))
    np.testing.assert_allclose(np.asarray(out), np.asarray(ref_f32),
                               rtol=1e-1, atol=1e-1)

    print("KERNEL_OK")
</pallas_src>

<mosaic_0001>
module attributes {stable_mosaic.version = 11 : i64} {
  func.func @_conv_stats_kernel(%arg0: i32, %arg1: memref<1x16x16x128xf32, #tpu.memory_space<vmem>>, %arg2: memref<1152x128xbf16, #tpu.memory_space<vmem>>, %arg3: memref<1x16x16x128xf32, #tpu.memory_space<vmem>>, %arg4: memref<1x2x128xf32, #tpu.memory_space<vmem>>, %arg5: memref<18x18x128xbf16, #tpu.memory_space<vmem>>, %arg6: memref<256x1152xbf16, #tpu.memory_space<vmem>>) attributes {dimension_semantics = [#tpu.dimension_semantics<parallel>], iteration_bounds = array<i64: 2>, scalar_prefetch = 0 : i64, scratch_operands = 2 : i64, tpu.core_type = #tpu.core_type<tc>, window_params = [{transform_indices = @transform_0, window_bounds = array<i64: 1, 16, 16, 128>}, {pipeline_mode = #tpu.pipeline_mode<synchronous>, transform_indices = @transform_1, window_bounds = array<i64: 1152, 128>}, {transform_indices = @transform_2, window_bounds = array<i64: 1, 16, 16, 128>}, {transform_indices = @transform_3, window_bounds = array<i64: 1, 2, 128>}]} {
    %c0 = arith.constant 0 : index
    %c0_0 = arith.constant 0 : index
    %c0_1 = arith.constant 0 : index
    %c0_2 = arith.constant 0 : index
    %0 = vector.load %arg1[%c0, %c0_0, %c0_1, %c0_2] : memref<1x16x16x128xf32, #tpu.memory_space<vmem>>, vector<1x16x16x128xf32>
    %1 = vector.shape_cast %0 : vector<1x16x16x128xf32> to vector<16x16x128xf32>
    %2 = arith.truncf %1 : vector<16x16x128xf32> to vector<16x16x128xbf16>
    %cst = arith.constant 0.000000e+00 : bf16
    %3 = vector.broadcast %cst : bf16 to vector<18x18x128xbf16>
    %c0_3 = arith.constant 0 : index
    %c0_4 = arith.constant 0 : index
    %c0_5 = arith.constant 0 : index
    %4 = vector.load %arg5[%c0_3, %c0_4, %c0_5] : memref<18x18x128xbf16, #tpu.memory_space<vmem>>, vector<18x18x128xbf16>
    tpu.vector_store %arg5[%c0_3, %c0_4, %c0_5], %3 {strides = array<i32>} : memref<18x18x128xbf16, #tpu.memory_space<vmem>>, vector<18x18x128xbf16>,
    %c1 = arith.constant 1 : index
    %c1_6 = arith.constant 1 : index
    %c0_7 = arith.constant 0 : index
    %5 = vector.load %arg5[%c1, %c1_6, %c0_7] : memref<18x18x128xbf16, #tpu.memory_space<vmem>>, vector<16x16x128xbf16>
    tpu.vector_store %arg5[%c1, %c1_6, %c0_7], %2 {strides = array<i32>} : memref<18x18x128xbf16, #tpu.memory_space<vmem>>, vector<16x16x128xbf16>,
    %c0_8 = arith.constant 0 : index
    %c0_9 = arith.constant 0 : index
    %c0_10 = arith.constant 0 : index
    %6 = vector.load %arg5[%c0_8, %c0_9, %c0_10] : memref<18x18x128xbf16, #tpu.memory_space<vmem>>, vector<16x16x128xbf16>
    %7 = vector.shape_cast %6 : vector<16x16x128xbf16> to vector<256x128xbf16>
    %c0_11 = arith.constant 0 : index
    %c0_12 = arith.constant 0 : index
    %8 = vector.load %arg6[%c0_11, %c0_12] : memref<256x1152xbf16, #tpu.memory_space<vmem>>, vector<256x128xbf16>
    tpu.vector_store %arg6[%c0_11, %c0_12], %7 {strides = array<i32>} : memref<256x1152xbf16, #tpu.memory_space<vmem>>, vector<256x128xbf16>,
    %c0_13 = arith.constant 0 : index
    %c1_14 = arith.constant 1 : index
    %c0_15 = arith.constant 0 : index
    %9 = vector.load %arg5[%c0_13, %c1_14, %c0_15] : memref<18x18x128xbf16, #tpu.memory_space<vmem>>, vector<16x16x128xbf16>
    %10 = vector.shape_cast %9 : vector<16x16x128xbf16> to vector<256x128xbf16>
    %c0_16 = arith.constant 0 : index
    %c128 = arith.constant 128 : index
    %11 = vector.load %arg6[%c0_16, %c128] : memref<256x1152xbf16, #tpu.memory_space<vmem>>, vector<256x128xbf16>
    tpu.vector_store %arg6[%c0_16, %c128], %10 {strides = array<i32>} : memref<256x1152xbf16, #tpu.memory_space<vmem>>, vector<256x128xbf16>,
    %c0_17 = arith.constant 0 : index
    %c2 = arith.constant 2 : index
    %c0_18 = arith.constant 0 : index
    %12 = vector.load %arg5[%c0_17, %c2, %c0_18] : memref<18x18x128xbf16, #tpu.memory_space<vmem>>, vector<16x16x128xbf16>
    %13 = vector.shape_cast %12 : vector<16x16x128xbf16> to vector<256x128xbf16>
    %c0_19 = arith.constant 0 : index
    %c256 = arith.constant 256 : index
    %14 = vector.load %arg6[%c0_19, %c256] : memref<256x1152xbf16, #tpu.memory_space<vmem>>, vector<256x128xbf16>
    tpu.vector_store %arg6[%c0_19, %c256], %13 {strides = array<i32>} : memref<256x1152xbf16, #tpu.memory_space<vmem>>, vector<256x128xbf16>,
    %c1_20 = arith.constant 1 : index
    %c0_21 = arith.constant 0 : index
    %c0_22 = arith.constant 0 : index
    %15 = vector.load %arg5[%c1_20, %c0_21, %c0_22] : memref<18x18x128xbf16, #tpu.memory_space<vmem>>, vector<16x16x128xbf16>
    %16 = vector.shape_cast %15 : vector<16x16x128xbf16> to vector<256x128xbf16>
    %c0_23 = arith.constant 0 : index
    %c384 = arith.constant 384 : index
    %17 = vector.load %arg6[%c0_23, %c384] : memref<256x1152xbf16, #tpu.memory_space<vmem>>, vector<256x128xbf16>
    tpu.vector_store %arg6[%c0_23, %c384], %16 {strides = array<i32>} : memref<256x1152xbf16, #tpu.memory_space<vmem>>, vector<256x128xbf16>,
    %c1_24 = arith.constant 1 : index
    %c1_25 = arith.constant 1 : index
    %c0_26 = arith.constant 0 : index
    %18 = vector.load %arg5[%c1_24, %c1_25, %c0_26] : memref<18x18x128xbf16, #tpu.memory_space<vmem>>, vector<16x16x128xbf16>
    %19 = vector.shape_cast %18 : vector<16x16x128xbf16> to vector<256x128xbf16>
    %c0_27 = arith.constant 0 : index
    %c512 = arith.constant 512 : index
    %20 = vector.load %arg6[%c0_27, %c512] : memref<256x1152xbf16, #tpu.memory_space<vmem>>, vector<256x128xbf16>
    tpu.vector_store %arg6[%c0_27, %c512], %19 {strides = array<i32>} : memref<256x1152xbf16, #tpu.memory_space<vmem>>, vector<256x128xbf16>,
    %c1_28 = arith.constant 1 : index
    %c2_29 = arith.constant 2 : index
    %c0_30 = arith.constant 0 : index
    %21 = vector.load %arg5[%c1_28, %c2_29, %c0_30] : memref<18x18x128xbf16, #tpu.memory_space<vmem>>, vector<16x16x128xbf16>
    %22 = vector.shape_cast %21 : vector<16x16x128xbf16> to vector<256x128xbf16>
    %c0_31 = arith.constant 0 : index
    %c640 = arith.constant 640 : index
    %23 = vector.load %arg6[%c0_31, %c640] : memref<256x1152xbf16, #tpu.memory_space<vmem>>, vector<256x128xbf16>
    tpu.vector_store %arg6[%c0_31, %c640], %22 {strides = array<i32>} : memref<256x1152xbf16, #tpu.memory_space<vmem>>, vector<256x128xbf16>,
    %c2_32 = arith.constant 2 : index
    %c0_33 = arith.constant 0 : index
    %c0_34 = arith.constant 0 : index
    %24 = vector.load %arg5[%c2_32, %c0_33, %c0_34] : memref<18x18x128xbf16, #tpu.memory_space<vmem>>, vector<16x16x128xbf16>
    %25 = vector.shape_cast %24 : vector<16x16x128xbf16> to vector<256x128xbf16>
    %c0_35 = arith.constant 0 : index
    %c768 = arith.constant 768 : index
    %26 = vector.load %arg6[%c0_35, %c768] : memref<256x1152xbf16, #tpu.memory_space<vmem>>, vector<256x128xbf16>
    tpu.vector_store %arg6[%c0_35, %c768], %25 {strides = array<i32>} : memref<256x1152xbf16, #tpu.memory_space<vmem>>, vector<256x128xbf16>,
    %c2_36 = arith.constant 2 : index
    %c1_37 = arith.constant 1 : index
    %c0_38 = arith.constant 0 : index
    %27 = vector.load %arg5[%c2_36, %c1_37, %c0_38] : memref<18x18x128xbf16, #tpu.memory_space<vmem>>, vector<16x16x128xbf16>
    %28 = vector.shape_cast %27 : vector<16x16x128xbf16> to vector<256x128xbf16>
    %c0_39 = arith.constant 0 : index
    %c896 = arith.constant 896 : index
    %29 = vector.load %arg6[%c0_39, %c896] : memref<256x1152xbf16, #tpu.memory_space<vmem>>, vector<256x128xbf16>
    tpu.vector_store %arg6[%c0_39, %c896], %28 {strides = array<i32>} : memref<256x1152xbf16, #tpu.memory_space<vmem>>, vector<256x128xbf16>,
    %c2_40 = arith.constant 2 : index
    %c2_41 = arith.constant 2 : index
    %c0_42 = arith.constant 0 : index
    %30 = vector.load %arg5[%c2_40, %c2_41, %c0_42] : memref<18x18x128xbf16, #tpu.memory_space<vmem>>, vector<16x16x128xbf16>
    %31 = vector.shape_cast %30 : vector<16x16x128xbf16> to vector<256x128xbf16>
    %c0_43 = arith.constant 0 : index
    %c1024 = arith.constant 1024 : index
    %32 = vector.load %arg6[%c0_43, %c1024] : memref<256x1152xbf16, #tpu.memory_space<vmem>>, vector<256x128xbf16>
    tpu.vector_store %arg6[%c0_43, %c1024], %31 {strides = array<i32>} : memref<256x1152xbf16, #tpu.memory_space<vmem>>, vector<256x128xbf16>,
    %c0_44 = arith.constant 0 : index
    %c0_45 = arith.constant 0 : index
    %33 = vector.load %arg6[%c0_44, %c0_45] : memref<256x1152xbf16, #tpu.memory_space<vmem>>, vector<256x1152xbf16>
    %c0_46 = arith.constant 0 : index
    %c0_47 = arith.constant 0 : index
    %34 = vector.load %arg2[%c0_46, %c0_47] : memref<1152x128xbf16, #tpu.memory_space<vmem>>, vector<1152x128xbf16>
    %cst_48 = arith.constant dense<0.000000e+00> : vector<256x128xf32>
    %35 = tpu.matmul %33, %34, %cst_48 {dimension_numbers = #tpu.dot_dimension_numbers<[1], [0], [0], [1], [0, 0, 1, 1], [], []>} : vector<256x1152xbf16>, vector<1152x128xbf16>, vector<256x128xf32> -> vector<256x128xf32>
    %36 = vector.shape_cast %35 : vector<256x128xf32> to vector<1x16x16x128xf32>
    %c0_49 = arith.constant 0 : index
    %c0_50 = arith.constant 0 : index
    %c0_51 = arith.constant 0 : index
    %c0_52 = arith.constant 0 : index
    %37 = vector.load %arg3[%c0_49, %c0_50, %c0_51, %c0_52] : memref<1x16x16x128xf32, #tpu.memory_space<vmem>>, vector<1x16x16x128xf32>
    tpu.vector_store %arg3[%c0_49, %c0_50, %c0_51, %c0_52], %36 {strides = array<i32>} : memref<1x16x16x128xf32, #tpu.memory_space<vmem>>, vector<1x16x16x128xf32>,
    %cst_53 = arith.constant dense<0.000000e+00> : vector<128xf32>
    %38 = vector.multi_reduction <add>, %35, %cst_53 [0] : vector<256x128xf32> to vector<128xf32>
    %39 = vector.shape_cast %38 : vector<128xf32> to vector<1x128xf32>
    %40 = arith.mulf %35, %35 : vector<256x128xf32>
    %cst_54 = arith.constant dense<0.000000e+00> : vector<128xf32>
    %41 = vector.multi_reduction <add>, %40, %cst_54 [0] : vector<256x128xf32> to vector<128xf32>
    %42 = vector.shape_cast %41 : vector<128xf32> to vector<1x128xf32>
    %43 = tpu.concatenate %39, %42 in 0 : vector<1x128xf32>, vector<1x128xf32> -> vector<2x128xf32>
    %44 = vector.shape_cast %43 : vector<2x128xf32> to vector<1x2x128xf32>
    %c0_55 = arith.constant 0 : index
    %c0_56 = arith.constant 0 : index
    %c0_57 = arith.constant 0 : index
    %45 = vector.load %arg4[%c0_55, %c0_56, %c0_57] : memref<1x2x128xf32, #tpu.memory_space<vmem>>, vector<1x2x128xf32>
    tpu.vector_store %arg4[%c0_55, %c0_56, %c0_57], %44 {strides = array<i32>} : memref<1x2x128xf32, #tpu.memory_space<vmem>>, vector<1x2x128xf32>,
    return
  }
  func.func @transform_0(%arg0: i32) -> (i32, i32, i32, i32) {
    %c0_i32 = arith.constant 0 : i32
    %c0_i32_0 = arith.constant 0 : i32
    %c0_i32_1 = arith.constant 0 : i32
    %c0_i32_2 = arith.constant 0 : i32
    return %arg0, %c0_i32, %c0_i32_0, %c0_i32_1 : i32, i32, i32, i32
  }
  func.func @transform_1(%arg0: i32) -> (i32, i32) {
    %c0_i32 = arith.constant 0 : i32
    %c0_i32_0 = arith.constant 0 : i32
    %c0_i32_1 = arith.constant 0 : i32
    return %c0_i32, %c0_i32_0 : i32, i32
  }
  func.func @transform_2(%arg0: i32) -> (i32, i32, i32, i32) {
    %c0_i32 = arith.constant 0 : i32
    %c0_i32_0 = arith.constant 0 : i32
    %c0_i32_1 = arith.constant 0 : i32
    %c0_i32_2 = arith.constant 0 : i32
    return %arg0, %c0_i32, %c0_i32_0, %c0_i32_1 : i32, i32, i32, i32
  }
  func.func @transform_3(%arg0: i32) -> (i32, i32, i32) {
    %c0_i32 = arith.constant 0 : i32
    %c0_i32_0 = arith.constant 0 : i32
    %c0_i32_1 = arith.constant 0 : i32
    return %arg0, %c0_i32, %c0_i32_0 : i32, i32, i32
  }
}

module attributes {stable_mosaic.version = 11 : i64} {
  func.func @_bn_relu_conv_stats_kernel(%arg0: i32, %arg1: memref<1x16x16x128xf32, #tpu.memory_space<vmem>>, %arg2: memref<1x128xf32, #tpu.memory_space<vmem>>, %arg3: memref<1x128xf32, #tpu.memory_space<vmem>>, %arg4: memref<1152x128xbf16, #tpu.memory_space<vmem>>, %arg5: memref<1x16x16x128xf32, #tpu.memory_space<vmem>>, %arg6: memref<1x2x128xf32, #tpu.memory_space<vmem>>, %arg7: memref<18x18x128xbf16, #tpu.memory_space<vmem>>, %arg8: memref<256x1152xbf16, #tpu.memory_space<vmem>>) attributes {dimension_semantics = [#tpu.dimension_semantics<parallel>], iteration_bounds = array<i64: 2>, scalar_prefetch = 0 : i64, scratch_operands = 2 : i64, tpu.core_type = #tpu.core_type<tc>, window_params = [{transform_indices = @transform_0, window_bounds = array<i64: 1, 16, 16, 128>}, {pipeline_mode = #tpu.pipeline_mode<synchronous>, transform_indices = @transform_1, window_bounds = array<i64: 1, 128>}, {pipeline_mode = #tpu.pipeline_mode<synchronous>, transform_indices = @transform_2, window_bounds = array<i64: 1, 128>}, {pipeline_mode = #tpu.pipeline_mode<synchronous>, transform_indices = @transform_3, window_bounds = array<i64: 1152, 128>}, {transform_indices = @transform_4, window_bounds = array<i64: 1, 16, 16, 128>}, {transform_indices = @transform_5, window_bounds = array<i64: 1, 2, 128>}]} {
    %c0 = arith.constant 0 : index
    %c0_0 = arith.constant 0 : index
    %0 = vector.load %arg2[%c0, %c0_0] : memref<1x128xf32, #tpu.memory_space<vmem>>, vector<1x128xf32>
    %1 = vector.shape_cast %0 : vector<1x128xf32> to vector<1x1x128xf32>
    %c0_1 = arith.constant 0 : index
    %c0_2 = arith.constant 0 : index
    %2 = vector.load %arg3[%c0_1, %c0_2] : memref<1x128xf32, #tpu.memory_space<vmem>>, vector<1x128xf32>
    %3 = vector.shape_cast %2 : vector<1x128xf32> to vector<1x1x128xf32>
    %c0_3 = arith.constant 0 : index
    %c0_4 = arith.constant 0 : index
    %c0_5 = arith.constant 0 : index
    %c0_6 = arith.constant 0 : index
    %4 = vector.load %arg1[%c0_3, %c0_4, %c0_5, %c0_6] : memref<1x16x16x128xf32, #tpu.memory_space<vmem>>, vector<1x16x16x128xf32>
    %5 = vector.shape_cast %4 : vector<1x16x16x128xf32> to vector<16x16x128xf32>
    %6 = vector.broadcast %1 : vector<1x1x128xf32> to vector<16x16x128xf32>
    %7 = arith.mulf %5, %6 : vector<16x16x128xf32>
    %8 = vector.broadcast %3 : vector<1x1x128xf32> to vector<16x16x128xf32>
    %9 = arith.addf %7, %8 : vector<16x16x128xf32>
    %cst = arith.constant 0.000000e+00 : f32
    %10 = vector.broadcast %cst : f32 to vector<16x16x128xf32>
    %11 = arith.maximumf %9, %10 : vector<16x16x128xf32>
    %12 = arith.truncf %11 : vector<16x16x128xf32> to vector<16x16x128xbf16>
    %cst_7 = arith.constant 0.000000e+00 : bf16
    %13 = vector.broadcast %cst_7 : bf16 to vector<18x18x128xbf16>
    %c0_8 = arith.constant 0 : index
    %c0_9 = arith.constant 0 : index
    %c0_10 = arith.constant 0 : index
    %14 = vector.load %arg7[%c0_8, %c0_9, %c0_10] : memref<18x18x128xbf16, #tpu.memory_space<vmem>>, vector<18x18x128xbf16>
    tpu.vector_store %arg7[%c0_8, %c0_9, %c0_10], %13 {strides = array<i32>} : memref<18x18x128xbf16, #tpu.memory_space<vmem>>, vector<18x18x128xbf16>,
    %c1 = arith.constant 1 : index
    %c1_11 = arith.constant 1 : index
    %c0_12 = arith.constant 0 : index
    %15 = vector.load %arg7[%c1, %c1_11, %c0_12] : memref<18x18x128xbf16, #tpu.memory_space<vmem>>, vector<16x16x128xbf16>
    tpu.vector_store %arg7[%c1, %c1_11, %c0_12], %12 {strides = array<i32>} : memref<18x18x128xbf16, #tpu.memory_space<vmem>>, vector<16x16x128xbf16>,
    %c0_13 = arith.constant 0 : index
    %c0_14 = arith.constant 0 : index
    %c0_15 = arith.constant 0 : index
    %16 = vector.load %arg7[%c0_13, %c0_14, %c0_15] : memref<18x18x128xbf16, #tpu.memory_space<vmem>>, vector<16x16x128xbf16>
    %17 = vector.shape_cast %16 : vector<16x16x128xbf16> to vector<256x128xbf16>
    %c0_16 = arith.constant 0 : index
    %c0_17 = arith.constant 0 : index
    %18 = vector.load %arg8[%c0_16, %c0_17] : memref<256x1152xbf16, #tpu.memory_space<vmem>>, vector<256x128xbf16>
    tpu.vector_store %arg8[%c0_16, %c0_17], %17 {strides = array<i32>} : memref<256x1152xbf16, #tpu.memory_space<vmem>>, vector<256x128xbf16>,
    %c0_18 = arith.constant 0 : index
    %c1_19 = arith.constant 1 : index
    %c0_20 = arith.constant 0 : index
    %19 = vector.load %arg7[%c0_18, %c1_19, %c0_20] : memref<18x18x128xbf16, #tpu.memory_space<vmem>>, vector<16x16x128xbf16>
    %20 = vector.shape_cast %19 : vector<16x16x128xbf16> to vector<256x128xbf16>
    %c0_21 = arith.constant 0 : index
    %c128 = arith.constant 128 : index
    %21 = vector.load %arg8[%c0_21, %c128] : memref<256x1152xbf16, #tpu.memory_space<vmem>>, vector<256x128xbf16>
    tpu.vector_store %arg8[%c0_21, %c128], %20 {strides = array<i32>} : memref<256x1152xbf16, #tpu.memory_space<vmem>>, vector<256x128xbf16>,
    %c0_22 = arith.constant 0 : index
    %c2 = arith.constant 2 : index
    %c0_23 = arith.constant 0 : index
    %22 = vector.load %arg7[%c0_22, %c2, %c0_23] : memref<18x18x128xbf16, #tpu.memory_space<vmem>>, vector<16x16x128xbf16>
    %23 = vector.shape_cast %22 : vector<16x16x128xbf16> to vector<256x128xbf16>
    %c0_24 = arith.constant 0 : index
    %c256 = arith.constant 256 : index
    %24 = vector.load %arg8[%c0_24, %c256] : memref<256x1152xbf16, #tpu.memory_space<vmem>>, vector<256x128xbf16>
    tpu.vector_store %arg8[%c0_24, %c256], %23 {strides = array<i32>} : memref<256x1152xbf16, #tpu.memory_space<vmem>>, vector<256x128xbf16>,
    %c1_25 = arith.constant 1 : index
    %c0_26 = arith.constant 0 : index
    %c0_27 = arith.constant 0 : index
    %25 = vector.load %arg7[%c1_25, %c0_26, %c0_27] : memref<18x18x128xbf16, #tpu.memory_space<vmem>>, vector<16x16x128xbf16>
    %26 = vector.shape_cast %25 : vector<16x16x128xbf16> to vector<256x128xbf16>
    %c0_28 = arith.constant 0 : index
    %c384 = arith.constant 384 : index
    %27 = vector.load %arg8[%c0_28, %c384] : memref<256x1152xbf16, #tpu.memory_space<vmem>>, vector<256x128xbf16>
    tpu.vector_store %arg8[%c0_28, %c384], %26 {strides = array<i32>} : memref<256x1152xbf16, #tpu.memory_space<vmem>>, vector<256x128xbf16>,
    %c1_29 = arith.constant 1 : index
    %c1_30 = arith.constant 1 : index
    %c0_31 = arith.constant 0 : index
    %28 = vector.load %arg7[%c1_29, %c1_30, %c0_31] : memref<18x18x128xbf16, #tpu.memory_space<vmem>>, vector<16x16x128xbf16>
    %29 = vector.shape_cast %28 : vector<16x16x128xbf16> to vector<256x128xbf16>
    %c0_32 = arith.constant 0 : index
    %c512 = arith.constant 512 : index
    %30 = vector.load %arg8[%c0_32, %c512] : memref<256x1152xbf16, #tpu.memory_space<vmem>>, vector<256x128xbf16>
    tpu.vector_store %arg8[%c0_32, %c512], %29 {strides = array<i32>} : memref<256x1152xbf16, #tpu.memory_space<vmem>>, vector<256x128xbf16>,
    %c1_33 = arith.constant 1 : index
    %c2_34 = arith.constant 2 : index
    %c0_35 = arith.constant 0 : index
    %31 = vector.load %arg7[%c1_33, %c2_34, %c0_35] : memref<18x18x128xbf16, #tpu.memory_space<vmem>>, vector<16x16x128xbf16>
    %32 = vector.shape_cast %31 : vector<16x16x128xbf16> to vector<256x128xbf16>
    %c0_36 = arith.constant 0 : index
    %c640 = arith.constant 640 : index
    %33 = vector.load %arg8[%c0_36, %c640] : memref<256x1152xbf16, #tpu.memory_space<vmem>>, vector<256x128xbf16>
    tpu.vector_store %arg8[%c0_36, %c640], %32 {strides = array<i32>} : memref<256x1152xbf16, #tpu.memory_space<vmem>>, vector<256x128xbf16>,
    %c2_37 = arith.constant 2 : index
    %c0_38 = arith.constant 0 : index
    %c0_39 = arith.constant 0 : index
    %34 = vector.load %arg7[%c2_37, %c0_38, %c0_39] : memref<18x18x128xbf16, #tpu.memory_space<vmem>>, vector<16x16x128xbf16>
    %35 = vector.shape_cast %34 : vector<16x16x128xbf16> to vector<256x128xbf16>
    %c0_40 = arith.constant 0 : index
    %c768 = arith.constant 768 : index
    %36 = vector.load %arg8[%c0_40, %c768] : memref<256x1152xbf16, #tpu.memory_space<vmem>>, vector<256x128xbf16>
    tpu.vector_store %arg8[%c0_40, %c768], %35 {strides = array<i32>} : memref<256x1152xbf16, #tpu.memory_space<vmem>>, vector<256x128xbf16>,
    %c2_41 = arith.constant 2 : index
    %c1_42 = arith.constant 1 : index
    %c0_43 = arith.constant 0 : index
    %37 = vector.load %arg7[%c2_41, %c1_42, %c0_43] : memref<18x18x128xbf16, #tpu.memory_space<vmem>>, vector<16x16x128xbf16>
    %38 = vector.shape_cast %37 : vector<16x16x128xbf16> to vector<256x128xbf16>
    %c0_44 = arith.constant 0 : index
    %c896 = arith.constant 896 : index
    %39 = vector.load %arg8[%c0_44, %c896] : memref<256x1152xbf16, #tpu.memory_space<vmem>>, vector<256x128xbf16>
    tpu.vector_store %arg8[%c0_44, %c896], %38 {strides = array<i32>} : memref<256x1152xbf16, #tpu.memory_space<vmem>>, vector<256x128xbf16>,
    %c2_45 = arith.constant 2 : index
    %c2_46 = arith.constant 2 : index
    %c0_47 = arith.constant 0 : index
    %40 = vector.load %arg7[%c2_45, %c2_46, %c0_47] : memref<18x18x128xbf16, #tpu.memory_space<vmem>>, vector<16x16x128xbf16>
    %41 = vector.shape_cast %40 : vector<16x16x128xbf16> to vector<256x128xbf16>
    %c0_48 = arith.constant 0 : index
    %c1024 = arith.constant 1024 : index
    %42 = vector.load %arg8[%c0_48, %c1024] : memref<256x1152xbf16, #tpu.memory_space<vmem>>, vector<256x128xbf16>
    tpu.vector_store %arg8[%c0_48, %c1024], %41 {strides = array<i32>} : memref<256x1152xbf16, #tpu.memory_space<vmem>>, vector<256x128xbf16>,
    %c0_49 = arith.constant 0 : index
    %c0_50 = arith.constant 0 : index
    %43 = vector.load %arg8[%c0_49, %c0_50] : memref<256x1152xbf16, #tpu.memory_space<vmem>>, vector<256x1152xbf16>
    %c0_51 = arith.constant 0 : index
    %c0_52 = arith.constant 0 : index
    %44 = vector.load %arg4[%c0_51, %c0_52] : memref<1152x128xbf16, #tpu.memory_space<vmem>>, vector<1152x128xbf16>
    %cst_53 = arith.constant dense<0.000000e+00> : vector<256x128xf32>
    %45 = tpu.matmul %43, %44, %cst_53 {dimension_numbers = #tpu.dot_dimension_numbers<[1], [0], [0], [1], [0, 0, 1, 1], [], []>} : vector<256x1152xbf16>, vector<1152x128xbf16>, vector<256x128xf32> -> vector<256x128xf32>
    %46 = vector.shape_cast %45 : vector<256x128xf32> to vector<1x16x16x128xf32>
    %c0_54 = arith.constant 0 : index
    %c0_55 = arith.constant 0 : index
    %c0_56 = arith.constant 0 : index
    %c0_57 = arith.constant 0 : index
    %47 = vector.load %arg5[%c0_54, %c0_55, %c0_56, %c0_57] : memref<1x16x16x128xf32, #tpu.memory_space<vmem>>, vector<1x16x16x128xf32>
    tpu.vector_store %arg5[%c0_54, %c0_55, %c0_56, %c0_57], %46 {strides = array<i32>} : memref<1x16x16x128xf32, #tpu.memory_space<vmem>>, vector<1x16x16x128xf32>,
    %cst_58 = arith.constant dense<0.000000e+00> : vector<128xf32>
    %48 = vector.multi_reduction <add>, %45, %cst_58 [0] : vector<256x128xf32> to vector<128xf32>
    %49 = vector.shape_cast %48 : vector<128xf32> to vector<1x128xf32>
    %50 = arith.mulf %45, %45 : vector<256x128xf32>
    %cst_59 = arith.constant dense<0.000000e+00> : vector<128xf32>
    %51 = vector.multi_reduction <add>, %50, %cst_59 [0] : vector<256x128xf32> to vector<128xf32>
    %52 = vector.shape_cast %51 : vector<128xf32> to vector<1x128xf32>
    %53 = tpu.concatenate %49, %52 in 0 : vector<1x128xf32>, vector<1x128xf32> -> vector<2x128xf32>
    %54 = vector.shape_cast %53 : vector<2x128xf32> to vector<1x2x128xf32>
    %c0_60 = arith.constant 0 : index
    %c0_61 = arith.constant 0 : index
    %c0_62 = arith.constant 0 : index
    %55 = vector.load %arg6[%c0_60, %c0_61, %c0_62] : memref<1x2x128xf32, #tpu.memory_space<vmem>>, vector<1x2x128xf32>
    tpu.vector_store %arg6[%c0_60, %c0_61, %c0_62], %54 {strides = array<i32>} : memref<1x2x128xf32, #tpu.memory_space<vmem>>, vector<1x2x128xf32>,
    return
  }
  func.func @transform_0(%arg0: i32) -> (i32, i32, i32, i32) {
    %c0_i32 = arith.constant 0 : i32
    %c0_i32_0 = arith.constant 0 : i32
    %c0_i32_1 = arith.constant 0 : i32
    %c0_i32_2 = arith.constant 0 : i32
    return %arg0, %c0_i32, %c0_i32_0, %c0_i32_1 : i32, i32, i32, i32
  }
  func.func @transform_1(%arg0: i32) -> (i32, i32) {
    %c0_i32 = arith.constant 0 : i32
    %c0_i32_0 = arith.constant 0 : i32
    %c0_i32_1 = arith.constant 0 : i32
    return %c0_i32, %c0_i32_0 : i32, i32
  }
  func.func @transform_2(%arg0: i32) -> (i32, i32) {
    %c0_i32 = arith.constant 0 : i32
    %c0_i32_0 = arith.constant 0 : i32
    %c0_i32_1 = arith.constant 0 : i32
    return %c0_i32, %c0_i32_0 : i32, i32
  }
  func.func @transform_3(%arg0: i32) -> (i32, i32) {
    %c0_i32 = arith.constant 0 : i32
    %c0_i32_0 = arith.constant 0 : i32
    %c0_i32_1 = arith.constant 0 : i32
    return %c0_i32, %c0_i32_0 : i32, i32
  }
  func.func @transform_4(%arg0: i32) -> (i32, i32, i32, i32) {
    %c0_i32 = arith.constant 0 : i32
    %c0_i32_0 = arith.constant 0 : i32
    %c0_i32_1 = arith.constant 0 : i32
    %c0_i32_2 = arith.constant 0 : i32
    return %arg0, %c0_i32, %c0_i32_0, %c0_i32_1 : i32, i32, i32, i32
  }
  func.func @transform_5(%arg0: i32) -> (i32, i32, i32) {
    %c0_i32 = arith.constant 0 : i32
    %c0_i32_0 = arith.constant 0 : i32
    %c0_i32_1 = arith.constant 0 : i32
    return %arg0, %c0_i32, %c0_i32_0 : i32, i32, i32
  }
}

module attributes {stable_mosaic.version = 11 : i64} {
  func.func @_bn_add_relu_kernel(%arg0: i32, %arg1: memref<1x16x16x128xf32, #tpu.memory_space<vmem>>, %arg2: memref<1x128xf32, #tpu.memory_space<vmem>>, %arg3: memref<1x128xf32, #tpu.memory_space<vmem>>, %arg4: memref<1x16x16x128xf32, #tpu.memory_space<vmem>>, %arg5: memref<1x16x16x128xf32, #tpu.memory_space<vmem>>) attributes {dimension_semantics = [#tpu.dimension_semantics<parallel>], iteration_bounds = array<i64: 2>, scalar_prefetch = 0 : i64, scratch_operands = 0 : i64, tpu.core_type = #tpu.core_type<tc>, window_params = [{transform_indices = @transform_0, window_bounds = array<i64: 1, 16, 16, 128>}, {pipeline_mode = #tpu.pipeline_mode<synchronous>, transform_indices = @transform_1, window_bounds = array<i64: 1, 128>}, {pipeline_mode = #tpu.pipeline_mode<synchronous>, transform_indices = @transform_2, window_bounds = array<i64: 1, 128>}, {transform_indices = @transform_3, window_bounds = array<i64: 1, 16, 16, 128>}, {transform_indices = @transform_4, window_bounds = array<i64: 1, 16, 16, 128>}]} {
    %c0 = arith.constant 0 : index
    %c0_0 = arith.constant 0 : index
    %0 = vector.load %arg2[%c0, %c0_0] : memref<1x128xf32, #tpu.memory_space<vmem>>, vector<1x128xf32>
    %1 = vector.shape_cast %0 : vector<1x128xf32> to vector<1x1x1x128xf32>
    %c0_1 = arith.constant 0 : index
    %c0_2 = arith.constant 0 : index
    %2 = vector.load %arg3[%c0_1, %c0_2] : memref<1x128xf32, #tpu.memory_space<vmem>>, vector<1x128xf32>
    %3 = vector.shape_cast %2 : vector<1x128xf32> to vector<1x1x1x128xf32>
    %c0_3 = arith.constant 0 : index
    %c0_4 = arith.constant 0 : index
    %c0_5 = arith.constant 0 : index
    %c0_6 = arith.constant 0 : index
    %4 = vector.load %arg1[%c0_3, %c0_4, %c0_5, %c0_6] : memref<1x16x16x128xf32, #tpu.memory_space<vmem>>, vector<1x16x16x128xf32>
    %5 = vector.broadcast %1 : vector<1x1x1x128xf32> to vector<1x16x16x128xf32>
    %6 = arith.mulf %4, %5 : vector<1x16x16x128xf32>
    %7 = vector.broadcast %3 : vector<1x1x1x128xf32> to vector<1x16x16x128xf32>
    %8 = arith.addf %6, %7 : vector<1x16x16x128xf32>
    %c0_7 = arith.constant 0 : index
    %c0_8 = arith.constant 0 : index
    %c0_9 = arith.constant 0 : index
    %c0_10 = arith.constant 0 : index
    %9 = vector.load %arg4[%c0_7, %c0_8, %c0_9, %c0_10] : memref<1x16x16x128xf32, #tpu.memory_space<vmem>>, vector<1x16x16x128xf32>
    %10 = arith.addf %8, %9 : vector<1x16x16x128xf32>
    %cst = arith.constant 0.000000e+00 : f32
    %11 = vector.broadcast %cst : f32 to vector<1x16x16x128xf32>
    %12 = arith.maximumf %10, %11 : vector<1x16x16x128xf32>
    %c0_11 = arith.constant 0 : index
    %c0_12 = arith.constant 0 : index
    %c0_13 = arith.constant 0 : index
    %c0_14 = arith.constant 0 : index
    %13 = vector.load %arg5[%c0_11, %c0_12, %c0_13, %c0_14] : memref<1x16x16x128xf32, #tpu.memory_space<vmem>>, vector<1x16x16x128xf32>
    tpu.vector_store %arg5[%c0_11, %c0_12, %c0_13, %c0_14], %12 {strides = array<i32>} : memref<1x16x16x128xf32, #tpu.memory_space<vmem>>, vector<1x16x16x128xf32>,
    return
  }
  func.func @transform_0(%arg0: i32) -> (i32, i32, i32, i32) {
    %c0_i32 = arith.constant 0 : i32
    %c0_i32_0 = arith.constant 0 : i32
    %c0_i32_1 = arith.constant 0 : i32
    %c0_i32_2 = arith.constant 0 : i32
    return %arg0, %c0_i32, %c0_i32_0, %c0_i32_1 : i32, i32, i32, i32
  }
  func.func @transform_1(%arg0: i32) -> (i32, i32) {
    %c0_i32 = arith.constant 0 : i32
    %c0_i32_0 = arith.constant 0 : i32
    %c0_i32_1 = arith.constant 0 : i32
    return %c0_i32, %c0_i32_0 : i32, i32
  }
  func.func @transform_2(%arg0: i32) -> (i32, i32) {
    %c0_i32 = arith.constant 0 : i32
    %c0_i32_0 = arith.constant 0 : i32
    %c0_i32_1 = arith.constant 0 : i32
    return %c0_i32, %c0_i32_0 : i32, i32
  }
  func.func @transform_3(%arg0: i32) -> (i32, i32, i32, i32) {
    %c0_i32 = arith.constant 0 : i32
    %c0_i32_0 = arith.constant 0 : i32
    %c0_i32_1 = arith.constant 0 : i32
    %c0_i32_2 = arith.constant 0 : i32
    return %arg0, %c0_i32, %c0_i32_0, %c0_i32_1 : i32, i32, i32, i32
  }
  func.func @transform_4(%arg0: i32) -> (i32, i32, i32, i32) {
    %c0_i32 = arith.constant 0 : i32
    %c0_i32_0 = arith.constant 0 : i32
    %c0_i32_1 = arith.constant 0 : i32
    %c0_i32_2 = arith.constant 0 : i32
    return %arg0, %c0_i32, %c0_i32_0, %c0_i32_1 : i32, i32, i32, i32
  }
}

</mosaic_0001>

<bundles_post_ra>
// kernel: basic_block_forward.5
= control target key start
LH: loop header
LB: loop body
LE: loop exit
PB: predicated region body
PF: predicated region fallthrough
CT: control target
= control target key end

     0   :  { %s582_s15 = smov 0   ;;  %s783_s0 = inlined_call_operand.vmem [shape: f32[2,16,16,128], index: 0, kind: input, shape index: {}]   ;;  %s784_s1 = inlined_call_operand.vmem [shape: f32[1,128], index: 1, kind: input, shape index: {}]   ;;  %s785_s2 = inlined_call_operand.vmem [shape: f32[1,128], index: 2, kind: input, shape index: {}]   ;;  %s786_s3 = inlined_call_operand.vmem [shape: f32[2,16,16,128], index: 3, kind: input, shape index: {}]   ;;  %s787_s4 = inlined_call_operand.vmem [shape: f32[2,16,16,128], index: 4, kind: output, shape index: {}]  }
   0x1 LB: > { %s523_s16 = sadd.s32 4294967295, %s555_s15   ;;  %p527_p0 = scmp.ge.s32.totalorder %s555_s15, 1  ;;  %s555_s15 = sphi %s582_s15, %s14_s15  }
   0x2   : > { %p172_p1 = scmp.lt.s32.totalorder %s555_s15, 3 }
   0x4   : > { %p173_p2 = pnand %p527_p0, %p172_p1 }
   0x5   : > { %p203_p3 = scmp.lt.s32.totalorder (!%p173_p2), %s523_s16, 1  ;;  %v595_v0 = vld [vmem:[%s784_s1] ss:$0 sm:$0xff] (!%p173_p2) }
   0x6   : > { %176 = sbr.rel (%p173_p2) target bundleno = 55 (0x37), region = 36  ;;  %v612_v1 = vld [vmem:[%s785_s2] ss:$0 sm:$0xff] (!%p173_p2) }
   0xd   : > { %s789_s16 = smov (!%p203_p3, %s523_s16), 1 }
   0xe   : > { %s590_s17 = sshll.u32 %s789_s16, 8 }
   0xf   : > { %s601_s22 = scalar_lea.vmem %s783_s0, %s590_s17  ;;  %s607_s25 = scalar_lea.vmem %s786_s3, %s590_s17 }
  0x10   : > { %v220_v2 = vld [vmem:[%s601_s22] sm:$0xff]  ;;  %v221_v3 = vld [vmem:[%s601_s22 + $0x8] sm:$0xff]  ;;  %v222_v7 = vld [vmem:[%s601_s22 + $0x10] sm:$0xff]  ;;  %s643_s30 = scalar_lea.vmem %s787_s4, %s590_s17 }
  0x11   : > { %v258_v4 = vmul.f32 %v595_v0, %v220_v2  ;;  %v328_v5 = vld [vmem:[%s607_s25] sm:$0xff]  ;;  %v259_v6 = vmul.f32 %v595_v0, %v221_v3  ;;  %v329_v8 = vld [vmem:[%s607_s25 + $0x8] sm:$0xff]  ;;  %v260_v9 = vmul.f32 %v595_v0, %v222_v7  ;;  %v223_v10 = vld [vmem:[%s601_s22 + $0x18] sm:$0xff] }
  0x12   : > { %v224_v11 = vld [vmem:[%s601_s22 + $0x20] sm:$0xff]  ;;  %v330_v14 = vld [vmem:[%s607_s25 + $0x10] sm:$0xff]  ;;  %v261_v15 = vmul.f32 %v595_v0, %v223_v10  ;;  %v331_v16 = vld [vmem:[%s607_s25 + $0x18] sm:$0xff] }
  0x13   : > { %v296_v12 = vadd.f32 %v612_v1, %v258_v4  ;;  %v297_v13 = vadd.f32 %v612_v1, %v259_v6  ;;  %v262_v17 = vmul.f32 %v595_v0, %v224_v11  ;;  %v225_v18 = vld [vmem:[%s601_s22 + $0x28] sm:$0xff]  ;;  %v298_v19 = vadd.f32 %v612_v1, %v260_v9  ;;  %v332_v20 = vld [vmem:[%s607_s25 + $0x20] sm:$0xff]  ;;  %v226_v22 = vld [vmem:[%s601_s22 + $0x30] sm:$0xff] }
  0x14   : > { %v263_v21 = vmul.f32 %v595_v0, %v225_v18  ;;  %v227_v23 = vld [vmem:[%s601_s22 + $0x38] sm:$0xff]  ;;  %v299_v26 = vadd.f32 %v612_v1, %v261_v15  ;;  %v333_v28 = vld [vmem:[%s607_s25 + $0x28] sm:$0xff]  ;;  %v264_v31 = vmul.f32 %v595_v0, %v226_v22  ;;  %v228_v33 = vld [vmem:[%s601_s22 + $0x40] sm:$0xff] }
  0x15   : > { %v360_v24 = vadd.f32 %v328_v5, %v296_v12  ;;  %v361_v25 = vadd.f32 %v329_v8, %v297_v13  ;;  %v300_v27 = vadd.f32 %v612_v1, %v262_v17  ;;  %v362_v29 = vadd.f32 %v330_v14, %v298_v19  ;;  %v229_v34 = vld [vmem:[%s601_s22 + $0x48] sm:$0xff]  ;;  %v334_v39 = vld [vmem:[%s607_s25 + $0x30] sm:$0xff]  ;;  %v335_v40 = vld [vmem:[%s607_s25 + $0x38] sm:$0xff] }
  0x16   : > { %v301_v30 = vadd.f32 %v612_v1, %v263_v21  ;;  %v265_v32 = vmul.f32 %v595_v0, %v227_v23  ;;  %v363_v37 = vadd.f32 %v331_v16, %v299_v26  ;;  %v230_v41 = vld [vmem:[%s601_s22 + $0x50] sm:$0xff]  ;;  %v302_v44 = vadd.f32 %v612_v1, %v264_v31  ;;  %v231_v46 = vld [vmem:[%s601_s22 + $0x58] sm:$0xff]  ;;  %v232_v47 = vld [vmem:[%s601_s22 + $0x60] sm:$0xff] }
  0x17   : > { %v392_v35 = vmax.f32 %v360_v24, 0.0  ;;  %v393_v36 = vmax.f32 %v361_v25, 0.0  ;;  %v364_v38 = vadd.f32 %v332_v20, %v300_v27  ;;  %v394_v42 = vmax.f32 %v362_v29, 0.0  ;;  %v233_v52 = vld [vmem:[%s601_s22 + $0x68] sm:$0xff]  ;;  %v336_v56 = vld [vmem:[%s607_s25 + $0x40] sm:$0xff]  ;;  %v338_v61 = vld [vmem:[%s607_s25 + $0x50] sm:$0xff] }
  0x18   : > { %v365_v43 = vadd.f32 %v333_v28, %v301_v30  ;;  %v303_v45 = vadd.f32 %v612_v1, %v265_v32  ;;  %v395_v48 = vmax.f32 %v363_v37, 0.0  ;;  %v266_v50 = vmul.f32 %v595_v0, %v228_v33  ;;  %v337_v57 = vld [vmem:[%s607_s25 + $0x48] sm:$0xff]  ;;  %v234_v2 = vld [vmem:[%s601_s22 + $0x70] sm:$0xff]  ;;  %v235_v3 = vld [vmem:[%s601_s22 + $0x78] sm:$0xff] }
  0x19   : > { %424 = vst [vmem:[%s643_s30] sm:$0xff] %v392_v35  ;;  %425 = vst [vmem:[%s643_s30 + $0x8] sm:$0xff] %v393_v36  ;;  %v396_v49 = vmax.f32 %v364_v38, 0.0  ;;  %v267_v51 = vmul.f32 %v595_v0, %v229_v34  ;;  %v366_v54 = vadd.f32 %v334_v39, %v302_v44  ;;  %v268_v58 = vmul.f32 %v595_v0, %v230_v41  ;;  %v339_v7 = vld [vmem:[%s607_s25 + $0x58] sm:$0xff]  ;;  %v340_v8 = vld [vmem:[%s607_s25 + $0x60] sm:$0xff] }
  0x1a   : > { %426 = vst [vmem:[%s643_s30 + $0x10] sm:$0xff] %v394_v42  ;;  %v397_v53 = vmax.f32 %v365_v43, 0.0  ;;  %v367_v55 = vadd.f32 %v335_v40, %v303_v45  ;;  %427 = vst [vmem:[%s643_s30 + $0x18] sm:$0xff] %v395_v48  ;;  %v304_v59 = vadd.f32 %v612_v1, %v266_v50  ;;  %v269_v62 = vmul.f32 %v595_v0, %v231_v46  ;;  %v341_v14 = vld [vmem:[%s607_s25 + $0x68] sm:$0xff]  ;;  %v236_v19 = vld [vmem:[%s601_s22 + $0x80] sm:$0xff] }
  0x1b   : > { %428 = vst [vmem:[%s643_s30 + $0x20] sm:$0xff] %v396_v49  ;;  %v305_v60 = vadd.f32 %v612_v1, %v267_v51  ;;  %v270_v63 = vmul.f32 %v595_v0, %v232_v47  ;;  %v398_v4 = vmax.f32 %v366_v54, 0.0  ;;  %v306_v6 = vadd.f32 %v612_v1, %v268_v58  ;;  %v237_v20 = vld [vmem:[%s601_s22 + $0x88] sm:$0xff]  ;;  %v342_v25 = vld [vmem:[%s607_s25 + $0x70] sm:$0xff]  ;;  %v343_v26 = vld [vmem:[%s607_s25 + $0x78] sm:$0xff] }
  0x1c   : > { %429 = vst [vmem:[%s643_s30 + $0x28] sm:$0xff] %v397_v53  ;;  %v399_v5 = vmax.f32 %v367_v55, 0.0  ;;  %v271_v9 = vmul.f32 %v595_v0, %v233_v52  ;;  %v368_v10 = vadd.f32 %v336_v56, %v304_v59  ;;  %v307_v12 = vadd.f32 %v612_v1, %v269_v62  ;;  %v238_v27 = vld [vmem:[%s601_s22 + $0x90] sm:$0xff]  ;;  %v239_v32 = vld [vmem:[%s601_s22 + $0x98] sm:$0xff]  ;;  %v240_v33 = vld [vmem:[%s601_s22 + $0xa0] sm:$0xff] }
  0x1d   : > { %v369_v11 = vadd.f32 %v337_v57, %v305_v60  ;;  %v308_v13 = vadd.f32 %v612_v1, %v270_v63  ;;  %430 = vst [vmem:[%s643_s30 + $0x30] sm:$0xff] %v398_v4  ;;  %v370_v15 = vadd.f32 %v338_v61, %v306_v6  ;;  %v272_v17 = vmul.f32 %v595_v0, %v234_v2  ;;  %v241_v38 = vld [vmem:[%s601_s22 + $0xa8] sm:$0xff]  ;;  %v344_v42 = vld [vmem:[%s607_s25 + $0x80] sm:$0xff]  ;;  %v346_v47 = vld [vmem:[%s607_s25 + $0x90] sm:$0xff] }
  0x1e   : > { %431 = vst [vmem:[%s643_s30 + $0x38] sm:$0xff] %v399_v5  ;;  %v309_v16 = vadd.f32 %v612_v1, %v271_v9  ;;  %v273_v18 = vmul.f32 %v595_v0, %v235_v3  ;;  %v400_v21 = vmax.f32 %v368_v10, 0.0  ;;  %v371_v23 = vadd.f32 %v339_v7, %v307_v12  ;;  %v345_v43 = vld [vmem:[%s607_s25 + $0x88] sm:$0xff]  ;;  %v242_v50 = vld [vmem:[%s601_s22 + $0xb0] sm:$0xff]  ;;  %v243_v51 = vld [vmem:[%s601_s22 + $0xb8] sm:$0xff] }
  0x1f   : > { %v401_v22 = vmax.f32 %v369_v11, 0.0  ;;  %v372_v24 = vadd.f32 %v340_v8, %v308_v13  ;;  %v402_v28 = vmax.f32 %v370_v15, 0.0  ;;  %v310_v30 = vadd.f32 %v612_v1, %v272_v17  ;;  %v347_v55 = vld [vmem:[%s607_s25 + $0x98] sm:$0xff]  ;;  %v348_v56 = vld [vmem:[%s607_s25 + $0xa0] sm:$0xff]  ;;  %v349_v62 = vld [vmem:[%s607_s25 + $0xa8] sm:$0xff] }
  0x20   : > { %v373_v29 = vadd.f32 %v341_v14, %v309_v16  ;;  %v311_v31 = vadd.f32 %v612_v1, %v273_v18  ;;  %432 = vst [vmem:[%s643_s30 + $0x40] sm:$0xff] %v400_v21  ;;  %v403_v34 = vmax.f32 %v371_v23, 0.0  ;;  %v274_v36 = vmul.f32 %v595_v0, %v236_v19  ;;  %v244_v5 = vld [vmem:[%s601_s22 + $0xc0] sm:$0xff]  ;;  %v245_v6 = vld [vmem:[%s601_s22 + $0xc8] sm:$0xff]  ;;  %v350_v11 = vld [vmem:[%s607_s25 + $0xb0] sm:$0xff] }
  0x21   : > { %433 = vst [vmem:[%s643_s30 + $0x48] sm:$0xff] %v401_v22  ;;  %v404_v35 = vmax.f32 %v372_v24, 0.0  ;;  %v275_v37 = vmul.f32 %v595_v0, %v237_v20  ;;  %434 = vst [vmem:[%s643_s30 + $0x50] sm:$0xff] %v402_v28  ;;  %v374_v40 = vadd.f32 %v342_v25, %v310_v30  ;;  %v276_v44 = vmul.f32 %v595_v0, %v238_v27  ;;  %v351_v12 = vld [vmem:[%s607_s25 + $0xb8] sm:$0xff]  ;;  %v246_v13 = vld [vmem:[%s601_s22 + $0xd0] sm:$0xff] }
  0x22   : > { %v405_v39 = vmax.f32 %v373_v29, 0.0  ;;  %v375_v41 = vadd.f32 %v343_v26, %v311_v31  ;;  %435 = vst [vmem:[%s643_s30 + $0x58] sm:$0xff] %v403_v34  ;;  %v312_v45 = vadd.f32 %v612_v1, %v274_v36  ;;  %v277_v48 = vmul.f32 %v595_v0, %v239_v32  ;;  %v247_v18 = vld [vmem:[%s601_s22 + $0xd8] sm:$0xff]  ;;  %v248_v19 = vld [vmem:[%s601_s22 + $0xe0] sm:$0xff]  ;;  %v249_v24 = vld [vmem:[%s601_s22 + $0xe8] sm:$0xff] }
  0x23   : > { %436 = vst [vmem:[%s643_s30 + $0x60] sm:$0xff] %v404_v35  ;;  %v313_v46 = vadd.f32 %v612_v1, %v275_v37  ;;  %v278_v49 = vmul.f32 %v595_v0, %v240_v33  ;;  %v406_v52 = vmax.f32 %v374_v40, 0.0  ;;  %v314_v54 = vadd.f32 %v612_v1, %v276_v44  ;;  %v352_v28 = vld [vmem:[%s607_s25 + $0xc0] sm:$0xff]  ;;  %v353_v29 = vld [vmem:[%s607_s25 + $0xc8] sm:$0xff]  ;;  %v354_v33 = vld [vmem:[%s607_s25 + $0xd0] sm:$0xff] }
  0x24   : > { %437 = vst [vmem:[%s643_s30 + $0x68] sm:$0xff] %v405_v39  ;;  %v407_v53 = vmax.f32 %v375_v41, 0.0  ;;  %v279_v57 = vmul.f32 %v595_v0, %v241_v38  ;;  %v376_v58 = vadd.f32 %v344_v42, %v312_v45  ;;  %v315_v60 = vadd.f32 %v612_v1, %v277_v48  ;;  %v250_v36 = vld [vmem:[%s601_s22 + $0xf0] sm:$0xff]  ;;  %v251_v37 = vld [vmem:[%s601_s22 + $0xf8] sm:$0xff]  ;;  %v356_v42 = vld [vmem:[%s607_s25 + $0xe0] sm:$0xff] }
  0x25   : > { %v377_v59 = vadd.f32 %v345_v43, %v313_v46  ;;  %v316_v61 = vadd.f32 %v612_v1, %v278_v49  ;;  %438 = vst [vmem:[%s643_s30 + $0x70] sm:$0xff] %v406_v52  ;;  %v378_v63 = vadd.f32 %v346_v47, %v314_v54  ;;  %v280_v3 = vmul.f32 %v595_v0, %v242_v50  ;;  %v355_v41 = vld [vmem:[%s607_s25 + $0xd8] sm:$0xff]  ;;  %v357_v48 = vld [vmem:[%s607_s25 + $0xe8] sm:$0xff] }
  0x26   : > { %439 = vst [vmem:[%s643_s30 + $0x78] sm:$0xff] %v407_v53  ;;  %v317_v2 = vadd.f32 %v612_v1, %v279_v57  ;;  %v281_v4 = vmul.f32 %v595_v0, %v243_v51  ;;  %v408_v7 = vmax.f32 %v376_v58, 0.0  ;;  %v379_v9 = vadd.f32 %v347_v55, %v315_v60  ;;  %v358_v57 = vld [vmem:[%s607_s25 + $0xf0] sm:$0xff]  ;;  %v359_v58 = vld [vmem:[%s607_s25 + $0xf8] sm:$0xff] }
  0x27   : > { %v409_v8 = vmax.f32 %v377_v59, 0.0  ;;  %v380_v10 = vadd.f32 %v348_v56, %v316_v61  ;;  %v410_v14 = vmax.f32 %v378_v63, 0.0  ;;  %v318_v16 = vadd.f32 %v612_v1, %v280_v3 }
  0x28   : > { %v381_v15 = vadd.f32 %v349_v62, %v317_v2  ;;  %v319_v17 = vadd.f32 %v612_v1, %v281_v4  ;;  %440 = vst [vmem:[%s643_s30 + $0x80] sm:$0xff] %v408_v7  ;;  %v411_v20 = vmax.f32 %v379_v9, 0.0  ;;  %v282_v22 = vmul.f32 %v595_v0, %v244_v5 }
  0x29   : > { %441 = vst [vmem:[%s643_s30 + $0x88] sm:$0xff] %v409_v8  ;;  %v412_v21 = vmax.f32 %v380_v10, 0.0  ;;  %v283_v23 = vmul.f32 %v595_v0, %v245_v6  ;;  %442 = vst [vmem:[%s643_s30 + $0x90] sm:$0xff] %v410_v14  ;;  %v382_v26 = vadd.f32 %v350_v11, %v318_v16  ;;  %v284_v30 = vmul.f32 %v595_v0, %v246_v13 }
  0x2a   : > { %v413_v25 = vmax.f32 %v381_v15, 0.0  ;;  %v383_v27 = vadd.f32 %v351_v12, %v319_v17  ;;  %443 = vst [vmem:[%s643_s30 + $0x98] sm:$0xff] %v411_v20  ;;  %v320_v31 = vadd.f32 %v612_v1, %v282_v22  ;;  %v285_v34 = vmul.f32 %v595_v0, %v247_v18 }
  0x2b   : > { %444 = vst [vmem:[%s643_s30 + $0xa0] sm:$0xff] %v412_v21  ;;  %v321_v32 = vadd.f32 %v612_v1, %v283_v23  ;;  %v286_v35 = vmul.f32 %v595_v0, %v248_v19  ;;  %v414_v38 = vmax.f32 %v382_v26, 0.0  ;;  %v322_v40 = vadd.f32 %v612_v1, %v284_v30 }
  0x2c   : > { %445 = vst [vmem:[%s643_s30 + $0xa8] sm:$0xff] %v413_v25  ;;  %v415_v39 = vmax.f32 %v383_v27, 0.0  ;;  %v287_v43 = vmul.f32 %v595_v0, %v249_v24  ;;  %v384_v44 = vadd.f32 %v352_v28, %v320_v31  ;;  %v323_v46 = vadd.f32 %v612_v1, %v285_v34 }
  0x2d   : > { %v385_v45 = vadd.f32 %v353_v29, %v321_v32  ;;  %v324_v47 = vadd.f32 %v612_v1, %v286_v35  ;;  %446 = vst [vmem:[%s643_s30 + $0xb0] sm:$0xff] %v414_v38  ;;  %v386_v49 = vadd.f32 %v354_v33, %v322_v40  ;;  %v288_v51 = vmul.f32 %v595_v0, %v250_v36 }
  0x2e   : > { %447 = vst [vmem:[%s643_s30 + $0xb8] sm:$0xff] %v415_v39  ;;  %v325_v50 = vadd.f32 %v612_v1, %v287_v43  ;;  %v289_v52 = vmul.f32 %v595_v0, %v251_v37  ;;  %v416_v53 = vmax.f32 %v384_v44, 0.0  ;;  %v387_v55 = vadd.f32 %v355_v41, %v323_v46 }
  0x2f   : > { %v417_v54 = vmax.f32 %v385_v45, 0.0  ;;  %v388_v56 = vadd.f32 %v356_v42, %v324_v47  ;;  %v418_v59 = vmax.f32 %v386_v49, 0.0  ;;  %v326_v61 = vadd.f32 %v612_v1, %v288_v51 }
  0x30   : > { %v389_v60 = vadd.f32 %v357_v48, %v325_v50  ;;  %v327_v62 = vadd.f32 %v612_v1, %v289_v52  ;;  %448 = vst [vmem:[%s643_s30 + $0xc0] sm:$0xff] %v416_v53  ;;  %v419_v0 = vmax.f32 %v387_v55, 0.0 }
  0x31   : > { %449 = vst [vmem:[%s643_s30 + $0xc8] sm:$0xff] %v417_v54  ;;  %v420_v63 = vmax.f32 %v388_v56, 0.0  ;;  %450 = vst [vmem:[%s643_s30 + $0xd0] sm:$0xff] %v418_v59  ;;  %v390_v3 = vadd.f32 %v358_v57, %v326_v61 }
  0x32   : > { %v421_v2 = vmax.f32 %v389_v60, 0.0  ;;  %v391_v4 = vadd.f32 %v359_v58, %v327_v62  ;;  %451 = vst [vmem:[%s643_s30 + $0xd8] sm:$0xff] %v419_v0 }
  0x33   : > { %452 = vst [vmem:[%s643_s30 + $0xe0] sm:$0xff] %v420_v63  ;;  %v422_v5 = vmax.f32 %v390_v3, 0.0 }
  0x34   : > { %453 = vst [vmem:[%s643_s30 + $0xe8] sm:$0xff] %v421_v2  ;;  %v423_v6 = vmax.f32 %v391_v4, 0.0 }
  0x35   : > { %454 = vst [vmem:[%s643_s30 + $0xf0] sm:$0xff] %v422_v5 }
  0x36   : > { %455 = vst [vmem:[%s643_s30 + $0xf8] sm:$0xff] %v423_v6 }
  0x37 PF: > { %s14_s15 = sadd.s32 1, %s555_s15  }
  0x38   : > { %p11_p4 = scmp.ge.s32.totalorder %s14_s15, 4  }
  0x3a   :  { %13 = sbr.rel (!%p11_p4) target bundleno = 1 (0x1), region = 69 }

// kernel: basic_block_forward.3
= control target key start
LH: loop header
LB: loop body
LE: loop exit
PB: predicated region body
PF: predicated region fallthrough
CT: control target
= control target key end

     0   :  { %s6433_s12 = smov 0   ;;  %s7978_s0 = inlined_call_operand.vmem [shape: f32[2,16,16,128], index: 0, kind: input, shape index: {}]   ;;  %s7979_s1 = inlined_call_operand.vmem [shape: bf16[1152,128], index: 1, kind: input, shape index: {}]   ;;  %s7980_s2 = inlined_call_operand.vmem [shape: f32[2,16,16,128], index: 2, kind: output, shape index: {0}]   ;;  %s7981_s3 = inlined_call_operand.vmem [shape: f32[2,2,128], index: 3, kind: output, shape index: {1}]  }
   0x1 LB: > { %s5397_s13 = sadd.s32 4294967295, %s6410_s12   ;;  %p5401_p0 = scmp.ge.s32.totalorder %s6410_s12, 1  ;;  %s6410_s12 = sphi %s6433_s12, %s14_s12  }
   0x2   : > { %p140_p1 = scmp.lt.s32.totalorder %s6410_s12, 3 }
   0x4   : > { %p141_p2 = pnand %p5401_p0, %p140_p1 }
   0x6   : > { %144 = sbr.rel (%p141_p2) target bundleno = 646 (0x286), region = 28 }
   0xd   : > { %v6284_v0 = vld [vmem:[%s7979_s1 + $0x40] sm:$0xff]   ;;  %v6412_v2 = vmov 0   ;;  %v6286_v3 = vld [vmem:[%s7979_s1 + $0x48] sm:$0xff]   ;;  %v6288_v5 = vld [vmem:[%s7979_s1 + $0x50] sm:$0xff]   ;;  %p168_p3 = scmp.lt.s32.totalorder %s5397_s13, 1  ;;  %vm689_vm0 = vcmask 1043456  }
   0xe   : > { %v6285_v1 = vld [vmem:[%s7979_s1] sm:$0xff]   ;;  %231 = vst [vmem:[#allocation2] sm:$0xf] %v6412_v2  ;;  %232 = vst [vmem:[#allocation2 + $0x4] sm:$0xf] %v6412_v2  ;;  %5739 = vmatprep.subr.bf16.mxu0 %v6284_v0  ;;  %6259 = vmatprep.subr.bf16.mxu1 %v6284_v0  ;;  %v6287_v4 = vld [vmem:[%s7979_s1 + $0x8] sm:$0xff]  }
   0xf   : > { %233 = vst [vmem:[#allocation2 + $0x8] sm:$0x1] %v6412_v2  ;;  %234 = vst [vmem:[#allocation2 + $0xc] sm:$0xf] %v6412_v2  ;;  %5740 = vmatpush3.bf16.msra.mxu0 %v6285_v1  ;;  %6267 = vmatpush3.bf16.msra.mxu1 %v6285_v1  ;;  %v6289_v6 = vld [vmem:[%s7979_s1 + $0x10] sm:$0xff]   ;;  %v6290_v7 = vld [vmem:[%s7979_s1 + $0x58] sm:$0xff]  }
  0x10   : > { %235 = vst [vmem:[#allocation2 + $0x10] sm:$0xf] %v6412_v2  ;;  %236 = vst [vmem:[#allocation2 + $0x14] sm:$0x1] %v6412_v2  ;;  %5741 = vmatprep.subr.bf16.mxu0 %v6286_v3  ;;  %6260 = vmatprep.subr.bf16.mxu1 %v6286_v3  ;;  %s8021_s13 = smov (!%p168_p3, %s5397_s13), 1  ;;  %v6291_v8 = vld [vmem:[%s7979_s1 + $0x18] sm:$0xff]  }
  0x11   : > { %237 = vst [vmem:[#allocation2 + $0x18] sm:$0xf] %v6412_v2  ;;  %238 = vst [vmem:[#allocation2 + $0x1c] sm:$0xf] %v6412_v2  ;;  %v6292_v9 = vld [vmem:[%s7979_s1 + $0x60] sm:$0xff]   ;;  %s5705_s5 = sshll.u32 %s8021_s13, 8 }
  0x12   : > { %239 = vst [vmem:[#allocation2 + $0x20] sm:$0x1] %v6412_v2  ;;  %240 = vst [vmem:[#allocation2 + $0x24] sm:$0xf] %v6412_v2  ;;  %v6293_v10 = vld [vmem:[%s7979_s1 + $0x20] sm:$0xff]   ;;  %v6294_v11 = vld [vmem:[%s7979_s1 + $0x68] sm:$0xff]   ;;  %s6486_s14 = scalar_lea.vmem %s7978_s0, %s5705_s5  ;;  %s7886_s23 = scalar_lea.vmem %s7980_s2, %s5705_s5 }
  0x13   : > { %241 = vst [vmem:[#allocation2 + $0x28] sm:$0xf] %v6412_v2  ;;  %242 = vst [vmem:[#allocation2 + $0x2c] sm:$0x1] %v6412_v2  ;;  %5742 = vmatpush3.bf16.msra.mxu0 %v6287_v4  ;;  %6268 = vmatpush3.bf16.msra.mxu1 %v6287_v4  ;;  %vm696_vm1 = vcmask 1040384   ;;  %v6295_v17 = vld [vmem:[%s7979_s1 + $0x28] sm:$0xff]  }
  0x14   : > { %243 = vst [vmem:[#allocation2 + $0x30] sm:$0xf] %v6412_v2  ;;  %244 = vst [vmem:[#allocation2 + $0x34] sm:$0xf] %v6412_v2  ;;  %5743 = vmatprep.subr.bf16.mxu0 %v6288_v5  ;;  %6261 = vmatprep.subr.bf16.mxu1 %v6288_v5  ;;  %vm998_vm2 = vsmask.f32 3328 }
  0x15   : > { %245 = vst [vmem:[#allocation2 + $0x38] sm:$0x1] %v6412_v2  ;;  %246 = vst [vmem:[#allocation2 + $0x3c] sm:$0xf] %v6412_v2  ;;  %v950_v12 = vld [vmem:[#allocation2] sm:$0xf] }
  0x16   : > { %247 = vst [vmem:[#allocation2 + $0x40] sm:$0xf] %v6412_v2  ;;  %248 = vst [vmem:[#allocation2 + $0x44] sm:$0x1] %v6412_v2  ;;  %v951_v13 = vld [vmem:[#allocation2 + $0x4] sm:$0xf] }
  0x17   : > { %249 = vst [vmem:[#allocation2 + $0x48] sm:$0xf] %v6412_v2  ;;  %250 = vst [vmem:[#allocation2 + $0x4c] sm:$0xf] %v6412_v2  ;;  %5744 = vmatpush3.bf16.msra.mxu0 %v6289_v6  ;;  %6269 = vmatpush3.bf16.msra.mxu1 %v6289_v6  ;;  %v952_v14 = vld [vmem:[#allocation2 + $0x8] sm:$0x1] }
  0x18   : > { %251 = vst [vmem:[#allocation2 + $0x50] sm:$0x1] %v6412_v2  ;;  %252 = vst [vmem:[#allocation2 + $0x54] sm:$0xf] %v6412_v2  ;;  %5745 = vmatprep.subr.bf16.mxu0 %v6290_v7  ;;  %6262 = vmatprep.subr.bf16.mxu1 %v6290_v7  ;;  %vm999_vm3 = vsmask.f32 7440 }
  0x19   : > { %253 = vst [vmem:[#allocation2 + $0x58] sm:$0xf] %v6412_v2  ;;  %254 = vst [vmem:[#allocation2 + $0x5c] sm:$0x1] %v6412_v2  ;;  %v1002_v15 = vshrl.u32 %v950_v12, 16  ;;  %v1005_v16 = vshll.u32 %v950_v12, 16 }
  0x1a   : > { %255 = vst [vmem:[#allocation2 + $0x60] sm:$0xf] %v6412_v2  ;;  %256 = vst [vmem:[#allocation2 + $0x64] sm:$0xf] %v6412_v2  ;;  %v1011_v18 = vshll.u32 %v951_v13, 16  ;;  %v1015_v19 = vshrl.u32 %v951_v13, 16 }
  0x1b   : > { %257 = vst [vmem:[#allocation2 + $0x68] sm:$0x1] %v6412_v2  ;;  %258 = vst [vmem:[#allocation2 + $0x6c] sm:$0xf] %v6412_v2  ;;  %5746 = vmatpush3.bf16.msra.mxu0 %v6291_v8  ;;  %6270 = vmatpush3.bf16.msra.mxu1 %v6291_v8  ;;  %v1021_v20 = vshll.u32 %v952_v14, 16  ;;  %v1004_v21 = vrot.slane %v1002_v15, 4 }
  0x1c   : > { %259 = vst [vmem:[#allocation2 + $0x70] sm:$0xf] %v6412_v2  ;;  %260 = vst [vmem:[#allocation2 + $0x74] sm:$0x1] %v6412_v2  ;;  %5747 = vmatprep.subr.bf16.mxu0 %v6292_v9  ;;  %6263 = vmatprep.subr.bf16.mxu1 %v6292_v9  ;;  %v1007_v22 = vrot.slane %v1005_v16, 5  ;;  %v205_v23 = vld [vmem:[%s6486_s14 + $0xb0] sm:$0xff] }
  0x1d   : > { %261 = vst [vmem:[#allocation2 + $0x78] sm:$0xf] %v6412_v2  ;;  %262 = vst [vmem:[#allocation2 + $0x7c] sm:$0xf] %v6412_v2  ;;  %v206_v24 = vld [vmem:[%s6486_s14 + $0xb8] sm:$0xff]  ;;  %v6296_v25 = vld [vmem:[%s7979_s1 + $0x70] sm:$0xff]   ;;  %v5729_v29 = vpack.c.bf16 %v205_v23, %v205_v23 }
  0x1e   : > { %263 = vst [vmem:[#allocation2 + $0x80] sm:$0x1] %v6412_v2  ;;  %264 = vst [vmem:[#allocation2 + $0x84] sm:$0xf] %v6412_v2  ;;  %v1013_v26 = vrot.slane %v1011_v18, 5  ;;  %v1017_v27 = vrot.slane %v1015_v19, 4  ;;  %v1008_v31 = vor.u32 %v1007_v22, %v1004_v21  ;;  %v5730_v32 = vpack.c.bf16 %v206_v24, %v206_v24 }
  0x1f   : > { %265 = vst [vmem:[#allocation2 + $0x88] sm:$0xf] %v6412_v2  ;;  %266 = vst [vmem:[#allocation2 + $0x8c] sm:$0x1] %v6412_v2  ;;  %5748 = vmatpush3.bf16.msra.mxu0 %v6293_v10  ;;  %6271 = vmatpush3.bf16.msra.mxu1 %v6293_v10  ;;  %v1023_v28 = vrot.slane %v1021_v20, 5  ;;  %v6297_v30 = vld [vmem:[%s7979_s1 + $0x30] sm:$0xff]  }
  0x20   : > { %267 = vst [vmem:[#allocation2 + $0x90] sm:$0xf] %v6412_v2  ;;  %268 = vst [vmem:[#allocation2 + $0x94] sm:$0xf] %v6412_v2  ;;  %5749 = vmatprep.subr.bf16.mxu0 %v6294_v11  ;;  %6264 = vmatprep.subr.bf16.mxu1 %v6294_v11  ;;  %vm365_vm4 = vsmask.f32 256  ;;  %v1018_v34 = vor.u32 %v1017_v27, %v1013_v26 }
  0x21   : > { %269 = vst [vmem:[#allocation2 + $0x98] sm:$0x1] %v6412_v2  ;;  %270 = vst [vmem:[#allocation2 + $0x9c] sm:$0xf] %v6412_v2  ;;  %vm366_vm5 = vsmask.f32 4368 }
  0x22   : > { %271 = vst [vmem:[#allocation2 + $0xa0] sm:$0xf] %v6412_v2  ;;  %272 = vst [vmem:[#allocation2 + $0xa4] sm:$0x1] %v6412_v2  ;;  %v556_v35 = vshrl.u32 %v5729_v29, 16  ;;  %v559_v36 = vshll.u32 %v5729_v29, 16 }
  0x23   : > { %273 = vst [vmem:[#allocation2 + $0xa8] sm:$0xf] %v6412_v2  ;;  %274 = vst [vmem:[#allocation2 + $0xac] sm:$0xf] %v6412_v2  ;;  %vm690_vm7 = vsmask.f32 7938  ;;  %5750 = vmatpush3.bf16.msra.mxu0 %v6295_v17  ;;  %6272 = vmatpush3.bf16.msra.mxu1 %v6295_v17 }
  0x24   : > { %275 = vst [vmem:[#allocation2 + $0xb0] sm:$0x1] %v6412_v2  ;;  %276 = vst [vmem:[#allocation2 + $0xb4] sm:$0xf] %v6412_v2  ;;  %v6298_v37 = vld [vmem:[%s7979_s1 + $0x78] sm:$0xff]   ;;  %v1009_v38 = vrot.slane %v1008_v31, 4  ;;  %5751 = vmatprep.subr.bf16.mxu0 %v6296_v25  ;;  %6265 = vmatprep.subr.bf16.mxu1 %v6296_v25 }
  0x25   : > { %277 = vst [vmem:[#allocation2 + $0xb8] sm:$0xf] %v6412_v2  ;;  %278 = vst [vmem:[#allocation2 + $0xbc] sm:$0x1] %v6412_v2  ;;  %v564_v39 = vshrl.u32 %v5730_v32, 16  ;;  %v567_v40 = vshll.u32 %v5730_v32, 16 }
  0x26   : > { %279 = vst [vmem:[#allocation2 + $0xc0] sm:$0xf] %v6412_v2  ;;  %280 = vst [vmem:[#allocation2 + $0xc4] sm:$0xf] %v6412_v2  ;;  %v1019_v42 = vrot.slane %v1018_v34, 4  ;;  %v558_v44 = vrot.slane %v556_v35, 7 }
  0x27   : > { %281 = vst [vmem:[#allocation2 + $0xc8] sm:$0x1] %v6412_v2  ;;  %282 = vst [vmem:[#allocation2 + $0xcc] sm:$0xf] %v6412_v2  ;;  %v771_v41 = vld [vmem:[#allocation2 + $0x90] sm:$0xf]  ;;  %5752 = vmatpush3.bf16.msra.mxu0 %v6297_v30  ;;  %6273 = vmatpush3.bf16.msra.mxu1 %v6297_v30 }
  0x28   : > { %283 = vst [vmem:[#allocation2 + $0xd0] sm:$0xf] %v6412_v2  ;;  %284 = vst [vmem:[#allocation2 + $0xd4] sm:$0x1] %v6412_v2  ;;  %v775_v45 = vld [vmem:[#allocation2 + $0x98] sm:$0x1]  ;;  %v561_v51 = vor.u32 %v559_v36, %v558_v44  ;;  %5753 = vmatprep.subr.bf16.mxu0 %v6298_v37  ;;  %6266 = vmatprep.subr.bf16.mxu1 %v6298_v37 }
  0x29   : > { %vm6501_vm6 = vmor %vm998_vm2, %vm999_vm3  ;;  %v6299_v46 = vld [vmem:[%s7979_s1 + $0x38] sm:$0xff]   ;;  %v566_v48 = vrot.slane %v564_v39, 7  ;;  %v562_v52 = vrot.slane %v558_v44, 4  ;;  %v6301_v57 = vld [vmem:[%s7979_s1 + $0xc0] sm:$0xff]   ;;  %vm1561_vm11 = vcmask 1042432   ;;  %vm1562_vm12 = vcmask 1046532  }
  0x2a   : > { %vm6510_vm8 = vmor %vm365_vm4, %vm366_vm5  ;;  %v1014_v47 = vsel %vm6501_vm6, %v1009_v38, %v1013_v26  ;;  %v1024_v50 = vsel %vm6501_vm6, %v1019_v42, %v1023_v28  ;;  %v6302_v59 = vld [vmem:[%s7979_s1 + $0x140] sm:$0xff]   ;;  %v184_v63 = vld [vmem:[%s6486_s14 + $0x8] sm:$0xff]  ;;  %s5406_s5 = sshll.u32 %s8021_s13, 1 }
  0x2b   : > { %vm6521_vm9 = vmand %vm689_vm0, %vm690_vm7  ;;  %v5455_v54 = vcombine.low %v1014_v47, %v1024_v50  ;;  %v569_v55 = vor.u32 %v567_v40, %v566_v48  ;;  %v571_v56 = vrot.slane %v566_v48, 4  ;;  %v183_v62 = vld [vmem:[%s6486_s14] sm:$0xff]  ;;  %v5708_v2 = vpack.c.bf16 %v184_v63, %v184_v63  ;;  %v208_v4 = vld [vmem:[%s6486_s14 + $0xc8] sm:$0xff]  ;;  %5754 = vmatpush3.bf16.msra.mxu0 %v6299_v46  ;;  %6274 = vmatpush3.bf16.msra.mxu1 %v6299_v46  ;;  %s181_s26 = scalar_lea.vmem %s7981_s3, %s5406_s5 }
  0x2c   : > { %vm6529_vm10 = vmand %vm696_vm1, %vm365_vm4  ;;  %v772_v58 = vsel %vm6521_vm9, %v561_v51, %v771_v41  ;;  %v6300_v0 = vld [vmem:[#allocation2] sm:$0xff]   ;;  %v5707_v1 = vpack.c.bf16 %v183_v62, %v183_v62  ;;  %v5732_v7 = vpack.c.bf16 %v208_v4, %v208_v4  ;;  %5851 = vmatprep.subr.bf16.mxu1 %v6301_v57  ;;  %5963 = vmatprep.subr.bf16.mxu0 %v6302_v59  ;;  %v692_v18 = vld [vmem:[#allocation2 + $0xc] sm:$0xf] }
  0x2d   : > { %4397 = vmatprep.mubr.bf16.mxu0 %v5455_v54  ;;  %v570_v60 = vsel %vm6510_vm8, %v562_v52, %v569_v55  ;;  %773 = vst [vmem:[#allocation2 + $0x90] sm:$0xf] %v772_v58  ;;  %v776_v61 = vsel %vm6529_vm10, %v571_v56, %v775_v45  ;;  %v207_v3 = vld [vmem:[%s6486_s14 + $0xc0] sm:$0xff]  ;;  %v377_v10 = vshrl.u32 %v5708_v2, 16  ;;  %v380_v11 = vshll.u32 %v5708_v2, 16  ;;  %v6313_v45 = vld [vmem:[%s7979_s1 + $0x148] sm:$0xff]   ;;  %vm6724_vm13 = vmor %vm1561_vm11, %vm1562_vm12 }
  0x2e   : > { %774 = vst [vmem:[#allocation2 + $0x94] sm:$0xf] %v570_v60  ;;  %777 = vst [vmem:[#allocation2 + $0x98] sm:$0x1] %v776_v61  ;;  %v6305_v5 = vld [vmem:[%s7979_s1 + $0x100] sm:$0xff]   ;;  %v5731_v6 = vpack.c.bf16 %v207_v3, %v207_v3  ;;  %v369_v8 = vshrl.u32 %v5707_v1, 16  ;;  %4398 = vmatmul.mubr.bf16.vlgmr.msra.gmra.mrb[0].mxu0 %v6300_v0 }
  0x2f   : > { %v372_v9 = vshll.u32 %v5707_v1, 16  ;;  %v581_v14 = vshrl.u32 %v5732_v7, 16  ;;  %v584_v15 = vshll.u32 %v5732_v7, 16  ;;  %v379_v17 = vrot.slane %v377_v10, 7  ;;  %v698_v19 = vld [vmem:[#allocation2 + $0x14] sm:$0x1]  ;;  %5964 = vmatpush3.bf16.msra.mxu0 %v6305_v5 }
  0x30   : > { %v573_v12 = vshrl.u32 %v5731_v6, 16  ;;  %v576_v13 = vshll.u32 %v5731_v6, 16  ;;  %v371_v16 = vrot.slane %v369_v8, 7  ;;  %v778_v27 = vld [vmem:[#allocation2 + $0x9c] sm:$0xf]  ;;  %5965 = vmatprep.subr.bf16.mxu0 %v6313_v45  ;;  %v6315_v57 = vld [vmem:[%s7979_s1 + $0x108] sm:$0xff]  }
  0x31   : > { %v583_v21 = vrot.slane %v581_v14, 7  ;;  %v382_v25 = vor.u32 %v380_v11, %v379_v17  ;;  %v384_v26 = vrot.slane %v379_v17, 4  ;;  %v782_v39 = vld [vmem:[#allocation2 + $0xa4] sm:$0x1]  ;;  %v185_v60 = vld [vmem:[%s6486_s14 + $0x10] sm:$0xff]  ;;  %v186_v62 = vld [vmem:[%s6486_s14 + $0x18] sm:$0xff] }
  0x32   : > { %v575_v20 = vrot.slane %v573_v12, 7  ;;  %v374_v23 = vor.u32 %v372_v9, %v371_v16  ;;  %v375_v24 = vrot.slane %v371_v16, 4  ;;  %v5709_v63 = vpack.c.bf16 %v185_v60, %v185_v60  ;;  %v6304_v2 = vld [vmem:[%s7979_s1 + $0x80] sm:$0xff]   ;;  %v209_v3 = vld [vmem:[%s6486_s14 + $0xd0] sm:$0xff]  ;;  %v6306_v5 = vld [vmem:[%s7979_s1 + $0xc8] sm:$0xff]  }
  0x33   : > { %v586_v34 = vor.u32 %v584_v15, %v583_v21  ;;  %v699_v44 = vsel %vm6529_vm10, %v384_v26, %v698_v19  ;;  %v588_v51 = vrot.slane %v583_v21, 4  ;;  %5966 = vmatpush3.bf16.msra.mxu0 %v6315_v57  ;;  %v210_v8 = vld [vmem:[%s6486_s14 + $0xd8] sm:$0xff]  ;;  %v6584_v14 = vpack.c.bf16 %v186_v62, %v186_v62 }
  0x34   : > { %v986_v22 = vld [vmem:[#allocation2 + $0x90] sm:$0xf]  ;;  %v578_v32 = vor.u32 %v576_v13, %v575_v20  ;;  %v383_v38 = vsel %vm6510_vm8, %v375_v24, %v382_v25  ;;  %v693_v42 = vsel %vm6521_vm9, %v374_v23, %v692_v18  ;;  %700 = vst [vmem:[#allocation2 + $0x14] sm:$0x1] %v699_v44  ;;  %v579_v48 = vrot.slane %v575_v20, 4 }
  0x35   : > { %v987_v28 = vld [vmem:[#allocation2 + $0x94] sm:$0xf]  ;;  %v988_v29 = vld [vmem:[#allocation2 + $0x98] sm:$0x1]  ;;  %v1290_v30 = vshrl.u32 %v986_v22, 16  ;;  %v1293_v31 = vshll.u32 %v986_v22, 16  ;;  %v783_v59 = vsel %vm6529_vm10, %v588_v51, %v782_v39  ;;  %v6586_v22 = vpack.c.bf16 %v209_v3, %v209_v3 }
  0x36   : > { %v1299_v35 = vshll.u32 %v987_v28, 16  ;;  %v1303_v36 = vshrl.u32 %v987_v28, 16  ;;  %v1309_v37 = vshll.u32 %v988_v29, 16  ;;  %695 = vst [vmem:[#allocation2 + $0x10] sm:$0xf] %v383_v38  ;;  %v779_v52 = vsel %vm6521_vm9, %v578_v32, %v778_v27  ;;  %v6303_v1 = vld [vmem:[#allocation2 + $0x90] sm:$0xff]  }
  0x37   : > { %v1292_v40 = vrot.slane %v1290_v30, 4  ;;  %v1295_v41 = vrot.slane %v1293_v31, 5  ;;  %694 = vst [vmem:[#allocation2 + $0xc] sm:$0xf] %v693_v42  ;;  %v587_v56 = vsel %vm6510_vm8, %v579_v48, %v586_v34  ;;  %780 = vst [vmem:[#allocation2 + $0x9c] sm:$0xf] %v779_v52  ;;  %v6588_v23 = vpack.c.bf16 %v210_v8, %v210_v8 }
  0x38   : > { %v1301_v46 = vrot.slane %v1299_v35, 5  ;;  %v1305_v47 = vrot.slane %v1303_v36, 4  ;;  %v1311_v55 = vrot.slane %v1309_v37, 5  ;;  %781 = vst [vmem:[#allocation2 + $0xa0] sm:$0xf] %v587_v56  ;;  %v386_v7 = vshrl.u32 %v5709_v63, 16 }
  0x39   : > { %v1296_v50 = vor.u32 %v1295_v41, %v1292_v40  ;;  %784 = vst [vmem:[#allocation2 + $0xa4] sm:$0x1] %v783_v59  ;;  %v389_v18 = vshll.u32 %v5709_v63, 16  ;;  %v6307_v29 = vld [vmem:[%s7979_s1 + $0x88] sm:$0xff]   ;;  %v701_v36 = vld [vmem:[#allocation2 + $0x18] sm:$0xf] }
  0x3a   : > { %v1306_v54 = vor.u32 %v1305_v47, %v1301_v46  ;;  %v6309_v40 = vld [vmem:[%s7979_s1 + $0xd0] sm:$0xff]   ;;  %v388_v41 = vrot.slane %v386_v7, 7  ;;  %v6312_v51 = vld [vmem:[%s7979_s1 + $0xd8] sm:$0xff]   ;;  %v394_v59 = vshrl.u32 %v6584_v14, 16  ;;  %v705_v63 = vld [vmem:[#allocation2 + $0x20] sm:$0x1] }
  0x3b   : > { %v1297_v58 = vrot.slane %v1296_v50, 4  ;;  %v955_v11 = vld [vmem:[#allocation2 + $0x14] sm:$0x1]  ;;  %v598_v7 = vshrl.u32 %v6588_v23, 16  ;;  %v601_v8 = vshll.u32 %v6588_v23, 16 }
  0x3c   : > { %v1307_v61 = vrot.slane %v1306_v54, 4  ;;  %v1045_v17 = vshll.u32 %v955_v11, 16  ;;  %v6311_v47 = vld [vmem:[%s7979_s1 + $0x90] sm:$0xff]   ;;  %v391_v52 = vor.u32 %v389_v18, %v388_v41  ;;  %v392_v54 = vrot.slane %v388_v41, 4 }
  0x3d   : > { %v1302_v0 = vsel %vm6501_vm6, %v1297_v58, %v1301_v46  ;;  %v954_v6 = vld [vmem:[#allocation2 + $0x10] sm:$0xf] }
  0x3e   : > { %v1312_v4 = vsel %vm6501_vm6, %v1307_v61, %v1311_v55  ;;  %v953_v10 = vld [vmem:[#allocation2 + $0xc] sm:$0xf]  ;;  %v1035_v12 = vshll.u32 %v954_v6, 16  ;;  %v1039_v13 = vshrl.u32 %v954_v6, 16  ;;  %v989_v21 = vld [vmem:[#allocation2 + $0x9c] sm:$0xf]  ;;  %v702_v62 = vsel %vm6521_vm9, %v391_v52, %v701_v36 }
  0x3f   : > { %v5467_v9 = vcombine.low %v1302_v0, %v1312_v4  ;;  %v1026_v15 = vshrl.u32 %v953_v10, 16  ;;  %v1029_v16 = vshll.u32 %v953_v10, 16  ;;  %v1047_v26 = vrot.slane %v1045_v17, 5  ;;  %v990_v27 = vld [vmem:[#allocation2 + $0xa0] sm:$0xf]  ;;  %v6308_v56 = vld [vmem:[#allocation2 + $0xc] sm:$0xff]  }
  0x40   : > { %v1037_v19 = vrot.slane %v1035_v12, 5  ;;  %v1041_v20 = vrot.slane %v1039_v13, 4  ;;  %v1314_v28 = vshrl.u32 %v989_v21, 16  ;;  %v991_v31 = vld [vmem:[#allocation2 + $0xa4] sm:$0x1]  ;;  %v1317_v32 = vshll.u32 %v989_v21, 16 }
  0x41   : > { %4493 = vmatprep.mubr.bf16.mxu1 %v5467_v9  ;;  %v1028_v24 = vrot.slane %v1026_v15, 4  ;;  %v1031_v25 = vrot.slane %v1029_v16, 5  ;;  %v1323_v34 = vshll.u32 %v990_v27, 16  ;;  %v1327_v35 = vshrl.u32 %v990_v27, 16  ;;  %703 = vst [vmem:[#allocation2 + $0x18] sm:$0xf] %v702_v62 }
  0x42   : > { %4494 = vmatmul.mubr.bf16.vlgmr.msra.gmra.mrb[0].mxu1 %v6303_v1  ;;  %v1042_v30 = vor.u32 %v1041_v20, %v1037_v19  ;;  %v1316_v38 = vrot.slane %v1314_v28, 4  ;;  %v1333_v39 = vshll.u32 %v991_v31, 16  ;;  %v1319_v44 = vrot.slane %v1317_v32, 5  ;;  %v187_v9 = vld [vmem:[%s6486_s14 + $0x20] sm:$0xff]  ;;  %v188_v10 = vld [vmem:[%s6486_s14 + $0x28] sm:$0xff]  ;;  %v6324_v36 = vld [vmem:[%s7979_s1 + $0x150] sm:$0xff]  }
  0x43   : > { %5852 = vmatpush3.bf16.msra.mxu1 %v6304_v2  ;;  %v1032_v37 = vor.u32 %v1031_v25, %v1028_v24  ;;  %v1325_v45 = vrot.slane %v1323_v34, 5  ;;  %v1329_v46 = vrot.slane %v1327_v35, 4  ;;  %v397_v61 = vshll.u32 %v6584_v14, 16  ;;  %v6310_v13 = vld [vmem:[#allocation2 + $0x9c] sm:$0xff]   ;;  %v785_v16 = vld [vmem:[#allocation2 + $0xa8] sm:$0xf]  ;;  %5967 = vmatprep.subr.bf16.mxu0 %v6324_v36 }
  0x44   : > { %5853 = vmatprep.subr.bf16.mxu1 %v6306_v5  ;;  %v1043_v42 = vrot.slane %v1042_v30, 4  ;;  %v1335_v50 = vrot.slane %v1333_v39, 5  ;;  %v1320_v57 = vor.u32 %v1319_v44, %v1316_v38  ;;  %v590_v0 = vshrl.u32 %v6586_v22, 16  ;;  %v211_v17 = vld [vmem:[%s6486_s14 + $0xe0] sm:$0xff]  ;;  %v789_v23 = vld [vmem:[#allocation2 + $0xb0] sm:$0x1] }
  0x45   : > { %v1033_v48 = vrot.slane %v1032_v37, 4  ;;  %v1330_v58 = vor.u32 %v1329_v46, %v1325_v45  ;;  %v396_v4 = vrot.slane %v394_v59, 7  ;;  %v593_v6 = vshll.u32 %v6586_v22, 16  ;;  %v6317_v24 = vld [vmem:[%s7979_s1 + $0xe0] sm:$0xff]  }
  0x46   : > { %v1048_v55 = vsel %vm6501_vm6, %v1043_v42, %v1047_v26  ;;  %v1321_v2 = vrot.slane %v1320_v57, 4  ;;  %v592_v5 = vrot.slane %v590_v0, 7  ;;  %v600_v22 = vrot.slane %v598_v7, 7  ;;  %v6319_v34 = vld [vmem:[%s7979_s1 + $0xa0] sm:$0xff]  }
  0x47   : > { %5854 = vmatpush3.bf16.msra.mxu1 %v6307_v29  ;;  %v1038_v60 = vsel %vm6501_vm6, %v1033_v48, %v1037_v19  ;;  %v1331_v3 = vrot.slane %v1330_v58, 4  ;;  %v399_v14 = vor.u32 %v397_v61, %v396_v4  ;;  %v401_v15 = vrot.slane %v396_v4, 4  ;;  %v6314_v19 = vld [vmem:[%s7979_s1 + $0x98] sm:$0xff]   ;;  %v212_v29 = vld [vmem:[%s6486_s14 + $0xe8] sm:$0xff]  ;;  %v708_v46 = vld [vmem:[#allocation2 + $0x24] sm:$0xf] }
  0x48   : > { %5855 = vmatprep.subr.bf16.mxu1 %v6309_v40  ;;  %v5456_v1 = vcombine.low %v1038_v60, %v1048_v55  ;;  %v1326_v11 = vsel %vm6501_vm6, %v1321_v2, %v1325_v45  ;;  %v595_v20 = vor.u32 %v593_v6, %v592_v5  ;;  %v596_v21 = vrot.slane %v592_v5, 4  ;;  %v956_v41 = vld [vmem:[#allocation2 + $0x18] sm:$0xf]  ;;  %v6320_v45 = vld [vmem:[%s7979_s1 + $0xe8] sm:$0xff]   ;;  %v6323_v2 = vld [vmem:[%s7979_s1 + $0xf0] sm:$0xff]  }
  0x49   : > { %v1336_v12 = vsel %vm6501_vm6, %v1331_v3, %v1335_v50  ;;  %v400_v25 = vsel %vm6510_vm8, %v392_v54, %v399_v14  ;;  %v706_v26 = vsel %vm6529_vm10, %v401_v15, %v705_v63  ;;  %v5711_v27 = vpack.c.bf16 %v187_v9, %v187_v9  ;;  %v6321_v55 = vld [vmem:[%s7979_s1 + $0xa8] sm:$0xff]   ;;  %v6327_v3 = vld [vmem:[%s7979_s1 + $0x110] sm:$0xff]  }
  0x4a   : > { %4405 = vmatprep.mubr.bf16.mxu0 %v5456_v1  ;;  %v5468_v18 = vcombine.low %v1326_v11, %v1336_v12  ;;  %v5712_v28 = vpack.c.bf16 %v188_v10, %v188_v10  ;;  %704 = vst [vmem:[#allocation2 + $0x1c] sm:$0xf] %v400_v25  ;;  %707 = vst [vmem:[#allocation2 + $0x20] sm:$0x1] %v706_v26  ;;  %v603_v30 = vor.u32 %v601_v8, %v600_v22  ;;  %v792_v1 = vld [vmem:[#allocation2 + $0xb4] sm:$0xf] }
  0x4b   : > { %5856 = vmatpush3.bf16.msra.mxu1 %v6311_v47  ;;  %4406 = vmatmul.mubr.bf16.gmra.mrb[4].mxu0 %v6308_v56  ;;  %v605_v31 = vrot.slane %v600_v22, 4  ;;  %v786_v32 = vsel %vm6521_vm9, %v595_v20, %v785_v16  ;;  %v5735_v35 = vpack.c.bf16 %v211_v17, %v211_v17  ;;  %v403_v37 = vshrl.u32 %v5711_v27, 16  ;;  %v712_v56 = vld [vmem:[#allocation2 + $0x2c] sm:$0x1] }
  0x4c   : > { %5857 = vmatprep.subr.bf16.mxu1 %v6312_v51  ;;  %4501 = vmatprep.mubr.bf16.mxu1 %v5468_v18  ;;  %787 = vst [vmem:[#allocation2 + $0xa8] sm:$0xf] %v786_v32  ;;  %v406_v38 = vshll.u32 %v5711_v27, 16  ;;  %v411_v39 = vshrl.u32 %v5712_v28, 16  ;;  %v414_v40 = vshll.u32 %v5712_v28, 16  ;;  %v604_v42 = vsel %vm6510_vm8, %v596_v21, %v603_v30  ;;  %v6326_v21 = vld [vmem:[%s7979_s1 + $0xb0] sm:$0xff]  }
  0x4d   : > { %4502 = vmatmul.mubr.bf16.gmra.mrb[4].mxu1 %v6310_v13  ;;  %v790_v44 = vsel %vm6529_vm10, %v605_v31, %v789_v23  ;;  %v6647_v47 = vpack.c.bf16 %v212_v29, %v212_v29  ;;  %v607_v48 = vshrl.u32 %v5735_v35, 16  ;;  %v1050_v50 = vshrl.u32 %v956_v41, 16  ;;  %788 = vst [vmem:[#allocation2 + $0xac] sm:$0xf] %v604_v42  ;;  %5968 = vmatpush3.bf16.msra.mxu0 %v6327_v3  ;;  %v6328_v27 = vld [vmem:[%s7979_s1 + $0xf8] sm:$0xff]  }
  0x4e   : > { %v1053_v51 = vshll.u32 %v956_v41, 16  ;;  %791 = vst [vmem:[#allocation2 + $0xb0] sm:$0x1] %v790_v44  ;;  %v405_v52 = vrot.slane %v403_v37, 7  ;;  %v413_v54 = vrot.slane %v411_v39, 7  ;;  %v610_v58 = vshll.u32 %v5735_v35, 16 }
  0x4f   : > { %5858 = vmatpush3.bf16.msra.mxu1 %v6314_v19  ;;  %v6652_v57 = vrot.slane %v607_v48, 7  ;;  %v615_v59 = vshrl.u32 %v6647_v47, 16  ;;  %v618_v60 = vshll.u32 %v6647_v47, 16  ;;  %v1052_v61 = vrot.slane %v1050_v50, 4  ;;  %v189_v41 = vld [vmem:[%s6486_s14 + $0x30] sm:$0xff]  ;;  %v6329_v48 = vld [vmem:[%s7979_s1 + $0xb8] sm:$0xff]  }
  0x50   : > { %5859 = vmatprep.subr.bf16.mxu1 %v6317_v24  ;;  %v1055_v62 = vrot.slane %v1053_v51, 5  ;;  %v408_v63 = vor.u32 %v406_v38, %v405_v52  ;;  %v409_v0 = vrot.slane %v405_v52, 4  ;;  %v416_v4 = vor.u32 %v414_v40, %v413_v54  ;;  %v796_v47 = vld [vmem:[#allocation2 + $0xbc] sm:$0x1] }
  0x51   : > { %v418_v5 = vrot.slane %v413_v54, 4  ;;  %v612_v6 = vor.u32 %v610_v58, %v6652_v57  ;;  %v613_v7 = vrot.slane %v6652_v57, 4  ;;  %v957_v8 = vld [vmem:[#allocation2 + $0x1c] sm:$0xf]  ;;  %v958_v9 = vld [vmem:[#allocation2 + $0x20] sm:$0x1] }
  0x52   : > { %v1056_v10 = vor.u32 %v1055_v62, %v1052_v61  ;;  %v709_v11 = vsel %vm6521_vm9, %v408_v63, %v708_v46  ;;  %v1059_v12 = vshll.u32 %v957_v8, 16  ;;  %v1063_v13 = vshrl.u32 %v957_v8, 16  ;;  %v190_v50 = vld [vmem:[%s6486_s14 + $0x38] sm:$0xff] }
  0x53   : > { %5860 = vmatpush3.bf16.msra.mxu1 %v6319_v34  ;;  %v1069_v14 = vshll.u32 %v958_v9, 16  ;;  %v992_v15 = vld [vmem:[#allocation2 + $0xa8] sm:$0xf]  ;;  %v417_v16 = vsel %vm6510_vm8, %v409_v0, %v416_v4  ;;  %710 = vst [vmem:[#allocation2 + $0x24] sm:$0xf] %v709_v11  ;;  %v713_v20 = vsel %vm6529_vm10, %v418_v5, %v712_v56  ;;  %v793_v26 = vsel %vm6521_vm9, %v612_v6, %v792_v1  ;;  %v6316_v51 = vld [vmem:[#allocation2 + $0x18] sm:$0xff]  }
  0x54   : > { %5861 = vmatprep.subr.bf16.mxu1 %v6320_v45  ;;  %v1057_v17 = vrot.slane %v1056_v10, 4  ;;  %v1338_v18 = vshrl.u32 %v992_v15, 16  ;;  %v1341_v19 = vshll.u32 %v992_v15, 16  ;;  %711 = vst [vmem:[#allocation2 + $0x28] sm:$0xf] %v417_v16  ;;  %v1061_v22 = vrot.slane %v1059_v12, 5 }
  0x55   : > { %v1065_v23 = vrot.slane %v1063_v13, 4  ;;  %v1071_v24 = vrot.slane %v1069_v14, 5  ;;  %v993_v25 = vld [vmem:[#allocation2 + $0xac] sm:$0xf]  ;;  %714 = vst [vmem:[#allocation2 + $0x2c] sm:$0x1] %v713_v20  ;;  %v5713_v56 = vpack.c.bf16 %v189_v41, %v189_v41  ;;  %v6685_v57 = vpack.c.bf16 %v190_v50, %v190_v50 }
  0x56   : > { %v994_v28 = vld [vmem:[#allocation2 + $0xb0] sm:$0x1]  ;;  %v1340_v29 = vrot.slane %v1338_v18, 4  ;;  %v1343_v30 = vrot.slane %v1341_v19, 5  ;;  %v1347_v31 = vshll.u32 %v993_v25, 16  ;;  %v1351_v32 = vshrl.u32 %v993_v25, 16 }
  0x57   : > { %5862 = vmatpush3.bf16.msra.mxu1 %v6321_v55  ;;  %794 = vst [vmem:[#allocation2 + $0xb4] sm:$0xf] %v793_v26  ;;  %v1066_v34 = vor.u32 %v1065_v23, %v1061_v22  ;;  %v1357_v35 = vshll.u32 %v994_v28, 16  ;;  %v617_v36 = vrot.slane %v615_v59, 7  ;;  %v1062_v37 = vsel %vm6501_vm6, %v1057_v17, %v1061_v22  ;;  %v6332_v4 = vld [vmem:[%s7979_s1 + $0x1c0] sm:$0xff]   ;;  %v6318_v11 = vld [vmem:[#allocation2 + $0xa8] sm:$0xff]  }
  0x58   : > { %5863 = vmatprep.subr.bf16.mxu1 %v6323_v2  ;;  %v1344_v38 = vor.u32 %v1343_v30, %v1340_v29  ;;  %v1349_v39 = vrot.slane %v1347_v31, 5  ;;  %v1353_v40 = vrot.slane %v1351_v32, 4  ;;  %v420_v20 = vshrl.u32 %v5713_v56, 16  ;;  %v715_v28 = vld [vmem:[#allocation2 + $0x30] sm:$0xf] }
  0x59   : > { %v1067_v42 = vrot.slane %v1066_v34, 4  ;;  %v1359_v44 = vrot.slane %v1357_v35, 5  ;;  %v620_v45 = vor.u32 %v618_v60, %v617_v36  ;;  %v622_v46 = vrot.slane %v617_v36, 4  ;;  %v1465_v34 = vld [vmem:[#allocation2] sm:$0xe] }
  0x5a   : > { %v1345_v52 = vrot.slane %v1344_v38, 4  ;;  %v1354_v54 = vor.u32 %v1353_v40, %v1349_v39  ;;  %v959_v55 = vld [vmem:[#allocation2 + $0x24] sm:$0xf]  ;;  %v428_v25 = vshrl.u32 %v6685_v57, 16  ;;  %v431_v32 = vshll.u32 %v6685_v57, 16 }
  0x5b   : > { %5864 = vmatpush3.bf16.msra.mxu1 %v6326_v21  ;;  %v1072_v58 = vsel %vm6501_vm6, %v1067_v42, %v1071_v24  ;;  %v960_v59 = vld [vmem:[#allocation2 + $0x28] sm:$0xf]  ;;  %v1074_v60 = vshrl.u32 %v959_v55, 16  ;;  %v1077_v61 = vshll.u32 %v959_v55, 16  ;;  %v621_v62 = vsel %vm6510_vm8, %v613_v7, %v620_v45  ;;  %v1466_v40 = vld [vmem:[#allocation2 + $0x4] sm:$0xf] }
  0x5c   : > { %5865 = vmatprep.subr.bf16.mxu1 %v6328_v27  ;;  %v5457_v63 = vcombine.low %v1062_v37, %v1072_v58  ;;  %v1350_v0 = vsel %vm6501_vm6, %v1345_v52, %v1349_v39  ;;  %v1355_v1 = vrot.slane %v1354_v54, 4  ;;  %v961_v2 = vld [vmem:[#allocation2 + $0x2c] sm:$0x1]  ;;  %v1083_v3 = vshll.u32 %v960_v59, 16  ;;  %795 = vst [vmem:[#allocation2 + $0xb8] sm:$0xf] %v621_v62 }
  0x5d   : > { %v1076_v5 = vrot.slane %v1074_v60, 4  ;;  %v1079_v6 = vrot.slane %v1077_v61, 5  ;;  %v1087_v8 = vshrl.u32 %v960_v59, 16  ;;  %v1093_v9 = vshll.u32 %v961_v2, 16  ;;  %v719_v39 = vld [vmem:[#allocation2 + $0x38] sm:$0x1] }
  0x5e   : > { %v995_v10 = vld [vmem:[#allocation2 + $0xb4] sm:$0xf]  ;;  %4413 = vmatprep.mubr.bf16.mxu0 %v5457_v63  ;;  %v1360_v7 = vsel %vm6501_vm6, %v1355_v1, %v1359_v44  ;;  %v1085_v12 = vrot.slane %v1083_v3, 5  ;;  %v797_v13 = vsel %vm6529_vm10, %v622_v46, %v796_v47  ;;  %v423_v21 = vshll.u32 %v5713_v56, 16  ;;  %v6322_v42 = vld [vmem:[#allocation2 + $0x24] sm:$0xff]   ;;  %v6334_v47 = vld [vmem:[%s7979_s1 + $0x158] sm:$0xff]  }
  0x5f   : > { %5866 = vmatpush3.bf16.msra.mxu1 %v6329_v48  ;;  %v1362_v14 = vshrl.u32 %v995_v10, 16  ;;  %4414 = vmatmul.mubr.bf16.gmra.mrb[8].mxu0 %v6316_v51  ;;  %v5469_v15 = vcombine.low %v1350_v0, %v1360_v7  ;;  %v1080_v16 = vor.u32 %v1079_v6, %v1076_v5  ;;  %v1089_v17 = vrot.slane %v1087_v8, 4  ;;  %798 = vst [vmem:[#allocation2 + $0xbc] sm:$0x1] %v797_v13  ;;  %v1467_v46 = vld [vmem:[#allocation2 + $0x8] sm:$0x1] }
  0x60   : > { %6075 = vmatprep.subr.bf16.mxu1 %v6332_v4  ;;  %v1365_v19 = vshll.u32 %v995_v10, 16  ;;  %v1095_v24 = vrot.slane %v1093_v9, 5  ;;  %v422_v27 = vrot.slane %v420_v20, 7  ;;  %v430_v45 = vrot.slane %v428_v25, 7  ;;  %v6335_v55 = vld [vmem:[%s7979_s1 + $0x118] sm:$0xff]   ;;  %5969 = vmatprep.subr.bf16.mxu0 %v6334_v47  ;;  %v191_v3 = vld [vmem:[%s6486_s14 + $0x40] sm:$0xff] }
  0x61   : > { %v1364_v18 = vrot.slane %v1362_v14, 4  ;;  %4509 = vmatprep.mubr.bf16.mxu1 %v5469_v15  ;;  %v1081_v22 = vrot.slane %v1080_v16, 4  ;;  %v1090_v23 = vor.u32 %v1089_v17, %v1085_v12  ;;  %v5471_v61 = vrot.slane %v1465_v34, 9  ;;  %5970 = vmatpush3.bf16.msra.mxu0 %v6335_v55  ;;  %v192_v4 = vld [vmem:[%s6486_s14 + $0x48] sm:$0xff]  ;;  %v6732_v16 = vld [vmem:[#allocation2 + $0x10] sm:$0xf] }
  0x62   : > { %4510 = vmatmul.mubr.bf16.gmra.mrb[8].mxu1 %v6318_v11  ;;  %v1367_v26 = vrot.slane %v1365_v19, 5  ;;  %v425_v38 = vor.u32 %v423_v21, %v422_v27  ;;  %v426_v44 = vrot.slane %v422_v27, 4  ;;  %v433_v57 = vor.u32 %v431_v32, %v430_v45  ;;  %v6734_v17 = vld [vmem:[#allocation2 + $0x14] sm:$0x1]  ;;  %v6331_v19 = vld [vmem:[#allocation2 + $0xc] sm:$0xff]  }
  0x63   : > { %v1086_v29 = vsel %vm6501_vm6, %v1081_v22, %v1085_v12  ;;  %v1091_v30 = vrot.slane %v1090_v23, 4  ;;  %v996_v31 = vld [vmem:[#allocation2 + $0xb8] sm:$0xf]  ;;  %v435_v58 = vrot.slane %v430_v45, 4  ;;  %v1566_v62 = vrot.slane %v1466_v40, 5 }
  0x64   : > { %v1368_v35 = vor.u32 %v1367_v26, %v1364_v18  ;;  %v1371_v36 = vshll.u32 %v996_v31, 16  ;;  %v1375_v37 = vshrl.u32 %v996_v31, 16  ;;  %v716_v59 = vsel %vm6521_vm9, %v425_v38, %v715_v28  ;;  %v6325_v7 = vld [vmem:[#allocation2 + $0xb4] sm:$0xff]   ;;  %v6728_v12 = vld [vmem:[#allocation2 + $0xc] sm:$0xe]  ;;  %v6340_v38 = vld [vmem:[%s7979_s1 + $0x160] sm:$0xff]  }
  0x65   : > { %v1096_v41 = vsel %vm6501_vm6, %v1091_v30, %v1095_v24  ;;  %717 = vst [vmem:[#allocation2 + $0x30] sm:$0xf] %v716_v59  ;;  %v434_v1 = vsel %vm6510_vm8, %v426_v44, %v433_v57  ;;  %v720_v2 = vsel %vm6529_vm10, %v435_v58, %v719_v39  ;;  %v1568_v8 = vrot.slane %v1566_v62, 4  ;;  %v722_v25 = vld [vmem:[#allocation2 + $0x3c] sm:$0xf]  ;;  %v193_v28 = vld [vmem:[%s6486_s14 + $0x50] sm:$0xff]  ;;  %5971 = vmatprep.subr.bf16.mxu0 %v6340_v38 }
  0x66   : > { %v5458_v48 = vcombine.low %v1086_v29, %v1096_v41  ;;  %v997_v50 = vld [vmem:[#allocation2 + $0xbc] sm:$0x1]  ;;  %v1369_v51 = vrot.slane %v1368_v35, 4  ;;  %v1373_v52 = vrot.slane %v1371_v36, 5  ;;  %v1377_v54 = vrot.slane %v1375_v37, 4 }
  0x67   : > { %v1381_v56 = vshll.u32 %v997_v50, 16  ;;  %718 = vst [vmem:[#allocation2 + $0x34] sm:$0xf] %v434_v1  ;;  %721 = vst [vmem:[#allocation2 + $0x38] sm:$0x1] %v720_v2  ;;  %v1569_v9 = vrot.slane %v1467_v46, 5  ;;  %v5715_v10 = vpack.c.bf16 %v191_v3, %v191_v3  ;;  %v5716_v11 = vpack.c.bf16 %v192_v4, %v192_v4 }
  0x68   : > { %4421 = vmatprep.mubr.bf16.mxu0 %v5458_v48  ;;  %v1378_v60 = vor.u32 %v1377_v54, %v1373_v52  ;;  %v1374_v63 = vsel %vm6501_vm6, %v1369_v51, %v1373_v52  ;;  %v6738_v20 = vsel %vm6724_vm13, %v5471_v61, %v1566_v62  ;;  %v5472_v26 = vrot.slane %v6728_v12, 9  ;;  %v194_v29 = vld [vmem:[%s6486_s14 + $0x58] sm:$0xff]  ;;  %v726_v51 = vld [vmem:[#allocation2 + $0x44] sm:$0x1]  ;;  %v6341_v4 = vld [vmem:[%s7979_s1 + $0x1c8] sm:$0xff]  }
  0x69   : > { %4422 = vmatmul.mubr.bf16.gmra.mrb[12].mxu0 %v6322_v42  ;;  %v1383_v0 = vrot.slane %v1381_v56, 5  ;;  %v437_v14 = vshrl.u32 %v5715_v10, 16  ;;  %v440_v15 = vshll.u32 %v5715_v10, 16  ;;  %v445_v21 = vshrl.u32 %v5716_v11, 16  ;;  %v6333_v54 = vld [vmem:[%s7979_s1 + $0x180] sm:$0xff]   ;;  %v6337_v58 = vld [vmem:[#allocation2 + $0x18] sm:$0xff]  }
  0x6a   : > { %v1379_v5 = vrot.slane %v1378_v60, 4  ;;  %v448_v22 = vshll.u32 %v5716_v11, 16  ;;  %v6742_v23 = vsel %vm6724_vm13, %v1568_v8, %v1569_v9  ;;  %v1573_v27 = vrot.slane %v6732_v16, 5  ;;  %v729_v10 = vld [vmem:[#allocation2 + $0x48] sm:$0xf] }
  0x6b   : > { %v439_v24 = vrot.slane %v437_v14, 7  ;;  %v447_v31 = vrot.slane %v445_v21, 7  ;;  %v1576_v32 = vrot.slane %v6734_v17, 5  ;;  %v5487_v41 = vcombine.low %v6738_v20, %v6742_v23  ;;  %v1473_v16 = vld [vmem:[#allocation2 + $0x20] sm:$0x1]  ;;  %v6343_v17 = vld [vmem:[%s7979_s1 + $0x188] sm:$0xff]  }
  0x6c   : > { %v1384_v13 = vsel %vm6501_vm6, %v1379_v5, %v1383_v0  ;;  %v962_v30 = vld [vmem:[#allocation2 + $0x30] sm:$0xf]  ;;  %v5717_v44 = vpack.c.bf16 %v193_v28, %v193_v28  ;;  %v5718_v45 = vpack.c.bf16 %v194_v29, %v194_v29  ;;  %v1575_v62 = vrot.slane %v1573_v27, 4  ;;  %v195_v23 = vld [vmem:[%s6486_s14 + $0x60] sm:$0xff]  ;;  %v196_v28 = vld [vmem:[%s6486_s14 + $0x68] sm:$0xff] }
  0x6d   : > { %v5470_v18 = vcombine.low %v1374_v63, %v1384_v13  ;;  %v1098_v34 = vshrl.u32 %v962_v30, 16  ;;  %v1101_v35 = vshll.u32 %v962_v30, 16  ;;  %v442_v36 = vor.u32 %v440_v15, %v439_v24  ;;  %v6342_v63 = vld [vmem:[%s7979_s1 + $0x120] sm:$0xff]   ;;  %v1472_v15 = vld [vmem:[#allocation2 + $0x1c] sm:$0xf] }
  0x6e   : > { %v443_v37 = vrot.slane %v439_v24, 4  ;;  %v963_v39 = vld [vmem:[#allocation2 + $0x34] sm:$0xf]  ;;  %v964_v40 = vld [vmem:[#allocation2 + $0x38] sm:$0x1]  ;;  %v450_v42 = vor.u32 %v448_v22, %v447_v31  ;;  %v452_v56 = vrot.slane %v447_v31, 4  ;;  %5972 = vmatpush3.bf16.msra.mxu0 %v6342_v63  ;;  %v6771_v11 = vsel %vm6724_vm13, %v5472_v26, %v1573_v27 }
  0x6f   : > { %4517 = vmatprep.mubr.bf16.mxu1 %v5470_v18  ;;  %v1100_v46 = vrot.slane %v1098_v34, 4  ;;  %v1103_v47 = vrot.slane %v1101_v35, 5  ;;  %v1107_v48 = vshll.u32 %v963_v39, 16  ;;  %v1111_v50 = vshrl.u32 %v963_v39, 16  ;;  %v733_v21 = vld [vmem:[#allocation2 + $0x50] sm:$0x1] }
  0x70   : > { %4518 = vmatmul.mubr.bf16.gmra.mrb[12].mxu1 %v6325_v7  ;;  %v1117_v52 = vshll.u32 %v964_v40, 16  ;;  %v451_v55 = vsel %vm6510_vm8, %v443_v37, %v450_v42  ;;  %v723_v57 = vsel %vm6521_vm9, %v442_v36, %v722_v25  ;;  %v727_v1 = vsel %vm6529_vm10, %v452_v56, %v726_v51  ;;  %v1471_v7 = vld [vmem:[#allocation2 + $0x18] sm:$0xe]  ;;  %v6330_v30 = vld [vmem:[#allocation2 + $0x30] sm:$0xff]  }
  0x71   : > { %4558 = vmatprep.mubr.bf16.mxu1 %v6331_v19  ;;  %v1104_v59 = vor.u32 %v1103_v47, %v1100_v46  ;;  %v1109_v60 = vrot.slane %v1107_v48, 5  ;;  %v1113_v61 = vrot.slane %v1111_v50, 4  ;;  %724 = vst [vmem:[#allocation2 + $0x3c] sm:$0xf] %v723_v57  ;;  %725 = vst [vmem:[#allocation2 + $0x40] sm:$0xf] %v451_v55  ;;  %v1577_v12 = vsel %vm6724_vm13, %v1575_v62, %v1576_v32 }
  0x72   : > { %v1119_v0 = vrot.slane %v1117_v52, 5  ;;  %v454_v2 = vshrl.u32 %v5717_v44, 16  ;;  %v457_v3 = vshll.u32 %v5717_v44, 16  ;;  %728 = vst [vmem:[#allocation2 + $0x44] sm:$0x1] %v727_v1  ;;  %v462_v9 = vshrl.u32 %v5718_v45, 16 }
  0x73   : > { %v1105_v5 = vrot.slane %v1104_v59, 4  ;;  %v1114_v8 = vor.u32 %v1113_v61, %v1109_v60  ;;  %v465_v14 = vshll.u32 %v5718_v45, 16  ;;  %v5473_v22 = vrot.slane %v1471_v7, 9  ;;  %v6339_v50 = vld [vmem:[#allocation2 + $0x24] sm:$0xff]   ;;  %v736_v63 = vld [vmem:[#allocation2 + $0x54] sm:$0xf] }
  0x74   : > { %v456_v13 = vrot.slane %v454_v2, 7  ;;  %v464_v20 = vrot.slane %v462_v9, 7  ;;  %v1580_v26 = vrot.slane %v1472_v15, 5  ;;  %v1583_v27 = vrot.slane %v1473_v16, 5 }
  0x75   : > { %v1110_v18 = vsel %vm6501_vm6, %v1105_v5, %v1109_v60  ;;  %v1115_v19 = vrot.slane %v1114_v8, 4  ;;  %v5719_v34 = vpack.c.bf16 %v195_v23, %v195_v23  ;;  %v5488_v38 = vcombine.low %v6771_v11, %v1577_v12  ;;  %v197_v5 = vld [vmem:[%s6486_s14 + $0x70] sm:$0xff]  ;;  %v1474_v11 = vld [vmem:[#allocation2 + $0x24] sm:$0xe]  ;;  %v198_v12 = vld [vmem:[%s6486_s14 + $0x78] sm:$0xff] }
  0x76   : > { %v459_v24 = vor.u32 %v457_v3, %v456_v13  ;;  %v460_v25 = vrot.slane %v456_v13, 4  ;;  %v467_v31 = vor.u32 %v465_v14, %v464_v20  ;;  %v469_v32 = vrot.slane %v464_v20, 4  ;;  %v1476_v23 = vld [vmem:[#allocation2 + $0x2c] sm:$0x1] }
  0x77   : > { %v1120_v29 = vsel %vm6501_vm6, %v1115_v19, %v1119_v0  ;;  %v6787_v40 = vpack.c.bf16 %v196_v28, %v196_v28  ;;  %v1582_v51 = vrot.slane %v1580_v26, 4  ;;  %v471_v52 = vshrl.u32 %v5719_v34, 16  ;;  %v6347_v0 = vld [vmem:[%s7979_s1 + $0x128] sm:$0xff]  }
  0x78   : > { %4559 = vmatmul.mubr.bf16.vlgmr.msra.gmra.mrb[16].mxu1 %v5487_v41  ;;  %v5459_v35 = vcombine.low %v1110_v18, %v1120_v29  ;;  %v965_v36 = vld [vmem:[#allocation2 + $0x3c] sm:$0xf]  ;;  %v966_v37 = vld [vmem:[#allocation2 + $0x40] sm:$0xf]  ;;  %v730_v39 = vsel %vm6521_vm9, %v459_v24, %v729_v10  ;;  %v468_v47 = vsel %vm6510_vm8, %v460_v25, %v467_v31  ;;  %v734_v48 = vsel %vm6529_vm10, %v469_v32, %v733_v21 }
  0x79   : > { %6076 = vmatpush3.bf16.msra.mxu1 %v6333_v54  ;;  %4566 = vmatprep.mubr.bf16.mxu1 %v6337_v58  ;;  %v1122_v41 = vshrl.u32 %v965_v36, 16  ;;  %v1125_v42 = vshll.u32 %v965_v36, 16  ;;  %v1131_v44 = vshll.u32 %v966_v37, 16  ;;  %v1135_v45 = vshrl.u32 %v966_v37, 16  ;;  %731 = vst [vmem:[#allocation2 + $0x48] sm:$0xf] %v730_v39 }
  0x7a   : > { %6077 = vmatprep.subr.bf16.mxu1 %v6341_v4  ;;  %4429 = vmatprep.mubr.bf16.mxu0 %v5459_v35  ;;  %v967_v46 = vld [vmem:[#allocation2 + $0x44] sm:$0x1]  ;;  %v6346_v54 = vld [vmem:[%s7979_s1 + $0x168] sm:$0xff]   ;;  %732 = vst [vmem:[#allocation2 + $0x4c] sm:$0xf] %v468_v47  ;;  %v1581_v60 = vsel %vm6724_vm13, %v5473_v22, %v1580_v26  ;;  %v473_v61 = vrot.slane %v471_v52, 7  ;;  %v1584_v3 = vsel %vm6724_vm13, %v1582_v51, %v1583_v27 }
  0x7b   : > { %4430 = vmatmul.mubr.bf16.gmra.mrb[16].mxu0 %v6330_v30  ;;  %v1124_v55 = vrot.slane %v1122_v41, 4  ;;  %v1127_v56 = vrot.slane %v1125_v42, 5  ;;  %v1133_v57 = vrot.slane %v1131_v44, 5  ;;  %v1137_v58 = vrot.slane %v1135_v45, 4  ;;  %735 = vst [vmem:[#allocation2 + $0x50] sm:$0x1] %v734_v48  ;;  %5973 = vmatprep.subr.bf16.mxu0 %v6346_v54 }
  0x7c   : > { %v1141_v59 = vshll.u32 %v967_v46, 16  ;;  %v474_v62 = vshll.u32 %v5719_v34, 16  ;;  %v479_v4 = vshrl.u32 %v6787_v40, 16  ;;  %v477_v10 = vrot.slane %v473_v61, 4  ;;  %5974 = vmatpush3.bf16.msra.mxu0 %v6347_v0  ;;  %v6336_v15 = vld [vmem:[#allocation2 + $0x3c] sm:$0xff]   ;;  %v6345_v22 = vld [vmem:[#allocation2 + $0x30] sm:$0xff]  }
  0x7d   : > { %6078 = vmatpush3.bf16.msra.mxu1 %v6343_v17  ;;  %v1128_v1 = vor.u32 %v1127_v56, %v1124_v55  ;;  %v1138_v2 = vor.u32 %v1137_v58, %v1133_v57  ;;  %v482_v7 = vshll.u32 %v6787_v40, 16  ;;  %v1475_v17 = vld [vmem:[#allocation2 + $0x28] sm:$0xf]  ;;  %v5474_v18 = vrot.slane %v1474_v11, 9  ;;  %v740_v39 = vld [vmem:[#allocation2 + $0x5c] sm:$0x1] }
  0x7e   : > { %v1143_v8 = vrot.slane %v1141_v59, 5  ;;  %v476_v9 = vor.u32 %v474_v62, %v473_v61  ;;  %v481_v16 = vrot.slane %v479_v4, 7  ;;  %v5489_v20 = vcombine.low %v1581_v60, %v1584_v3  ;;  %v6350_v45 = vld [vmem:[%s7979_s1 + $0x1d0] sm:$0xff]   ;;  %v199_v61 = vld [vmem:[%s6486_s14 + $0x80] sm:$0xff] }
  0x7f   : > { %v1129_v13 = vrot.slane %v1128_v1, 4  ;;  %v1139_v14 = vrot.slane %v1138_v2, 4  ;;  %v5721_v32 = vpack.c.bf16 %v197_v5, %v197_v5  ;;  %v5722_v34 = vpack.c.bf16 %v198_v12, %v198_v12  ;;  %v6351_v51 = vld [vmem:[%s7979_s1 + $0x190] sm:$0xff]   ;;  %6079 = vmatprep.subr.bf16.mxu1 %v6350_v45  ;;  %v6349_v2 = vld [vmem:[#allocation2 + $0x3c] sm:$0xff]  }
  0x80   : > { %4567 = vmatmul.mubr.bf16.gmra.mrb[20].mxu1 %v5488_v38  ;;  %v968_v19 = vld [vmem:[#allocation2 + $0x48] sm:$0xf]  ;;  %v737_v21 = vsel %vm6521_vm9, %v476_v9, %v736_v63  ;;  %v484_v31 = vor.u32 %v482_v7, %v481_v16  ;;  %v486_v42 = vrot.slane %v481_v16, 4  ;;  %v1587_v44 = vrot.slane %v1475_v17, 5 }
  0x81   : > { %4574 = vmatprep.mubr.bf16.mxu1 %v6339_v50  ;;  %v1134_v24 = vsel %vm6501_vm6, %v1129_v13, %v1133_v57  ;;  %v1144_v25 = vsel %vm6501_vm6, %v1139_v14, %v1143_v8  ;;  %v1146_v26 = vshrl.u32 %v968_v19, 16  ;;  %v1149_v27 = vshll.u32 %v968_v19, 16  ;;  %738 = vst [vmem:[#allocation2 + $0x54] sm:$0xf] %v737_v21  ;;  %v969_v29 = vld [vmem:[#allocation2 + $0x4c] sm:$0xf]  ;;  %6080 = vmatpush3.bf16.msra.mxu1 %v6351_v51 }
  0x82   : > { %v5460_v28 = vcombine.low %v1134_v24, %v1144_v25  ;;  %v970_v30 = vld [vmem:[#allocation2 + $0x50] sm:$0x1]  ;;  %v1155_v37 = vshll.u32 %v969_v29, 16  ;;  %v1159_v38 = vshrl.u32 %v969_v29, 16  ;;  %v485_v41 = vsel %vm6510_vm8, %v477_v10, %v484_v31  ;;  %v6338_v5 = vld [vmem:[#allocation2 + $0x48] sm:$0xff]  }
  0x83   : > { %v1148_v35 = vrot.slane %v1146_v26, 4  ;;  %v1151_v36 = vrot.slane %v1149_v27, 5  ;;  %v1165_v40 = vshll.u32 %v970_v30, 16  ;;  %739 = vst [vmem:[#allocation2 + $0x58] sm:$0xf] %v485_v41  ;;  %v1590_v50 = vrot.slane %v1476_v23, 5 }
  0x84   : > { %4437 = vmatprep.mubr.bf16.mxu0 %v5460_v28  ;;  %v1157_v47 = vrot.slane %v1155_v37, 5  ;;  %v1161_v48 = vrot.slane %v1159_v38, 4  ;;  %v741_v54 = vsel %vm6529_vm10, %v486_v42, %v740_v39  ;;  %v1588_v55 = vsel %vm6724_vm13, %v5474_v18, %v1587_v44  ;;  %v743_v10 = vld [vmem:[#allocation2 + $0x60] sm:$0xf]  ;;  %v200_v7 = vld [vmem:[%s6486_s14 + $0x88] sm:$0xff] }
  0x85   : > { %4438 = vmatmul.mubr.bf16.gmra.mrb[20].mxu0 %v6336_v15  ;;  %v1152_v46 = vor.u32 %v1151_v36, %v1148_v35  ;;  %v1167_v52 = vrot.slane %v1165_v40, 5  ;;  %v1589_v56 = vrot.slane %v1587_v44, 4  ;;  %742 = vst [vmem:[#allocation2 + $0x5c] sm:$0x1] %v741_v54  ;;  %v488_v59 = vshrl.u32 %v5721_v32, 16 }
  0x86   : > { %v1162_v58 = vor.u32 %v1161_v48, %v1157_v47  ;;  %v491_v60 = vshll.u32 %v5721_v32, 16  ;;  %v496_v0 = vshrl.u32 %v5722_v34, 16  ;;  %v499_v1 = vshll.u32 %v5722_v34, 16  ;;  %v747_v18 = vld [vmem:[#allocation2 + $0x68] sm:$0x1] }
  0x87   : > { %v1153_v57 = vrot.slane %v1152_v46, 4  ;;  %v1591_v63 = vsel %vm6724_vm13, %v1589_v56, %v1590_v50  ;;  %v490_v12 = vrot.slane %v488_v59, 7  ;;  %v5723_v14 = vpack.c.bf16 %v199_v61, %v199_v61  ;;  %v1477_v19 = vld [vmem:[#allocation2 + $0x30] sm:$0xe]  ;;  %v1479_v31 = vld [vmem:[#allocation2 + $0x38] sm:$0x1] }
  0x88   : > { %4575 = vmatmul.mubr.bf16.gmra.mrb[24].mxu1 %v5489_v20  ;;  %v971_v62 = vld [vmem:[#allocation2 + $0x54] sm:$0xf]  ;;  %v1163_v4 = vrot.slane %v1162_v58, 4  ;;  %v5490_v11 = vcombine.low %v1588_v55, %v1591_v63  ;;  %v498_v13 = vrot.slane %v496_v0, 7  ;;  %v5724_v21 = vpack.c.bf16 %v200_v7, %v200_v7  ;;  %v1480_v63 = vld [vmem:[#allocation2 + $0x3c] sm:$0xe] }
  0x89   : > { %4582 = vmatprep.mubr.bf16.mxu1 %v6345_v22  ;;  %v1158_v3 = vsel %vm6501_vm6, %v1153_v57, %v1157_v47  ;;  %v1170_v8 = vshrl.u32 %v971_v62, 16  ;;  %v1173_v9 = vshll.u32 %v971_v62, 16  ;;  %v1478_v20 = vld [vmem:[#allocation2 + $0x34] sm:$0xf]  ;;  %v493_v24 = vor.u32 %v491_v60, %v490_v12  ;;  %v6353_v47 = vld [vmem:[#allocation2 + $0x48] sm:$0xff]  }
  0x8a   : > { %v1168_v15 = vsel %vm6501_vm6, %v1163_v4, %v1167_v52  ;;  %v972_v23 = vld [vmem:[#allocation2 + $0x58] sm:$0xf]  ;;  %v494_v25 = vrot.slane %v490_v12, 4  ;;  %v501_v26 = vor.u32 %v499_v1, %v498_v13  ;;  %v503_v30 = vrot.slane %v498_v13, 4  ;;  %v6354_v57 = vld [vmem:[%s7979_s1 + $0x170] sm:$0xff]  }
  0x8b   : > { %v1172_v16 = vrot.slane %v1170_v8, 4  ;;  %v1175_v17 = vrot.slane %v1173_v9, 5  ;;  %v5461_v22 = vcombine.low %v1158_v3, %v1168_v15  ;;  %v1179_v28 = vshll.u32 %v972_v23, 16  ;;  %v6344_v60 = vld [vmem:[#allocation2 + $0x54] sm:$0xff]   ;;  %v750_v1 = vld [vmem:[#allocation2 + $0x6c] sm:$0xf]  ;;  %5975 = vmatprep.subr.bf16.mxu0 %v6354_v57 }
  0x8c   : > { %v1183_v29 = vshrl.u32 %v972_v23, 16  ;;  %v973_v32 = vld [vmem:[#allocation2 + $0x5c] sm:$0x1]  ;;  %v502_v34 = vsel %vm6510_vm8, %v494_v25, %v501_v26  ;;  %v744_v35 = vsel %vm6521_vm9, %v493_v24, %v743_v10  ;;  %v5475_v36 = vrot.slane %v1477_v19, 9  ;;  %v754_v9 = vld [vmem:[#allocation2 + $0x74] sm:$0x1] }
  0x8d   : > { %v1176_v27 = vor.u32 %v1175_v17, %v1172_v16  ;;  %4445 = vmatprep.mubr.bf16.mxu0 %v5461_v22  ;;  %v1594_v37 = vrot.slane %v1478_v20, 5  ;;  %v1181_v39 = vrot.slane %v1179_v28, 5  ;;  %v1189_v41 = vshll.u32 %v973_v32, 16  ;;  %745 = vst [vmem:[#allocation2 + $0x60] sm:$0xf] %v744_v35  ;;  %v6355_v24 = vld [vmem:[%s7979_s1 + $0x130] sm:$0xff]  }
  0x8e   : > { %4446 = vmatmul.mubr.bf16.gmra.mrb[24].mxu0 %v6338_v5  ;;  %v1185_v40 = vrot.slane %v1183_v29, 4  ;;  %746 = vst [vmem:[#allocation2 + $0x64] sm:$0xf] %v502_v34  ;;  %v748_v42 = vsel %vm6529_vm10, %v503_v30, %v747_v18  ;;  %v1597_v46 = vrot.slane %v1479_v31, 5  ;;  %v505_v51 = vshrl.u32 %v5723_v14, 16  ;;  %v201_v29 = vld [vmem:[%s6486_s14 + $0x90] sm:$0xff] }
  0x8f   : > { %v1177_v38 = vrot.slane %v1176_v27, 4  ;;  %v1595_v44 = vsel %vm6724_vm13, %v5475_v36, %v1594_v37  ;;  %v1596_v45 = vrot.slane %v1594_v37, 4  ;;  %v1191_v50 = vrot.slane %v1189_v41, 5  ;;  %749 = vst [vmem:[#allocation2 + $0x68] sm:$0x1] %v748_v42  ;;  %v202_v30 = vld [vmem:[%s6486_s14 + $0x98] sm:$0xff]  ;;  %5976 = vmatpush3.bf16.msra.mxu0 %v6355_v24 }
  0x90   : > { %4583 = vmatmul.mubr.bf16.gmra.mrb[28].mxu1 %v5490_v11  ;;  %v1186_v48 = vor.u32 %v1185_v40, %v1181_v39  ;;  %v508_v54 = vshll.u32 %v5723_v14, 16  ;;  %v513_v55 = vshrl.u32 %v5724_v21, 16  ;;  %v516_v56 = vshll.u32 %v5724_v21, 16  ;;  %v1482_v10 = vld [vmem:[#allocation2 + $0x44] sm:$0x1]  ;;  %v6357_v40 = vld [vmem:[#allocation2 + $0x54] sm:$0xff]  }
  0x91   : > { %4590 = vmatprep.mubr.bf16.mxu1 %v6349_v2  ;;  %v1598_v52 = vsel %vm6724_vm13, %v1596_v45, %v1597_v46  ;;  %v1182_v58 = vsel %vm6501_vm6, %v1177_v38, %v1181_v39  ;;  %v507_v62 = vrot.slane %v505_v51, 7  ;;  %v1481_v2 = vld [vmem:[#allocation2 + $0x40] sm:$0xf]  ;;  %v5476_v3 = vrot.slane %v1480_v63, 9  ;;  %v1483_v51 = vld [vmem:[#allocation2 + $0x48] sm:$0xe] }
  0x92   : > { %v1187_v59 = vrot.slane %v1186_v48, 4  ;;  %v5491_v61 = vcombine.low %v1595_v44, %v1598_v52  ;;  %v515_v0 = vrot.slane %v513_v55, 7  ;;  %v1601_v7 = vrot.slane %v1481_v2, 5  ;;  %v6358_v44 = vld [vmem:[%s7979_s1 + $0x1d8] sm:$0xff]   ;;  %v1484_v57 = vld [vmem:[#allocation2 + $0x4c] sm:$0xf] }
  0x93   : > { %v510_v5 = vor.u32 %v508_v54, %v507_v62  ;;  %v511_v8 = vrot.slane %v507_v62, 4  ;;  %v1604_v35 = vrot.slane %v1482_v10, 5  ;;  %v5725_v38 = vpack.c.bf16 %v201_v29, %v201_v29  ;;  %v6359_v52 = vld [vmem:[%s7979_s1 + $0x198] sm:$0xff]   ;;  %6081 = vmatprep.subr.bf16.mxu1 %v6358_v44  ;;  %v761_v10 = vld [vmem:[#allocation2 + $0x80] sm:$0x1] }
  0x94   : > { %v1192_v4 = vsel %vm6501_vm6, %v1187_v59, %v1191_v50  ;;  %v974_v12 = vld [vmem:[#allocation2 + $0x60] sm:$0xf]  ;;  %v518_v14 = vor.u32 %v516_v56, %v515_v0  ;;  %v520_v21 = vrot.slane %v515_v0, 4  ;;  %v1602_v23 = vsel %vm6724_vm13, %v5476_v3, %v1601_v7  ;;  %v757_v62 = vld [vmem:[#allocation2 + $0x78] sm:$0xf]  ;;  %6082 = vmatpush3.bf16.msra.mxu1 %v6359_v52 }
  0x95   : > { %v5462_v11 = vcombine.low %v1182_v58, %v1192_v4  ;;  %v975_v13 = vld [vmem:[#allocation2 + $0x64] sm:$0xf]  ;;  %v1194_v15 = vshrl.u32 %v974_v12, 16  ;;  %v1197_v16 = vshll.u32 %v974_v12, 16  ;;  %v751_v22 = vsel %vm6521_vm9, %v510_v5, %v750_v1  ;;  %v1485_v3 = vld [vmem:[#allocation2 + $0x50] sm:$0x1] }
  0x96   : > { %v1203_v17 = vshll.u32 %v975_v13, 16  ;;  %v1207_v18 = vshrl.u32 %v975_v13, 16  ;;  %v976_v19 = vld [vmem:[#allocation2 + $0x68] sm:$0x1]  ;;  %v519_v20 = vsel %vm6510_vm8, %v511_v8, %v518_v14  ;;  %752 = vst [vmem:[#allocation2 + $0x6c] sm:$0xf] %v751_v22  ;;  %v755_v32 = vsel %vm6529_vm10, %v520_v21, %v754_v9 }
  0x97   : > { %4453 = vmatprep.mubr.bf16.mxu0 %v5462_v11  ;;  %v1196_v25 = vrot.slane %v1194_v15, 4  ;;  %v1199_v26 = vrot.slane %v1197_v16, 5  ;;  %753 = vst [vmem:[#allocation2 + $0x70] sm:$0xf] %v519_v20  ;;  %v1213_v31 = vshll.u32 %v976_v19, 16  ;;  %v1603_v34 = vrot.slane %v1601_v7, 4 }
  0x98   : > { %4591 = vmatmul.mubr.bf16.gmra.mrb[32].mxu1 %v5491_v61  ;;  %4454 = vmatmul.mubr.bf16.gmra.mrb[28].mxu0 %v6344_v60  ;;  %v1205_v27 = vrot.slane %v1203_v17, 5  ;;  %v1209_v28 = vrot.slane %v1207_v18, 4  ;;  %756 = vst [vmem:[#allocation2 + $0x74] sm:$0x1] %v755_v32  ;;  %v5726_v39 = vpack.c.bf16 %v202_v30, %v202_v30  ;;  %v522_v50 = vshrl.u32 %v5725_v38, 16  ;;  %v6360_v15 = vld [vmem:[%s7979_s1 + $0x178] sm:$0xff]  }
  0x99   : > { %4598 = vmatprep.mubr.bf16.mxu1 %v6353_v47  ;;  %v1200_v36 = vor.u32 %v1199_v26, %v1196_v25  ;;  %v1215_v41 = vrot.slane %v1213_v31, 5  ;;  %v1605_v42 = vsel %vm6724_vm13, %v1603_v34, %v1604_v35  ;;  %v6348_v47 = vld [vmem:[#allocation2 + $0x60] sm:$0xff]   ;;  %v525_v54 = vshll.u32 %v5725_v38, 16  ;;  %5977 = vmatprep.subr.bf16.mxu0 %v6360_v15  ;;  %v6361_v31 = vld [vmem:[%s7979_s1 + $0x138] sm:$0xff]   ;;  %v204_v34 = vld [vmem:[%s6486_s14 + $0xa8] sm:$0xff] }
  0x9a   : > { %v1210_v37 = vor.u32 %v1209_v28, %v1205_v27  ;;  %v5492_v48 = vcombine.low %v1602_v23, %v1605_v42  ;;  %v530_v55 = vshrl.u32 %v5726_v39, 16  ;;  %v533_v56 = vshll.u32 %v5726_v39, 16  ;;  %v203_v32 = vld [vmem:[%s6486_s14 + $0xa0] sm:$0xff]  ;;  %5978 = vmatpush3.bf16.msra.mxu0 %v6361_v31  ;;  %v1900_v31 = vld [vmem:[#allocation2 + $0xc] sm:$0xf] }
  0x9b   : > { %v1201_v45 = vrot.slane %v1200_v36, 4  ;;  %v5477_v58 = vrot.slane %v1483_v51, 9  ;;  %v524_v61 = vrot.slane %v522_v50, 7  ;;  %v1608_v63 = vrot.slane %v1484_v57, 5  ;;  %v6363_v42 = vld [vmem:[#allocation2 + $0x60] sm:$0xff]  }
  0x9c   : > { %v1211_v46 = vrot.slane %v1210_v37, 4  ;;  %v532_v13 = vrot.slane %v530_v55, 7  ;;  %v5727_v39 = vpack.c.bf16 %v203_v32, %v203_v32  ;;  %v1487_v50 = vld [vmem:[#allocation2 + $0x58] sm:$0xf]  ;;  %v1488_v55 = vld [vmem:[#allocation2 + $0x5c] sm:$0x1] }
  0x9d   : > { %v1206_v59 = vsel %vm6501_vm6, %v1201_v45, %v1205_v27  ;;  %v977_v1 = vld [vmem:[#allocation2 + $0x6c] sm:$0xf]  ;;  %v527_v11 = vor.u32 %v525_v54, %v524_v61  ;;  %v528_v12 = vrot.slane %v524_v61, 4  ;;  %v1609_v14 = vsel %vm6724_vm13, %v5477_v58, %v1608_v63  ;;  %v764_v58 = vld [vmem:[#allocation2 + $0x84] sm:$0xf] }
  0x9e   : > { %v1216_v60 = vsel %vm6501_vm6, %v1211_v46, %v1215_v41  ;;  %v978_v2 = vld [vmem:[#allocation2 + $0x70] sm:$0xf]  ;;  %v1218_v4 = vshrl.u32 %v977_v1, 16  ;;  %v1221_v5 = vshll.u32 %v977_v1, 16  ;;  %v535_v21 = vor.u32 %v533_v56, %v532_v13  ;;  %v6370_v32 = vld [vmem:[%s7979_s1 + $0x1e8] sm:$0xff]  }
  0x9f   : > { %v5463_v0 = vcombine.low %v1206_v59, %v1216_v60  ;;  %v1227_v8 = vshll.u32 %v978_v2, 16  ;;  %v1231_v9 = vshrl.u32 %v978_v2, 16  ;;  %v979_v7 = vld [vmem:[#allocation2 + $0x74] sm:$0x1]  ;;  %v537_v22 = vrot.slane %v532_v13, 4  ;;  %v6352_v37 = vld [vmem:[#allocation2 + $0x6c] sm:$0xff]  }
  0xa0   : > { %4599 = vmatmul.mubr.bf16.gmra.mrb[36].mxu1 %v5492_v48  ;;  %v1220_v16 = vrot.slane %v1218_v4, 4  ;;  %v1223_v17 = vrot.slane %v1221_v5, 5  ;;  %v1237_v20 = vshll.u32 %v979_v7, 16  ;;  %v758_v23 = vsel %vm6521_vm9, %v527_v11, %v757_v62  ;;  %v1486_v48 = vld [vmem:[#allocation2 + $0x54] sm:$0xe]  ;;  %v6365_v60 = vld [vmem:[%s7979_s1 + $0x1e0] sm:$0xff]  }
  0xa1   : > { %4606 = vmatprep.mubr.bf16.mxu1 %v6357_v40  ;;  %4461 = vmatprep.mubr.bf16.mxu0 %v5463_v0  ;;  %v1229_v18 = vrot.slane %v1227_v8, 5  ;;  %v1233_v19 = vrot.slane %v1231_v9, 4  ;;  %759 = vst [vmem:[#allocation2 + $0x78] sm:$0xf] %v758_v23  ;;  %v1610_v26 = vrot.slane %v1608_v63, 4  ;;  %v1611_v27 = vrot.slane %v1485_v3, 5 }
  0xa2   : > { %4462 = vmatmul.mubr.bf16.gmra.mrb[32].mxu0 %v6348_v47  ;;  %v1224_v24 = vor.u32 %v1223_v17, %v1220_v16  ;;  %v1239_v28 = vrot.slane %v1237_v20, 5  ;;  %v536_v29 = vsel %vm6510_vm8, %v528_v12, %v535_v21  ;;  %v762_v30 = vsel %vm6529_vm10, %v537_v22, %v761_v10  ;;  %v768_v4 = vld [vmem:[#allocation2 + $0x8c] sm:$0x1]  ;;  %v6900_v5 = vld [vmem:[#allocation2 + $0x10] sm:$0xf]  ;;  %6083 = vmatprep.subr.bf16.mxu1 %v6365_v60  ;;  %v6905_v8 = vld [vmem:[%s7979_s1 + $0x200] sm:$0xff]  }
  0xa3   : > { %v1234_v25 = vor.u32 %v1233_v19, %v1229_v18  ;;  %760 = vst [vmem:[#allocation2 + $0x7c] sm:$0xf] %v536_v29  ;;  %763 = vst [vmem:[#allocation2 + $0x80] sm:$0x1] %v762_v30  ;;  %v1612_v38 = vsel %vm6724_vm13, %v1610_v26, %v1611_v27  ;;  %v5728_v41 = vpack.c.bf16 %v204_v34, %v204_v34  ;;  %v539_v46 = vshrl.u32 %v5727_v39, 16  ;;  %v6367_v16 = vld [vmem:[%s7979_s1 + $0x1a0] sm:$0xff]  }
  0xa4   : > { %v1225_v35 = vrot.slane %v1224_v24, 4  ;;  %v5493_v40 = vcombine.low %v1609_v14, %v1612_v38  ;;  %v542_v47 = vshll.u32 %v5727_v39, 16  ;;  %v5478_v56 = vrot.slane %v1486_v48, 9  ;;  %6211 = vmatprep.subr.bf16.mxu0 %v6905_v8  ;;  %v2412_v21 = vld [vmem:[#allocation2 + $0xc] sm:$0xe]  ;;  %6084 = vmatpush3.bf16.msra.mxu1 %v6367_v16 }
  0xa5   : > { %v1235_v36 = vrot.slane %v1234_v25, 4  ;;  %v547_v52 = vshrl.u32 %v5728_v41, 16  ;;  %v550_v54 = vshll.u32 %v5728_v41, 16  ;;  %v541_v57 = vrot.slane %v539_v46, 7  ;;  %v6364_v30 = vld [vmem:[#allocation2 + $0x6c] sm:$0xff]   ;;  %6085 = vmatprep.subr.bf16.mxu1 %v6370_v32 }
  0xa6   : > { %v1230_v44 = vsel %vm6501_vm6, %v1225_v35, %v1229_v18  ;;  %v1615_v59 = vrot.slane %v1487_v50, 5  ;;  %v1618_v63 = vrot.slane %v1488_v55, 5  ;;  %v2510_v29 = vrot.slane %v6900_v5, 5  ;;  %v1902_v38 = vld [vmem:[#allocation2 + $0x14] sm:$0x1] }
  0xa7   : > { %v1240_v45 = vsel %vm6501_vm6, %v1235_v36, %v1239_v28  ;;  %v549_v62 = vrot.slane %v547_v52, 7  ;;  %v544_v2 = vor.u32 %v542_v47, %v541_v57  ;;  %v545_v3 = vrot.slane %v541_v57, 4  ;;  %v2414_v28 = vld [vmem:[#allocation2 + $0x14] sm:$0x1]  ;;  %v6372_v52 = vld [vmem:[%s7979_s1 + $0x1a8] sm:$0xff]  }
  0xa8   : > { %v5464_v51 = vcombine.low %v1230_v44, %v1240_v45  ;;  %4607 = vmatmul.mubr.bf16.gmra.mrb[40].mxu1 %v5493_v40  ;;  %v980_v61 = vld [vmem:[#allocation2 + $0x78] sm:$0xf]  ;;  %v1616_v11 = vsel %vm6724_vm13, %v5478_v56, %v1615_v59  ;;  %v1617_v25 = vrot.slane %v1615_v59, 4  ;;  %v1949_v39 = vshrl.u32 %v1900_v31, 16  ;;  %v1489_v59 = vld [vmem:[#allocation2 + $0x60] sm:$0xe] }
  0xa9   : > { %4614 = vmatprep.mubr.bf16.mxu1 %v6363_v42  ;;  %v1242_v0 = vshrl.u32 %v980_v61, 16  ;;  %v1245_v1 = vshll.u32 %v980_v61, 16  ;;  %v552_v7 = vor.u32 %v550_v54, %v549_v62  ;;  %v554_v19 = vrot.slane %v549_v62, 4  ;;  %6086 = vmatpush3.bf16.msra.mxu1 %v6372_v52  ;;  %v1491_v16 = vld [vmem:[#allocation2 + $0x68] sm:$0x1] }
  0xaa   : > { %4469 = vmatprep.mubr.bf16.mxu0 %v5464_v51  ;;  %v981_v9 = vld [vmem:[#allocation2 + $0x7c] sm:$0xf]  ;;  %v982_v10 = vld [vmem:[#allocation2 + $0x80] sm:$0x1]  ;;  %v765_v20 = vsel %vm6521_vm9, %v544_v2, %v764_v58  ;;  %v1619_v36 = vsel %vm6724_vm13, %v1617_v25, %v1618_v63  ;;  %v5535_v41 = vrot.slane %v2412_v21, 9  ;;  %v1952_v42 = vshll.u32 %v1900_v31, 16 }
  0xab   : > { %4470 = vmatmul.mubr.bf16.gmra.mrb[36].mxu0 %v6352_v37  ;;  %v1244_v12 = vrot.slane %v1242_v0, 4  ;;  %v1247_v13 = vrot.slane %v1245_v1, 5  ;;  %v1251_v14 = vshll.u32 %v981_v9, 16  ;;  %v1255_v15 = vshrl.u32 %v981_v9, 16  ;;  %766 = vst [vmem:[#allocation2 + $0x84] sm:$0xf] %v765_v20 }
  0xac   : > { %v1261_v17 = vshll.u32 %v982_v10, 16  ;;  %v553_v18 = vsel %vm6510_vm8, %v545_v3, %v552_v7  ;;  %v769_v27 = vsel %vm6529_vm10, %v554_v19, %v768_v4  ;;  %v1901_v37 = vld [vmem:[#allocation2 + $0x10] sm:$0xf]  ;;  %v5494_v40 = vcombine.low %v1616_v11, %v1619_v36  ;;  %v6356_v55 = vld [vmem:[#allocation2 + $0x78] sm:$0xff]   ;;  %v1490_v0 = vld [vmem:[#allocation2 + $0x64] sm:$0xf] }
  0xad   : > { %v1248_v22 = vor.u32 %v1247_v13, %v1244_v12  ;;  %v1253_v23 = vrot.slane %v1251_v14, 5  ;;  %v1257_v24 = vrot.slane %v1255_v15, 4  ;;  %767 = vst [vmem:[#allocation2 + $0x88] sm:$0xf] %v553_v18  ;;  %770 = vst [vmem:[#allocation2 + $0x8c] sm:$0x1] %v769_v27  ;;  %v6936_v9 = vsel %vm6724_vm13, %v5535_v41, %v2510_v29 }
  0xae   : > { %v1263_v26 = vrot.slane %v1261_v17, 5  ;;  %v1951_v46 = vrot.slane %v1949_v39, 4  ;;  %v1958_v47 = vshll.u32 %v1901_v37, 16  ;;  %v1954_v48 = vrot.slane %v1952_v42, 5  ;;  %v2415_v25 = vld [vmem:[#allocation2 + $0x18] sm:$0xe] }
  0xaf   : > { %v1249_v34 = vrot.slane %v1248_v22, 4  ;;  %v1258_v35 = vor.u32 %v1257_v24, %v1253_v23  ;;  %v1962_v50 = vshrl.u32 %v1901_v37, 16  ;;  %v1968_v51 = vshll.u32 %v1902_v38, 16  ;;  %v6368_v38 = vld [vmem:[#allocation2 + $0x78] sm:$0xff]   ;;  %v1492_v52 = vld [vmem:[#allocation2 + $0x6c] sm:$0xe] }
  0xb0   : > { %4615 = vmatmul.mubr.bf16.gmra.mrb[44].mxu1 %v5494_v40  ;;  %v2512_v56 = vrot.slane %v2510_v29, 4  ;;  %v2513_v57 = vrot.slane %v2414_v28, 5  ;;  %v6932_v58 = vrot.slane %v1958_v47, 5  ;;  %v1955_v63 = vor.u32 %v1954_v48, %v1951_v46  ;;  %v2417_v29 = vld [vmem:[#allocation2 + $0x20] sm:$0x1] }
  0xb1   : > { %v1254_v44 = vsel %vm6501_vm6, %v1249_v34, %v1253_v23  ;;  %v1259_v45 = vrot.slane %v1258_v35, 4  ;;  %4622 = vmatprep.mubr.bf16.mxu1 %v6364_v30  ;;  %v1964_v7 = vrot.slane %v1962_v50, 4  ;;  %v6940_v11 = vrot.slane %v1968_v51, 5  ;;  %v1904_v50 = vld [vmem:[#allocation2 + $0x1c] sm:$0xf] }
  0xb2   : > { %v983_v61 = vld [vmem:[#allocation2 + $0x84] sm:$0xf]  ;;  %v6938_v10 = vrot.slane %v1955_v63, 4  ;;  %v2514_v18 = vsel %vm6724_vm13, %v2512_v56, %v2513_v57  ;;  %v5479_v20 = vrot.slane %v1489_v59, 9  ;;  %v1622_v23 = vrot.slane %v1490_v0, 5 }
  0xb3   : > { %v1264_v54 = vsel %vm6501_vm6, %v1259_v45, %v1263_v26  ;;  %v1266_v1 = vshrl.u32 %v983_v61, 16  ;;  %v1269_v2 = vshll.u32 %v983_v61, 16  ;;  %v1965_v19 = vor.u32 %v1964_v7, %v6932_v58  ;;  %v2416_v26 = vld [vmem:[#allocation2 + $0x1c] sm:$0xf]  ;;  %v1905_v51 = vld [vmem:[#allocation2 + $0x20] sm:$0x1] }
  0xb4   : > { %v5465_v60 = vcombine.low %v1254_v44, %v1264_v54  ;;  %v984_v62 = vld [vmem:[#allocation2 + $0x88] sm:$0xf]  ;;  %v985_v5 = vld [vmem:[#allocation2 + $0x8c] sm:$0x1]  ;;  %v1625_v24 = vrot.slane %v1491_v16, 5  ;;  %v5536_v30 = vrot.slane %v2415_v25, 9  ;;  %v1623_v36 = vsel %vm6724_vm13, %v5479_v20, %v1622_v23 }
  0xb5   : > { %v1275_v3 = vshll.u32 %v984_v62, 16  ;;  %v1279_v4 = vshrl.u32 %v984_v62, 16  ;;  %v1268_v12 = vrot.slane %v1266_v1, 4  ;;  %v1271_v13 = vrot.slane %v1269_v2, 5  ;;  %v6362_v35 = vld [vmem:[#allocation2 + $0x84] sm:$0xff]   ;;  %v6375_v1 = vld [vmem:[%s7979_s1 + $0x1f0] sm:$0xff]  }
  0xb6   : > { %4477 = vmatprep.mubr.bf16.mxu0 %v5465_v60  ;;  %v1285_v17 = vshll.u32 %v985_v5, 16  ;;  %v1966_v28 = vrot.slane %v1965_v19, 4  ;;  %v2517_v31 = vrot.slane %v2416_v26, 5  ;;  %v1624_v37 = vrot.slane %v1622_v23, 4  ;;  %v1903_v44 = vld [vmem:[#allocation2 + $0x18] sm:$0xf]  ;;  %6087 = vmatprep.subr.bf16.mxu1 %v6375_v1 }
  0xb7   : > { %4478 = vmatmul.mubr.bf16.gmra.mrb[40].mxu0 %v6356_v55  ;;  %v1277_v14 = vrot.slane %v1275_v3, 5  ;;  %v1281_v15 = vrot.slane %v1279_v4, 4  ;;  %v1272_v21 = vor.u32 %v1271_v13, %v1268_v12  ;;  %v5551_v39 = vcombine.low %v6936_v9, %v2514_v18  ;;  %v1494_v59 = vld [vmem:[#allocation2 + $0x74] sm:$0x1]  ;;  %v6969_v0 = vld [vmem:[#allocation2 + $0x24] sm:$0xe] }
  0xb8   : > { %v1287_v27 = vrot.slane %v1285_v17, 5  ;;  %v1961_v40 = vsel %vm6501_vm6, %v6938_v10, %v6932_v58  ;;  %v2519_v41 = vrot.slane %v2517_v31, 4  ;;  %v2520_v42 = vrot.slane %v2417_v29, 5  ;;  %v1493_v58 = vld [vmem:[#allocation2 + $0x70] sm:$0xf] }
  0xb9   : > { %v1282_v22 = vor.u32 %v1281_v15, %v1277_v14  ;;  %v1273_v32 = vrot.slane %v1272_v21, 4  ;;  %v1971_v47 = vsel %vm6501_vm6, %v1966_v28, %v6940_v11  ;;  %v1626_v48 = vsel %vm6724_vm13, %v1624_v37, %v1625_v24  ;;  %v2419_v9 = vld [vmem:[#allocation2 + $0x28] sm:$0xf]  ;;  %v2420_v13 = vld [vmem:[#allocation2 + $0x2c] sm:$0x1] }
  0xba   : > { %v5495_v55 = vcombine.low %v1623_v36, %v1626_v48  ;;  %v6963_v56 = vsel %vm6724_vm13, %v5536_v30, %v2517_v31  ;;  %v1973_v57 = vshrl.u32 %v1903_v44, 16  ;;  %v6967_v60 = vsel %vm6724_vm13, %v2519_v41, %v2520_v42  ;;  %v1906_v23 = vld [vmem:[#allocation2 + $0x24] sm:$0xf]  ;;  %v1907_v26 = vld [vmem:[#allocation2 + $0x28] sm:$0xf]  ;;  %v6377_v48 = vld [vmem:[%s7979_s1 + $0x1b0] sm:$0xff]  }
  0xbb   : > { %v1283_v34 = vrot.slane %v1282_v22, 4  ;;  %v1278_v45 = vsel %vm6501_vm6, %v1273_v32, %v1277_v14  ;;  %v1976_v61 = vshll.u32 %v1903_v44, 16  ;;  %v1982_v62 = vshll.u32 %v1904_v50, 16  ;;  %v6369_v22 = vld [vmem:[#allocation2 + $0x84] sm:$0xff]   ;;  %v1495_v42 = vld [vmem:[#allocation2 + $0x78] sm:$0xe]  ;;  %6088 = vmatpush3.bf16.msra.mxu1 %v6377_v48 }
  0xbc   : > { %v1986_v63 = vshrl.u32 %v1904_v50, 16  ;;  %4623 = vmatmul.mubr.bf16.gmra.mrb[48].mxu1 %v5495_v55  ;;  %v1975_v2 = vrot.slane %v1973_v57, 4  ;;  %v1992_v3 = vshll.u32 %v1905_v51, 16  ;;  %v5480_v4 = vrot.slane %v1492_v52, 9  ;;  %v7000_v55 = vld [vmem:[%s7979_s1 + $0x210] sm:$0xff]  }
  0xbd   : > { %v1288_v46 = vsel %vm6501_vm6, %v1283_v34, %v1287_v27  ;;  %v1629_v5 = vrot.slane %v1493_v58, 5  ;;  %4630 = vmatprep.mubr.bf16.mxu1 %v6368_v38  ;;  %v1978_v10 = vrot.slane %v1976_v61, 5  ;;  %v6974_v7 = vrot.slane %v1982_v62, 5  ;;  %v1908_v27 = vld [vmem:[#allocation2 + $0x2c] sm:$0x1] }
  0xbe   : > { %v5466_v54 = vcombine.low %v1278_v45, %v1288_v46  ;;  %v1988_v11 = vrot.slane %v1986_v63, 4  ;;  %v1632_v12 = vrot.slane %v1494_v59, 5  ;;  %v1994_v14 = vrot.slane %v1992_v3, 5  ;;  %v1496_v46 = vld [vmem:[#allocation2 + $0x7c] sm:$0xf] }
  0xbf   : > { %v1630_v15 = vsel %vm6724_vm13, %v5480_v4, %v1629_v5  ;;  %v1631_v16 = vrot.slane %v1629_v5, 4  ;;  %v5537_v17 = vrot.slane %v6969_v0, 9  ;;  %v1979_v18 = vor.u32 %v1978_v10, %v1975_v2  ;;  %v2421_v63 = vld [vmem:[#allocation2 + $0x30] sm:$0xe]  ;;  %v2422_v0 = vld [vmem:[#allocation2 + $0x34] sm:$0xf] }
  0xc0   : > { %4485 = vmatprep.mubr.bf16.mxu0 %v5466_v54  ;;  %v1989_v19 = vor.u32 %v1988_v11, %v6974_v7  ;;  %v2524_v20 = vrot.slane %v2419_v9, 5  ;;  %v2527_v21 = vrot.slane %v2420_v13, 5  ;;  %v5519_v24 = vcombine.low %v1961_v40, %v1971_v47  ;;  %v1497_v47 = vld [vmem:[#allocation2 + $0x80] sm:$0x1]  ;;  %v2423_v1 = vld [vmem:[#allocation2 + $0x38] sm:$0x1] }
  0xc1   : > { %4486 = vmatmul.mubr.bf16.gmra.mrb[44].mxu0 %v6362_v35  ;;  %v1633_v25 = vsel %vm6724_vm13, %v1631_v16, %v1632_v12  ;;  %v1997_v28 = vshrl.u32 %v1906_v23, 16  ;;  %v2000_v29 = vshll.u32 %v1906_v23, 16  ;;  %v5552_v30 = vcombine.low %v6963_v56, %v6967_v60  ;;  %v6371_v35 = vld [vmem:[%s7979_s1 + $0x208] sm:$0xff]   ;;  %v6373_v4 = vld [vmem:[#allocation2 + $0x90] sm:$0xff]   ;;  %v6380_v12 = vld [vmem:[%s7979_s1 + $0x1f8] sm:$0xff]  }
  0xc2   : > { %4719 = vmatprep.mubr.bf16.mxu0 %v5551_v39  ;;  %v1980_v31 = vrot.slane %v1979_v18, 4  ;;  %v1990_v32 = vrot.slane %v1989_v19, 4  ;;  %v5496_v34 = vcombine.low %v1630_v15, %v1633_v25  ;;  %v2526_v36 = vrot.slane %v2524_v20, 4  ;;  %v1909_v11 = vld [vmem:[#allocation2 + $0x30] sm:$0xf]  ;;  %6089 = vmatprep.subr.bf16.mxu1 %v6380_v12  ;;  %v6381_v23 = vld [vmem:[%s7979_s1 + $0x218] sm:$0xff]  }
  0xc3   : > { %v1999_v37 = vrot.slane %v1997_v28, 4  ;;  %v2002_v38 = vrot.slane %v2000_v29, 5  ;;  %v2006_v39 = vshll.u32 %v1907_v26, 16  ;;  %v2010_v40 = vshrl.u32 %v1907_v26, 16  ;;  %v1910_v15 = vld [vmem:[#allocation2 + $0x34] sm:$0xf] }
  0xc4   : > { %v2016_v41 = vshll.u32 %v1908_v27, 16  ;;  %4631 = vmatmul.mubr.bf16.gmra.mrb[52].mxu1 %v5496_v34  ;;  %v1985_v50 = vsel %vm6501_vm6, %v1980_v31, %v6974_v7  ;;  %v1995_v51 = vsel %vm6501_vm6, %v1990_v32, %v1994_v14  ;;  %v5481_v54 = vrot.slane %v1495_v42, 9  ;;  %v1911_v16 = vld [vmem:[#allocation2 + $0x38] sm:$0x1]  ;;  %v1500_v28 = vld [vmem:[#allocation2 + $0x8c] sm:$0x1] }
  0xc5   : > { %v2003_v44 = vor.u32 %v2002_v38, %v1999_v37  ;;  %v6987_v45 = vrot.slane %v2006_v39, 5  ;;  %4638 = vmatprep.mubr.bf16.mxu1 %v6369_v22  ;;  %v2012_v52 = vrot.slane %v2010_v40, 4  ;;  %v1636_v58 = vrot.slane %v1496_v46, 5  ;;  %v1499_v22 = vld [vmem:[#allocation2 + $0x88] sm:$0xf]  ;;  %v6382_v29 = vld [vmem:[%s7979_s1 + $0x1b8] sm:$0xff]  }
  0xc6   : > { %v7005_v57 = vrot.slane %v2016_v41, 5  ;;  %v1639_v59 = vrot.slane %v1497_v47, 5  ;;  %v2525_v60 = vsel %vm6724_vm13, %v5537_v17, %v2524_v20  ;;  %v2528_v61 = vsel %vm6724_vm13, %v2526_v36, %v2527_v21  ;;  %v1498_v21 = vld [vmem:[#allocation2 + $0x84] sm:$0xe]  ;;  %v2425_v40 = vld [vmem:[#allocation2 + $0x40] sm:$0xf]  ;;  %6090 = vmatpush3.bf16.msra.mxu1 %v6382_v29 }
  0xc7   : > { %v7003_v56 = vrot.slane %v2003_v44, 4  ;;  %v2013_v62 = vor.u32 %v2012_v52, %v6987_v45  ;;  %v1638_v2 = vrot.slane %v1636_v58, 4  ;;  %v5538_v3 = vrot.slane %v2421_v63, 9  ;;  %v2426_v41 = vld [vmem:[#allocation2 + $0x44] sm:$0x1]  ;;  %v6374_v52 = vld [vmem:[#allocation2 + $0x9c] sm:$0xff]  }
  0xc8   : > { %v5520_v5 = vcombine.low %v1985_v50, %v1995_v51  ;;  %v2531_v10 = vrot.slane %v2422_v0, 5  ;;  %v2534_v7 = vrot.slane %v2423_v1, 5  ;;  %v5553_v13 = vcombine.low %v2525_v60, %v2528_v61  ;;  %v6384_v60 = vld [vmem:[%s7979_s1 + $0x220] sm:$0xff]   ;;  %v2427_v29 = vld [vmem:[#allocation2 + $0x48] sm:$0xe] }
  0xc9   : > { %4720 = vmatmul.mubr.bf16.vlgmr.msra.gmra.mrb[48].mxu0 %v5519_v24  ;;  %v2014_v9 = vrot.slane %v2013_v62, 4  ;;  %v1640_v14 = vsel %vm6724_vm13, %v1638_v2, %v1639_v59  ;;  %v2021_v17 = vshrl.u32 %v1909_v11, 16  ;;  %v2024_v18 = vshll.u32 %v1909_v11, 16  ;;  %v1913_v59 = vld [vmem:[#allocation2 + $0x40] sm:$0xf] }
  0xca   : > { %6212 = vmatpush3.bf16.msra.mxu0 %v6905_v8  ;;  %4727 = vmatprep.mubr.bf16.mxu0 %v5552_v30  ;;  %v1637_v8 = vsel %vm6724_vm13, %v5481_v54, %v1636_v58  ;;  %v2533_v20 = vrot.slane %v2531_v10, 4  ;;  %v2009_v24 = vsel %vm6501_vm6, %v7003_v56, %v6987_v45  ;;  %v2030_v27 = vshll.u32 %v1910_v15, 16  ;;  %v1912_v58 = vld [vmem:[#allocation2 + $0x3c] sm:$0xf]  ;;  %v1914_v0 = vld [vmem:[#allocation2 + $0x44] sm:$0x1] }
  0xcb   : > { %6213 = vmatprep.subr.bf16.mxu0 %v6371_v35  ;;  %v5497_v19 = vcombine.low %v1637_v8, %v1640_v14  ;;  %v2023_v25 = vrot.slane %v2021_v17, 4  ;;  %v2026_v26 = vrot.slane %v2024_v18, 5  ;;  %v2019_v30 = vsel %vm6501_vm6, %v2014_v9, %v7005_v57  ;;  %v1501_v14 = vld [vmem:[#allocation2 + $0x90] sm:$0xe] }
  0xcc   : > { %v2034_v31 = vshrl.u32 %v1910_v15, 16  ;;  %v2040_v32 = vshll.u32 %v1911_v16, 16  ;;  %v5482_v34 = vrot.slane %v1498_v21, 9  ;;  %v2532_v36 = vsel %vm6724_vm13, %v5538_v3, %v2531_v10  ;;  %v6387_v10 = vld [vmem:[%s7979_s1 + $0x228] sm:$0xff]  }
  0xcd   : > { %4639 = vmatmul.mubr.bf16.gmra.mrb[56].mxu1 %v5497_v19  ;;  %v2027_v37 = vor.u32 %v2026_v26, %v2023_v25  ;;  %v7035_v38 = vrot.slane %v2030_v27, 5  ;;  %v1643_v39 = vrot.slane %v1499_v22, 5  ;;  %v2535_v42 = vsel %vm6724_vm13, %v2533_v20, %v2534_v7  ;;  %v1502_v19 = vld [vmem:[#allocation2 + $0x94] sm:$0xf]  ;;  %v1503_v22 = vld [vmem:[#allocation2 + $0x98] sm:$0x1] }
  0xce   : > { %6214 = vmatpush3.bf16.msra.mxu0 %v6371_v35  ;;  %v2424_v35 = vld [vmem:[#allocation2 + $0x3c] sm:$0xe]  ;;  %4646 = vmatprep.mubr.bf16.mxu1 %v6373_v4  ;;  %v2036_v44 = vrot.slane %v2034_v31, 4  ;;  %v2042_v45 = vrot.slane %v2040_v32, 5  ;;  %v1646_v46 = vrot.slane %v1500_v28, 5  ;;  %v2538_v51 = vrot.slane %v2425_v40, 5 }
  0xcf   : > { %6215 = vmatprep.subr.bf16.mxu0 %v7000_v55  ;;  %v1644_v47 = vsel %vm6724_vm13, %v5482_v34, %v1643_v39  ;;  %v1645_v48 = vrot.slane %v1643_v39, 4  ;;  %v5539_v50 = vrot.slane %v2424_v35, 9  ;;  %v5521_v54 = vcombine.low %v2009_v24, %v2019_v30  ;;  %v213_v20 = vld [vmem:[%s6486_s14 + $0xf0] sm:$0xff]  ;;  %v2428_v35 = vld [vmem:[#allocation2 + $0x4c] sm:$0xf] }
  0xd0   : > { %v2037_v56 = vor.u32 %v2036_v44, %v7035_v38  ;;  %v2541_v57 = vrot.slane %v2426_v41, 5  ;;  %v2028_v61 = vrot.slane %v2027_v37, 4  ;;  %v2540_v63 = vrot.slane %v2538_v51, 4  ;;  %v6378_v37 = vld [vmem:[#allocation2 + $0xa8] sm:$0xff]  }
  0xd1   : > { %4728 = vmatmul.mubr.bf16.gmra.mrb[52].mxu0 %v5520_v5  ;;  %v1647_v62 = vsel %vm6724_vm13, %v1645_v48, %v1646_v46  ;;  %v2045_v2 = vshrl.u32 %v1912_v58, 16  ;;  %v2048_v3 = vshll.u32 %v1912_v58, 16  ;;  %v2054_v4 = vshll.u32 %v1913_v59, 16  ;;  %v1915_v44 = vld [vmem:[#allocation2 + $0x48] sm:$0xf] }
  0xd2   : > { %4735 = vmatprep.mubr.bf16.mxu0 %v5553_v13  ;;  %6216 = vmatpush3.bf16.msra.mxu0 %v7000_v55  ;;  %v5554_v55 = vcombine.low %v2532_v36, %v2535_v42  ;;  %v2038_v1 = vrot.slane %v2037_v56, 4  ;;  %v5498_v8 = vcombine.low %v1644_v47, %v1647_v62  ;;  %v2058_v5 = vshrl.u32 %v1913_v59, 16  ;;  %v2429_v36 = vld [vmem:[#allocation2 + $0x50] sm:$0x1] }
  0xd3   : > { %6217 = vmatprep.subr.bf16.mxu0 %v6381_v23  ;;  %v2064_v9 = vshll.u32 %v1914_v0, 16  ;;  %v2539_v7 = vsel %vm6724_vm13, %v5539_v50, %v2538_v51  ;;  %v2542_v11 = vsel %vm6724_vm13, %v2540_v63, %v2541_v57  ;;  %v2047_v12 = vrot.slane %v2045_v2, 4  ;;  %v1506_v0 = vld [vmem:[#allocation2 + $0xa4] sm:$0x1] }
  0xd4   : > { %v2050_v13 = vrot.slane %v2048_v3, 5  ;;  %v2033_v15 = vsel %vm6501_vm6, %v2028_v61, %v7035_v38  ;;  %v2043_v16 = vsel %vm6501_vm6, %v2038_v1, %v2042_v45  ;;  %v2056_v17 = vrot.slane %v2054_v4, 5  ;;  %v1916_v45 = vld [vmem:[#allocation2 + $0x4c] sm:$0xf] }
  0xd5   : > { %4647 = vmatmul.mubr.bf16.gmra.mrb[60].mxu1 %v5498_v8  ;;  %v2060_v18 = vrot.slane %v2058_v5, 4  ;;  %v1650_v24 = vrot.slane %v1502_v19, 5  ;;  %v5555_v25 = vcombine.low %v2539_v7, %v2542_v11  ;;  %v2066_v27 = vrot.slane %v2064_v9, 5  ;;  %v2430_v5 = vld [vmem:[#allocation2 + $0x54] sm:$0xe]  ;;  %v214_v9 = vld [vmem:[%s6486_s14 + $0xf8] sm:$0xff] }
  0xd6   : > { %6218 = vmatpush3.bf16.msra.mxu0 %v6381_v23  ;;  %4654 = vmatprep.mubr.bf16.mxu1 %v6374_v52  ;;  %v2051_v21 = vor.u32 %v2050_v13, %v2047_v12  ;;  %v5483_v23 = vrot.slane %v1501_v14, 9  ;;  %v1653_v28 = vrot.slane %v1503_v22, 5  ;;  %v5522_v30 = vcombine.low %v2033_v15, %v2043_v16  ;;  %v1917_v52 = vld [vmem:[#allocation2 + $0x50] sm:$0x1]  ;;  %v2431_v13 = vld [vmem:[#allocation2 + $0x58] sm:$0xf] }
  0xd7   : > { %6219 = vmatprep.subr.bf16.mxu0 %v6384_v60  ;;  %v2061_v26 = vor.u32 %v2060_v18, %v2056_v17  ;;  %v1652_v34 = vrot.slane %v1650_v24, 4  ;;  %v5540_v39 = vrot.slane %v2427_v29, 9  ;;  %v2545_v40 = vrot.slane %v2428_v35, 5  ;;  %v2432_v16 = vld [vmem:[#allocation2 + $0x5c] sm:$0x1] }
  0xd8   : > { %v2052_v31 = vrot.slane %v2051_v21, 4  ;;  %v1651_v32 = vsel %vm6724_vm13, %v5483_v23, %v1650_v24  ;;  %v2548_v41 = vrot.slane %v2429_v36, 5  ;;  %v7065_v46 = vpack.c.bf16 %v213_v20, %v213_v20  ;;  %v6379_v23 = vld [vmem:[#allocation2 + $0xb4] sm:$0xff]  }
  0xd9   : > { %4736 = vmatmul.mubr.bf16.gmra.mrb[56].mxu0 %v5521_v54  ;;  %v2062_v38 = vrot.slane %v2061_v26, 4  ;;  %v1654_v42 = vsel %vm6724_vm13, %v1652_v34, %v1653_v28  ;;  %v2547_v51 = vrot.slane %v2545_v40, 4  ;;  %v1504_v54 = vld [vmem:[#allocation2 + $0x9c] sm:$0xe]  ;;  %v2546_v56 = vsel %vm6724_vm13, %v5540_v39, %v2545_v40  ;;  %v1918_v24 = vld [vmem:[#allocation2 + $0x54] sm:$0xf] }
  0xda   : > { %4743 = vmatprep.mubr.bf16.mxu0 %v5554_v55  ;;  %6220 = vmatpush3.bf16.msra.mxu0 %v6384_v60  ;;  %v2057_v47 = vsel %vm6501_vm6, %v2052_v31, %v2056_v17  ;;  %v5499_v50 = vcombine.low %v1651_v32, %v1654_v42  ;;  %v2069_v57 = vshrl.u32 %v1915_v44, 16  ;;  %v2072_v58 = vshll.u32 %v1915_v44, 16  ;;  %v1505_v60 = vld [vmem:[#allocation2 + $0xa0] sm:$0xf]  ;;  %v6390_v55 = vld [vmem:[%s7979_s1 + $0x230] sm:$0xff]   ;;  %v6393_v35 = vld [vmem:[%s7979_s1 + $0x238] sm:$0xff]  }
  0xdb   : > { %6221 = vmatprep.subr.bf16.mxu0 %v6387_v10  ;;  %v2067_v48 = vsel %vm6501_vm6, %v2062_v38, %v2066_v27  ;;  %v2078_v59 = vshll.u32 %v1916_v45, 16  ;;  %v2549_v61 = vsel %vm6724_vm13, %v2547_v51, %v2548_v41  ;;  %v2082_v62 = vshrl.u32 %v1916_v45, 16  ;;  %v1919_v27 = vld [vmem:[#allocation2 + $0x58] sm:$0xf]  ;;  %v1920_v28 = vld [vmem:[#allocation2 + $0x5c] sm:$0x1] }
  0xdc   : > { %v2088_v63 = vshll.u32 %v1917_v52, 16  ;;  %v5484_v1 = vrot.slane %v1504_v54, 9  ;;  %v5523_v8 = vcombine.low %v2057_v47, %v2067_v48  ;;  %v2071_v2 = vrot.slane %v2069_v57, 4  ;;  %v1507_v45 = vld [vmem:[#allocation2 + $0xa8] sm:$0xe] }
  0xdd   : > { %4655 = vmatmul.mubr.bf16.gmra.mrb[64].mxu1 %v5499_v50  ;;  %v2074_v3 = vrot.slane %v2072_v58, 5  ;;  %v2080_v4 = vrot.slane %v2078_v59, 5  ;;  %v1657_v11 = vrot.slane %v1505_v60, 5  ;;  %v1660_v12 = vrot.slane %v1506_v0, 5  ;;  %v1508_v52 = vld [vmem:[#allocation2 + $0xac] sm:$0xf] }
  0xde   : > { %6222 = vmatpush3.bf16.msra.mxu0 %v6387_v10  ;;  %4662 = vmatprep.mubr.bf16.mxu1 %v6378_v37  ;;  %v2084_v10 = vrot.slane %v2082_v62, 4  ;;  %v2090_v7 = vrot.slane %v2088_v63, 5  ;;  %v5556_v14 = vcombine.low %v2546_v56, %v2549_v61  ;;  %v5541_v17 = vrot.slane %v2430_v5, 9  ;;  %v1509_v57 = vld [vmem:[#allocation2 + $0xb0] sm:$0x1] }
  0xdf   : > { %6223 = vmatprep.subr.bf16.mxu0 %v6390_v55  ;;  %v2075_v15 = vor.u32 %v2074_v3, %v2071_v2  ;;  %v2552_v18 = vrot.slane %v2431_v13, 5  ;;  %v1658_v20 = vsel %vm6724_vm13, %v5484_v1, %v1657_v11  ;;  %v1659_v21 = vrot.slane %v1657_v11, 4  ;;  %v2433_v2 = vld [vmem:[#allocation2 + $0x60] sm:$0xe]  ;;  %v2434_v3 = vld [vmem:[#allocation2 + $0x64] sm:$0xf] }
  0xe0   : > { %v2085_v19 = vor.u32 %v2084_v10, %v2080_v4  ;;  %v2555_v22 = vrot.slane %v2432_v16, 5  ;;  %v7081_v29 = vpack.c.bf16 %v214_v9, %v214_v9  ;;  %v2093_v32 = vshrl.u32 %v1918_v24, 16  ;;  %v2435_v5 = vld [vmem:[#allocation2 + $0x68] sm:$0x1] }
  0xe1   : > { %4744 = vmatmul.mubr.bf16.gmra.mrb[60].mxu0 %v5522_v30  ;;  %v2554_v26 = vrot.slane %v2552_v18, 4  ;;  %v1661_v31 = vsel %vm6724_vm13, %v1659_v21, %v1660_v12  ;;  %v2096_v34 = vshll.u32 %v1918_v24, 16  ;;  %v2102_v38 = vshll.u32 %v1919_v27, 16  ;;  %v1922_v21 = vld [vmem:[#allocation2 + $0x64] sm:$0xf] }
  0xe2   : > { %4751 = vmatprep.mubr.bf16.mxu0 %v5555_v25  ;;  %6224 = vmatpush3.bf16.msra.mxu0 %v6390_v55  ;;  %v2076_v25 = vrot.slane %v2075_v15, 4  ;;  %v2086_v30 = vrot.slane %v2085_v19, 4  ;;  %v5500_v37 = vcombine.low %v1658_v20, %v1661_v31  ;;  %v624_v39 = vshrl.u32 %v7065_v46, 16  ;;  %v1921_v15 = vld [vmem:[#allocation2 + $0x60] sm:$0xf] }
  0xe3   : > { %v2553_v41 = vsel %vm6724_vm13, %v5541_v17, %v2552_v18  ;;  %v2095_v42 = vrot.slane %v2093_v32, 4  ;;  %v2098_v44 = vrot.slane %v2096_v34, 5  ;;  %6225 = vmatprep.subr.bf16.mxu0 %v6393_v35  ;;  %v2556_v47 = vsel %vm6724_vm13, %v2554_v26, %v2555_v22  ;;  %v799_v20 = vld [vmem:[#allocation2 + $0xc0] sm:$0xf]  ;;  %v1923_v24 = vld [vmem:[#allocation2 + $0x68] sm:$0x1] }
  0xe4   : > { %v2081_v36 = vsel %vm6501_vm6, %v2076_v25, %v2080_v4  ;;  %v2091_v40 = vsel %vm6501_vm6, %v2086_v30, %v2090_v7  ;;  %v2104_v48 = vrot.slane %v2102_v38, 5  ;;  %v2106_v50 = vshrl.u32 %v1919_v27, 16  ;;  %v1510_v31 = vld [vmem:[#allocation2 + $0xb4] sm:$0xe]  ;;  %v1511_v32 = vld [vmem:[#allocation2 + $0xb8] sm:$0xf] }
  0xe5   : > { %4663 = vmatmul.mubr.bf16.gmra.mrb[68].mxu1 %v5500_v37  ;;  %v2112_v51 = vshll.u32 %v1920_v28, 16  ;;  %v5524_v54 = vcombine.low %v2081_v36, %v2091_v40  ;;  %v2099_v56 = vor.u32 %v2098_v44, %v2095_v42  ;;  %v5485_v58 = vrot.slane %v1507_v45, 9  ;;  %v1512_v37 = vld [vmem:[#allocation2 + $0xbc] sm:$0x1]  ;;  %v2436_v38 = vld [vmem:[#allocation2 + $0x6c] sm:$0xe] }
  0xe6   : > { %6226 = vmatpush3.bf16.msra.mxu0 %v6393_v35  ;;  %4670 = vmatprep.mubr.bf16.mxu1 %v6379_v23  ;;  %v1664_v59 = vrot.slane %v1508_v52, 5  ;;  %v2108_v60 = vrot.slane %v2106_v50, 4  ;;  %v1667_v61 = vrot.slane %v1509_v57, 5  ;;  %v626_v62 = vrot.slane %v624_v39, 7  ;;  %v2437_v44 = vld [vmem:[#allocation2 + $0x70] sm:$0xf] }
  0xe7   : > { %v2114_v55 = vrot.slane %v2112_v51, 5  ;;  %v5557_v63 = vcombine.low %v2553_v41, %v2556_v47  ;;  %v2100_v0 = vrot.slane %v2099_v56, 4  ;;  %v5542_v9 = vrot.slane %v2433_v2, 9  ;;  %v2438_v51 = vld [vmem:[#allocation2 + $0x74] sm:$0x1] }
  0xe8   : > { %v1665_v1 = vsel %vm6724_vm13, %v5485_v58, %v1664_v59  ;;  %v2109_v4 = vor.u32 %v2108_v60, %v2104_v48  ;;  %v2559_v10 = vrot.slane %v2434_v3, 5  ;;  %v627_v7 = vshll.u32 %v7065_v46, 16  ;;  %v1924_v57 = vld [vmem:[#allocation2 + $0x6c] sm:$0xf]  ;;  %v2845_v2 = vld [vmem:[#allocation2 + $0x18] sm:$0xf] }
  0xe9   : > { %4752 = vmatmul.mubr.bf16.gmra.mrb[64].mxu0 %v5523_v8  ;;  %v1666_v8 = vrot.slane %v1664_v59, 4  ;;  %v2105_v11 = vsel %vm6501_vm6, %v2100_v0, %v2104_v48  ;;  %v2562_v13 = vrot.slane %v2435_v5, 5  ;;  %v632_v22 = vshrl.u32 %v7081_v29, 16 }
  0xea   : > { %4759 = vmatprep.mubr.bf16.mxu0 %v5556_v14  ;;  %v630_v14 = vrot.slane %v626_v62, 4  ;;  %v2110_v16 = vrot.slane %v2109_v4, 4  ;;  %v2560_v18 = vsel %vm6724_vm13, %v5542_v9, %v2559_v10  ;;  %v2561_v19 = vrot.slane %v2559_v10, 4  ;;  %v2846_v9 = vld [vmem:[#allocation2 + $0x1c] sm:$0xf] }
  0xeb   : > { %v1668_v12 = vsel %vm6724_vm13, %v1666_v8, %v1667_v61  ;;  %v629_v46 = vor.u32 %v627_v7, %v626_v62  ;;  %v635_v23 = vshll.u32 %v7081_v29, 16  ;;  %v2117_v25 = vshrl.u32 %v1921_v15, 16  ;;  %v1925_v61 = vld [vmem:[#allocation2 + $0x70] sm:$0xf]  ;;  %v1926_v8 = vld [vmem:[#allocation2 + $0x74] sm:$0x1] }
  0xec   : > { %v5501_v17 = vcombine.low %v1665_v1, %v1668_v12  ;;  %v2115_v26 = vsel %vm6501_vm6, %v2110_v16, %v2114_v55  ;;  %v2563_v27 = vsel %vm6724_vm13, %v2561_v19, %v2562_v13  ;;  %v2120_v28 = vshll.u32 %v1921_v15, 16 }
  0xed   : > { %v2126_v30 = vshll.u32 %v1922_v21, 16  ;;  %v5525_v34 = vcombine.low %v2105_v11, %v2115_v26  ;;  %v5558_v35 = vcombine.low %v2560_v18, %v2563_v27  ;;  %v7112_v36 = vrot.slane %v632_v22, 7  ;;  %v2440_v26 = vld [vmem:[#allocation2 + $0x7c] sm:$0xf] }
  0xee   : > { %4671 = vmatmul.mubr.bf16.gmra.mrb[72].mxu1 %v5501_v17  ;;  %v800_v29 = vsel %vm6521_vm9, %v629_v46, %v799_v20  ;;  %v2119_v39 = vrot.slane %v2117_v25, 4  ;;  %v2122_v40 = vrot.slane %v2120_v28, 5  ;;  %v2130_v42 = vshrl.u32 %v1922_v21, 16  ;;  %v2847_v21 = vld [vmem:[#allocation2 + $0x20] sm:$0x1] }
  0xef   : > { %801 = vst [vmem:[#allocation2 + $0xc0] sm:$0xf] %v800_v29  ;;  %v2128_v41 = vrot.slane %v2126_v30, 5  ;;  %v637_v45 = vor.u32 %v635_v23, %v7112_v36  ;;  %v639_v47 = vrot.slane %v7112_v36, 4  ;;  %v2136_v48 = vshll.u32 %v1923_v24, 16 }
  0xf0   : > { %v5486_v50 = vrot.slane %v1510_v31, 9  ;;  %v2123_v52 = vor.u32 %v2122_v40, %v2119_v39  ;;  %v1671_v56 = vrot.slane %v1511_v32, 5  ;;  %v1674_v49 = vrot.slane %v1512_v37, 5  ;;  %v2439_v46 = vld [vmem:[#allocation2 + $0x78] sm:$0xe] }
  0xf1   : > { %4760 = vmatmul.mubr.bf16.gmra.mrb[68].mxu0 %v5524_v54  ;;  %v2132_v54 = vrot.slane %v2130_v42, 4  ;;  %v638_v58 = vsel %vm6510_vm8, %v630_v14, %v637_v45  ;;  %v2138_v59 = vrot.slane %v2136_v48, 5  ;;  %v5543_v60 = vrot.slane %v2436_v38, 9 }
  0xf2   : > { %4767 = vmatprep.mubr.bf16.mxu0 %v5557_v63  ;;  %v2566_v55 = vrot.slane %v2437_v44, 5  ;;  %802 = vst [vmem:[#allocation2 + $0xc4] sm:$0xf] %v638_v58  ;;  %v2124_v62 = vrot.slane %v2123_v52, 4  ;;  %v1672_v0 = vsel %vm6724_vm13, %v5486_v50, %v1671_v56  ;;  %v1673_v1 = vrot.slane %v1671_v56, 4 }
  0xf3   : > { %v2133_v63 = vor.u32 %v2132_v54, %v2128_v41  ;;  %v2569_v4 = vrot.slane %v2438_v51, 5  ;;  %v2141_v5 = vshrl.u32 %v1924_v57, 16  ;;  %v2144_v12 = vshll.u32 %v1924_v57, 16  ;;  %v1927_v56 = vld [vmem:[#allocation2 + $0x78] sm:$0xf] }
  0xf4   : > { %v2567_v3 = vsel %vm6724_vm13, %v5543_v60, %v2566_v55  ;;  %v2568_v43 = vrot.slane %v2566_v55, 4  ;;  %v2129_v10 = vsel %vm6501_vm6, %v2124_v62, %v2128_v41  ;;  %v1675_v11 = vsel %vm6724_vm13, %v1673_v1, %v1674_v49  ;;  %v1928_v60 = vld [vmem:[#allocation2 + $0x7c] sm:$0xf] }
  0xf5   : > { %v2134_v7 = vrot.slane %v2133_v63, 4  ;;  %v5502_v13 = vcombine.low %v1672_v0, %v1675_v11  ;;  %v2143_v15 = vrot.slane %v2141_v5, 4  ;;  %v2150_v16 = vshll.u32 %v1925_v61, 16  ;;  %v1929_v0 = vld [vmem:[#allocation2 + $0x80] sm:$0x1] }
  0xf6   : > { %v2570_v14 = vsel %vm6724_vm13, %v2568_v43, %v2569_v4  ;;  %v2146_v19 = vrot.slane %v2144_v12, 5  ;;  %v2154_v20 = vshrl.u32 %v1925_v61, 16  ;;  %v2160_v24 = vshll.u32 %v1926_v8, 16 }
  0xf7   : > { %v2139_v17 = vsel %vm6501_vm6, %v2134_v7, %v2138_v59  ;;  %v5559_v18 = vcombine.low %v2567_v3, %v2570_v14  ;;  %v2152_v23 = vrot.slane %v2150_v16, 5  ;;  %v2894_v25 = vshrl.u32 %v2845_v2, 16  ;;  %v2848_v7 = vld [vmem:[#allocation2 + $0x24] sm:$0xf] }
  0xf8   : > { %v5526_v22 = vcombine.low %v2129_v10, %v2139_v17  ;;  %v2147_v28 = vor.u32 %v2146_v19, %v2143_v15  ;;  %v2156_v30 = vrot.slane %v2154_v20, 4  ;;  %v2897_v31 = vshll.u32 %v2845_v2, 16  ;;  %v2849_v15 = vld [vmem:[#allocation2 + $0x28] sm:$0xf]  ;;  %v6385_v17 = vld [vmem:[#allocation2 + $0x18] sm:$0xff]  }
  0xf9   : > { %4768 = vmatmul.mubr.bf16.gmra.mrb[72].mxu0 %v5525_v34  ;;  %v2903_v32 = vshll.u32 %v2846_v9, 16  ;;  %v2441_v34 = vld [vmem:[#allocation2 + $0x80] sm:$0x1]  ;;  %v2162_v37 = vrot.slane %v2160_v24, 5  ;;  %v2896_v38 = vrot.slane %v2894_v25, 4  ;;  %v2907_v39 = vshrl.u32 %v2846_v9, 16 }
  0xfa   : > { %4775 = vmatprep.mubr.bf16.mxu0 %v5558_v35  ;;  %v6383_v29 = vld [vmem:[#allocation2 + $0xc0] sm:$0xff]   ;;  %v2148_v41 = vrot.slane %v2147_v28, 4  ;;  %v2157_v42 = vor.u32 %v2156_v30, %v2152_v23  ;;  %v2899_v44 = vrot.slane %v2897_v31, 5  ;;  %v2913_v51 = vshll.u32 %v2847_v21, 16  ;;  %v2850_v21 = vld [vmem:[#allocation2 + $0x2c] sm:$0x1] }
  0xfb   : > { %v2905_v45 = vrot.slane %v2903_v32, 5  ;;  %4678 = vmatprep.mubr.bf16.mxu1 %v6383_v29  ;;  %v2909_v50 = vrot.slane %v2907_v39, 4  ;;  %v5544_v52 = vrot.slane %v2439_v46, 9  ;;  %v2573_v54 = vrot.slane %v2440_v26, 5  ;;  %v2442_v25 = vld [vmem:[#allocation2 + $0x84] sm:$0xe] }
  0xfc   : > { %4679 = vmatmul.mubr.bf16.gmra.mrb[76].mxu1 %v5502_v13  ;;  %v2153_v49 = vsel %vm6501_vm6, %v2148_v41, %v2152_v23  ;;  %v2158_v57 = vrot.slane %v2157_v42, 4  ;;  %v2900_v58 = vor.u32 %v2899_v44, %v2896_v38  ;;  %v2576_v59 = vrot.slane %v2441_v34, 5  ;;  %v2443_v26 = vld [vmem:[#allocation2 + $0x88] sm:$0xf]  ;;  %v2444_v32 = vld [vmem:[#allocation2 + $0x8c] sm:$0x1] }
  0xfd   : > { %v2910_v55 = vor.u32 %v2909_v50, %v2905_v45  ;;  %v2915_v61 = vrot.slane %v2913_v51, 5  ;;  %v2574_v62 = vsel %vm6724_vm13, %v5544_v52, %v2573_v54  ;;  %v2575_v63 = vrot.slane %v2573_v54, 4  ;;  %v1930_v38 = vld [vmem:[#allocation2 + $0x84] sm:$0xf] }
  0xfe   : > { %v2163_v1 = vsel %vm6501_vm6, %v2158_v57, %v2162_v37  ;;  %v2901_v8 = vrot.slane %v2900_v58, 4  ;;  %v2165_v2 = vshrl.u32 %v1927_v56, 16  ;;  %v2168_v3 = vshll.u32 %v1927_v56, 16 }
  0xff   : > { %v5527_v4 = vcombine.low %v2153_v49, %v2163_v1  ;;  %v2911_v5 = vrot.slane %v2910_v55, 4  ;;  %v2577_v9 = vsel %vm6724_vm13, %v2575_v63, %v2576_v59  ;;  %v2174_v10 = vshll.u32 %v1928_v60, 16  ;;  %v1932_v59 = vld [vmem:[#allocation2 + $0x8c] sm:$0x1] }
 0x100   : > { %v2906_v11 = vsel %vm6501_vm6, %v2901_v8, %v2905_v45  ;;  %v5560_v12 = vcombine.low %v2574_v62, %v2577_v9  ;;  %v2167_v13 = vrot.slane %v2165_v2, 4  ;;  %v2170_v14 = vrot.slane %v2168_v3, 5  ;;  %v1931_v45 = vld [vmem:[#allocation2 + $0x88] sm:$0xf] }
 0x101   : > { %v5755_v27 = vpop.f32.mrb[0].mxu0  ;;  %4776 = vmatmul.mubr.bf16.gmra.mrb[76].mxu0 %v5526_v22  ;;  %v2916_v16 = vsel %vm6501_vm6, %v2911_v5, %v2915_v61  ;;  %v2178_v19 = vshrl.u32 %v1928_v60, 16  ;;  %v2184_v20 = vshll.u32 %v1929_v0, 16  ;;  %v2918_v23 = vshrl.u32 %v2848_v7, 16  ;;  %v2851_v5 = vld [vmem:[#allocation2 + $0x30] sm:$0xf] }
 0x102   : > { %v5756_v35 = vpop.f32.mrb[1].mxu0  ;;  %4783 = vmatprep.mubr.bf16.mxu0 %v5559_v18  ;;  %v2176_v18 = vrot.slane %v2174_v10, 5  ;;  %v5583_v46 = vcombine.low %v2906_v11, %v2916_v16  ;;  %v2171_v22 = vor.u32 %v2170_v14, %v2167_v13  ;;  %v2921_v24 = vshll.u32 %v2848_v7, 16  ;;  %v6386_v11 = vld [vmem:[#allocation2 + $0x24] sm:$0xff]   ;;  %v2852_v14 = vld [vmem:[#allocation2 + $0x34] sm:$0xf] }
 0x103   : > { %v7132_v40 = vadd.f32 %v5756_v35, %v5755_v27  ;;  %v7134_v48 = vpop.f32.mrb[2].mxu0  ;;  %v2180_v27 = vrot.slane %v2178_v19, 4  ;;  %v2186_v28 = vrot.slane %v2184_v20, 5  ;;  %v2927_v30 = vshll.u32 %v2849_v15, 16  ;;  %v2853_v19 = vld [vmem:[#allocation2 + $0x38] sm:$0x1] }
 0x104   : > { %v7142_v43 = vpop.f32.mrb[3].mxu0  ;;  %v2931_v31 = vshrl.u32 %v2849_v15, 16  ;;  %4880 = vmatprep.mubr.bf16.mxu1 %v5583_v46  ;;  %v2172_v34 = vrot.slane %v2171_v22, 4  ;;  %v2920_v35 = vrot.slane %v2918_v23, 4  ;;  %v2923_v29 = vrot.slane %v2921_v24, 5 }
 0x105   : > { %v2937_v37 = vshll.u32 %v2850_v21, 16  ;;  %4881 = vmatmul.mubr.bf16.vlgmr.msra.gmra.mrb[80].mxu1 %v6385_v17  ;;  %v2181_v39 = vor.u32 %v2180_v27, %v2176_v18  ;;  %v2929_v41 = vrot.slane %v2927_v30, 5  ;;  %v5545_v44 = vrot.slane %v2442_v25, 9  ;;  %v2445_v20 = vld [vmem:[#allocation2 + $0x90] sm:$0xe] }
 0x106   : > { %v2933_v42 = vrot.slane %v2931_v31, 4  ;;  %v2177_v51 = vsel %vm6501_vm6, %v2172_v34, %v2176_v18  ;;  %v2924_v52 = vor.u32 %v2923_v29, %v2920_v35  ;;  %v2580_v56 = vrot.slane %v2443_v26, 5  ;;  %v2446_v24 = vld [vmem:[#allocation2 + $0x94] sm:$0xf]  ;;  %v2447_v25 = vld [vmem:[#allocation2 + $0x98] sm:$0x1] }
 0x107   : > { %v2939_v54 = vrot.slane %v2937_v37, 5  ;;  %v2182_v49 = vrot.slane %v2181_v39, 4  ;;  %v2583_v58 = vrot.slane %v2444_v32, 5  ;;  %v2189_v60 = vshrl.u32 %v1930_v38, 16  ;;  %v1933_v31 = vld [vmem:[#allocation2 + $0x90] sm:$0xf] }
 0x108   : > { %v2934_v57 = vor.u32 %v2933_v42, %v2929_v41  ;;  %v2925_v61 = vrot.slane %v2924_v52, 4  ;;  %v2581_v62 = vsel %vm6724_vm13, %v5545_v44, %v2580_v56  ;;  %v2582_v63 = vrot.slane %v2580_v56, 4  ;;  %v1934_v37 = vld [vmem:[#allocation2 + $0x94] sm:$0xf] }
 0x109   : > { %4784 = vmatmul.mubr.bf16.gmra.mrb[80].mxu0 %v5527_v4  ;;  %v2192_v0 = vshll.u32 %v1930_v38, 16  ;;  %v2187_v8 = vsel %vm6501_vm6, %v2182_v49, %v2186_v28  ;;  %v2191_v3 = vrot.slane %v2189_v60, 4  ;;  %v2198_v4 = vshll.u32 %v1931_v45, 16 }
 0x10a   : > { %4791 = vmatprep.mubr.bf16.mxu0 %v5560_v12  ;;  %v2935_v2 = vrot.slane %v2934_v57, 4  ;;  %v5528_v10 = vcombine.low %v2177_v51, %v2187_v8  ;;  %v2930_v7 = vsel %vm6501_vm6, %v2925_v61, %v2929_v41  ;;  %v2584_v12 = vsel %vm6724_vm13, %v2582_v63, %v2583_v58 }
 0x10b   : > { %v2194_v13 = vrot.slane %v2192_v0, 5  ;;  %v5561_v16 = vcombine.low %v2581_v62, %v2584_v12  ;;  %v2200_v17 = vrot.slane %v2198_v4, 5  ;;  %v2202_v18 = vshrl.u32 %v1931_v45, 16  ;;  %v6388_v4 = vld [vmem:[#allocation2 + $0x30] sm:$0xff]  }
 0x10c   : > { %v2940_v15 = vsel %vm6501_vm6, %v2935_v2, %v2939_v54  ;;  %v2208_v22 = vshll.u32 %v1932_v59, 16  ;;  %v2942_v23 = vshrl.u32 %v2851_v5, 16  ;;  %v2945_v27 = vshll.u32 %v2851_v5, 16  ;;  %v1935_v5 = vld [vmem:[#allocation2 + $0x98] sm:$0x1] }
 0x10d   : > { %v5584_v21 = vcombine.low %v2930_v7, %v2940_v15  ;;  %v2195_v46 = vor.u32 %v2194_v13, %v2191_v3  ;;  %v2204_v26 = vrot.slane %v2202_v18, 4  ;;  %v2951_v28 = vshll.u32 %v2852_v14, 16  ;;  %v2854_v15 = vld [vmem:[#allocation2 + $0x3c] sm:$0xf] }
 0x10e   : > { %v2955_v30 = vshrl.u32 %v2852_v14, 16  ;;  %v2210_v34 = vrot.slane %v2208_v22, 5  ;;  %v2944_v35 = vrot.slane %v2942_v23, 4  ;;  %v2961_v29 = vshll.u32 %v2853_v19, 16 }
 0x10f   : > { %4888 = vmatprep.mubr.bf16.mxu1 %v5584_v21  ;;  %v2196_v32 = vrot.slane %v2195_v46, 4  ;;  %v2205_v38 = vor.u32 %v2204_v26, %v2200_v17  ;;  %v2947_v39 = vrot.slane %v2945_v27, 5  ;;  %v2953_v41 = vrot.slane %v2951_v28, 5  ;;  %v2856_v21 = vld [vmem:[#allocation2 + $0x44] sm:$0x1] }
 0x110   : > { %4889 = vmatmul.mubr.bf16.gmra.mrb[84].mxu1 %v6386_v11  ;;  %v2957_v42 = vrot.slane %v2955_v30, 4  ;;  %v2963_v51 = vrot.slane %v2961_v29, 5  ;;  %v5546_v52 = vrot.slane %v2445_v20, 9  ;;  %v2587_v54 = vrot.slane %v2446_v24, 5  ;;  %v2448_v46 = vld [vmem:[#allocation2 + $0x9c] sm:$0xe] }
 0x111   : > { %4792 = vmatmul.mubr.bf16.gmra.mrb[84].mxu0 %v5528_v10  ;;  %v2201_v45 = vsel %vm6501_vm6, %v2196_v32, %v2200_v17  ;;  %v2206_v49 = vrot.slane %v2205_v38, 4  ;;  %v2948_v57 = vor.u32 %v2947_v39, %v2944_v35  ;;  %v2590_v59 = vrot.slane %v2447_v25, 5  ;;  %v2449_v27 = vld [vmem:[#allocation2 + $0xa0] sm:$0xf]  ;;  %v2450_v28 = vld [vmem:[#allocation2 + $0xa4] sm:$0x1] }
 0x112   : > { %4799 = vmatprep.mubr.bf16.mxu0 %v5561_v16  ;;  %v2958_v58 = vor.u32 %v2957_v42, %v2953_v41  ;;  %v2588_v60 = vsel %vm6724_vm13, %v5546_v52, %v2587_v54  ;;  %v2589_v61 = vrot.slane %v2587_v54, 4  ;;  %v2213_v62 = vshrl.u32 %v1933_v31, 16  ;;  %v2855_v16 = vld [vmem:[#allocation2 + $0x40] sm:$0xf]  ;;  %v1936_v35 = vld [vmem:[#allocation2 + $0x9c] sm:$0xf] }
 0x113   : > { %v2216_v63 = vshll.u32 %v1933_v31, 16  ;;  %v2211_v8 = vsel %vm6501_vm6, %v2206_v49, %v2210_v34  ;;  %v2949_v2 = vrot.slane %v2948_v57, 4  ;;  %v2222_v10 = vshll.u32 %v1934_v37, 16  ;;  %v1937_v29 = vld [vmem:[#allocation2 + $0xa0] sm:$0xf] }
 0x114   : > { %v2959_v3 = vrot.slane %v2958_v58, 4  ;;  %v5529_v11 = vcombine.low %v2201_v45, %v2211_v8  ;;  %v2591_v12 = vsel %vm6724_vm13, %v2589_v61, %v2590_v59  ;;  %v2215_v13 = vrot.slane %v2213_v62, 4  ;;  %v1938_v8 = vld [vmem:[#allocation2 + $0xa4] sm:$0x1] }
 0x115   : > { %v7150_v50 = vpop.f32.mrb[0].mxu1  ;;  %v2218_v14 = vrot.slane %v2216_v63, 5  ;;  %v2954_v17 = vsel %vm6501_vm6, %v2949_v2, %v2953_v41  ;;  %v5562_v19 = vcombine.low %v2588_v60, %v2591_v12  ;;  %v2224_v20 = vrot.slane %v2222_v10, 5 }
 0x116   : > { %v7154_v55 = vpop.f32.mrb[1].mxu1  ;;  %v2964_v18 = vsel %vm6501_vm6, %v2959_v3, %v2963_v51  ;;  %v2226_v25 = vshrl.u32 %v1934_v37, 16  ;;  %v2232_v26 = vshll.u32 %v1935_v5, 16  ;;  %v2966_v30 = vshrl.u32 %v2854_v15, 16 }
 0x117   : > { %v7158_v1 = vpop.f32.mrb[2].mxu1  ;;  %v5585_v23 = vcombine.low %v2954_v17, %v2964_v18  ;;  %v2219_v24 = vor.u32 %v2218_v14, %v2215_v13  ;;  %v2969_v31 = vshll.u32 %v2854_v15, 16  ;;  %v2975_v32 = vshll.u32 %v2855_v16, 16  ;;  %v2857_v13 = vld [vmem:[#allocation2 + $0x48] sm:$0xf] }
 0x118   : > { %v7162_v9 = vpop.f32.mrb[3].mxu1  ;;  %v2979_v34 = vshrl.u32 %v2855_v16, 16  ;;  %v2228_v39 = vrot.slane %v2226_v25, 4  ;;  %v2234_v41 = vrot.slane %v2232_v26, 5  ;;  %v2985_v42 = vshll.u32 %v2856_v21, 16 }
 0x119   : > { %4800 = vmatmul.mubr.bf16.gmra.mrb[88].mxu0 %v5529_v11  ;;  %4896 = vmatprep.mubr.bf16.mxu1 %v5585_v23  ;;  %v2220_v38 = vrot.slane %v2219_v24, 4  ;;  %v2968_v45 = vrot.slane %v2966_v30, 4  ;;  %v2971_v51 = vrot.slane %v2969_v31, 5  ;;  %v2977_v52 = vrot.slane %v2975_v32, 5  ;;  %v6389_v24 = vld [vmem:[#allocation2 + $0x3c] sm:$0xff]  }
 0x11a   : > { %4807 = vmatprep.mubr.bf16.mxu0 %v5562_v19  ;;  %4897 = vmatmul.mubr.bf16.gmra.mrb[88].mxu1 %v6388_v4  ;;  %v2981_v37 = vrot.slane %v2979_v34, 4  ;;  %v2229_v49 = vor.u32 %v2228_v39, %v2224_v20  ;;  %v2987_v57 = vrot.slane %v2985_v42, 5  ;;  %v5547_v58 = vrot.slane %v2448_v46, 9  ;;  %v2858_v19 = vld [vmem:[#allocation2 + $0x4c] sm:$0xf] }
 0x11b   : > { %v2225_v54 = vsel %vm6501_vm6, %v2220_v38, %v2224_v20  ;;  %v2972_v59 = vor.u32 %v2971_v51, %v2968_v45  ;;  %v2594_v61 = vrot.slane %v2449_v27, 5  ;;  %v2597_v62 = vrot.slane %v2450_v28, 5  ;;  %v2859_v26 = vld [vmem:[#allocation2 + $0x50] sm:$0x1]  ;;  %v2451_v32 = vld [vmem:[#allocation2 + $0xa8] sm:$0xe] }
 0x11c   : > { %v2982_v60 = vor.u32 %v2981_v37, %v2977_v52  ;;  %v2230_v63 = vrot.slane %v2229_v49, 4  ;;  %v2237_v2 = vshrl.u32 %v1936_v35, 16  ;;  %v2240_v3 = vshll.u32 %v1936_v35, 16  ;;  %v2452_v42 = vld [vmem:[#allocation2 + $0xac] sm:$0xf] }
 0x11d   : > { %v2246_v5 = vshll.u32 %v1937_v29, 16  ;;  %v2973_v4 = vrot.slane %v2972_v59, 4  ;;  %v2595_v11 = vsel %vm6724_vm13, %v5547_v58, %v2594_v61  ;;  %v2596_v12 = vrot.slane %v2594_v61, 4  ;;  %v1939_v59 = vld [vmem:[#allocation2 + $0xa8] sm:$0xf] }
 0x11e   : > { %v7170_v44 = vpop.f32.mrb[4].mxu0  ;;  %v2983_v10 = vrot.slane %v2982_v60, 4  ;;  %v2235_v15 = vsel %vm6501_vm6, %v2230_v63, %v2234_v41  ;;  %v2239_v16 = vrot.slane %v2237_v2, 4  ;;  %v2242_v17 = vrot.slane %v2240_v3, 5 }
 0x11f   : > { %v7174_v56 = vpop.f32.mrb[5].mxu0  ;;  %v7200_v18 = vrot.slane %v2246_v5, 5  ;;  %v5530_v21 = vcombine.low %v2225_v54, %v2235_v15  ;;  %v2978_v46 = vsel %vm6501_vm6, %v2973_v4, %v2977_v52  ;;  %v2598_v25 = vsel %vm6724_vm13, %v2596_v12, %v2597_v62  ;;  %v2453_v54 = vld [vmem:[#allocation2 + $0xb0] sm:$0x1] }
 0x120   : > { %v7178_v0 = vpop.f32.mrb[4].mxu1  ;;  %v7182_v7 = vpop.f32.mrb[6].mxu0  ;;  %v2988_v23 = vsel %vm6501_vm6, %v2983_v10, %v2987_v57  ;;  %v5563_v28 = vcombine.low %v2595_v11, %v2598_v25  ;;  %v2243_v30 = vor.u32 %v2242_v17, %v2239_v16  ;;  %v2250_v31 = vshrl.u32 %v1937_v29, 16  ;;  %v2860_v17 = vld [vmem:[#allocation2 + $0x54] sm:$0xf] }
 0x121   : > { %v7190_v22 = vpop.f32.mrb[5].mxu1  ;;  %v7196_v14 = vpop.f32.mrb[7].mxu0  ;;  %v5586_v27 = vcombine.low %v2978_v46, %v2988_v23  ;;  %4808 = vmatmul.mubr.bf16.gmra.mrb[92].mxu0 %v5530_v21  ;;  %v2256_v35 = vshll.u32 %v1938_v8, 16  ;;  %v2990_v38 = vshrl.u32 %v2857_v13, 16  ;;  %v2993_v39 = vshll.u32 %v2857_v13, 16 }
 0x122   : > { %v7202_v20 = vpop.f32.mrb[6].mxu1  ;;  %v2999_v41 = vshll.u32 %v2858_v19, 16  ;;  %4815 = vmatprep.mubr.bf16.mxu0 %v5563_v28  ;;  %v2244_v45 = vrot.slane %v2243_v30, 4  ;;  %v2252_v51 = vrot.slane %v2250_v31, 4  ;;  %v3003_v52 = vshrl.u32 %v2858_v19, 16  ;;  %v6391_v28 = vld [vmem:[#allocation2 + $0x48] sm:$0xff]  }
 0x123   : > { %v7210_v34 = vpop.f32.mrb[7].mxu1  ;;  %4904 = vmatprep.mubr.bf16.mxu1 %v5586_v27  ;;  %v3009_v37 = vshll.u32 %v2859_v26, 16  ;;  %v2258_v49 = vrot.slane %v2256_v35, 5  ;;  %v2992_v57 = vrot.slane %v2990_v38, 4  ;;  %v2995_v29 = vrot.slane %v2993_v39, 5 }
 0x124   : > { %4905 = vmatmul.mubr.bf16.gmra.mrb[92].mxu1 %v6389_v24  ;;  %v3001_v58 = vrot.slane %v2999_v41, 5  ;;  %v2249_v60 = vsel %vm6501_vm6, %v2244_v45, %v7200_v18  ;;  %v2253_v61 = vor.u32 %v2252_v51, %v7200_v18  ;;  %v3005_v62 = vrot.slane %v3003_v52, 4  ;;  %v1940_v8 = vld [vmem:[#allocation2 + $0xac] sm:$0xf]  ;;  %v1941_v13 = vld [vmem:[#allocation2 + $0xb0] sm:$0x1] }
 0x125   : > { %v3011_v63 = vrot.slane %v3009_v37, 5  ;;  %v2996_v2 = vor.u32 %v2995_v29, %v2992_v57  ;;  %v5548_v3 = vrot.slane %v2451_v32, 9  ;;  %v2601_v5 = vrot.slane %v2452_v42, 5  ;;  %v2861_v24 = vld [vmem:[#allocation2 + $0x58] sm:$0xf] }
 0x126   : > { %v2604_v4 = vrot.slane %v2453_v54, 5  ;;  %v2254_v11 = vrot.slane %v2253_v61, 4  ;;  %v3006_v12 = vor.u32 %v3005_v62, %v3001_v58  ;;  %v2261_v15 = vshrl.u32 %v1939_v59, 16  ;;  %v2862_v32 = vld [vmem:[#allocation2 + $0x5c] sm:$0x1] }
 0x127   : > { %v2264_v16 = vshll.u32 %v1939_v59, 16  ;;  %v2997_v21 = vrot.slane %v2996_v2, 4  ;;  %v2602_v18 = vsel %vm6724_vm13, %v5548_v3, %v2601_v5  ;;  %v2603_v46 = vrot.slane %v2601_v5, 4  ;;  %v2455_v61 = vld [vmem:[#allocation2 + $0xb8] sm:$0xf] }
 0x128   : > { %v2270_v23 = vshll.u32 %v1940_v8, 16  ;;  %v2259_v26 = vsel %vm6501_vm6, %v2254_v11, %v2258_v49  ;;  %v3007_v27 = vrot.slane %v3006_v12, 4  ;;  %v2263_v30 = vrot.slane %v2261_v15, 4  ;;  %v2454_v49 = vld [vmem:[#allocation2 + $0xb4] sm:$0xe] }
 0x129   : > { %v2266_v31 = vrot.slane %v2264_v16, 5  ;;  %v5531_v38 = vcombine.low %v2249_v60, %v2259_v26  ;;  %v3002_v39 = vsel %vm6501_vm6, %v2997_v21, %v3001_v58  ;;  %v2605_v41 = vsel %vm6724_vm13, %v2603_v46, %v2604_v4  ;;  %v1942_v16 = vld [vmem:[#allocation2 + $0xb4] sm:$0xf] }
 0x12a   : > { %v2272_v42 = vrot.slane %v2270_v23, 5  ;;  %v3012_v51 = vsel %vm6501_vm6, %v3007_v27, %v3011_v63  ;;  %v5564_v52 = vcombine.low %v2602_v18, %v2605_v41  ;;  %v2274_v54 = vshrl.u32 %v1940_v8, 16  ;;  %v2456_v63 = vld [vmem:[#allocation2 + $0xbc] sm:$0x1] }
 0x12b   : > { %v2267_v37 = vor.u32 %v2266_v31, %v2263_v30  ;;  %4816 = vmatmul.mubr.bf16.gmra.mrb[96].mxu0 %v5531_v38  ;;  %v5587_v29 = vcombine.low %v3002_v39, %v3012_v51  ;;  %v2280_v59 = vshll.u32 %v1941_v13, 16  ;;  %v3014_v60 = vshrl.u32 %v2860_v17, 16  ;;  %v1943_v30 = vld [vmem:[#allocation2 + $0xb8] sm:$0xf]  ;;  %v1944_v41 = vld [vmem:[#allocation2 + $0xbc] sm:$0x1] }
 0x12c   : > { %v3017_v58 = vshll.u32 %v2860_v17, 16  ;;  %4823 = vmatprep.mubr.bf16.mxu0 %v5564_v52  ;;  %v2276_v3 = vrot.slane %v2274_v54, 4  ;;  %v3023_v5 = vshll.u32 %v2861_v24, 16  ;;  %v3027_v4 = vshrl.u32 %v2861_v24, 16  ;;  %v2863_v51 = vld [vmem:[#allocation2 + $0x60] sm:$0xf] }
 0x12d   : > { %v2268_v2 = vrot.slane %v2267_v37, 4  ;;  %4912 = vmatprep.mubr.bf16.mxu1 %v5587_v29  ;;  %v2282_v11 = vrot.slane %v2280_v59, 5  ;;  %v3016_v8 = vrot.slane %v3014_v60, 4  ;;  %v3033_v15 = vshll.u32 %v2862_v32, 16 }
 0x12e   : > { %v3019_v12 = vrot.slane %v3017_v58, 5  ;;  %4913 = vmatmul.mubr.bf16.gmra.mrb[96].mxu1 %v6391_v28  ;;  %v2277_v17 = vor.u32 %v2276_v3, %v2272_v42  ;;  %v3025_v21 = vrot.slane %v3023_v5, 5  ;;  %v3029_v18 = vrot.slane %v3027_v4, 4 }
 0x12f   : > { %v2273_v13 = vsel %vm6501_vm6, %v2268_v2, %v2272_v42  ;;  %v3035_v23 = vrot.slane %v3033_v15, 5  ;;  %v5549_v26 = vrot.slane %v2454_v49, 9  ;;  %v2608_v27 = vrot.slane %v2455_v61, 5 }
 0x130   : > { %v3020_v46 = vor.u32 %v3019_v12, %v3016_v8  ;;  %v2278_v31 = vrot.slane %v2277_v17, 4  ;;  %v3030_v38 = vor.u32 %v3029_v18, %v3025_v21  ;;  %v2611_v39 = vrot.slane %v2456_v63, 5  ;;  %v2864_v63 = vld [vmem:[#allocation2 + $0x64] sm:$0xf]  ;;  %v2865_v18 = vld [vmem:[#allocation2 + $0x68] sm:$0x1] }
 0x131   : > { %v2285_v32 = vshrl.u32 %v1942_v16, 16  ;;  %v2609_v42 = vsel %vm6724_vm13, %v5549_v26, %v2608_v27  ;;  %v2610_v37 = vrot.slane %v2608_v27, 4  ;;  %v2288_v54 = vshll.u32 %v1942_v16, 16 }
 0x132   : > { %v7216_v10 = vpop.f32.mrb[8].mxu0  ;;  %v3021_v52 = vrot.slane %v3020_v46, 4  ;;  %v2283_v49 = vsel %vm6501_vm6, %v2278_v31, %v2282_v11  ;;  %v3031_v59 = vrot.slane %v3030_v38, 4  ;;  %v2294_v58 = vshll.u32 %v1943_v30, 16  ;;  %v6392_v11 = vld [vmem:[#allocation2 + $0x54] sm:$0xff]  }
 0x133   : > { %v7218_v19 = vpop.f32.mrb[9].mxu0  ;;  %v2287_v60 = vrot.slane %v2285_v32, 4  ;;  %v5532_v2 = vcombine.low %v2273_v13, %v2283_v49  ;;  %v2612_v5 = vsel %vm6724_vm13, %v2610_v37, %v2611_v39  ;;  %v2290_v4 = vrot.slane %v2288_v54, 5  ;;  %v803_v32 = vld [vmem:[#allocation2 + $0xc8] sm:$0x1] }
 0x134   : > { %v7226_v35 = vpop.f32.mrb[10].mxu0  ;;  %v3026_v3 = vsel %vm6501_vm6, %v3021_v52, %v3025_v21  ;;  %v3036_v12 = vsel %vm6501_vm6, %v3031_v59, %v3035_v23  ;;  %v5565_v15 = vcombine.low %v2609_v42, %v2612_v5  ;;  %v2296_v16 = vrot.slane %v2294_v58, 5  ;;  %v2457_v52 = vld [vmem:[#allocation2 + $0xc0] sm:$0xe]  ;;  %v2458_v49 = vld [vmem:[#allocation2 + $0xc4] sm:$0xf] }
 0x135   : > { %v7222_v25 = vpop.f32.mrb[8].mxu1  ;;  %v7236_v57 = vpop.f32.mrb[11].mxu0  ;;  %v2298_v17 = vshrl.u32 %v1943_v30, 16  ;;  %4824 = vmatmul.mubr.bf16.gmra.mrb[100].mxu0 %v5532_v2  ;;  %v5588_v13 = vcombine.low %v3026_v3, %v3036_v12  ;;  %v2291_v46 = vor.u32 %v2290_v4, %v2287_v60  ;;  %v2304_v26 = vshll.u32 %v1944_v41, 16  ;;  %v1945_v41 = vld [vmem:[#allocation2 + $0xc0] sm:$0xf] }
 0x136   : > { %v7232_v45 = vpop.f32.mrb[9].mxu1  ;;  %v3038_v21 = vshrl.u32 %v2863_v51, 16  ;;  %4831 = vmatprep.mubr.bf16.mxu0 %v5565_v15  ;;  %v3041_v31 = vshll.u32 %v2863_v51, 16  ;;  %v3047_v38 = vshll.u32 %v2864_v63, 16  ;;  %v3051_v39 = vshrl.u32 %v2864_v63, 16 }
 0x137   : > { %v7238_v62 = vpop.f32.mrb[10].mxu1  ;;  %v2300_v27 = vrot.slane %v2298_v17, 4  ;;  %4920 = vmatprep.mubr.bf16.mxu1 %v5588_v13  ;;  %v2292_v37 = vrot.slane %v2291_v46, 4  ;;  %v2306_v23 = vrot.slane %v2304_v26, 5  ;;  %v3057_v42 = vshll.u32 %v2865_v18, 16 }
 0x138   : > { %v7242_v24 = vpop.f32.mrb[11].mxu1  ;;  %v3040_v54 = vrot.slane %v3038_v21, 4  ;;  %4921 = vmatmul.mubr.bf16.gmra.mrb[100].mxu1 %v6392_v11  ;;  %v3043_v59 = vrot.slane %v3041_v31, 5  ;;  %v3049_v58 = vrot.slane %v3047_v38, 5  ;;  %v3053_v60 = vrot.slane %v3051_v39, 4 }
 0x139   : > { %v2301_v30 = vor.u32 %v2300_v27, %v2296_v16  ;;  %v2297_v51 = vsel %vm6501_vm6, %v2292_v37, %v2296_v16  ;;  %v3059_v3 = vrot.slane %v3057_v42, 5  ;;  %v7268_v5 = vadd.f32 %v7154_v55, %v7150_v50  ;;  %v2867_v31 = vld [vmem:[#allocation2 + $0x70] sm:$0xf] }
 0x13a   : > { %v7272_v4 = vadd.f32 %v7142_v43, %v7134_v48  ;;  %v3044_v11 = vor.u32 %v3043_v59, %v3040_v54  ;;  %v3054_v15 = vor.u32 %v3053_v60, %v3049_v58  ;;  %v7278_v17 = vadd.f32 %v7162_v9, %v7158_v1  ;;  %v1946_v48 = vld [vmem:[#allocation2 + $0xc4] sm:$0xf]  ;;  %v2866_v9 = vld [vmem:[#allocation2 + $0x6c] sm:$0xf] }
 0x13b   : > { %7992 = vst [vmem:[#allocation4_spill] sm:$0xff] %v7268_v5  ;;  %v2302_v12 = vrot.slane %v2301_v30, 4  ;;  %v804_v50 = vsel %vm6529_vm10, %v639_v47, %v803_v32  ;;  %v5550_v55 = vrot.slane %v2457_v52, 9  ;;  %v2615_v16 = vrot.slane %v2458_v49, 5  ;;  %v6394_v32 = vld [vmem:[#allocation2 + $0x60] sm:$0xff]  }
 0x13c   : > { %v7244_v28 = vpop.f32.mrb[12].mxu0  ;;  %7993 = vst [vmem:[#allocation5_spill] sm:$0xff] %v7278_v17  ;;  %v2309_v43 = vshrl.u32 %v1945_v41, 16  ;;  %v3045_v26 = vrot.slane %v3044_v11, 4  ;;  %v3055_v21 = vrot.slane %v3054_v15, 4  ;;  %v2312_v1 = vshll.u32 %v1945_v41, 16 }
 0x13d   : > { %v7248_v29 = vpop.f32.mrb[13].mxu0  ;;  %v2307_v46 = vsel %vm6501_vm6, %v2302_v12, %v2306_v23  ;;  %805 = vst [vmem:[#allocation2 + $0xc8] sm:$0x1] %v804_v50  ;;  %v7292_v36 = vsel %vm6724_vm13, %v5550_v55, %v2615_v16  ;;  %v2617_v53 = vrot.slane %v2615_v16, 4  ;;  %v2318_v37 = vshll.u32 %v1946_v48, 16 }
 0x13e   : > { %v7252_v61 = vpop.f32.mrb[14].mxu0  ;;  %v5533_v27 = vcombine.low %v2297_v51, %v2307_v46  ;;  %v2311_v47 = vrot.slane %v2309_v43, 4  ;;  %v3050_v38 = vsel %vm6501_vm6, %v3045_v26, %v3049_v58  ;;  %v3060_v39 = vsel %vm6501_vm6, %v3055_v21, %v3059_v3  ;;  %v2868_v23 = vld [vmem:[#allocation2 + $0x74] sm:$0x1]  ;;  %v3357_v46 = vld [vmem:[#allocation2 + $0x18] sm:$0xe] }
 0x13f   : > { %v7258_v8 = vpop.f32.mrb[15].mxu0  ;;  %v2314_v52 = vrot.slane %v2312_v1, 5  ;;  %v5589_v54 = vcombine.low %v3050_v38, %v3060_v39  ;;  %v2322_v42 = vshrl.u32 %v1946_v48, 16  ;;  %v3062_v49 = vshrl.u32 %v2866_v9, 16 }
 0x140   : > { %4832 = vmatmul.mubr.bf16.gmra.mrb[104].mxu0 %v5533_v27  ;;  %v3065_v30 = vshll.u32 %v2866_v9, 16  ;;  %v2320_v41 = vrot.slane %v2318_v37, 5  ;;  %v3071_v51 = vshll.u32 %v2867_v31, 16  ;;  %v3075_v12 = vshrl.u32 %v2867_v31, 16  ;;  %v3359_v37 = vld [vmem:[#allocation2 + $0x20] sm:$0x1] }
 0x141   : > { %v2315_v60 = vor.u32 %v2314_v52, %v2311_v47  ;;  %4928 = vmatprep.mubr.bf16.mxu1 %v5589_v54  ;;  %v2324_v58 = vrot.slane %v2322_v42, 4  ;;  %v3064_v3 = vrot.slane %v3062_v49, 4  ;;  %v3081_v50 = vshll.u32 %v2868_v23, 16  ;;  %v3358_v52 = vld [vmem:[#allocation2 + $0x1c] sm:$0xf] }
 0x142   : > { %v3067_v15 = vrot.slane %v3065_v30, 5  ;;  %4929 = vmatmul.mubr.bf16.gmra.mrb[104].mxu1 %v6394_v32  ;;  %v3073_v16 = vrot.slane %v3071_v51, 5  ;;  %v3077_v43 = vrot.slane %v3075_v12, 4  ;;  %v7304_v48 = vadd.f32 %v7174_v56, %v7170_v44  ;;  %v2870_v49 = vld [vmem:[#allocation2 + $0x7c] sm:$0xf]  ;;  %v6395_v51 = vld [vmem:[#allocation2 + $0x6c] sm:$0xff]  }
 0x143   : > { %v7262_v2 = vpop.f32.mrb[12].mxu1  ;;  %v2316_v55 = vrot.slane %v2315_v60, 4  ;;  %v2325_v9 = vor.u32 %v2324_v58, %v2320_v41  ;;  %v3083_v47 = vrot.slane %v3081_v50, 5  ;;  %v7310_v31 = vadd.f32 %v7190_v22, %v7178_v0  ;;  %v2869_v22 = vld [vmem:[#allocation2 + $0x78] sm:$0xf] }
 0x144   : > { %v7274_v63 = vpop.f32.mrb[13].mxu1  ;;  %v2459_v21 = vld [vmem:[#allocation2 + $0xc8] sm:$0x1]  ;;  %v3068_v27 = vor.u32 %v3067_v15, %v3064_v3  ;;  %v3078_v56 = vor.u32 %v3077_v43, %v3073_v16  ;;  %v7318_v42 = vadd.f32 %v7196_v14, %v7182_v7  ;;  %v7322_v0 = vadd.f32 %v7210_v34, %v7202_v20  ;;  %v2871_v58 = vld [vmem:[#allocation2 + $0x80] sm:$0x1] }
 0x145   : > { %v7280_v18 = vpop.f32.mrb[14].mxu1  ;;  %v1947_v1 = vld [vmem:[#allocation2 + $0xc8] sm:$0x1]  ;;  %7994 = vst [vmem:[#allocation6_spill] sm:$0xff] %v7310_v31  ;;  %v2618_v39 = vrot.slane %v2459_v21, 5  ;;  %v2321_v32 = vsel %vm6501_vm6, %v2316_v55, %v2320_v41  ;;  %v2326_v23 = vrot.slane %v2325_v9, 4 }
 0x146   : > { %v7286_v13 = vpop.f32.mrb[15].mxu1  ;;  %v2328_v44 = vshll.u32 %v1947_v1, 16  ;;  %v3069_v54 = vrot.slane %v3068_v27, 4  ;;  %7995 = vst [vmem:[#allocation7_spill] sm:$0xff] %v7322_v0  ;;  %v3079_v41 = vrot.slane %v3078_v56, 4  ;;  %v5599_v12 = vrot.slane %v3357_v46, 9 }
 0x147   : > { %v2619_v30 = vsel %vm6724_vm13, %v2617_v53, %v2618_v39  ;;  %v3455_v14 = vrot.slane %v3358_v52, 5  ;;  %v3458_v20 = vrot.slane %v3359_v37, 5  ;;  %v3360_v34 = vld [vmem:[#allocation2 + $0x24] sm:$0xe]  ;;  %v3361_v50 = vld [vmem:[#allocation2 + $0x28] sm:$0xf] }
 0x148   : > { %v2330_v60 = vrot.slane %v2328_v44, 5  ;;  %v5566_v15 = vcombine.low %v7292_v36, %v2619_v30  ;;  %v3074_v7 = vsel %vm6501_vm6, %v3069_v54, %v3073_v16  ;;  %v3084_v53 = vsel %vm6501_vm6, %v3079_v41, %v3083_v47  ;;  %v3362_v21 = vld [vmem:[#allocation2 + $0x2c] sm:$0x1]  ;;  %v3381_v31 = vld [vmem:[#allocation2 + $0x78] sm:$0xe] }
 0x149   : > { %v3086_v43 = vshrl.u32 %v2869_v22, 16  ;;  %v3089_v46 = vshll.u32 %v2869_v22, 16  ;;  %v5590_v9 = vcombine.low %v3074_v7, %v3084_v53  ;;  %v3456_v36 = vsel %vm6724_vm13, %v5599_v12, %v3455_v14 }
 0x14a   : > { %v2331_v55 = vsel %vm6501_vm6, %v2326_v23, %v2330_v60  ;;  %4839 = vmatprep.mubr.bf16.mxu0 %v5566_v15  ;;  %v3457_v16 = vrot.slane %v3455_v14, 4  ;;  %v3095_v52 = vshll.u32 %v2870_v49, 16  ;;  %v3099_v37 = vshrl.u32 %v2870_v49, 16  ;;  %v3363_v49 = vld [vmem:[#allocation2 + $0x30] sm:$0xe] }
 0x14b   : > { %v7298_v59 = vpop.f32.mrb[16].mxu1  ;;  %v5534_v1 = vcombine.low %v2321_v32, %v2331_v55  ;;  %v3088_v44 = vrot.slane %v3086_v43, 4  ;;  %v3091_v56 = vrot.slane %v3089_v46, 5  ;;  %4936 = vmatprep.mubr.bf16.mxu1 %v5590_v9  ;;  %v3105_v54 = vshll.u32 %v2871_v58, 16  ;;  %v3364_v14 = vld [vmem:[#allocation2 + $0x34] sm:$0xf] }
 0x14c   : > { %v7300_v11 = vpop.f32.mrb[17].mxu1  ;;  %v3459_v32 = vsel %vm6724_vm13, %v3457_v16, %v3458_v20  ;;  %v5600_v22 = vrot.slane %v3360_v34, 9  ;;  %v3462_v30 = vrot.slane %v3361_v50, 5  ;;  %4937 = vmatmul.mubr.bf16.gmra.mrb[108].mxu1 %v6395_v51  ;;  %v3097_v15 = vrot.slane %v3095_v52, 5  ;;  %v2872_v9 = vld [vmem:[#allocation2 + $0x84] sm:$0xf] }
 0x14d   : > { %v7306_v26 = vpop.f32.mrb[18].mxu1  ;;  %4840 = vmatmul.mubr.bf16.gmra.mrb[108].mxu0 %v5534_v1  ;;  %v5615_v41 = vcombine.low %v3456_v36, %v3459_v32  ;;  %v3092_v12 = vor.u32 %v3091_v56, %v3088_v44  ;;  %v3101_v7 = vrot.slane %v3099_v37, 4  ;;  %v3107_v55 = vrot.slane %v3105_v54, 5  ;;  %v3365_v1 = vld [vmem:[#allocation2 + $0x38] sm:$0x1] }
 0x14e   : > { %v7312_v38 = vpop.f32.mrb[16].mxu0  ;;  %v7339_v39 = vpop.f32.mrb[19].mxu1  ;;  %v3463_v53 = vsel %vm6724_vm13, %v5600_v22, %v3462_v30  ;;  %v3464_v43 = vrot.slane %v3462_v30, 4  ;;  %v3465_v46 = vrot.slane %v3362_v21, 5  ;;  %v7355_v51 = vadd.f32 %v7218_v19, %v7216_v10  ;;  %v2873_v36 = vld [vmem:[#allocation2 + $0x88] sm:$0xf] }
 0x14f   : > { %v7326_v3 = vpop.f32.mrb[17].mxu0  ;;  %6227 = vmatprep.mubr.bf16.mxu0 %v5615_v41  ;;  %v3093_v58 = vrot.slane %v3092_v12, 4  ;;  %v3102_v34 = vor.u32 %v3101_v7, %v3097_v15  ;;  %v7359_v50 = vadd.f32 %v7232_v45, %v7222_v25  ;;  %v7367_v44 = vadd.f32 %v7236_v57, %v7226_v35  ;;  %v2874_v19 = vld [vmem:[#allocation2 + $0x8c] sm:$0x1]  ;;  %v3366_v52 = vld [vmem:[#allocation2 + $0x3c] sm:$0xe] }
 0x150   : > { %v7337_v27 = vpop.f32.mrb[18].mxu0  ;;  %v3466_v21 = vsel %vm6724_vm13, %v3464_v43, %v3465_v46  ;;  %v7371_v56 = vadd.f32 %v7242_v24, %v7238_v62  ;;  %v5601_v10 = vrot.slane %v3363_v49, 9  ;;  %v6396_v54 = vld [vmem:[#allocation2 + $0x78] sm:$0xff]   ;;  %v3469_v22 = vrot.slane %v3364_v14, 5  ;;  %v3367_v30 = vld [vmem:[#allocation2 + $0x40] sm:$0xf] }
 0x151   : > { %v7341_v23 = vpop.f32.mrb[19].mxu0  ;;  %7996 = vst [vmem:[#allocation8_spill] sm:$0xff] %v7359_v50  ;;  %v3098_v45 = vsel %vm6501_vm6, %v3093_v58, %v3097_v15  ;;  %v3103_v37 = vrot.slane %v3102_v34, 4  ;;  %v5616_v32 = vcombine.low %v3463_v53, %v3466_v21  ;;  %v3472_v41 = vrot.slane %v3365_v1, 5  ;;  %v3368_v43 = vld [vmem:[#allocation2 + $0x44] sm:$0x1] }
 0x152   : > { %7997 = vst [vmem:[#allocation9_spill] sm:$0xff] %v7371_v56  ;;  %v3110_v35 = vshrl.u32 %v2872_v9, 16  ;;  %v3113_v57 = vshll.u32 %v2872_v9, 16  ;;  %v3119_v12 = vshll.u32 %v2873_v36, 16  ;;  %v3470_v24 = vsel %vm6724_vm13, %v5601_v10, %v3469_v22 }
 0x153   : > { %v7343_v47 = vpop.f32.mrb[20].mxu1  ;;  %v3108_v62 = vsel %vm6501_vm6, %v3103_v37, %v3107_v55  ;;  %v3471_v7 = vrot.slane %v3469_v22, 4  ;;  %v3123_v49 = vshrl.u32 %v2873_v36, 16  ;;  %v3129_v21 = vshll.u32 %v2874_v19, 16  ;;  %v3369_v37 = vld [vmem:[#allocation2 + $0x48] sm:$0xe] }
 0x154   : > { %v7347_v60 = vpop.f32.mrb[21].mxu1  ;;  %v5591_v53 = vcombine.low %v3098_v45, %v3108_v62  ;;  %v3112_v14 = vrot.slane %v3110_v35, 4  ;;  %v3115_v1 = vrot.slane %v3113_v57, 5  ;;  %v3121_v58 = vrot.slane %v3119_v12, 5  ;;  %v3371_v35 = vld [vmem:[#allocation2 + $0x50] sm:$0x1] }
 0x155   : > { %v7383_v15 = vpop.f32.mrb[22].mxu1  ;;  %6228 = vmatmul.mubr.bf16.vlgmr.msra.gmra.mrb[112].mxu0 %v5616_v32  ;;  %v3473_v55 = vsel %vm6724_vm13, %v3471_v7, %v3472_v41  ;;  %v3125_v9 = vrot.slane %v3123_v49, 4  ;;  %v5602_v10 = vrot.slane %v3366_v52, 9  ;;  %v3476_v50 = vrot.slane %v3367_v30, 5  ;;  %v3370_v32 = vld [vmem:[#allocation2 + $0x4c] sm:$0xf] }
 0x156   : > { %v7385_v34 = vpop.f32.mrb[23].mxu1  ;;  %4944 = vmatprep.mubr.bf16.mxu1 %v5591_v53  ;;  %v5617_v22 = vcombine.low %v3470_v24, %v3473_v55  ;;  %v3116_v56 = vor.u32 %v3115_v1, %v3112_v14  ;;  %v3479_v45 = vrot.slane %v3368_v43, 5  ;;  %v3131_v12 = vrot.slane %v3129_v21, 5  ;;  %v2875_v52 = vld [vmem:[#allocation2 + $0x90] sm:$0xf] }
 0x157   : > { %4945 = vmatmul.mubr.bf16.gmra.mrb[112].mxu1 %v6396_v54  ;;  %v3126_v57 = vor.u32 %v3125_v9, %v3121_v58  ;;  %v7393_v62 = vadd.f32 %v7248_v29, %v7244_v28  ;;  %v7397_v19 = vadd.f32 %v7274_v63, %v7262_v2  ;;  %v2876_v41 = vld [vmem:[#allocation2 + $0x94] sm:$0xf]  ;;  %v3477_v24 = vsel %vm6724_vm13, %v5602_v10, %v3476_v50  ;;  %v2877_v28 = vld [vmem:[#allocation2 + $0x98] sm:$0x1]  ;;  %v6397_v9 = vld [vmem:[#allocation2 + $0x84] sm:$0xff]  }
 0x158   : > { %v7351_v20 = vpop.f32.mrb[20].mxu0  ;;  %6231 = vmatprep.mubr.bf16.mxu0 %v5617_v22  ;;  %v3117_v30 = vrot.slane %v3116_v56, 4  ;;  %v3478_v54 = vrot.slane %v3476_v50, 4  ;;  %v7405_v49 = vadd.f32 %v7258_v8, %v7252_v61  ;;  %v3372_v29 = vld [vmem:[#allocation2 + $0x54] sm:$0xe]  ;;  %v7409_v2 = vadd.f32 %v7286_v13, %v7280_v18 }
 0x159   : > { %v7361_v16 = vpop.f32.mrb[21].mxu0  ;;  %7998 = vst [vmem:[#allocation10_spill] sm:$0xff] %v7397_v19  ;;  %v3127_v43 = vrot.slane %v3126_v57, 4  ;;  %v5603_v63 = vrot.slane %v3369_v37, 9  ;;  %v3483_v53 = vrot.slane %v3370_v32, 5  ;;  %v3486_v1 = vrot.slane %v3371_v35, 5 }
 0x15a   : > { %v7373_v25 = vpop.f32.mrb[22].mxu0  ;;  %7999 = vst [vmem:[#allocation11_spill] sm:$0xff] %v7409_v2  ;;  %v3122_v56 = vsel %vm6501_vm6, %v3117_v30, %v3121_v58  ;;  %v3480_v50 = vsel %vm6724_vm13, %v3478_v54, %v3479_v45  ;;  %v3134_v61 = vshrl.u32 %v2875_v52, 16  ;;  %v3373_v37 = vld [vmem:[#allocation2 + $0x58] sm:$0xf]  ;;  %v3137_v35 = vshll.u32 %v2875_v52, 16 }
 0x15b   : > { %v7381_v46 = vpop.f32.mrb[23].mxu0  ;;  %v7389_v36 = vpop.f32.mrb[24].mxu1  ;;  %v3132_v18 = vsel %vm6501_vm6, %v3127_v43, %v3131_v12  ;;  %v5618_v13 = vcombine.low %v3477_v24, %v3480_v50  ;;  %v3484_v21 = vsel %vm6724_vm13, %v5603_v63, %v3483_v53  ;;  %v3485_v10 = vrot.slane %v3483_v53, 4  ;;  %v3374_v30 = vld [vmem:[#allocation2 + $0x5c] sm:$0x1] }
 0x15c   : > { %v7399_v7 = vpop.f32.mrb[25].mxu1  ;;  %v5592_v45 = vcombine.low %v3122_v56, %v3132_v18  ;;  %v3136_v32 = vrot.slane %v3134_v61, 4  ;;  %v3143_v57 = vshll.u32 %v2876_v41, 16  ;;  %v3147_v24 = vshrl.u32 %v2876_v41, 16  ;;  %v3375_v61 = vld [vmem:[#allocation2 + $0x60] sm:$0xe] }
 0x15d   : > { %v7419_v55 = vpop.f32.mrb[26].mxu1  ;;  %6232 = vmatmul.mubr.bf16.gmra.mrb[116].mxu0 %v5618_v13  ;;  %v3487_v12 = vsel %vm6724_vm13, %v3485_v10, %v3486_v1  ;;  %v3153_v43 = vshll.u32 %v2877_v28, 16  ;;  %v5604_v63 = vrot.slane %v3372_v29, 9  ;;  %v3139_v2 = vrot.slane %v3137_v35, 5  ;;  %v3376_v41 = vld [vmem:[#allocation2 + $0x64] sm:$0xf] }
 0x15e   : > { %v7427_v22 = vpop.f32.mrb[27].mxu1  ;;  %4952 = vmatprep.mubr.bf16.mxu1 %v5592_v45  ;;  %v5619_v50 = vcombine.low %v3484_v21, %v3487_v12  ;;  %v3145_v19 = vrot.slane %v3143_v57, 5  ;;  %v3490_v56 = vrot.slane %v3373_v37, 5  ;;  %v3149_v18 = vrot.slane %v3147_v24, 4  ;;  %v2878_v45 = vld [vmem:[#allocation2 + $0x9c] sm:$0xf] }
 0x15f   : > { %4953 = vmatmul.mubr.bf16.gmra.mrb[116].mxu1 %v6397_v9  ;;  %v3155_v0 = vrot.slane %v3153_v43, 5  ;;  %v3493_v13 = vrot.slane %v3374_v30, 5  ;;  %v7439_v1 = vadd.f32 %v7326_v3, %v7312_v38  ;;  %v3140_v29 = vor.u32 %v3139_v2, %v3136_v32  ;;  %v3377_v9 = vld [vmem:[#allocation2 + $0x68] sm:$0x1]  ;;  %v2879_v32 = vld [vmem:[#allocation2 + $0xa0] sm:$0xf] }
 0x160   : > { %6235 = vmatprep.mubr.bf16.mxu0 %v5619_v50  ;;  %v3491_v21 = vsel %vm6724_vm13, %v5604_v63, %v3490_v56  ;;  %v3492_v10 = vrot.slane %v3490_v56, 4  ;;  %v5869_v37 = vadd.f32 %v7300_v11, %v7298_v59  ;;  %v3150_v57 = vor.u32 %v3149_v18, %v3145_v19  ;;  %v2880_v30 = vld [vmem:[#allocation2 + $0xa4] sm:$0x1] }
 0x161   : > { %v7411_v14 = vpop.f32.mrb[24].mxu0  ;;  %v7451_v38 = vadd.f32 %v7341_v23, %v7337_v27  ;;  %v5872_v3 = vadd.f32 %v7339_v39, %v7306_v26  ;;  %v5605_v2 = vrot.slane %v3375_v61, 9  ;;  %v3141_v24 = vrot.slane %v3140_v29, 4  ;;  %v6398_v27 = vld [vmem:[#allocation2 + $0x90] sm:$0xff]   ;;  %v3378_v39 = vld [vmem:[#allocation2 + $0x6c] sm:$0xe] }
 0x162   : > { %v7417_v8 = vpop.f32.mrb[25].mxu0  ;;  %v3494_v59 = vsel %vm6724_vm13, %v3492_v10, %v3493_v13  ;;  %v7460_v11 = vadd.f32 %v5869_v37, %v7132_v40  ;;  %v3497_v43 = vrot.slane %v3376_v41, 5  ;;  %v3151_v63 = vrot.slane %v3150_v57, 4  ;;  %v3379_v29 = vld [vmem:[#allocation2 + $0x70] sm:$0xf] }
 0x163   : > { %v7425_v58 = vpop.f32.mrb[26].mxu0  ;;  %v7433_v53 = vpop.f32.mrb[28].mxu1  ;;  %8000 = vst [vmem:[#allocation12_spill] sm:$0xff] %v7451_v38  ;;  %v5620_v50 = vcombine.low %v3491_v21, %v3494_v59  ;;  %v7463_v23 = vadd.f32 %v5872_v3, %v7272_v4  ;;  %v3500_v26 = vrot.slane %v3377_v9, 5  ;;  %v3146_v18 = vsel %vm6501_vm6, %v3141_v24, %v3145_v19  ;;  %v3380_v3 = vld [vmem:[#allocation2 + $0x74] sm:$0x1] }
 0x164   : > { %v7429_v54 = vpop.f32.mrb[27].mxu0  ;;  %v7435_v52 = vpop.f32.mrb[29].mxu1  ;;  %8001 = vst [vmem:[#allocation13_spill] sm:$0xff] %v7460_v11  ;;  %v3498_v40 = vsel %vm6724_vm13, %v5605_v2, %v3497_v43  ;;  %v3499_v13 = vrot.slane %v3497_v43, 4  ;;  %v3158_v41 = vshrl.u32 %v2878_v45, 16  ;;  %v3156_v4 = vsel %vm6501_vm6, %v3151_v63, %v3155_v0 }
 0x165   : > { %v7441_v28 = vpop.f32.mrb[30].mxu1  ;;  %8002 = vst [vmem:[#allocation14_spill] sm:$0xff] %v7463_v23  ;;  %6236 = vmatmul.mubr.bf16.gmra.mrb[120].mxu0 %v5620_v50  ;;  %v3161_v37 = vshll.u32 %v2878_v45, 16  ;;  %v3167_v9 = vshll.u32 %v2879_v32, 16  ;;  %v3171_v57 = vshrl.u32 %v2879_v32, 16  ;;  %v5593_v19 = vcombine.low %v3146_v18, %v3156_v4 }
 0x166   : > { %v7447_v35 = vpop.f32.mrb[31].mxu1  ;;  %v3501_v2 = vsel %vm6724_vm13, %v3499_v13, %v3500_v26  ;;  %v3160_v24 = vrot.slane %v3158_v41, 4  ;;  %v3177_v43 = vshll.u32 %v2880_v30, 16  ;;  %v5606_v50 = vrot.slane %v3378_v39, 9  ;;  %v3382_v18 = vld [vmem:[#allocation2 + $0x7c] sm:$0xf] }
 0x167   : > { %v5621_v23 = vcombine.low %v3498_v40, %v3501_v2  ;;  %v3163_v0 = vrot.slane %v3161_v37, 5  ;;  %v3169_v63 = vrot.slane %v3167_v9, 5  ;;  %v3173_v45 = vrot.slane %v3171_v57, 4  ;;  %4960 = vmatprep.mubr.bf16.mxu1 %v5593_v19  ;;  %v3383_v41 = vld [vmem:[#allocation2 + $0x80] sm:$0x1] }
 0x168   : > { %v3179_v32 = vrot.slane %v3177_v43, 5  ;;  %v3504_v11 = vrot.slane %v3379_v29, 5  ;;  %v3507_v38 = vrot.slane %v3380_v3, 5  ;;  %4961 = vmatmul.mubr.bf16.gmra.mrb[120].mxu1 %v6398_v27  ;;  %v7489_v30 = vadd.f32 %v7361_v16, %v7351_v20  ;;  %v2881_v40 = vld [vmem:[#allocation2 + $0xa8] sm:$0xf] }
 0x169   : > { %6239 = vmatprep.mubr.bf16.mxu0 %v5621_v23  ;;  %v3164_v26 = vor.u32 %v3163_v0, %v3160_v24  ;;  %v3174_v13 = vor.u32 %v3173_v45, %v3169_v63  ;;  %v5607_v4 = vrot.slane %v3381_v31, 9  ;;  %v5875_v29 = vadd.f32 %v7347_v60, %v7343_v47  ;;  %v2882_v23 = vld [vmem:[#allocation2 + $0xac] sm:$0xf]  ;;  %v2883_v57 = vld [vmem:[#allocation2 + $0xb0] sm:$0x1]  ;;  %v6399_v45 = vld [vmem:[#allocation2 + $0x9c] sm:$0xff]  }
 0x16a   : > { %v3505_v9 = vsel %vm6724_vm13, %v5606_v50, %v3504_v11  ;;  %v3506_v39 = vrot.slane %v3504_v11, 4  ;;  %v7499_v27 = vadd.f32 %v7381_v46, %v7373_v25  ;;  %v5878_v3 = vadd.f32 %v7385_v34, %v7383_v15  ;;  %v3384_v46 = vld [vmem:[#allocation2 + $0x84] sm:$0xe]  ;;  %v3386_v50 = vld [vmem:[#allocation2 + $0x8c] sm:$0x1] }
 0x16b   : > { %v7455_v12 = vpop.f32.mrb[32].mxu1  ;;  %v7465_v56 = vpop.f32.mrb[28].mxu0  ;;  %v3165_v16 = vrot.slane %v3164_v26, 4  ;;  %v3175_v31 = vrot.slane %v3174_v13, 4  ;;  %v3511_v19 = vrot.slane %v3382_v18, 5  ;;  %v7510_v47 = vadd.f32 %v5875_v29, %v7304_v48 }
 0x16c   : > { %v7467_v61 = vpop.f32.mrb[33].mxu1  ;;  %v7473_v21 = vpop.f32.mrb[29].mxu0  ;;  %v3508_v11 = vsel %vm6724_vm13, %v3506_v39, %v3507_v38  ;;  %v3514_v60 = vrot.slane %v3383_v41, 5  ;;  %v3182_v25 = vshrl.u32 %v2881_v40, 16  ;;  %v7521_v38 = vadd.f32 %v5878_v3, %v7318_v42  ;;  %v3385_v48 = vld [vmem:[#allocation2 + $0x88] sm:$0xf] }
 0x16d   : > { %v7475_v10 = vpop.f32.mrb[34].mxu1  ;;  %v7479_v59 = vpop.f32.mrb[30].mxu0  ;;  %v3170_v0 = vsel %vm6501_vm6, %v3165_v16, %v3169_v63  ;;  %v3180_v15 = vsel %vm6501_vm6, %v3175_v31, %v3179_v32  ;;  %v5622_v34 = vcombine.low %v3505_v9, %v3508_v11  ;;  %v3512_v13 = vsel %vm6724_vm13, %v5607_v4, %v3511_v19 }
 0x16e   : > { %v7483_v17 = vpop.f32.mrb[31].mxu0  ;;  %v7485_v5 = vpop.f32.mrb[35].mxu1  ;;  %8003 = vst [vmem:[#allocation15_spill] sm:$0xff] %v7521_v38  ;;  %v5594_v26 = vcombine.low %v3170_v0, %v3180_v15  ;;  %v3513_v41 = vrot.slane %v3511_v19, 4  ;;  %v3184_v39 = vrot.slane %v3182_v25, 4  ;;  %v3185_v63 = vshll.u32 %v2881_v40, 16 }
 0x16f   : > { %6240 = vmatmul.mubr.bf16.gmra.mrb[124].mxu0 %v5622_v34  ;;  %v3191_v32 = vshll.u32 %v2882_v23, 16  ;;  %v3195_v9 = vshrl.u32 %v2882_v23, 16  ;;  %v3201_v16 = vshll.u32 %v2883_v57, 16  ;;  %v5608_v3 = vrot.slane %v3384_v46, 9  ;;  %v3387_v15 = vld [vmem:[#allocation2 + $0x90] sm:$0xe] }
 0x170   : > { %4968 = vmatprep.mubr.bf16.mxu1 %v5594_v26  ;;  %v3515_v42 = vsel %vm6724_vm13, %v3513_v41, %v3514_v60  ;;  %v3518_v11 = vrot.slane %v3385_v48, 5  ;;  %v3521_v0 = vrot.slane %v3386_v50, 5  ;;  %v3187_v19 = vrot.slane %v3185_v63, 5  ;;  %v3388_v34 = vld [vmem:[#allocation2 + $0x94] sm:$0xf] }
 0x171   : > { %4969 = vmatmul.mubr.bf16.gmra.mrb[124].mxu1 %v6399_v45  ;;  %v5623_v4 = vcombine.low %v3512_v13, %v3515_v42  ;;  %v3193_v25 = vrot.slane %v3191_v32, 5  ;;  %v3197_v38 = vrot.slane %v3195_v9, 4  ;;  %v3203_v40 = vrot.slane %v3201_v16, 5  ;;  %v3389_v60 = vld [vmem:[#allocation2 + $0x98] sm:$0x1] }
 0x172   : > { %v3519_v23 = vsel %vm6724_vm13, %v5608_v3, %v3518_v11  ;;  %v3520_v57 = vrot.slane %v3518_v11, 4  ;;  %v7537_v26 = vadd.f32 %v7417_v8, %v7411_v14  ;;  %v3188_v46 = vor.u32 %v3187_v19, %v3184_v39  ;;  %v2884_v13 = vld [vmem:[#allocation2 + $0xb4] sm:$0xf]  ;;  %v2885_v32 = vld [vmem:[#allocation2 + $0xb8] sm:$0xf] }
 0x173   : > { %v7491_v37 = vpop.f32.mrb[36].mxu1  ;;  %6243 = vmatprep.mubr.bf16.mxu0 %v5623_v4  ;;  %v3198_v48 = vor.u32 %v3197_v38, %v3193_v25  ;;  %v5881_v45 = vadd.f32 %v7399_v7, %v7389_v36  ;;  %v7543_v50 = vadd.f32 %v7429_v54, %v7425_v58  ;;  %v5884_v63 = vadd.f32 %v7427_v22, %v7419_v55  ;;  %v6400_v36 = vld [vmem:[#allocation2 + $0xa8] sm:$0xff]   ;;  %v2886_v58 = vld [vmem:[#allocation2 + $0xbc] sm:$0x1]  ;;  %v3390_v11 = vld [vmem:[#allocation2 + $0x9c] sm:$0xe] }
 0x174   : > { %v7501_v20 = vpop.f32.mrb[37].mxu1  ;;  %v3522_v41 = vsel %vm6724_vm13, %v3520_v57, %v3521_v0  ;;  %v5609_v14 = vrot.slane %v3387_v15, 9  ;;  %v3525_v8 = vrot.slane %v3388_v34, 5  ;;  %v3189_v38 = vrot.slane %v3188_v46, 4  ;;  %v3391_v34 = vld [vmem:[#allocation2 + $0xa0] sm:$0xf] }
 0x175   : > { %v7505_v2 = vpop.f32.mrb[38].mxu1  ;;  %v7512_v24 = vpop.f32.mrb[32].mxu0  ;;  %v3199_v39 = vrot.slane %v3198_v48, 4  ;;  %v5624_v16 = vcombine.low %v3519_v23, %v3522_v41  ;;  %v7552_v7 = vadd.f32 %v5881_v45, %v7355_v51  ;;  %v7557_v42 = vadd.f32 %v5884_v63, %v7367_v44  ;;  %v3392_v41 = vld [vmem:[#allocation2 + $0xa4] sm:$0x1] }
 0x176   : > { %v7514_v43 = vpop.f32.mrb[39].mxu1  ;;  %v7523_v18 = vpop.f32.mrb[33].mxu0  ;;  %v3526_v55 = vsel %vm6724_vm13, %v5609_v14, %v3525_v8  ;;  %v3527_v22 = vrot.slane %v3525_v8, 4  ;;  %v3528_v3 = vrot.slane %v3389_v60, 5  ;;  %v3194_v51 = vsel %vm6501_vm6, %v3189_v38, %v3193_v25 }
 0x177   : > { %v7527_v29 = vpop.f32.mrb[34].mxu0  ;;  %8004 = vst [vmem:[#allocation16_spill] sm:$0xff] %v7557_v42  ;;  %v3204_v4 = vsel %vm6501_vm6, %v3199_v39, %v3203_v40  ;;  %6244 = vmatmul.mubr.bf16.gmra.mrb[128].mxu0 %v5624_v16  ;;  %v3206_v19 = vshrl.u32 %v2884_v13, 16  ;;  %v3209_v44 = vshll.u32 %v2884_v13, 16  ;;  %v3215_v48 = vshll.u32 %v2885_v32, 16 }
 0x178   : > { %v7529_v31 = vpop.f32.mrb[35].mxu0  ;;  %v5595_v60 = vcombine.low %v3194_v51, %v3204_v4  ;;  %v3529_v46 = vsel %vm6724_vm13, %v3527_v22, %v3528_v3  ;;  %v3219_v45 = vshrl.u32 %v2885_v32, 16  ;;  %v3225_v8 = vshll.u32 %v2886_v58, 16  ;;  %v3393_v51 = vld [vmem:[#allocation2 + $0xa8] sm:$0xe] }
 0x179   : > { %v5625_v25 = vcombine.low %v3526_v55, %v3529_v46  ;;  %v3208_v14 = vrot.slane %v3206_v19, 4  ;;  %v3211_v40 = vrot.slane %v3209_v44, 5  ;;  %v3217_v13 = vrot.slane %v3215_v48, 5  ;;  %v3394_v55 = vld [vmem:[#allocation2 + $0xac] sm:$0xf] }
 0x17a   : > { %4976 = vmatprep.mubr.bf16.mxu1 %v5595_v60  ;;  %v3221_v39 = vrot.slane %v3219_v45, 4  ;;  %v5610_v16 = vrot.slane %v3390_v11, 9  ;;  %v3532_v42 = vrot.slane %v3391_v34, 5  ;;  %v3227_v3 = vrot.slane %v3225_v8, 5  ;;  %v3395_v34 = vld [vmem:[#allocation2 + $0xb0] sm:$0x1] }
 0x17b   : > { %v7549_v9 = vpop.f32.mrb[40].mxu1  ;;  %4977 = vmatmul.mubr.bf16.gmra.mrb[128].mxu1 %v6400_v36  ;;  %6247 = vmatprep.mubr.bf16.mxu0 %v5625_v25  ;;  %v3212_v22 = vor.u32 %v3211_v40, %v3208_v14  ;;  %v3535_v32 = vrot.slane %v3392_v41, 5  ;;  %v7581_v4 = vadd.f32 %v7473_v21, %v7465_v56  ;;  %v5887_v11 = vadd.f32 %v7435_v52, %v7433_v53  ;;  %v2887_v21 = vld [vmem:[#allocation2 + $0xc0] sm:$0xf]  ;;  %v2888_v53 = vld [vmem:[#allocation2 + $0xc4] sm:$0xf] }
 0x17c   : > { %v7554_v54 = vpop.f32.mrb[41].mxu1  ;;  %v3222_v19 = vor.u32 %v3221_v39, %v3217_v13  ;;  %v3533_v58 = vsel %vm6724_vm13, %v5610_v16, %v3532_v42  ;;  %v3534_v44 = vrot.slane %v3532_v42, 4  ;;  %v7589_v36 = vadd.f32 %v7483_v17, %v7479_v59  ;;  %v6401_v8 = vld [vmem:[#allocation2 + $0xb4] sm:$0xff]  }
 0x17d   : > { %v7563_v15 = vpop.f32.mrb[42].mxu1  ;;  %v3213_v60 = vrot.slane %v3212_v22, 4  ;;  %v5890_v46 = vadd.f32 %v7447_v35, %v7441_v28  ;;  %v5611_v56 = vrot.slane %v3393_v51, 9  ;;  %v7596_v42 = vadd.f32 %v5887_v11, %v7393_v62  ;;  %v2889_v28 = vld [vmem:[#allocation2 + $0xc8] sm:$0x1] }
 0x17e   : > { %v7561_v0 = vpop.f32.mrb[36].mxu0  ;;  %v7571_v57 = vpop.f32.mrb[43].mxu1  ;;  %v3223_v48 = vrot.slane %v3222_v19, 4  ;;  %v3536_v45 = vsel %vm6724_vm13, %v3534_v44, %v3535_v32  ;;  %v3539_v41 = vrot.slane %v3394_v55, 5  ;;  %v3542_v59 = vrot.slane %v3395_v34, 5 }
 0x17f   : > { %v7569_v23 = vpop.f32.mrb[37].mxu0  ;;  %v3218_v52 = vsel %vm6501_vm6, %v3213_v60, %v3217_v13  ;;  %v5626_v25 = vcombine.low %v3533_v58, %v3536_v45  ;;  %v7601_v17 = vadd.f32 %v5890_v46, %v7405_v49  ;;  %v3396_v35 = vld [vmem:[#allocation2 + $0xb4] sm:$0xe]  ;;  %v3230_v16 = vshrl.u32 %v2887_v21, 16  ;;  %v3397_v51 = vld [vmem:[#allocation2 + $0xb8] sm:$0xf] }
 0x180   : > { %v7575_v63 = vpop.f32.mrb[38].mxu0  ;;  %v3228_v40 = vsel %vm6501_vm6, %v3223_v48, %v3227_v3  ;;  %v3540_v62 = vsel %vm6724_vm13, %v5611_v56, %v3539_v41  ;;  %v3541_v39 = vrot.slane %v3539_v41, 4  ;;  %v3233_v49 = vshll.u32 %v2887_v21, 16  ;;  %v3398_v19 = vld [vmem:[#allocation2 + $0xbc] sm:$0x1] }
 0x181   : > { %v7577_v38 = vpop.f32.mrb[39].mxu0  ;;  %v5596_v22 = vcombine.low %v3218_v52, %v3228_v40  ;;  %6248 = vmatmul.mubr.bf16.gmra.mrb[132].mxu0 %v5626_v25  ;;  %v3239_v32 = vshll.u32 %v2888_v53, 16  ;;  %v3243_v55 = vshrl.u32 %v2888_v53, 16  ;;  %v3232_v44 = vrot.slane %v3230_v16, 4  ;;  %v3399_v41 = vld [vmem:[#allocation2 + $0xc0] sm:$0xe] }
 0x182   : > { %v3543_v3 = vsel %vm6724_vm13, %v3541_v39, %v3542_v59  ;;  %v3249_v11 = vshll.u32 %v2889_v28, 16  ;;  %v5612_v34 = vrot.slane %v3396_v35, 9  ;;  %v3235_v56 = vrot.slane %v3233_v49, 5  ;;  %v3400_v59 = vld [vmem:[#allocation2 + $0xc4] sm:$0xf] }
 0x183   : > { %v7603_v14 = vpop.f32.mrb[44].mxu1  ;;  %4984 = vmatprep.mubr.bf16.mxu1 %v5596_v22  ;;  %v5627_v46 = vcombine.low %v3540_v62, %v3543_v3  ;;  %v3241_v48 = vrot.slane %v3239_v32, 5  ;;  %v3245_v45 = vrot.slane %v3243_v55, 4  ;;  %v3546_v53 = vrot.slane %v3397_v51, 5  ;;  %v2890_v16 = vld [vmem:[#allocation2 + $0xcc] sm:$0xf] }
 0x184   : > { %v7609_v13 = vpop.f32.mrb[45].mxu1  ;;  %4985 = vmatmul.mubr.bf16.gmra.mrb[132].mxu1 %v6401_v8  ;;  %v3251_v21 = vrot.slane %v3249_v11, 5  ;;  %v3549_v52 = vrot.slane %v3398_v19, 5  ;;  %v7619_v25 = vadd.f32 %v7523_v18, %v7512_v24  ;;  %v3236_v28 = vor.u32 %v3235_v56, %v3232_v44  ;;  %v3401_v8 = vld [vmem:[#allocation2 + $0xc8] sm:$0x1]  ;;  %v8005_v44 = vld [vmem:[#allocation12_spill] sm:$0xff] }
 0x185   : > { %v7611_v58 = vpop.f32.mrb[46].mxu1  ;;  %6251 = vmatprep.mubr.bf16.mxu0 %v5627_v46  ;;  %v3246_v35 = vor.u32 %v3245_v45, %v3241_v48  ;;  %v5893_v62 = vadd.f32 %v7467_v61, %v7455_v12  ;;  %v7627_v39 = vadd.f32 %v7529_v31, %v7527_v29  ;;  %v3547_v24 = vsel %vm6724_vm13, %v5612_v34, %v3546_v53  ;;  %v2891_v29 = vld [vmem:[#allocation2 + $0xd0] sm:$0xf]  ;;  %v2892_v46 = vld [vmem:[#allocation2 + $0xd4] sm:$0x1] }
 0x186   : > { %v7615_v60 = vpop.f32.mrb[47].mxu1  ;;  %v3548_v18 = vrot.slane %v3546_v53, 4  ;;  %v5896_v22 = vadd.f32 %v7485_v5, %v7475_v10  ;;  %v5613_v49 = vrot.slane %v3399_v41, 9  ;;  %v3237_v55 = vrot.slane %v3236_v28, 4  ;;  %v3402_v10 = vld [vmem:[#allocation2 + $0xcc] sm:$0xe] }
 0x187   : > { %v3247_v19 = vrot.slane %v3246_v35, 4  ;;  %v7636_v12 = vadd.f32 %v5893_v62, %v7439_v1  ;;  %v3553_v61 = vrot.slane %v3400_v59, 5  ;;  %v3556_v34 = vrot.slane %v3401_v8, 5  ;;  %v6402_v41 = vld [vmem:[#allocation2 + $0xc0] sm:$0xff]   ;;  %v3403_v59 = vld [vmem:[#allocation2 + $0xd0] sm:$0xf] }
 0x188   : > { %v3550_v3 = vsel %vm6724_vm13, %v3548_v18, %v3549_v52  ;;  %v7641_v11 = vadd.f32 %v5896_v22, %v8005_v44  ;;  %v3254_v5 = vshrl.u32 %v2890_v16, 16  ;;  %v3242_v56 = vsel %vm6501_vm6, %v3237_v55, %v3241_v48  ;;  %v3404_v52 = vld [vmem:[#allocation2 + $0xd4] sm:$0x1] }
 0x189   : > { %v3252_v1 = vsel %vm6501_vm6, %v3247_v19, %v3251_v21  ;;  %v5628_v45 = vcombine.low %v3547_v24, %v3550_v3  ;;  %v3554_v53 = vsel %vm6724_vm13, %v5613_v49, %v3553_v61  ;;  %v3555_v35 = vrot.slane %v3553_v61, 4 }
 0x18a   : > { %v7621_v40 = vpop.f32.mrb[40].mxu0  ;;  %8006 = vst [vmem:[#allocation12_spill] sm:$0xff] %v7641_v11  ;;  %v5597_v28 = vcombine.low %v3242_v56, %v3252_v1  ;;  %v3256_v62 = vrot.slane %v3254_v5, 4  ;;  %v3257_v8 = vshll.u32 %v2890_v16, 16  ;;  %v3263_v18 = vshll.u32 %v2891_v29, 16 }
 0x18b   : > { %v5816_v51 = vpop.f32.mrb[41].mxu0  ;;  %6252 = vmatmul.mubr.bf16.gmra.mrb[136].mxu0 %v5628_v45  ;;  %v3267_v22 = vshrl.u32 %v2891_v29, 16  ;;  %v3273_v44 = vshll.u32 %v2892_v46, 16  ;;  %v5614_v11 = vrot.slane %v3402_v10, 9  ;;  %v3557_v48 = vsel %vm6724_vm13, %v3555_v35, %v3556_v34 }
 0x18c   : > { %v7633_v32 = vpop.f32.mrb[42].mxu0  ;;  %4992 = vmatprep.mubr.bf16.mxu1 %v5597_v28  ;;  %v3259_v21 = vrot.slane %v3257_v8, 5  ;;  %v3560_v24 = vrot.slane %v3403_v59, 5  ;;  %v3563_v55 = vrot.slane %v3404_v52, 5  ;;  %v5629_v49 = vcombine.low %v3554_v53, %v3557_v48 }
 0x18d   : > { %v5819_v31 = vpop.f32.mrb[43].mxu0  ;;  %4993 = vmatmul.mubr.bf16.gmra.mrb[136].mxu1 %v6402_v41  ;;  %v3265_v19 = vrot.slane %v3263_v18, 5  ;;  %v3269_v3 = vrot.slane %v3267_v22, 4  ;;  %v3275_v56 = vrot.slane %v3273_v44, 5  ;;  %v5811_v46 = vadd.f32 %v7569_v23, %v7561_v0 }
 0x18e   : > { %v3260_v5 = vor.u32 %v3259_v21, %v3256_v62  ;;  %v3561_v16 = vsel %vm6724_vm13, %v5614_v11, %v3560_v24  ;;  %v3562_v29 = vrot.slane %v3560_v24, 4  ;;  %6255 = vmatprep.mubr.bf16.mxu0 %v5629_v49  ;;  %v5899_v45 = vadd.f32 %v7501_v20, %v7491_v37 }
 0x18f   : > { %v5915_v61 = vpop.f32.mrb[48].mxu1  ;;  %v3270_v34 = vor.u32 %v3269_v3, %v3265_v19  ;;  %v5814_v41 = vadd.f32 %v7577_v38, %v7575_v63  ;;  %v5902_v53 = vadd.f32 %v7514_v43, %v7505_v2  ;;  %v5817_v0 = vadd.f32 %v5816_v51, %v7621_v40 }
 0x190   : > { %v5916_v1 = vpop.f32.mrb[49].mxu1  ;;  %v3261_v11 = vrot.slane %v3260_v5, 4  ;;  %v3564_v28 = vsel %vm6724_vm13, %v3562_v29, %v3563_v55  ;;  %v5905_v23 = vadd.f32 %v7554_v54, %v7549_v9  ;;  %v7667_v63 = vadd.f32 %v5899_v45, %v7489_v30  ;;  %v6403_v30 = vld [vmem:[#allocation2 + $0xcc] sm:$0xff]  }
 0x191   : > { %v5918_v52 = vpop.f32.mrb[50].mxu1  ;;  %v3271_v37 = vrot.slane %v3270_v34, 4  ;;  %v5630_v20 = vcombine.low %v3561_v16, %v3564_v28  ;;  %v7670_v2 = vadd.f32 %v5902_v53, %v7499_v27  ;;  %v5820_v40 = vadd.f32 %v5819_v31, %v7633_v32 }
 0x192   : > { %v5919_v62 = vpop.f32.mrb[51].mxu1  ;;  %v3266_v6 = vsel %vm6501_vm6, %v3261_v11, %v3265_v19  ;;  %v7675_v38 = vadd.f32 %v5905_v23, %v7537_v26  ;;  %v5908_v9 = vadd.f32 %v7571_v57, %v7563_v15  ;;  %v5911_v27 = vadd.f32 %v7609_v13, %v7603_v14  ;;  %v8007_v19 = vld [vmem:[#allocation13_spill] sm:$0xff]  ;;  %v8009_v23 = vld [vmem:[#allocation15_spill] sm:$0xff] }
 0x193   : > { %v3276_v54 = vsel %vm6501_vm6, %v3271_v37, %v3275_v56  ;;  %6256 = vmatmul.mubr.bf16.gmra.mrb[140].mxu0 %v5630_v20  ;;  %v5914_v26 = vadd.f32 %v7615_v60, %v7611_v58  ;;  %v5917_v32 = vadd.f32 %v5916_v1, %v5915_v61  ;;  %v5920_v33 = vadd.f32 %v5919_v62, %v5918_v52  ;;  %v8008_v61 = vld [vmem:[#allocation14_spill] sm:$0xff] }
 0x194   : > { %v5821_v10 = vpop.f32.mrb[44].mxu0  ;;  %v5598_v18 = vcombine.low %v3266_v6, %v3276_v54  ;;  %v7685_v22 = vadd.f32 %v5908_v9, %v7543_v50  ;;  %v7690_v15 = vadd.f32 %v5911_v27, %v7581_v4 }
 0x195   : > { %v5822_v59 = vpop.f32.mrb[45].mxu0  ;;  %v7693_v31 = vadd.f32 %v5914_v26, %v7589_v36  ;;  %v7696_v14 = vadd.f32 %v5917_v32, %v7619_v25  ;;  %v7699_v48 = vadd.f32 %v5920_v33, %v7627_v39 }
 0x196   : > { %v5824_v35 = vpop.f32.mrb[46].mxu0  ;;  %v5823_v51 = vadd.f32 %v5822_v59, %v5821_v10  ;;  %5000 = vmatprep.mubr.bf16.mxu1 %v5598_v18 }
 0x197   : > { %v5825_v43 = vpop.f32.mrb[47].mxu0  ;;  %v5921_v57 = vpop.f32.mrb[52].mxu1  ;;  %5001 = vmatmul.mubr.bf16.gmra.mrb[140].mxu1 %v6403_v30 }
 0x198   : > { %v5826_v8 = vadd.f32 %v5825_v43, %v5824_v35  ;;  %v5922_v13 = vpop.f32.mrb[53].mxu1 }
 0x199   : > { %v5923_v58 = vadd.f32 %v5922_v13, %v5921_v57  ;;  %v5924_v60 = vpop.f32.mrb[54].mxu1  ;;  %v8010_v57 = vld [vmem:[#allocation16_spill] sm:$0xff] }
 0x19a   : > { %v5925_v24 = vpop.f32.mrb[55].mxu1 }
 0x19b   : > { %v7701_v49 = vadd.f32 %v5923_v58, %v5811_v46  ;;  %v5926_v36 = vadd.f32 %v5925_v24, %v5924_v60 }
 0x19c   : > { %v5979_v44 = vpop.f32.mrb[48].mxu0 }
 0x19d   : > { %v5980_v50 = vpop.f32.mrb[49].mxu0  ;;  %v7706_v56 = vadd.f32 %v5926_v36, %v5814_v41 }
 0x19e   : > { %v5981_v4 = vadd.f32 %v5980_v50, %v5979_v44  ;;  %v5982_v21 = vpop.f32.mrb[50].mxu0 }
 0x19f   : > { %v5983_v55 = vpop.f32.mrb[51].mxu0 }
 0x1a0   : > { %v7704_v3 = vadd.f32 %v5981_v4, %v8007_v19  ;;  %v5984_v25 = vadd.f32 %v5983_v55, %v5982_v21  ;;  %v5927_v16 = vpop.f32.mrb[56].mxu1 }
 0x1a1   : > { %v5928_v10 = vpop.f32.mrb[57].mxu1 }
 0x1a2   : > { %v7709_v5 = vadd.f32 %v5984_v25, %v8008_v61  ;;  %v5929_v45 = vadd.f32 %v5928_v10, %v5927_v16  ;;  %v5930_v53 = vpop.f32.mrb[58].mxu1  ;;  %v8011_v25 = vld [vmem:[#allocation4_spill] sm:$0xff]  ;;  %v8012_v16 = vld [vmem:[#allocation5_spill] sm:$0xff] }
 0x1a3   : > { %v5931_v59 = vpop.f32.mrb[59].mxu1 }
 0x1a4   : > { %v5985_v39 = vpop.f32.mrb[52].mxu0  ;;  %v7714_v28 = vadd.f32 %v5929_v45, %v5817_v0  ;;  %v5932_v41 = vadd.f32 %v5931_v59, %v5930_v53 }
 0x1a5   : > { %v5986_v29 = vpop.f32.mrb[53].mxu0 }
 0x1a6   : > { %v5987_v1 = vadd.f32 %v5986_v29, %v5985_v39  ;;  %v5988_v34 = vpop.f32.mrb[54].mxu0  ;;  %v7719_v62 = vadd.f32 %v5932_v41, %v5820_v40 }
 0x1a7   : > { %v5989_v46 = vpop.f32.mrb[55].mxu0 }
 0x1a8   : > { %v7712_v52 = vadd.f32 %v5987_v1, %v7510_v47  ;;  %v5990_v11 = vadd.f32 %v5989_v46, %v5988_v34  ;;  %v5933_v20 = vpop.f32.mrb[60].mxu1 }
 0x1a9   : > { %v5934_v6 = vpop.f32.mrb[61].mxu1 }
 0x1aa   : > { %v7717_v35 = vadd.f32 %v5990_v11, %v8009_v23  ;;  %v5935_v30 = vadd.f32 %v5934_v6, %v5933_v20  ;;  %v5936_v27 = vpop.f32.mrb[62].mxu1  ;;  %v8013_v20 = vld [vmem:[#allocation12_spill] sm:$0xff] }
 0x1ab   : > { %v5937_v47 = vpop.f32.mrb[63].mxu1 }
 0x1ac   : > { %v5991_v37 = vpop.f32.mrb[56].mxu0  ;;  %v7724_v32 = vadd.f32 %v5935_v30, %v5823_v51  ;;  %v5938_v33 = vadd.f32 %v5937_v47, %v5936_v27  ;;  %v8015_v30 = vld [vmem:[#allocation7_spill] sm:$0xff] }
 0x1ad   : > { %v5992_v43 = vpop.f32.mrb[57].mxu0 }
 0x1ae   : > { %v5993_v9 = vadd.f32 %v5992_v43, %v5991_v37  ;;  %v5994_v54 = vpop.f32.mrb[58].mxu0  ;;  %v7729_v44 = vadd.f32 %v5938_v33, %v5826_v8  ;;  %v8014_v43 = vld [vmem:[#allocation6_spill] sm:$0xff] }
 0x1af   : > { %v5995_v18 = vpop.f32.mrb[59].mxu0 }
 0x1b0   : > { %v7722_v26 = vadd.f32 %v5993_v9, %v7552_v7  ;;  %v5996_v0 = vadd.f32 %v5995_v18, %v5994_v54  ;;  %v5939_v58 = vpop.f32.mrb[64].mxu1 }
 0x1b1   : > { %v5940_v21 = vpop.f32.mrb[65].mxu1 }
 0x1b2   : > { %v7727_v40 = vadd.f32 %v5996_v0, %v8010_v57  ;;  %v5941_v55 = vadd.f32 %v5940_v21, %v5939_v58  ;;  %v5942_v36 = vpop.f32.mrb[66].mxu1 }
 0x1b3   : > { %v5943_v19 = vpop.f32.mrb[67].mxu1 }
 0x1b4   : > { %v5997_v13 = vpop.f32.mrb[60].mxu0  ;;  %v7735_v61 = vadd.f32 %v5941_v55, %v8011_v25  ;;  %v5944_v39 = vadd.f32 %v5943_v19, %v5942_v36  ;;  %v8017_v19 = vld [vmem:[#allocation9_spill] sm:$0xff] }
 0x1b5   : > { %v5998_v50 = vpop.f32.mrb[61].mxu0 }
 0x1b6   : > { %v5999_v60 = vadd.f32 %v5998_v50, %v5997_v13  ;;  %v6000_v4 = vpop.f32.mrb[62].mxu0  ;;  %v7741_v29 = vadd.f32 %v5944_v39, %v8012_v16 }
 0x1b7   : > { %v6001_v24 = vpop.f32.mrb[63].mxu0 }
 0x1b8   : > { %v7732_v7 = vadd.f32 %v5999_v60, %v7596_v42  ;;  %v6002_v51 = vadd.f32 %v6001_v24, %v6000_v4  ;;  %v5945_v53 = vpop.f32.mrb[68].mxu1  ;;  %v8016_v24 = vld [vmem:[#allocation8_spill] sm:$0xff] }
 0x1b9   : > { %v5946_v42 = vpop.f32.mrb[69].mxu1 }
 0x1ba   : > { %v7738_v8 = vadd.f32 %v6002_v51, %v7601_v17  ;;  %v5947_v41 = vadd.f32 %v5946_v42, %v5945_v53  ;;  %v5948_v23 = vpop.f32.mrb[70].mxu1 }
 0x1bb   : > { %v5949_v37 = vpop.f32.mrb[71].mxu1 }
 0x1bc   : > { %v6003_v10 = vpop.f32.mrb[64].mxu0  ;;  %v7750_v6 = vadd.f32 %v5947_v41, %v8014_v43  ;;  %v5950_v9 = vadd.f32 %v5949_v37, %v5948_v23 }
 0x1bd   : > { %v6004_v1 = vpop.f32.mrb[65].mxu0 }
 0x1be   : > { %v6005_v34 = vadd.f32 %v6004_v1, %v6003_v10  ;;  %v6006_v45 = vpop.f32.mrb[66].mxu0  ;;  %v7753_v27 = vadd.f32 %v5950_v9, %v8015_v30 }
 0x1bf   : > { %v6007_v46 = vpop.f32.mrb[67].mxu0 }
 0x1c0   : > { %v7744_v59 = vadd.f32 %v6005_v34, %v7636_v12  ;;  %v6008_v11 = vadd.f32 %v6007_v46, %v6006_v45 }
 0x1c1   : > { %v5951_v12 = vpop.f32.mrb[72].mxu1 }
 0x1c2   : > { %v7747_v17 = vadd.f32 %v6008_v11, %v8013_v20  ;;  %v5952_v57 = vpop.f32.mrb[73].mxu1 }
 0x1c3   : > { %v5953_v58 = vadd.f32 %v5952_v57, %v5951_v12  ;;  %v5954_v60 = vpop.f32.mrb[74].mxu1 }
 0x1c4   : > { %v6009_v54 = vpop.f32.mrb[68].mxu0  ;;  %v5955_v4 = vpop.f32.mrb[75].mxu1 }
 0x1c5   : > { %v6010_v18 = vpop.f32.mrb[69].mxu0  ;;  %v7762_v55 = vadd.f32 %v5953_v58, %v8016_v24  ;;  %v5956_v36 = vadd.f32 %v5955_v4, %v5954_v60 }
 0x1c6   : > { %v6011_v47 = vadd.f32 %v6010_v18, %v6009_v54  ;;  %v6012_v0 = vpop.f32.mrb[70].mxu0 }
 0x1c7   : > { %v6013_v33 = vpop.f32.mrb[71].mxu0  ;;  %v7765_v25 = vadd.f32 %v5956_v36, %v8017_v19 }
 0x1c8   : > { %v7756_v13 = vadd.f32 %v6011_v47, %v7667_v63  ;;  %v6014_v50 = vadd.f32 %v6013_v33, %v6012_v0  ;;  %v8019_v47 = vld [vmem:[#allocation11_spill] sm:$0xff] }
 0x1ca   : > { %v7759_v21 = vadd.f32 %v6014_v50, %v7670_v2 }
 0x1cc   : > { %v6015_v51 = vpop.f32.mrb[72].mxu0 }
 0x1cd   : > { %v6016_v39 = vpop.f32.mrb[73].mxu0 }
 0x1ce   : > { %v6017_v16 = vadd.f32 %v6016_v39, %v6015_v51  ;;  %v6018_v10 = vpop.f32.mrb[74].mxu0 }
 0x1cf   : > { %v6019_v63 = vpop.f32.mrb[75].mxu0  ;;  %v5957_v46 = vpop.f32.mrb[76].mxu1 }
 0x1d0   : > { %v7768_v1 = vadd.f32 %v6017_v16, %v7675_v38  ;;  %v6020_v34 = vadd.f32 %v6019_v63, %v6018_v10  ;;  %v5958_v41 = vpop.f32.mrb[77].mxu1  ;;  %v8018_v38 = vld [vmem:[#allocation10_spill] sm:$0xff] }
 0x1d1   : > { %v5959_v20 = vadd.f32 %v5958_v41, %v5957_v46  ;;  %v5960_v43 = vpop.f32.mrb[78].mxu1 }
 0x1d2   : > { %v7771_v45 = vadd.f32 %v6020_v34, %v7685_v22  ;;  %v5961_v54 = vpop.f32.mrb[79].mxu1 }
 0x1d3   : > { %v7777_v30 = vadd.f32 %v5959_v20, %v8018_v38  ;;  %v5962_v18 = vadd.f32 %v5961_v54, %v5960_v43 }
 0x1d4   : > { %v6021_v2 = vpop.f32.mrb[76].mxu0 }
 0x1d5   : > { %v6022_v53 = vpop.f32.mrb[77].mxu0  ;;  %v7783_v0 = vadd.f32 %v5962_v18, %v8019_v47 }
 0x1d6   : > { %v6023_v42 = vadd.f32 %v6022_v53, %v6021_v2  ;;  %v6024_v11 = vpop.f32.mrb[78].mxu0 }
 0x1d7   : > { %v6025_v23 = vpop.f32.mrb[79].mxu0 }
 0x1d8   : > { %v7774_v37 = vadd.f32 %v6023_v42, %v7690_v15  ;;  %v6026_v9 = vadd.f32 %v6025_v23, %v6024_v11  ;;  %v6091_v15 = vpop.f32.mrb[80].mxu1 }
 0x1d9   : > { %v6092_v4 = vpop.f32.mrb[81].mxu1 }
 0x1da   : > { %v7780_v22 = vadd.f32 %v6026_v9, %v7693_v31  ;;  %v6093_v36 = vadd.f32 %v6092_v4, %v6091_v15  ;;  %v6094_v51 = vpop.f32.mrb[82].mxu1 }
 0x1db   : > { %v6095_v19 = vpop.f32.mrb[83].mxu1 }
 0x1dc   : > { %v6027_v12 = vpop.f32.mrb[80].mxu0  ;;  %v6096_v39 = vadd.f32 %v6095_v19, %v6094_v51  ;;  %v7792_v16 = vadd.f32 %v6093_v36, %v7704_v3 }
 0x1dd   : > { %v6028_v33 = vpop.f32.mrb[81].mxu0 }
 0x1de   : > { %v6029_v57 = vadd.f32 %v6028_v33, %v6027_v12  ;;  %v6030_v50 = vpop.f32.mrb[82].mxu0  ;;  %v7795_v10 = vadd.f32 %v6096_v39, %v7709_v5 }
 0x1df   : > { %v6031_v58 = vpop.f32.mrb[83].mxu0 }
 0x1e0   : > { %v7786_v60 = vadd.f32 %v6029_v57, %v7696_v14  ;;  %v6032_v24 = vadd.f32 %v6031_v58, %v6030_v50 }
 0x1e2   : > { %v7789_v31 = vadd.f32 %v6032_v24, %v7699_v48 }
 0x1e3   : > { %v6097_v53 = vpop.f32.mrb[84].mxu1 }
 0x1e4   : > { %v6033_v63 = vpop.f32.mrb[84].mxu0  ;;  %v6098_v11 = vpop.f32.mrb[85].mxu1 }
 0x1e5   : > { %v6034_v34 = vpop.f32.mrb[85].mxu0  ;;  %v6099_v41 = vadd.f32 %v6098_v11, %v6097_v53  ;;  %v6100_v23 = vpop.f32.mrb[86].mxu1 }
 0x1e6   : > { %v6035_v2 = vadd.f32 %v6034_v34, %v6033_v63  ;;  %v6036_v14 = vpop.f32.mrb[86].mxu0  ;;  %v6101_v3 = vpop.f32.mrb[87].mxu1 }
 0x1e7   : > { %v6037_v46 = vpop.f32.mrb[87].mxu0  ;;  %v6102_v43 = vadd.f32 %v6101_v3, %v6100_v23  ;;  %v7804_v5 = vadd.f32 %v6099_v41, %v7712_v52 }
 0x1e8   : > { %v7798_v42 = vadd.f32 %v6035_v2, %v7701_v49  ;;  %v6038_v48 = vadd.f32 %v6037_v46, %v6036_v14 }
 0x1e9   : > { %v7807_v9 = vadd.f32 %v6102_v43, %v7717_v35 }
 0x1ea   : > { %v7801_v20 = vadd.f32 %v6038_v48, %v7706_v56 }
 0x1ec   : > { %v6039_v54 = vpop.f32.mrb[88].mxu0 }
 0x1ed   : > { %v6040_v38 = vpop.f32.mrb[89].mxu0  ;;  %v6103_v47 = vpop.f32.mrb[88].mxu1 }
 0x1ee   : > { %v6041_v18 = vadd.f32 %v6040_v38, %v6039_v54  ;;  %v6042_v49 = vpop.f32.mrb[90].mxu0  ;;  %v6104_v57 = vpop.f32.mrb[89].mxu1 }
 0x1ef   : > { %v6043_v12 = vpop.f32.mrb[91].mxu0  ;;  %v6105_v50 = vadd.f32 %v6104_v57, %v6103_v47  ;;  %v6106_v15 = vpop.f32.mrb[90].mxu1 }
 0x1f0   : > { %v7810_v33 = vadd.f32 %v6041_v18, %v7714_v28  ;;  %v6044_v56 = vadd.f32 %v6043_v12, %v6042_v49  ;;  %v6107_v52 = vpop.f32.mrb[91].mxu1 }
 0x1f1   : > { %v6108_v4 = vadd.f32 %v6107_v52, %v6106_v15  ;;  %v7816_v35 = vadd.f32 %v6105_v50, %v7722_v26 }
 0x1f2   : > { %v7813_v58 = vadd.f32 %v6044_v56, %v7719_v62 }
 0x1f3   : > { %v7819_v24 = vadd.f32 %v6108_v4, %v7727_v40 }
 0x1f4   : > { %v6045_v36 = vpop.f32.mrb[92].mxu0 }
 0x1f5   : > { %v6046_v51 = vpop.f32.mrb[93].mxu0 }
 0x1f6   : > { %v6047_v19 = vadd.f32 %v6046_v51, %v6045_v36  ;;  %v6048_v39 = vpop.f32.mrb[94].mxu0 }
 0x1f7   : > { %v6109_v28 = vpop.f32.mrb[92].mxu1  ;;  %v6049_v34 = vpop.f32.mrb[95].mxu0 }
 0x1f8   : > { %v6110_v63 = vpop.f32.mrb[93].mxu1  ;;  %v7822_v2 = vadd.f32 %v6047_v19, %v7724_v32  ;;  %v6050_v14 = vadd.f32 %v6049_v34, %v6048_v39 }
 0x1f9   : > { %v6111_v62 = vadd.f32 %v6110_v63, %v6109_v28  ;;  %v6112_v53 = vpop.f32.mrb[94].mxu1 }
 0x1fa   : > { %v6113_v46 = vpop.f32.mrb[95].mxu1  ;;  %v7825_v26 = vadd.f32 %v6050_v14, %v7729_v44 }
 0x1fb   : > { %v6114_v11 = vadd.f32 %v6113_v46, %v6112_v53  ;;  %v7828_v40 = vadd.f32 %v6111_v62, %v7732_v7 }
 0x1fd   : > { %v7831_v48 = vadd.f32 %v6114_v11, %v7738_v8 }
 0x1fe   : > { %v6051_v41 = vpop.f32.mrb[96].mxu0 }
 0x1ff   : > { %v6052_v23 = vpop.f32.mrb[97].mxu0 }
 0x200   : > { %v6053_v3 = vadd.f32 %v6052_v23, %v6051_v41  ;;  %v6054_v43 = vpop.f32.mrb[98].mxu0 }
 0x201   : > { %v6115_v32 = vpop.f32.mrb[96].mxu1  ;;  %v6055_v54 = vpop.f32.mrb[99].mxu0 }
 0x202   : > { %v7834_v38 = vadd.f32 %v6053_v3, %v7735_v61  ;;  %v6116_v18 = vpop.f32.mrb[97].mxu1  ;;  %v6056_v49 = vadd.f32 %v6055_v54, %v6054_v43 }
 0x203   : > { %v6117_v44 = vadd.f32 %v6116_v18, %v6115_v32  ;;  %v6118_v47 = vpop.f32.mrb[98].mxu1 }
 0x204   : > { %v7837_v12 = vadd.f32 %v6056_v49, %v7741_v29  ;;  %v6119_v7 = vpop.f32.mrb[99].mxu1 }
 0x205   : > { %v6120_v57 = vadd.f32 %v6119_v7, %v6118_v47  ;;  %v7840_v8 = vadd.f32 %v6117_v44, %v7744_v59 }
 0x207   : > { %v7843_v56 = vadd.f32 %v6120_v57, %v7747_v17 }
 0x208   : > { %v6057_v50 = vpop.f32.mrb[100].mxu0 }
 0x209   : > { %v6058_v15 = vpop.f32.mrb[101].mxu0 }
 0x20a   : > { %v6059_v52 = vadd.f32 %v6058_v15, %v6057_v50  ;;  %v6060_v61 = vpop.f32.mrb[102].mxu0 }
 0x20b   : > { %v6121_v4 = vpop.f32.mrb[100].mxu1  ;;  %v6061_v36 = vpop.f32.mrb[103].mxu0 }
 0x20c   : > { %v7846_v51 = vadd.f32 %v6059_v52, %v7750_v6  ;;  %v6122_v19 = vpop.f32.mrb[101].mxu1  ;;  %v6062_v29 = vadd.f32 %v6061_v36, %v6060_v61 }
 0x20d   : > { %v6123_v28 = vadd.f32 %v6122_v19, %v6121_v4  ;;  %v6124_v39 = vpop.f32.mrb[102].mxu1 }
 0x20e   : > { %v7849_v63 = vadd.f32 %v6062_v29, %v7753_v27  ;;  %v6125_v59 = vpop.f32.mrb[103].mxu1 }
 0x20f   : > { %v6126_v34 = vadd.f32 %v6125_v59, %v6124_v39  ;;  %v7852_v17 = vadd.f32 %v6123_v28, %v7756_v13 }
 0x211   : > { %v7855_v62 = vadd.f32 %v6126_v34, %v7759_v21 }
 0x213   : > { %v6063_v14 = vpop.f32.mrb[104].mxu0 }
 0x214   : > { %v6064_v53 = vpop.f32.mrb[105].mxu0 }
 0x215   : > { %v6065_v46 = vadd.f32 %v6064_v53, %v6063_v14  ;;  %v6066_v6 = vpop.f32.mrb[106].mxu0  ;;  %v6127_v11 = vpop.f32.mrb[104].mxu1 }
 0x216   : > { %v6067_v41 = vpop.f32.mrb[107].mxu0  ;;  %v6128_v3 = vpop.f32.mrb[105].mxu1 }
 0x217   : > { %v7858_v23 = vadd.f32 %v6065_v46, %v7762_v55  ;;  %v6068_v27 = vadd.f32 %v6067_v41, %v6066_v6  ;;  %v6129_v43 = vadd.f32 %v6128_v3, %v6127_v11  ;;  %v6130_v32 = vpop.f32.mrb[106].mxu1 }
 0x218   : > { %v6131_v13 = vpop.f32.mrb[107].mxu1 }
 0x219   : > { %v7861_v54 = vadd.f32 %v6068_v27, %v7765_v25  ;;  %v6132_v18 = vadd.f32 %v6131_v13, %v6130_v32  ;;  %v7864_v21 = vadd.f32 %v6129_v43, %v7768_v1 }
 0x21b   : > { %v7867_v49 = vadd.f32 %v6132_v18, %v7771_v45 }
 0x21f   : > { %v6133_v55 = vpop.f32.mrb[108].mxu1 }
 0x220   : > { %v6069_v44 = vpop.f32.mrb[108].mxu0  ;;  %v6134_v50 = vpop.f32.mrb[109].mxu1 }
 0x221   : > { %v6070_v47 = vpop.f32.mrb[109].mxu0  ;;  %v6135_v15 = vadd.f32 %v6134_v50, %v6133_v55  ;;  %v6136_v61 = vpop.f32.mrb[110].mxu1 }
 0x222   : > { %v6071_v7 = vadd.f32 %v6070_v47, %v6069_v44  ;;  %v6072_v57 = vpop.f32.mrb[110].mxu0  ;;  %v6137_v36 = vpop.f32.mrb[111].mxu1 }
 0x223   : > { %v6073_v52 = vpop.f32.mrb[111].mxu0  ;;  %v6138_v1 = vadd.f32 %v6137_v36, %v6136_v61  ;;  %v7873_v19 = vadd.f32 %v6135_v15, %v7774_v37 }
 0x224   : > { %v7870_v25 = vadd.f32 %v6071_v7, %v7777_v30  ;;  %v6074_v4 = vadd.f32 %v6073_v52, %v6072_v57 }
 0x225   : > { %v7879_v29 = vadd.f32 %v6138_v1, %v7780_v22 }
 0x226   : > { %v7876_v45 = vadd.f32 %v6074_v4, %v7783_v0 }
 0x228   : > { %v6229_v30 = vpop.f32.mrb[112].mxu0 }
 0x229   : > { %v5052_v37 = vadd.f32 %v6229_v30, %v7804_v5  ;;  %v5043_v28 = vpop.f32.mrb[113].mxu0 }
 0x22a   : > { %v5044_v0 = vadd.f32 %v5043_v28, %v7792_v16  ;;  %v6230_v39 = vpop.f32.mrb[114].mxu0  ;;  %v6139_v22 = vpop.f32.mrb[112].mxu1 }
 0x22b   : > { %5172 = vst [vmem:[%s7886_s23 + $0x10] sm:$0xff] %v5052_v37  ;;  %v5055_v59 = vadd.f32 %v6230_v39, %v7807_v9  ;;  %v5046_v34 = vpop.f32.mrb[115].mxu0  ;;  %v6140_v14 = vpop.f32.mrb[113].mxu1  ;;  %v5241_v43 = vmul.f32 %v5052_v37, %v5052_v37 }
 0x22c   : > { %5170 = vst [vmem:[%s7886_s23] sm:$0xff] %v5044_v0  ;;  %v5047_v53 = vadd.f32 %v5046_v34, %v7795_v10  ;;  %v6141_v46 = vadd.f32 %v6140_v14, %v6139_v22  ;;  %v6142_v6 = vpop.f32.mrb[114].mxu1  ;;  %v5239_v11 = vmul.f32 %v5044_v0, %v5044_v0 }
 0x22d   : > { %5173 = vst [vmem:[%s7886_s23 + $0x18] sm:$0xff] %v5055_v59  ;;  %v6143_v3 = vpop.f32.mrb[115].mxu1  ;;  %v5242_v18 = vmul.f32 %v5055_v59, %v5055_v59 }
 0x22e   : > { %5171 = vst [vmem:[%s7886_s23 + $0x8] sm:$0xff] %v5047_v53  ;;  %v5202_v41 = vadd.f32 %v5047_v53, %v5044_v0  ;;  %v5240_v5 = vmul.f32 %v5047_v53, %v5047_v53  ;;  %v6144_v16 = vadd.f32 %v6143_v3, %v6142_v6  ;;  %v7897_v27 = vadd.f32 %v6141_v46, %v7786_v60 }
 0x230   : > { %v5203_v9 = vadd.f32 %v5202_v41, %v5052_v37  ;;  %v5271_v32 = vadd.f32 %v5240_v5, %v5239_v11  ;;  %v6233_v13 = vpop.f32.mrb[116].mxu0  ;;  %v7900_v10 = vadd.f32 %v6144_v16, %v7789_v31 }
 0x231   : > { %v5068_v47 = vadd.f32 %v6233_v13, %v7828_v40  ;;  %v5059_v55 = vpop.f32.mrb[117].mxu0 }
 0x232   : > { %v5272_v44 = vadd.f32 %v5271_v32, %v5241_v43  ;;  %v5204_v7 = vadd.f32 %v5203_v9, %v5055_v59  ;;  %v6145_v57 = vpop.f32.mrb[116].mxu1  ;;  %v5060_v50 = vadd.f32 %v5059_v55, %v7816_v35  ;;  %v6234_v60 = vpop.f32.mrb[118].mxu0 }
 0x233   : > { %5176 = vst [vmem:[%s7886_s23 + $0x30] sm:$0xff] %v5068_v47  ;;  %v6146_v52 = vpop.f32.mrb[117].mxu1  ;;  %v5071_v61 = vadd.f32 %v6234_v60, %v7831_v48  ;;  %v5062_v4 = vpop.f32.mrb[119].mxu0  ;;  %v5245_v48 = vmul.f32 %v5068_v47, %v5068_v47 }
 0x234   : > { %v5273_v15 = vadd.f32 %v5272_v44, %v5242_v18  ;;  %5174 = vst [vmem:[%s7886_s23 + $0x20] sm:$0xff] %v5060_v50  ;;  %v5205_v31 = vadd.f32 %v5204_v7, %v5060_v50  ;;  %v5243_v36 = vmul.f32 %v5060_v50, %v5060_v50  ;;  %v6147_v1 = vadd.f32 %v6146_v52, %v6145_v57  ;;  %v6148_v30 = vpop.f32.mrb[118].mxu1 }
 0x235   : > { %v5063_v40 = vadd.f32 %v5062_v4, %v7819_v24  ;;  %5177 = vst [vmem:[%s7886_s23 + $0x38] sm:$0xff] %v5071_v61  ;;  %v6149_v37 = vpop.f32.mrb[119].mxu1  ;;  %v5246_v6 = vmul.f32 %v5071_v61, %v5071_v61 }
 0x236   : > { %v5274_v28 = vadd.f32 %v5273_v15, %v5243_v36  ;;  %v6150_v39 = vadd.f32 %v6149_v37, %v6148_v30  ;;  %v7911_v22 = vadd.f32 %v6147_v1, %v7798_v42 }
 0x237   : > { %5175 = vst [vmem:[%s7886_s23 + $0x28] sm:$0xff] %v5063_v40  ;;  %v5206_v35 = vadd.f32 %v5205_v31, %v5063_v40  ;;  %v5244_v0 = vmul.f32 %v5063_v40, %v5063_v40 }
 0x238   : > { %v6237_v14 = vpop.f32.mrb[120].mxu0  ;;  %v7914_v53 = vadd.f32 %v6150_v39, %v7801_v20 }
 0x239   : > { %v5207_v59 = vadd.f32 %v5206_v35, %v5068_v47  ;;  %v5275_v34 = vadd.f32 %v5274_v28, %v5244_v0  ;;  %v5084_v24 = vadd.f32 %v6237_v14, %v7852_v17  ;;  %v5075_v46 = vpop.f32.mrb[121].mxu0 }
 0x23a   : > { %v5076_v41 = vadd.f32 %v5075_v46, %v7840_v8  ;;  %v6238_v42 = vpop.f32.mrb[122].mxu0 }
 0x23b   : > { %v5276_v11 = vadd.f32 %v5275_v34, %v5245_v48  ;;  %v5208_v5 = vadd.f32 %v5207_v59, %v5071_v61  ;;  %5180 = vst [vmem:[%s7886_s23 + $0x50] sm:$0xff] %v5084_v24  ;;  %v5087_v3 = vadd.f32 %v6238_v42, %v7855_v62  ;;  %v5078_v16 = vpop.f32.mrb[123].mxu0  ;;  %v6151_v43 = vpop.f32.mrb[120].mxu1  ;;  %v5249_v7 = vmul.f32 %v5084_v24, %v5084_v24 }
 0x23c   : > { %5178 = vst [vmem:[%s7886_s23 + $0x40] sm:$0xff] %v5076_v41  ;;  %v5247_v20 = vmul.f32 %v5076_v41, %v5076_v41  ;;  %v5079_v17 = vadd.f32 %v5078_v16, %v7843_v56  ;;  %v6152_v13 = vpop.f32.mrb[121].mxu1 }
 0x23d   : > { %v5209_v9 = vadd.f32 %v5208_v5, %v5076_v41  ;;  %v5277_v32 = vadd.f32 %v5276_v11, %v5246_v6  ;;  %5181 = vst [vmem:[%s7886_s23 + $0x58] sm:$0xff] %v5087_v3  ;;  %v6153_v44 = vadd.f32 %v6152_v13, %v6151_v43  ;;  %v6154_v47 = vpop.f32.mrb[122].mxu1  ;;  %v5250_v52 = vmul.f32 %v5087_v3, %v5087_v3 }
 0x23e   : > { %5179 = vst [vmem:[%s7886_s23 + $0x48] sm:$0xff] %v5079_v17  ;;  %v5248_v55 = vmul.f32 %v5079_v17, %v5079_v17  ;;  %v6155_v57 = vpop.f32.mrb[123].mxu1 }
 0x23f   : > { %v5278_v18 = vadd.f32 %v5277_v32, %v5247_v20  ;;  %v5210_v8 = vadd.f32 %v5209_v9, %v5079_v17  ;;  %v6156_v60 = vadd.f32 %v6155_v57, %v6154_v47  ;;  %v7925_v15 = vadd.f32 %v6153_v44, %v7810_v33 }
 0x241   : > { %v5211_v62 = vadd.f32 %v5210_v8, %v5084_v24  ;;  %v5279_v50 = vadd.f32 %v5278_v18, %v5248_v55  ;;  %v7928_v31 = vadd.f32 %v6156_v60, %v7813_v58 }
 0x242   : > { %v6241_v61 = vpop.f32.mrb[124].mxu0 }
 0x243   : > { %v5280_v56 = vadd.f32 %v5279_v50, %v5249_v7  ;;  %v5212_v4 = vadd.f32 %v5211_v62, %v5087_v3  ;;  %v5100_v36 = vadd.f32 %v6241_v61, %v7873_v19  ;;  %v5091_v1 = vpop.f32.mrb[125].mxu0 }
 0x244   : > { %v6157_v30 = vpop.f32.mrb[124].mxu1  ;;  %v5092_v40 = vadd.f32 %v5091_v1, %v7864_v21  ;;  %v6242_v28 = vpop.f32.mrb[126].mxu0 }
 0x245   : > { %v5281_v37 = vadd.f32 %v5280_v56, %v5250_v52  ;;  %5184 = vst [vmem:[%s7886_s23 + $0x70] sm:$0xff] %v5100_v36  ;;  %v6158_v33 = vpop.f32.mrb[125].mxu1  ;;  %v5103_v35 = vadd.f32 %v6242_v28, %v7879_v29  ;;  %v5094_v0 = vpop.f32.mrb[127].mxu0  ;;  %v5253_v11 = vmul.f32 %v5100_v36, %v5100_v36 }
 0x246   : > { %5182 = vst [vmem:[%s7886_s23 + $0x60] sm:$0xff] %v5092_v40  ;;  %v5213_v39 = vadd.f32 %v5212_v4, %v5092_v40  ;;  %v5251_v48 = vmul.f32 %v5092_v40, %v5092_v40  ;;  %v6159_v58 = vadd.f32 %v6158_v33, %v6157_v30  ;;  %v6160_v59 = vpop.f32.mrb[126].mxu1  ;;  %v5095_v19 = vadd.f32 %v5094_v0, %v7867_v49 }
 0x247   : > { %5185 = vst [vmem:[%s7886_s23 + $0x78] sm:$0xff] %v5103_v35  ;;  %v6161_v34 = vpop.f32.mrb[127].mxu1  ;;  %v5254_v16 = vmul.f32 %v5103_v35, %v5103_v35 }
 0x248   : > { %v5282_v14 = vadd.f32 %v5281_v37, %v5251_v48  ;;  %5183 = vst [vmem:[%s7886_s23 + $0x68] sm:$0xff] %v5095_v19  ;;  %v5214_v21 = vadd.f32 %v5213_v39, %v5095_v19  ;;  %v5252_v24 = vmul.f32 %v5095_v19, %v5095_v19  ;;  %v6162_v46 = vadd.f32 %v6161_v34, %v6160_v59 }
 0x249   : > { %v4971_v6 = vadd.f32 %v6159_v58, %v7822_v2 }
 0x24a   : > { %v5215_v29 = vadd.f32 %v5214_v21, %v5100_v36  ;;  %v5283_v41 = vadd.f32 %v5282_v14, %v5252_v24  ;;  %v6245_v5 = vpop.f32.mrb[128].mxu0  ;;  %v4974_v42 = vadd.f32 %v6162_v46, %v7825_v26 }
 0x24b   : > { %v5116_v3 = vadd.f32 %v6245_v5, %v7911_v22  ;;  %v5107_v49 = vpop.f32.mrb[129].mxu0 }
 0x24c   : > { %v5284_v43 = vadd.f32 %v5283_v41, %v5253_v11  ;;  %v5108_v9 = vadd.f32 %v5107_v49, %v7897_v27  ;;  %v5216_v20 = vadd.f32 %v5215_v29, %v5103_v35  ;;  %v6246_v32 = vpop.f32.mrb[130].mxu0 }
 0x24d   : > { %5188 = vst [vmem:[%s7886_s23 + $0x90] sm:$0xff] %v5116_v3  ;;  %v5119_v2 = vadd.f32 %v6246_v32, %v7914_v53  ;;  %v5110_v17 = vpop.f32.mrb[131].mxu0  ;;  %v5257_v62 = vmul.f32 %v5116_v3, %v5116_v3 }
 0x24e   : > { %v6163_v13 = vpop.f32.mrb[128].mxu1  ;;  %5186 = vst [vmem:[%s7886_s23 + $0x80] sm:$0xff] %v5108_v9  ;;  %v5217_v18 = vadd.f32 %v5216_v20, %v5108_v9  ;;  %v5255_v44 = vmul.f32 %v5108_v9, %v5108_v9  ;;  %v5285_v26 = vadd.f32 %v5284_v43, %v5254_v16  ;;  %v5111_v22 = vadd.f32 %v5110_v17, %v7900_v10 }
 0x24f   : > { %v6164_v47 = vpop.f32.mrb[129].mxu1  ;;  %5189 = vst [vmem:[%s7886_s23 + $0x98] sm:$0xff] %v5119_v2  ;;  %v5258_v61 = vmul.f32 %v5119_v2, %v5119_v2 }
 0x250   : > { %v5286_v8 = vadd.f32 %v5285_v26, %v5255_v44  ;;  %v6165_v55 = vadd.f32 %v6164_v47, %v6163_v13  ;;  %v6166_v7 = vpop.f32.mrb[130].mxu1  ;;  %5187 = vst [vmem:[%s7886_s23 + $0x88] sm:$0xff] %v5111_v22  ;;  %v5218_v27 = vadd.f32 %v5217_v18, %v5111_v22  ;;  %v5256_v57 = vmul.f32 %v5111_v22, %v5111_v22 }
 0x251   : > { %v6167_v50 = vpop.f32.mrb[131].mxu1 }
 0x252   : > { %v5219_v53 = vadd.f32 %v5218_v27, %v5116_v3  ;;  %v5287_v60 = vadd.f32 %v5286_v8, %v5256_v57  ;;  %v6168_v52 = vadd.f32 %v6167_v50, %v6166_v7  ;;  %v4979_v56 = vadd.f32 %v6165_v55, %v7834_v38 }
 0x254   : > { %v5288_v4 = vadd.f32 %v5287_v60, %v5257_v62  ;;  %v6249_v10 = vpop.f32.mrb[132].mxu0  ;;  %v5220_v36 = vadd.f32 %v5219_v53, %v5119_v2  ;;  %v4982_v1 = vadd.f32 %v6168_v52, %v7837_v12 }
 0x255   : > { %v5132_v30 = vadd.f32 %v6249_v10, %v4971_v6  ;;  %v5123_v40 = vpop.f32.mrb[133].mxu0 }
 0x256   : > { %v5124_v37 = vadd.f32 %v5123_v40, %v7925_v15  ;;  %v5289_v28 = vadd.f32 %v5288_v4, %v5258_v61  ;;  %v6250_v33 = vpop.f32.mrb[134].mxu0 }
 0x257   : > { %5192 = vst [vmem:[%s7886_s23 + $0xb0] sm:$0xff] %v5132_v30  ;;  %v6169_v35 = vpop.f32.mrb[132].mxu1  ;;  %v5135_v0 = vadd.f32 %v6250_v33, %v4974_v42  ;;  %v5126_v39 = vpop.f32.mrb[135].mxu0  ;;  %v5261_v6 = vmul.f32 %v5132_v30, %v5132_v30 }
 0x258   : > { %5190 = vst [vmem:[%s7886_s23 + $0xa0] sm:$0xff] %v5124_v37  ;;  %v5221_v38 = vadd.f32 %v5220_v36, %v5124_v37  ;;  %v5259_v48 = vmul.f32 %v5124_v37, %v5124_v37  ;;  %v6170_v58 = vpop.f32.mrb[133].mxu1  ;;  %v5127_v59 = vadd.f32 %v5126_v39, %v7928_v31 }
 0x259   : > { %v6171_v19 = vadd.f32 %v6170_v58, %v6169_v35  ;;  %5193 = vst [vmem:[%s7886_s23 + $0xb8] sm:$0xff] %v5135_v0  ;;  %v6172_v12 = vpop.f32.mrb[134].mxu1  ;;  %v5262_v5 = vmul.f32 %v5135_v0, %v5135_v0 }
 0x25a   : > { %v5290_v34 = vadd.f32 %v5289_v28, %v5259_v48  ;;  %5191 = vst [vmem:[%s7886_s23 + $0xa8] sm:$0xff] %v5127_v59  ;;  %v5222_v14 = vadd.f32 %v5221_v38, %v5127_v59  ;;  %v5260_v15 = vmul.f32 %v5127_v59, %v5127_v59  ;;  %v6173_v21 = vpop.f32.mrb[135].mxu1 }
 0x25b   : > { %v6174_v24 = vadd.f32 %v6173_v21, %v6172_v12  ;;  %v4987_v46 = vadd.f32 %v6171_v19, %v7846_v51 }
 0x25c   : > { %v5223_v11 = vadd.f32 %v5222_v14, %v5132_v30  ;;  %v5291_v29 = vadd.f32 %v5290_v34, %v5260_v15 }
 0x25d   : > { %v4990_v41 = vadd.f32 %v6174_v24, %v7849_v63 }
 0x25e   : > { %v5292_v31 = vadd.f32 %v5291_v29, %v5261_v6  ;;  %v6253_v42 = vpop.f32.mrb[136].mxu0  ;;  %v5224_v3 = vadd.f32 %v5223_v11, %v5135_v0 }
 0x25f   : > { %v5148_v49 = vadd.f32 %v6253_v42, %v4987_v46  ;;  %v5139_v16 = vpop.f32.mrb[137].mxu0 }
 0x260   : > { %v6175_v43 = vpop.f32.mrb[136].mxu1  ;;  %v5140_v9 = vadd.f32 %v5139_v16, %v4979_v56  ;;  %v5293_v20 = vadd.f32 %v5292_v31, %v5262_v5  ;;  %v6254_v32 = vpop.f32.mrb[138].mxu0 }
 0x261   : > { %5196 = vst [vmem:[%s7886_s23 + $0xd0] sm:$0xff] %v5148_v49  ;;  %v6176_v51 = vpop.f32.mrb[137].mxu1  ;;  %v5151_v2 = vadd.f32 %v6254_v32, %v4990_v41  ;;  %v5142_v17 = vpop.f32.mrb[139].mxu0  ;;  %v5265_v57 = vmul.f32 %v5148_v49, %v5148_v49 }
 0x262   : > { %5194 = vst [vmem:[%s7886_s23 + $0xc0] sm:$0xff] %v5140_v9  ;;  %v5225_v13 = vadd.f32 %v5224_v3, %v5140_v9  ;;  %v5263_v18 = vmul.f32 %v5140_v9, %v5140_v9  ;;  %v6177_v63 = vadd.f32 %v6176_v51, %v6175_v43  ;;  %v6178_v44 = vpop.f32.mrb[138].mxu1  ;;  %v5143_v26 = vadd.f32 %v5142_v17, %v4982_v1 }
 0x263   : > { %5197 = vst [vmem:[%s7886_s23 + $0xd8] sm:$0xff] %v5151_v2  ;;  %v6179_v22 = vpop.f32.mrb[139].mxu1  ;;  %v5266_v56 = vmul.f32 %v5151_v2, %v5151_v2 }
 0x264   : > { %v5294_v47 = vadd.f32 %v5293_v20, %v5263_v18  ;;  %5195 = vst [vmem:[%s7886_s23 + $0xc8] sm:$0xff] %v5143_v26  ;;  %v5226_v8 = vadd.f32 %v5225_v13, %v5143_v26  ;;  %v5264_v55 = vmul.f32 %v5143_v26, %v5143_v26  ;;  %v6180_v7 = vadd.f32 %v6179_v22, %v6178_v44 }
 0x265   : > { %v4995_v27 = vadd.f32 %v6177_v63, %v7858_v23 }
 0x266   : > { %v5227_v62 = vadd.f32 %v5226_v8, %v5148_v49  ;;  %v5295_v50 = vadd.f32 %v5294_v47, %v5264_v55  ;;  %v6257_v53 = vpop.f32.mrb[140].mxu0  ;;  %v4998_v60 = vadd.f32 %v6180_v7, %v7861_v54 }
 0x267   : > { %v5155_v52 = vpop.f32.mrb[141].mxu0 }
 0x268   : > { %v5296_v61 = vadd.f32 %v5295_v50, %v5265_v57  ;;  %v5156_v4 = vadd.f32 %v5155_v52, %v4995_v27  ;;  %v5228_v10 = vadd.f32 %v5227_v62, %v5151_v2  ;;  %v6258_v36 = vpop.f32.mrb[142].mxu0 }
 0x269   : > { %v5158_v1 = vpop.f32.mrb[143].mxu0 }
 0x26a   : > { %v6181_v30 = vpop.f32.mrb[140].mxu1  ;;  %5198 = vst [vmem:[%s7886_s23 + $0xe0] sm:$0xff] %v5156_v4  ;;  %v5229_v40 = vadd.f32 %v5228_v10, %v5156_v4  ;;  %v5267_v37 = vmul.f32 %v5156_v4, %v5156_v4  ;;  %v5297_v23 = vadd.f32 %v5296_v61, %v5266_v56  ;;  %v5159_v28 = vadd.f32 %v5158_v1, %v4998_v60 }
 0x26b   : > { %v6182_v33 = vpop.f32.mrb[141].mxu1 }
 0x26c   : > { %v5298_v35 = vadd.f32 %v5297_v23, %v5267_v37  ;;  %v6183_v0 = vadd.f32 %v6182_v33, %v6181_v30  ;;  %v6184_v54 = vpop.f32.mrb[142].mxu1  ;;  %5199 = vst [vmem:[%s7886_s23 + $0xe8] sm:$0xff] %v5159_v28  ;;  %v5230_v39 = vadd.f32 %v5229_v40, %v5159_v28  ;;  %v5268_v38 = vmul.f32 %v5159_v28, %v5159_v28 }
 0x26d   : > { %v6185_v48 = vpop.f32.mrb[143].mxu1 }
 0x26e   : > { %v5003_v58 = vadd.f32 %v6183_v0, %v7870_v25  ;;  %v5299_v59 = vadd.f32 %v5298_v35, %v5268_v38  ;;  %v6186_v19 = vadd.f32 %v6185_v48, %v6184_v54 }
 0x270   : > { %v5164_v12 = vadd.f32 %v6257_v53, %v5003_v58  ;;  %v5006_v34 = vadd.f32 %v6186_v19, %v7876_v45 }
 0x272   : > { %5200 = vst [vmem:[%s7886_s23 + $0xf0] sm:$0xff] %v5164_v12  ;;  %v5269_v14 = vmul.f32 %v5164_v12, %v5164_v12  ;;  %v5231_v15 = vadd.f32 %v5230_v39, %v5164_v12  ;;  %v5167_v21 = vadd.f32 %v6258_v36, %v5006_v34 }
 0x274   : > { %v5300_v24 = vadd.f32 %v5299_v59, %v5269_v14  ;;  %5201 = vst [vmem:[%s7886_s23 + $0xf8] sm:$0xff] %v5167_v21  ;;  %v5232_v46 = vadd.f32 %v5231_v15, %v5167_v21  ;;  %v5270_v6 = vmul.f32 %v5167_v21, %v5167_v21 }
 0x276   : > { %v5233_v11 = vrot.slane %v5232_v46, 4  ;;  %v5301_v29 = vadd.f32 %v5300_v24, %v5270_v6 }
 0x278   : > { %v5234_v41 = vadd.f32 %v5233_v11, %v5232_v46  ;;  %v5302_v5 = vrot.slane %v5301_v29, 4 }
 0x27a   : > { %v5235_v31 = vrot.slane %v5234_v41, 2  ;;  %v5303_v25 = vadd.f32 %v5302_v5, %v5301_v29 }
 0x27c   : > { %v5236_v42 = vadd.f32 %v5235_v31, %v5234_v41  ;;  %v5304_v3 = vrot.slane %v5303_v25, 2 }
 0x27e   : > { %v5237_v49 = vrot.slane %v5236_v42, 1  ;;  %v5305_v16 = vadd.f32 %v5304_v3, %v5303_v25 }
 0x280   : > { %v5306_v45 = vrot.slane %v5305_v16, 1  ;;  %v5238_v43 = vadd.f32 %v5237_v49, %v5236_v42 }
 0x282   : > { %v5307_v9 = vadd.f32 %v5306_v45, %v5305_v16 }
 0x284   : > { %v5309_v20 = vsel %vm696_vm1, %v5238_v43, %v5307_v9 }
 0x285   : > { %5310 = vst [vmem:[%s181_s26] sm:$0x3] %v5309_v20 }
 0x286 PF: > { %s14_s12 = sadd.s32 1, %s6410_s12  }
 0x287   : > { %p11_p4 = scmp.ge.s32.totalorder %s14_s12, 4  }
 0x289   :  { %13 = sbr.rel (!%p11_p4) target bundleno = 1 (0x1), region = 72 }

// kernel: basic_block_forward.4
= control target key start
LH: loop header
LB: loop body
LE: loop exit
PB: predicated region body
PF: predicated region fallthrough
CT: control target
= control target key end

     0   :  { %s6613_s18 = smov 0   ;;  %s8262_s0 = inlined_call_operand.vmem [shape: f32[2,16,16,128], index: 0, kind: input, shape index: {}]   ;;  %s8263_s1 = inlined_call_operand.vmem [shape: f32[1,128], index: 1, kind: input, shape index: {}]   ;;  %s8264_s2 = inlined_call_operand.vmem [shape: f32[1,128], index: 2, kind: input, shape index: {}]   ;;  %s8265_s3 = inlined_call_operand.vmem [shape: bf16[1152,128], index: 3, kind: input, shape index: {}]   ;;  %s8266_s4 = inlined_call_operand.vmem [shape: f32[2,16,16,128], index: 4, kind: output, shape index: {0}]   ;;  %s8267_s5 = inlined_call_operand.vmem [shape: f32[2,2,128], index: 5, kind: output, shape index: {1}]  }
   0x1 LB: > { %s5561_s19 = sadd.s32 4294967295, %s6580_s18   ;;  %p5565_p0 = scmp.ge.s32.totalorder %s6580_s18, 1  ;;  %s6580_s18 = sphi %s6613_s18, %s16_s18  }
   0x2   : > { %p190_p1 = scmp.lt.s32.totalorder %s6580_s18, 3 }
   0x4   : > { %p191_p2 = pnand %p5565_p0, %p190_p1 }
   0x6   : > { %194 = sbr.rel (%p191_p2) target bundleno = 668 (0x29c), region = 36 }
   0xd   : > { %v6450_v0 = vld [vmem:[%s8265_s3 + $0x40] sm:$0xff]   ;;  %v6582_v2 = vmov 0   ;;  %v6452_v3 = vld [vmem:[%s8265_s3 + $0x48] sm:$0xff]   ;;  %v6454_v5 = vld [vmem:[%s8265_s3 + $0x50] sm:$0xff]   ;;  %p222_p3 = scmp.lt.s32.totalorder %s5561_s19, 1  ;;  %vm853_vm5 = vcmask 1043456  }
   0xe   : > { %v6451_v1 = vld [vmem:[%s8265_s3] sm:$0xff]   ;;  %395 = vst [vmem:[#allocation2] sm:$0xf] %v6582_v2  ;;  %396 = vst [vmem:[#allocation2 + $0x4] sm:$0xf] %v6582_v2  ;;  %5905 = vmatprep.subr.bf16.mxu0 %v6450_v0  ;;  %6425 = vmatprep.subr.bf16.mxu1 %v6450_v0  ;;  %v6453_v4 = vld [vmem:[%s8265_s3 + $0x8] sm:$0xff]  }
   0xf   : > { %397 = vst [vmem:[#allocation2 + $0x8] sm:$0x1] %v6582_v2  ;;  %398 = vst [vmem:[#allocation2 + $0xc] sm:$0xf] %v6582_v2  ;;  %5906 = vmatpush3.bf16.msra.mxu0 %v6451_v1  ;;  %6433 = vmatpush3.bf16.msra.mxu1 %v6451_v1  ;;  %v6455_v6 = vld [vmem:[%s8265_s3 + $0x10] sm:$0xff]   ;;  %v6456_v7 = vld [vmem:[%s8265_s3 + $0x58] sm:$0xff]  }
  0x10   : > { %399 = vst [vmem:[#allocation2 + $0x10] sm:$0xf] %v6582_v2  ;;  %400 = vst [vmem:[#allocation2 + $0x14] sm:$0x1] %v6582_v2  ;;  %5907 = vmatprep.subr.bf16.mxu0 %v6452_v3  ;;  %6426 = vmatprep.subr.bf16.mxu1 %v6452_v3  ;;  %s8301_s19 = smov (!%p222_p3, %s5561_s19), 1  ;;  %v6457_v8 = vld [vmem:[%s8265_s3 + $0x18] sm:$0xff]  }
  0x11   : > { %401 = vst [vmem:[#allocation2 + $0x18] sm:$0xf] %v6582_v2  ;;  %402 = vst [vmem:[#allocation2 + $0x1c] sm:$0xf] %v6582_v2  ;;  %v6458_v9 = vld [vmem:[%s8265_s3 + $0x60] sm:$0xff]   ;;  %s5871_s15 = sshll.u32 %s8301_s19, 8 }
  0x12   : > { %403 = vst [vmem:[#allocation2 + $0x20] sm:$0x1] %v6582_v2  ;;  %404 = vst [vmem:[#allocation2 + $0x24] sm:$0xf] %v6582_v2  ;;  %v6459_v10 = vld [vmem:[%s8265_s3 + $0x20] sm:$0xff]   ;;  %v6460_v11 = vld [vmem:[%s8265_s3 + $0x68] sm:$0xff]   ;;  %s6666_s22 = scalar_lea.vmem %s8262_s0, %s5871_s15  ;;  %s8176_s7 = scalar_lea.vmem %s8266_s4, %s5871_s15 }
  0x13   : > { %405 = vst [vmem:[#allocation2 + $0x28] sm:$0xf] %v6582_v2  ;;  %406 = vst [vmem:[#allocation2 + $0x2c] sm:$0x1] %v6582_v2  ;;  %5908 = vmatpush3.bf16.msra.mxu0 %v6453_v4  ;;  %6434 = vmatpush3.bf16.msra.mxu1 %v6453_v4  ;;  %vm1162_vm0 = vsmask.f32 3328 }
  0x14   : > { %407 = vst [vmem:[#allocation2 + $0x30] sm:$0xf] %v6582_v2  ;;  %408 = vst [vmem:[#allocation2 + $0x34] sm:$0xf] %v6582_v2  ;;  %5909 = vmatprep.subr.bf16.mxu0 %v6454_v5  ;;  %6427 = vmatprep.subr.bf16.mxu1 %v6454_v5  ;;  %vm1163_vm1 = vsmask.f32 7440 }
  0x15   : > { %409 = vst [vmem:[#allocation2 + $0x38] sm:$0x1] %v6582_v2  ;;  %410 = vst [vmem:[#allocation2 + $0x3c] sm:$0xf] %v6582_v2  ;;  %v1114_v12 = vld [vmem:[#allocation2] sm:$0xf] }
  0x16   : > { %411 = vst [vmem:[#allocation2 + $0x40] sm:$0xf] %v6582_v2  ;;  %412 = vst [vmem:[#allocation2 + $0x44] sm:$0x1] %v6582_v2  ;;  %v1115_v13 = vld [vmem:[#allocation2 + $0x4] sm:$0xf] }
  0x17   : > { %413 = vst [vmem:[#allocation2 + $0x48] sm:$0xf] %v6582_v2  ;;  %414 = vst [vmem:[#allocation2 + $0x4c] sm:$0xf] %v6582_v2  ;;  %5910 = vmatpush3.bf16.msra.mxu0 %v6455_v6  ;;  %6435 = vmatpush3.bf16.msra.mxu1 %v6455_v6  ;;  %v1116_v14 = vld [vmem:[#allocation2 + $0x8] sm:$0x1] }
  0x18   : > { %415 = vst [vmem:[#allocation2 + $0x50] sm:$0x1] %v6582_v2  ;;  %416 = vst [vmem:[#allocation2 + $0x54] sm:$0xf] %v6582_v2  ;;  %5911 = vmatprep.subr.bf16.mxu0 %v6456_v7  ;;  %6428 = vmatprep.subr.bf16.mxu1 %v6456_v7  ;;  %v1166_v15 = vshrl.u32 %v1114_v12, 16  ;;  %v1169_v16 = vshll.u32 %v1114_v12, 16 }
  0x19   : > { %417 = vst [vmem:[#allocation2 + $0x58] sm:$0xf] %v6582_v2  ;;  %418 = vst [vmem:[#allocation2 + $0x5c] sm:$0x1] %v6582_v2  ;;  %v6461_v17 = vld [vmem:[%s8265_s3 + $0x28] sm:$0xff]   ;;  %v1175_v18 = vshll.u32 %v1115_v13, 16 }
  0x1a   : > { %419 = vst [vmem:[#allocation2 + $0x60] sm:$0xf] %v6582_v2  ;;  %420 = vst [vmem:[#allocation2 + $0x64] sm:$0xf] %v6582_v2  ;;  %v1179_v19 = vshrl.u32 %v1115_v13, 16  ;;  %v1185_v20 = vshll.u32 %v1116_v14, 16 }
  0x1b   : > { %421 = vst [vmem:[#allocation2 + $0x68] sm:$0x1] %v6582_v2  ;;  %422 = vst [vmem:[#allocation2 + $0x6c] sm:$0xf] %v6582_v2  ;;  %5912 = vmatpush3.bf16.msra.mxu0 %v6457_v8  ;;  %6436 = vmatpush3.bf16.msra.mxu1 %v6457_v8  ;;  %v1168_v21 = vrot.slane %v1166_v15, 4  ;;  %v1171_v22 = vrot.slane %v1169_v16, 5 }
  0x1c   : > { %423 = vst [vmem:[#allocation2 + $0x70] sm:$0xf] %v6582_v2  ;;  %424 = vst [vmem:[#allocation2 + $0x74] sm:$0x1] %v6582_v2  ;;  %5913 = vmatprep.subr.bf16.mxu0 %v6458_v9  ;;  %6429 = vmatprep.subr.bf16.mxu1 %v6458_v9  ;;  %v6674_v23 = vld [vmem:[%s8263_s1] ss:$0 sm:$0xff] }
  0x1d   : > { %425 = vst [vmem:[#allocation2 + $0x78] sm:$0xf] %v6582_v2  ;;  %426 = vst [vmem:[#allocation2 + $0x7c] sm:$0xf] %v6582_v2  ;;  %v6462_v24 = vld [vmem:[%s8265_s3 + $0x70] sm:$0xff]   ;;  %v1177_v25 = vrot.slane %v1175_v18, 5  ;;  %v1172_v29 = vor.u32 %v1171_v22, %v1168_v21 }
  0x1e   : > { %427 = vst [vmem:[#allocation2 + $0x80] sm:$0x1] %v6582_v2  ;;  %428 = vst [vmem:[#allocation2 + $0x84] sm:$0xf] %v6582_v2  ;;  %v1181_v26 = vrot.slane %v1179_v19, 4  ;;  %v261_v28 = vld [vmem:[%s6666_s22 + $0xb0] sm:$0xff] }
  0x1f   : > { %429 = vst [vmem:[#allocation2 + $0x88] sm:$0xf] %v6582_v2  ;;  %430 = vst [vmem:[#allocation2 + $0x8c] sm:$0x1] %v6582_v2  ;;  %5914 = vmatpush3.bf16.msra.mxu0 %v6459_v10  ;;  %6437 = vmatpush3.bf16.msra.mxu1 %v6459_v10  ;;  %v6682_v27 = vld [vmem:[%s8264_s2] ss:$0 sm:$0xff]  ;;  %v299_v32 = vmul.f32 %v6674_v23, %v261_v28 }
  0x20   : > { %431 = vst [vmem:[#allocation2 + $0x90] sm:$0xf] %v6582_v2  ;;  %432 = vst [vmem:[#allocation2 + $0x94] sm:$0xf] %v6582_v2  ;;  %5915 = vmatprep.subr.bf16.mxu0 %v6460_v11  ;;  %6430 = vmatprep.subr.bf16.mxu1 %v6460_v11  ;;  %v1187_v30 = vrot.slane %v1185_v20, 5  ;;  %v262_v31 = vld [vmem:[%s6666_s22 + $0xb8] sm:$0xff]  ;;  %v1182_v34 = vor.u32 %v1181_v26, %v1177_v25 }
  0x21   : > { %433 = vst [vmem:[#allocation2 + $0x98] sm:$0x1] %v6582_v2  ;;  %434 = vst [vmem:[#allocation2 + $0x9c] sm:$0xf] %v6582_v2  ;;  %v300_v35 = vmul.f32 %v6674_v23, %v262_v31  ;;  %vm529_vm3 = vsmask.f32 256  ;;  %v337_v38 = vadd.f32 %v6682_v27, %v299_v32 }
  0x22   : > { %435 = vst [vmem:[#allocation2 + $0xa0] sm:$0xf] %v6582_v2  ;;  %436 = vst [vmem:[#allocation2 + $0xa4] sm:$0x1] %v6582_v2  ;;  %vm530_vm4 = vsmask.f32 4368 }
  0x23   : > { %437 = vst [vmem:[#allocation2 + $0xa8] sm:$0xf] %v6582_v2  ;;  %438 = vst [vmem:[#allocation2 + $0xac] sm:$0xf] %v6582_v2  ;;  %5916 = vmatpush3.bf16.msra.mxu0 %v6461_v17  ;;  %v6463_v36 = vld [vmem:[%s8265_s3 + $0x30] sm:$0xff]   ;;  %6438 = vmatpush3.bf16.msra.mxu1 %v6461_v17  ;;  %v1173_v37 = vrot.slane %v1172_v29, 4  ;;  %v338_v41 = vadd.f32 %v6682_v27, %v300_v35 }
  0x24   : > { %439 = vst [vmem:[#allocation2 + $0xb0] sm:$0x1] %v6582_v2  ;;  %440 = vst [vmem:[#allocation2 + $0xb4] sm:$0xf] %v6582_v2  ;;  %5917 = vmatprep.subr.bf16.mxu0 %v6462_v24  ;;  %v6464_v39 = vld [vmem:[%s8265_s3 + $0x78] sm:$0xff]   ;;  %6431 = vmatprep.subr.bf16.mxu1 %v6462_v24  ;;  %v1183_v40 = vrot.slane %v1182_v34, 4 }
  0x25   : > { %441 = vst [vmem:[#allocation2 + $0xb8] sm:$0xf] %v6582_v2  ;;  %442 = vst [vmem:[#allocation2 + $0xbc] sm:$0x1] %v6582_v2  ;;  %v369_v43 = vmax.f32 %v337_v38, 0.0  ;;  %v239_v44 = vld [vmem:[%s6666_s22] sm:$0xff] }
  0x26   : > { %443 = vst [vmem:[#allocation2 + $0xc0] sm:$0xf] %v6582_v2  ;;  %444 = vst [vmem:[#allocation2 + $0xc4] sm:$0xf] %v6582_v2  ;;  %vm854_vm6 = vsmask.f32 7938  ;;  %v277_v50 = vmul.f32 %v6674_v23, %v239_v44 }
  0x27   : > { %445 = vst [vmem:[#allocation2 + $0xc8] sm:$0x1] %v6582_v2  ;;  %446 = vst [vmem:[#allocation2 + $0xcc] sm:$0xf] %v6582_v2  ;;  %v240_v45 = vld [vmem:[%s6666_s22 + $0x8] sm:$0xff]  ;;  %v6465_v46 = vld [vmem:[%s8265_s3 + $0x38] sm:$0xff]   ;;  %5918 = vmatpush3.bf16.msra.mxu0 %v6463_v36  ;;  %6439 = vmatpush3.bf16.msra.mxu1 %v6463_v36  ;;  %v5895_v53 = vpack.c.bf16 %v369_v43, %v369_v43 }
  0x28   : > { %447 = vst [vmem:[#allocation2 + $0xd0] sm:$0xf] %v6582_v2  ;;  %448 = vst [vmem:[#allocation2 + $0xd4] sm:$0x1] %v6582_v2  ;;  %v370_v48 = vmax.f32 %v338_v41, 0.0  ;;  %v6467_v49 = vld [vmem:[%s8265_s3 + $0xc0] sm:$0xff]   ;;  %v278_v51 = vmul.f32 %v6674_v23, %v240_v45  ;;  %5919 = vmatprep.subr.bf16.mxu0 %v6464_v39  ;;  %6432 = vmatprep.subr.bf16.mxu1 %v6464_v39  ;;  %v315_v56 = vadd.f32 %v6682_v27, %v277_v50 }
  0x29   : > { %vm6689_vm2 = vmor %vm1162_vm0, %vm1163_vm1  ;;  %vm860_vm7 = vcmask 1040384   ;;  %v6468_v55 = vld [vmem:[%s8265_s3 + $0x140] sm:$0xff]   ;;  %v720_v59 = vshrl.u32 %v5895_v53, 16  ;;  %v723_v60 = vshll.u32 %v5895_v53, 16  ;;  %v264_v5 = vld [vmem:[%s6666_s22 + $0xc8] sm:$0xff]  ;;  %vm1725_vm11 = vcmask 1042432  }
  0x2a   : > { %v1178_v42 = vsel %vm6689_vm2, %v1173_v37, %v1177_v25  ;;  %v1188_v47 = vsel %vm6689_vm2, %v1183_v40, %v1187_v30  ;;  %v5896_v54 = vpack.c.bf16 %v370_v48, %v370_v48  ;;  %v316_v57 = vadd.f32 %v6682_v27, %v278_v51  ;;  %v6466_v58 = vld [vmem:[#allocation2] sm:$0xff]   ;;  %vm6726_vm8 = vmor %vm529_vm3, %vm530_vm4  ;;  %v935_v8 = vld [vmem:[#allocation2 + $0x90] sm:$0xf]  ;;  %s5570_s15 = sshll.u32 %s8301_s19, 1 }
  0x2b   : > { %v5621_v52 = vcombine.low %v1178_v42, %v1188_v47  ;;  %v6471_v61 = vld [vmem:[%s8265_s3 + $0x100] sm:$0xff]   ;;  %v347_v1 = vmax.f32 %v315_v56, 0.0  ;;  %5920 = vmatpush3.bf16.msra.mxu0 %v6465_v46  ;;  %6440 = vmatpush3.bf16.msra.mxu1 %v6465_v46  ;;  %v722_v3 = vrot.slane %v720_v59, 7  ;;  %vm6734_vm9 = vmand %vm853_vm5, %vm854_vm6  ;;  %v939_v9 = vld [vmem:[#allocation2 + $0x98] sm:$0x1]  ;;  %v302_v16 = vmul.f32 %v6674_v23, %v264_v5  ;;  %s235_s10 = scalar_lea.vmem %s8267_s5, %s5570_s15 }
  0x2c   : > { %v728_v63 = vshrl.u32 %v5896_v54, 16  ;;  %v731_v0 = vshll.u32 %v5896_v54, 16  ;;  %v348_v2 = vmax.f32 %v316_v57, 0.0  ;;  %v263_v4 = vld [vmem:[%s6666_s22 + $0xc0] sm:$0xff]  ;;  %6017 = vmatprep.subr.bf16.mxu1 %v6467_v49  ;;  %6129 = vmatprep.subr.bf16.mxu0 %v6468_v55  ;;  %vm6741_vm10 = vmand %vm860_vm7, %vm529_vm3  ;;  %v241_v21 = vld [vmem:[%s6666_s22 + $0x10] sm:$0xff]  ;;  %vm1726_vm12 = vcmask 1046532  }
  0x2d   : > { %4561 = vmatprep.mubr.bf16.mxu0 %v5621_v52  ;;  %v5873_v10 = vpack.c.bf16 %v347_v1, %v347_v1  ;;  %v301_v12 = vmul.f32 %v6674_v23, %v263_v4  ;;  %v725_v13 = vor.u32 %v723_v60, %v722_v3  ;;  %v726_v14 = vrot.slane %v722_v3, 4  ;;  %v242_v22 = vld [vmem:[%s6666_s22 + $0x18] sm:$0xff]  ;;  %v856_v28 = vld [vmem:[#allocation2 + $0xc] sm:$0xf]  ;;  %v862_v34 = vld [vmem:[#allocation2 + $0x14] sm:$0x1] }
  0x2e   : > { %v730_v6 = vrot.slane %v728_v63, 7  ;;  %v5874_v11 = vpack.c.bf16 %v348_v2, %v348_v2  ;;  %4562 = vmatmul.mubr.bf16.vlgmr.msra.gmra.mrb[0].mxu0 %v6466_v58  ;;  %v340_v35 = vadd.f32 %v6682_v27, %v302_v16  ;;  %v279_v38 = vmul.f32 %v6674_v23, %v241_v21  ;;  %v6480_v40 = vld [vmem:[%s8265_s3 + $0x148] sm:$0xff]   ;;  %v265_v56 = vld [vmem:[%s6666_s22 + $0xd0] sm:$0xff]  ;;  %v266_v57 = vld [vmem:[%s6666_s22 + $0xd8] sm:$0xff] }
  0x2f   : > { %v533_v19 = vshrl.u32 %v5873_v10, 16  ;;  %v536_v20 = vshll.u32 %v5873_v10, 16  ;;  %v936_v24 = vsel %vm6734_vm9, %v725_v13, %v935_v8  ;;  %6130 = vmatpush3.bf16.msra.mxu0 %v6471_v61  ;;  %v339_v29 = vadd.f32 %v6682_v27, %v301_v12  ;;  %v6482_v51 = vld [vmem:[%s8265_s3 + $0x108] sm:$0xff]   ;;  %v942_v59 = vld [vmem:[#allocation2 + $0x9c] sm:$0xf]  ;;  %vm6949_vm13 = vmor %vm1725_vm11, %vm1726_vm12 }
  0x30   : > { %v733_v17 = vor.u32 %v731_v0, %v730_v6  ;;  %v735_v18 = vrot.slane %v730_v6, 4  ;;  %v541_v25 = vshrl.u32 %v5874_v11, 16  ;;  %v544_v26 = vshll.u32 %v5874_v11, 16  ;;  %937 = vst [vmem:[#allocation2 + $0x90] sm:$0xf] %v936_v24  ;;  %6131 = vmatprep.subr.bf16.mxu0 %v6480_v40 }
  0x31   : > { %v535_v32 = vrot.slane %v533_v19, 7  ;;  %v371_v37 = vmax.f32 %v339_v29, 0.0  ;;  %v280_v39 = vmul.f32 %v6674_v23, %v242_v22  ;;  %v372_v43 = vmax.f32 %v340_v35, 0.0 }
  0x32   : > { %v734_v30 = vsel %vm6726_vm8, %v726_v14, %v733_v17  ;;  %v940_v31 = vsel %vm6741_vm10, %v735_v18, %v939_v9  ;;  %v543_v36 = vrot.slane %v541_v25, 7  ;;  %v317_v47 = vadd.f32 %v6682_v27, %v279_v38 }
  0x33   : > { %938 = vst [vmem:[#allocation2 + $0x94] sm:$0xf] %v734_v30  ;;  %941 = vst [vmem:[#allocation2 + $0x98] sm:$0x1] %v940_v31  ;;  %v538_v41 = vor.u32 %v536_v20, %v535_v32  ;;  %v539_v42 = vrot.slane %v535_v32, 4  ;;  %v5897_v46 = vpack.c.bf16 %v371_v37, %v371_v37  ;;  %v5898_v49 = vpack.c.bf16 %v372_v43, %v372_v43 }
  0x34   : > { %v546_v44 = vor.u32 %v544_v26, %v543_v36  ;;  %v548_v45 = vrot.slane %v543_v36, 4  ;;  %v318_v50 = vadd.f32 %v6682_v27, %v280_v39  ;;  %v349_v60 = vmax.f32 %v317_v47, 0.0  ;;  %6132 = vmatpush3.bf16.msra.mxu0 %v6482_v51  ;;  %v946_v30 = vld [vmem:[#allocation2 + $0xa4] sm:$0x1] }
  0x35   : > { %v857_v48 = vsel %vm6734_vm9, %v538_v41, %v856_v28  ;;  %v737_v54 = vshrl.u32 %v5897_v46, 16  ;;  %v740_v55 = vshll.u32 %v5897_v46, 16  ;;  %v745_v58 = vshrl.u32 %v5898_v49, 16  ;;  %v6470_v51 = vld [vmem:[%s8265_s3 + $0x80] sm:$0xff]  }
  0x36   : > { %v547_v52 = vsel %vm6726_vm8, %v539_v42, %v546_v44  ;;  %858 = vst [vmem:[#allocation2 + $0xc] sm:$0xf] %v857_v48  ;;  %v863_v53 = vsel %vm6741_vm10, %v548_v45, %v862_v34  ;;  %v350_v61 = vmax.f32 %v318_v50, 0.0  ;;  %v748_v1 = vshll.u32 %v5898_v49, 16 }
  0x37   : > { %859 = vst [vmem:[#allocation2 + $0x10] sm:$0xf] %v547_v52  ;;  %864 = vst [vmem:[#allocation2 + $0x14] sm:$0x1] %v863_v53  ;;  %v1150_v63 = vld [vmem:[#allocation2 + $0x90] sm:$0xf]  ;;  %v303_v2 = vmul.f32 %v6674_v23, %v265_v56  ;;  %v304_v3 = vmul.f32 %v6674_v23, %v266_v57  ;;  %v6776_v9 = vpack.c.bf16 %v349_v60, %v349_v60 }
  0x38   : > { %v739_v0 = vrot.slane %v737_v54, 7  ;;  %v1454_v6 = vshrl.u32 %v1150_v63, 16  ;;  %v1457_v8 = vshll.u32 %v1150_v63, 16  ;;  %v6778_v10 = vpack.c.bf16 %v350_v61, %v350_v61  ;;  %v865_v57 = vld [vmem:[#allocation2 + $0x18] sm:$0xf] }
  0x39   : > { %v747_v19 = vrot.slane %v745_v58, 7  ;;  %v550_v31 = vshrl.u32 %v6776_v9, 16  ;;  %v341_v38 = vadd.f32 %v6682_v27, %v303_v2  ;;  %v553_v60 = vshll.u32 %v6776_v9, 16 }
  0x3a   : > { %v1151_v4 = vld [vmem:[#allocation2 + $0x94] sm:$0xf]  ;;  %v1152_v5 = vld [vmem:[#allocation2 + $0x98] sm:$0x1]  ;;  %v742_v14 = vor.u32 %v740_v55, %v739_v0  ;;  %v1456_v16 = vrot.slane %v1454_v6, 4  ;;  %v1459_v17 = vrot.slane %v1457_v8, 5 }
  0x3b   : > { %v1463_v11 = vshll.u32 %v1151_v4, 16  ;;  %v1467_v12 = vshrl.u32 %v1151_v4, 16  ;;  %v1473_v13 = vshll.u32 %v1152_v5, 16  ;;  %v743_v18 = vrot.slane %v739_v0, 4  ;;  %v6469_v54 = vld [vmem:[#allocation2 + $0x90] sm:$0xff]   ;;  %v6473_v0 = vld [vmem:[%s8265_s3 + $0xc8] sm:$0xff]  }
  0x3c   : > { %v943_v24 = vsel %vm6734_vm9, %v742_v14, %v942_v59  ;;  %v1460_v25 = vor.u32 %v1459_v17, %v1456_v16  ;;  %v750_v28 = vor.u32 %v748_v1, %v747_v19  ;;  %v752_v29 = vrot.slane %v747_v19, 4  ;;  %v6474_v8 = vld [vmem:[%s8265_s3 + $0x88] sm:$0xff]  }
  0x3d   : > { %v1465_v20 = vrot.slane %v1463_v11, 5  ;;  %v1469_v21 = vrot.slane %v1467_v12, 4  ;;  %v1475_v22 = vrot.slane %v1473_v13, 5  ;;  %v1117_v26 = vld [vmem:[#allocation2 + $0xc] sm:$0xf]  ;;  %v552_v56 = vrot.slane %v550_v31, 7 }
  0x3e   : > { %944 = vst [vmem:[#allocation2 + $0x9c] sm:$0xf] %v943_v24  ;;  %v1118_v34 = vld [vmem:[#allocation2 + $0x10] sm:$0xf]  ;;  %v1119_v35 = vld [vmem:[#allocation2 + $0x14] sm:$0x1]  ;;  %v751_v46 = vsel %vm6726_vm8, %v743_v18, %v750_v28  ;;  %v947_v55 = vsel %vm6741_vm10, %v752_v29, %v946_v30  ;;  %v342_v5 = vadd.f32 %v6682_v27, %v304_v3 }
  0x3f   : > { %v1470_v32 = vor.u32 %v1469_v21, %v1465_v20  ;;  %v1190_v36 = vshrl.u32 %v1117_v26, 16  ;;  %v1193_v37 = vshll.u32 %v1117_v26, 16  ;;  %v1461_v39 = vrot.slane %v1460_v25, 4  ;;  %945 = vst [vmem:[#allocation2 + $0xa0] sm:$0xf] %v751_v46  ;;  %v6472_v16 = vld [vmem:[#allocation2 + $0xc] sm:$0xff]  }
  0x40   : > { %v1199_v40 = vshll.u32 %v1118_v34, 16  ;;  %v1203_v41 = vshrl.u32 %v1118_v34, 16  ;;  %v1209_v42 = vshll.u32 %v1119_v35, 16  ;;  %948 = vst [vmem:[#allocation2 + $0xa4] sm:$0x1] %v947_v55  ;;  %v558_v61 = vshrl.u32 %v6778_v10, 16 }
  0x41   : > { %v1471_v43 = vrot.slane %v1470_v32, 4  ;;  %v1192_v44 = vrot.slane %v1190_v36, 4  ;;  %v1195_v45 = vrot.slane %v1193_v37, 5  ;;  %v1466_v47 = vsel %vm6689_vm2, %v1461_v39, %v1465_v20  ;;  %v869_v13 = vld [vmem:[#allocation2 + $0x20] sm:$0x1]  ;;  %v6475_v25 = vld [vmem:[%s8265_s3 + $0xd0] sm:$0xff]  }
  0x42   : > { %v1201_v48 = vrot.slane %v1199_v40, 5  ;;  %v1205_v49 = vrot.slane %v1203_v41, 4  ;;  %v1211_v50 = vrot.slane %v1209_v42, 5  ;;  %v556_v2 = vrot.slane %v552_v56, 4  ;;  %v6477_v34 = vld [vmem:[%s8265_s3 + $0x90] sm:$0xff]   ;;  %v243_v36 = vld [vmem:[%s6666_s22 + $0x20] sm:$0xff] }
  0x43   : > { %v1476_v52 = vsel %vm6689_vm2, %v1471_v43, %v1475_v22  ;;  %v1196_v53 = vor.u32 %v1195_v45, %v1192_v44  ;;  %v561_v4 = vshll.u32 %v6778_v10, 16  ;;  %v555_v12 = vor.u32 %v553_v60, %v552_v56  ;;  %v244_v37 = vld [vmem:[%s6666_s22 + $0x28] sm:$0xff]  ;;  %v6479_v41 = vld [vmem:[%s8265_s3 + $0xd8] sm:$0xff]   ;;  %v267_v44 = vld [vmem:[%s6666_s22 + $0xe0] sm:$0xff] }
  0x44   : > { %v5633_v58 = vcombine.low %v1466_v47, %v1476_v52  ;;  %v1206_v59 = vor.u32 %v1205_v49, %v1201_v48  ;;  %v560_v17 = vrot.slane %v558_v61, 7  ;;  %v373_v18 = vmax.f32 %v341_v38, 0.0  ;;  %v268_v45 = vld [vmem:[%s6666_s22 + $0xe8] sm:$0xff]  ;;  %v6481_v60 = vld [vmem:[%s8265_s3 + $0x98] sm:$0xff]  }
  0x45   : > { %v1197_v63 = vrot.slane %v1196_v53, 4  ;;  %v1153_v1 = vld [vmem:[#allocation2 + $0x9c] sm:$0xf]  ;;  %v374_v10 = vmax.f32 %v342_v5, 0.0  ;;  %v866_v21 = vsel %vm6734_vm9, %v555_v12, %v865_v57  ;;  %v281_v53 = vmul.f32 %v6674_v23, %v243_v36  ;;  %v245_v36 = vld [vmem:[%s6666_s22 + $0x30] sm:$0xff] }
  0x46   : > { %4657 = vmatprep.mubr.bf16.mxu1 %v5633_v58  ;;  %v1207_v6 = vrot.slane %v1206_v59, 4  ;;  %v1478_v9 = vshrl.u32 %v1153_v1, 16  ;;  %v1481_v11 = vshll.u32 %v1153_v1, 16  ;;  %v1154_v24 = vld [vmem:[#allocation2 + $0xa0] sm:$0xf]  ;;  %v563_v26 = vor.u32 %v561_v4, %v560_v17 }
  0x47   : > { %v1202_v14 = vsel %vm6689_vm2, %v1197_v63, %v1201_v48  ;;  %4658 = vmatmul.mubr.bf16.vlgmr.msra.gmra.mrb[0].mxu1 %v6469_v54  ;;  %v565_v28 = vrot.slane %v560_v17, 4  ;;  %867 = vst [vmem:[#allocation2 + $0x18] sm:$0xf] %v866_v21  ;;  %v5899_v29 = vpack.c.bf16 %v373_v18, %v373_v18  ;;  %v1487_v31 = vshll.u32 %v1154_v24, 16  ;;  %v1155_v38 = vld [vmem:[#allocation2 + $0xa4] sm:$0x1] }
  0x48   : > { %v1212_v3 = vsel %vm6689_vm2, %v1207_v6, %v1211_v50  ;;  %6018 = vmatpush3.bf16.msra.mxu1 %v6470_v51  ;;  %v1480_v19 = vrot.slane %v1478_v9, 4  ;;  %v1483_v20 = vrot.slane %v1481_v11, 5  ;;  %v1491_v32 = vshrl.u32 %v1154_v24, 16  ;;  %v6490_v54 = vld [vmem:[%s8265_s3 + $0x150] sm:$0xff]   ;;  %v949_v58 = vld [vmem:[#allocation2 + $0xa8] sm:$0xf] }
  0x49   : > { %v5622_v22 = vcombine.low %v1202_v14, %v1212_v3  ;;  %6019 = vmatprep.subr.bf16.mxu1 %v6473_v0  ;;  %v5900_v35 = vpack.c.bf16 %v374_v10, %v374_v10  ;;  %v564_v39 = vsel %vm6726_vm8, %v556_v2, %v563_v26  ;;  %v870_v40 = vsel %vm6741_vm10, %v565_v28, %v869_v13  ;;  %v953_v1 = vld [vmem:[#allocation2 + $0xb0] sm:$0x1]  ;;  %v6483_v2 = vld [vmem:[%s8265_s3 + $0xe0] sm:$0xff]  }
  0x4a   : > { %v1484_v30 = vor.u32 %v1483_v20, %v1480_v19  ;;  %v754_v42 = vshrl.u32 %v5899_v29, 16  ;;  %v757_v43 = vshll.u32 %v5899_v29, 16  ;;  %v1489_v47 = vrot.slane %v1487_v31, 5  ;;  %868 = vst [vmem:[#allocation2 + $0x1c] sm:$0xf] %v564_v39  ;;  %6133 = vmatprep.subr.bf16.mxu0 %v6490_v54  ;;  %v6493_v18 = vld [vmem:[%s8265_s3 + $0x110] sm:$0xff]  }
  0x4b   : > { %4569 = vmatprep.mubr.bf16.mxu0 %v5622_v22  ;;  %v1493_v48 = vrot.slane %v1491_v32, 4  ;;  %v1497_v49 = vshll.u32 %v1155_v38, 16  ;;  %871 = vst [vmem:[#allocation2 + $0x20] sm:$0x1] %v870_v40  ;;  %v762_v51 = vshrl.u32 %v5900_v35, 16  ;;  %v765_v52 = vshll.u32 %v5900_v35, 16  ;;  %6134 = vmatpush3.bf16.msra.mxu0 %v6493_v18 }
  0x4c   : > { %4570 = vmatmul.mubr.bf16.gmra.mrb[4].mxu0 %v6472_v16  ;;  %6020 = vmatpush3.bf16.msra.mxu1 %v6474_v8  ;;  %v1485_v46 = vrot.slane %v1484_v30, 4  ;;  %v756_v50 = vrot.slane %v754_v42, 7  ;;  %v282_v59 = vmul.f32 %v6674_v23, %v244_v37  ;;  %v319_v4 = vadd.f32 %v6682_v27, %v281_v53  ;;  %v6476_v8 = vld [vmem:[#allocation2 + $0x9c] sm:$0xff]   ;;  %v6487_v30 = vld [vmem:[%s8265_s3 + $0xe8] sm:$0xff]   ;;  %v6489_v54 = vld [vmem:[%s8265_s3 + $0xf0] sm:$0xff]  }
  0x4d   : > { %6021 = vmatprep.subr.bf16.mxu1 %v6475_v25  ;;  %v1494_v56 = vor.u32 %v1493_v48, %v1489_v47  ;;  %v1499_v57 = vrot.slane %v1497_v49, 5  ;;  %v764_v0 = vrot.slane %v762_v51, 7  ;;  %v305_v11 = vmul.f32 %v6674_v23, %v267_v44  ;;  %v6485_v21 = vld [vmem:[%s8265_s3 + $0xa0] sm:$0xff]   ;;  %v246_v44 = vld [vmem:[%s6666_s22 + $0x38] sm:$0xff]  ;;  %v6488_v51 = vld [vmem:[%s8265_s3 + $0xa8] sm:$0xff]  }
  0x4e   : > { %v1490_v55 = vsel %vm6689_vm2, %v1485_v46, %v1489_v47  ;;  %v759_v61 = vor.u32 %v757_v43, %v756_v50  ;;  %v760_v63 = vrot.slane %v756_v50, 4  ;;  %v1120_v6 = vld [vmem:[#allocation2 + $0x18] sm:$0xf]  ;;  %v320_v9 = vadd.f32 %v6682_v27, %v282_v59 }
  0x4f   : > { %v1495_v5 = vrot.slane %v1494_v56, 4  ;;  %v306_v12 = vmul.f32 %v6674_v23, %v268_v45  ;;  %v1214_v13 = vshrl.u32 %v1120_v6, 16  ;;  %v1217_v14 = vshll.u32 %v1120_v6, 16 }
  0x50   : > { %6022 = vmatpush3.bf16.msra.mxu1 %v6477_v34  ;;  %v767_v16 = vor.u32 %v765_v52, %v764_v0  ;;  %v769_v17 = vrot.slane %v764_v0, 4  ;;  %v950_v3 = vsel %vm6734_vm9, %v759_v61, %v949_v58  ;;  %v351_v19 = vmax.f32 %v319_v4, 0.0  ;;  %v872_v61 = vld [vmem:[#allocation2 + $0x24] sm:$0xf] }
  0x51   : > { %6023 = vmatprep.subr.bf16.mxu1 %v6479_v41  ;;  %v1500_v10 = vsel %vm6689_vm2, %v1495_v5, %v1499_v57  ;;  %v352_v20 = vmax.f32 %v320_v9, 0.0  ;;  %v1121_v24 = vld [vmem:[#allocation2 + $0x1c] sm:$0xf]  ;;  %v1216_v26 = vrot.slane %v1214_v13, 4  ;;  %v1219_v28 = vrot.slane %v1217_v14, 5 }
  0x52   : > { %v5634_v22 = vcombine.low %v1490_v55, %v1500_v10  ;;  %v1122_v25 = vld [vmem:[#allocation2 + $0x20] sm:$0x1]  ;;  %v768_v29 = vsel %vm6726_vm8, %v760_v63, %v767_v16  ;;  %951 = vst [vmem:[#allocation2 + $0xa8] sm:$0xf] %v950_v3  ;;  %v1223_v31 = vshll.u32 %v1121_v24, 16  ;;  %v1227_v32 = vshrl.u32 %v1121_v24, 16 }
  0x53   : > { %v1233_v34 = vshll.u32 %v1122_v25, 16  ;;  %952 = vst [vmem:[#allocation2 + $0xac] sm:$0xf] %v768_v29  ;;  %v954_v35 = vsel %vm6741_vm10, %v769_v17, %v953_v1  ;;  %v1220_v37 = vor.u32 %v1219_v28, %v1216_v26  ;;  %v5877_v38 = vpack.c.bf16 %v351_v19, %v351_v19  ;;  %v6478_v4 = vld [vmem:[#allocation2 + $0x18] sm:$0xff]  }
  0x54   : > { %6024 = vmatpush3.bf16.msra.mxu1 %v6481_v60  ;;  %4665 = vmatprep.mubr.bf16.mxu1 %v5634_v22  ;;  %955 = vst [vmem:[#allocation2 + $0xb0] sm:$0x1] %v954_v35  ;;  %v5878_v39 = vpack.c.bf16 %v352_v20, %v352_v20  ;;  %v1225_v40 = vrot.slane %v1223_v31, 5  ;;  %v1229_v41 = vrot.slane %v1227_v32, 4  ;;  %v343_v43 = vadd.f32 %v6682_v27, %v305_v11  ;;  %v247_v32 = vld [vmem:[%s6666_s22 + $0x40] sm:$0xff] }
  0x55   : > { %6025 = vmatprep.subr.bf16.mxu1 %v6483_v2  ;;  %v1235_v42 = vrot.slane %v1233_v34, 5  ;;  %4666 = vmatmul.mubr.bf16.gmra.mrb[4].mxu1 %v6476_v8  ;;  %v1221_v45 = vrot.slane %v1220_v37, 4  ;;  %v567_v46 = vshrl.u32 %v5877_v38, 16  ;;  %v570_v47 = vshll.u32 %v5877_v38, 16  ;;  %v6492_v2 = vld [vmem:[%s8265_s3 + $0xb0] sm:$0xff]   ;;  %v6501_v34 = vld [vmem:[%s8265_s3 + $0x158] sm:$0xff]  }
  0x56   : > { %v575_v48 = vshrl.u32 %v5878_v39, 16  ;;  %v1230_v49 = vor.u32 %v1229_v41, %v1225_v40  ;;  %v578_v50 = vshll.u32 %v5878_v39, 16  ;;  %v344_v52 = vadd.f32 %v6682_v27, %v306_v12  ;;  %v876_v12 = vld [vmem:[#allocation2 + $0x2c] sm:$0x1]  ;;  %v6496_v39 = vld [vmem:[%s8265_s3 + $0xb8] sm:$0xff]   ;;  %6135 = vmatprep.subr.bf16.mxu0 %v6501_v34 }
  0x57   : > { %v375_v53 = vmax.f32 %v343_v43, 0.0  ;;  %v1226_v55 = vsel %vm6689_vm2, %v1221_v45, %v1225_v40  ;;  %v569_v56 = vrot.slane %v567_v46, 7  ;;  %v283_v58 = vmul.f32 %v6674_v23, %v245_v36  ;;  %v248_v40 = vld [vmem:[%s6666_s22 + $0x48] sm:$0xff]  ;;  %v6498_v46 = vld [vmem:[%s8265_s3 + $0x1c0] sm:$0xff]  }
  0x58   : > { %6026 = vmatpush3.bf16.msra.mxu1 %v6485_v21  ;;  %v577_v57 = vrot.slane %v575_v48, 7  ;;  %v1231_v59 = vrot.slane %v1230_v49, 4  ;;  %v376_v63 = vmax.f32 %v344_v52, 0.0  ;;  %v284_v1 = vmul.f32 %v6674_v23, %v246_v44  ;;  %v6495_v21 = vld [vmem:[%s8265_s3 + $0xf8] sm:$0xff]   ;;  %v956_v44 = vld [vmem:[#allocation2 + $0xb4] sm:$0xf] }
  0x59   : > { %6027 = vmatprep.subr.bf16.mxu1 %v6487_v30  ;;  %v1156_v60 = vld [vmem:[#allocation2 + $0xa8] sm:$0xf]  ;;  %v6875_v0 = vpack.c.bf16 %v375_v53, %v375_v53  ;;  %v572_v9 = vor.u32 %v570_v47, %v569_v56  ;;  %v573_v11 = vrot.slane %v569_v56, 4  ;;  %v321_v45 = vadd.f32 %v6682_v27, %v283_v58  ;;  %v6502_v47 = vld [vmem:[%s8265_s3 + $0x118] sm:$0xff]  }
  0x5a   : > { %v1157_v5 = vld [vmem:[#allocation2 + $0xac] sm:$0xf]  ;;  %v1502_v6 = vshrl.u32 %v1156_v60, 16  ;;  %v1505_v8 = vshll.u32 %v1156_v60, 16  ;;  %v1236_v13 = vsel %vm6689_vm2, %v1231_v59, %v1235_v42  ;;  %v580_v18 = vor.u32 %v578_v50, %v577_v57  ;;  %6136 = vmatpush3.bf16.msra.mxu0 %v6502_v47 }
  0x5b   : > { %v1158_v14 = vld [vmem:[#allocation2 + $0xb0] sm:$0x1]  ;;  %v1511_v16 = vshll.u32 %v1157_v5, 16  ;;  %v1515_v17 = vshrl.u32 %v1157_v5, 16  ;;  %v5623_v10 = vcombine.low %v1226_v55, %v1236_v13  ;;  %v582_v26 = vrot.slane %v577_v57, 4  ;;  %v6484_v49 = vld [vmem:[#allocation2 + $0xa8] sm:$0xff]  }
  0x5c   : > { %6028 = vmatpush3.bf16.msra.mxu1 %v6488_v51  ;;  %v1504_v3 = vrot.slane %v1502_v6, 4  ;;  %v1507_v19 = vrot.slane %v1505_v8, 5  ;;  %v1521_v20 = vshll.u32 %v1158_v14, 16  ;;  %v581_v25 = vsel %vm6726_vm8, %v573_v11, %v580_v18  ;;  %v960_v51 = vld [vmem:[#allocation2 + $0xbc] sm:$0x1]  ;;  %v249_v11 = vld [vmem:[%s6666_s22 + $0x50] sm:$0xff] }
  0x5d   : > { %6029 = vmatprep.subr.bf16.mxu1 %v6489_v54  ;;  %v1513_v22 = vrot.slane %v1511_v16, 5  ;;  %v1517_v24 = vrot.slane %v1515_v17, 4  ;;  %4577 = vmatprep.mubr.bf16.mxu0 %v5623_v10  ;;  %v873_v30 = vsel %vm6734_vm9, %v572_v9, %v872_v61  ;;  %875 = vst [vmem:[#allocation2 + $0x28] sm:$0xf] %v581_v25  ;;  %v5902_v31 = vpack.c.bf16 %v376_v63, %v376_v63 }
  0x5e   : > { %v1508_v28 = vor.u32 %v1507_v19, %v1504_v3  ;;  %v1523_v29 = vrot.slane %v1521_v20, 5  ;;  %4578 = vmatmul.mubr.bf16.gmra.mrb[8].mxu0 %v6478_v4  ;;  %874 = vst [vmem:[#allocation2 + $0x24] sm:$0xf] %v873_v30  ;;  %v877_v36 = vsel %vm6741_vm10, %v582_v26, %v876_v12  ;;  %v771_v37 = vshrl.u32 %v6875_v0, 16  ;;  %v6928_v30 = vld [vmem:[#allocation2] sm:$0xe] }
  0x5f   : > { %v1518_v35 = vor.u32 %v1517_v24, %v1513_v22  ;;  %v774_v38 = vshll.u32 %v6875_v0, 16  ;;  %878 = vst [vmem:[#allocation2 + $0x2c] sm:$0x1] %v877_v36  ;;  %v779_v42 = vshrl.u32 %v5902_v31, 16  ;;  %v782_v43 = vshll.u32 %v5902_v31, 16 }
  0x60   : > { %6030 = vmatpush3.bf16.msra.mxu1 %v6492_v2  ;;  %v1509_v41 = vrot.slane %v1508_v28, 4  ;;  %v773_v50 = vrot.slane %v771_v37, 7  ;;  %v322_v52 = vadd.f32 %v6682_v27, %v284_v1  ;;  %v285_v53 = vmul.f32 %v6674_v23, %v247_v32 }
  0x61   : > { %6031 = vmatprep.subr.bf16.mxu1 %v6495_v21  ;;  %v1519_v48 = vrot.slane %v1518_v35, 4  ;;  %v781_v55 = vrot.slane %v779_v42, 7  ;;  %v353_v56 = vmax.f32 %v321_v45, 0.0  ;;  %v286_v57 = vmul.f32 %v6674_v23, %v248_v40  ;;  %v879_v35 = vld [vmem:[#allocation2 + $0x30] sm:$0xf] }
  0x62   : > { %v1514_v54 = vsel %vm6689_vm2, %v1509_v41, %v1513_v22  ;;  %v776_v59 = vor.u32 %v774_v38, %v773_v50  ;;  %v777_v60 = vrot.slane %v773_v50, 4  ;;  %v354_v61 = vmax.f32 %v322_v52, 0.0  ;;  %v883_v42 = vld [vmem:[#allocation2 + $0x38] sm:$0x1] }
  0x63   : > { %v1524_v58 = vsel %vm6689_vm2, %v1519_v48, %v1523_v29  ;;  %v784_v0 = vor.u32 %v782_v43, %v781_v55  ;;  %v786_v1 = vrot.slane %v781_v55, 4  ;;  %v5879_v2 = vpack.c.bf16 %v353_v56, %v353_v56 }
  0x64   : > { %6032 = vmatpush3.bf16.msra.mxu1 %v6496_v39  ;;  %v5635_v63 = vcombine.low %v1514_v54, %v1524_v58  ;;  %v1124_v4 = vld [vmem:[#allocation2 + $0x28] sm:$0xf]  ;;  %v957_v5 = vsel %vm6734_vm9, %v776_v59, %v956_v44  ;;  %v5880_v6 = vpack.c.bf16 %v354_v61, %v354_v61  ;;  %v323_v8 = vadd.f32 %v6682_v27, %v285_v53 }
  0x65   : > { %6241 = vmatprep.subr.bf16.mxu1 %v6498_v46  ;;  %v324_v9 = vadd.f32 %v6682_v27, %v286_v57  ;;  %v1123_v12 = vld [vmem:[#allocation2 + $0x24] sm:$0xf]  ;;  %v1247_v13 = vshll.u32 %v1124_v4, 16  ;;  %v1251_v14 = vshrl.u32 %v1124_v4, 16  ;;  %v785_v16 = vsel %vm6726_vm8, %v777_v60, %v784_v0  ;;  %958 = vst [vmem:[#allocation2 + $0xb4] sm:$0xf] %v957_v5 }
  0x66   : > { %4673 = vmatprep.mubr.bf16.mxu1 %v5635_v63  ;;  %v961_v17 = vsel %vm6741_vm10, %v786_v1, %v960_v51  ;;  %v1125_v18 = vld [vmem:[#allocation2 + $0x2c] sm:$0x1]  ;;  %v1238_v10 = vshrl.u32 %v1123_v12, 16  ;;  %v1241_v3 = vshll.u32 %v1123_v12, 16  ;;  %959 = vst [vmem:[#allocation2 + $0xb8] sm:$0xf] %v785_v16  ;;  %v6926_v27 = vmul.f32 %v6674_v23, %v249_v11 }
  0x67   : > { %4674 = vmatmul.mubr.bf16.gmra.mrb[8].mxu1 %v6484_v49  ;;  %962 = vst [vmem:[#allocation2 + $0xbc] sm:$0x1] %v961_v17  ;;  %v584_v19 = vshrl.u32 %v5879_v2, 16  ;;  %v1249_v20 = vrot.slane %v1247_v13, 5  ;;  %v1253_v21 = vrot.slane %v1251_v14, 4  ;;  %v1257_v22 = vshll.u32 %v1125_v18, 16 }
  0x68   : > { %v587_v24 = vshll.u32 %v5879_v2, 16  ;;  %v1240_v25 = vrot.slane %v1238_v10, 4  ;;  %v1243_v26 = vrot.slane %v1241_v3, 5  ;;  %v592_v29 = vshrl.u32 %v5880_v6, 16  ;;  %v6506_v23 = vld [vmem:[%s8265_s3 + $0x160] sm:$0xff]   ;;  %v250_v12 = vld [vmem:[%s6666_s22 + $0x58] sm:$0xff] }
  0x69   : > { %v586_v28 = vrot.slane %v584_v19, 7  ;;  %v1254_v31 = vor.u32 %v1253_v21, %v1249_v20  ;;  %v1259_v32 = vrot.slane %v1257_v22, 5  ;;  %v595_v34 = vshll.u32 %v5880_v6, 16  ;;  %6137 = vmatprep.subr.bf16.mxu0 %v6506_v23  ;;  %v1630_v57 = vld [vmem:[#allocation2 + $0x4] sm:$0xf] }
  0x6a   : > { %v355_v36 = vmax.f32 %v323_v8, 0.0  ;;  %v1244_v37 = vor.u32 %v1243_v26, %v1240_v25  ;;  %v594_v40 = vrot.slane %v592_v29, 7  ;;  %v356_v43 = vmax.f32 %v324_v9, 0.0  ;;  %v6938_v58 = vld [vmem:[#allocation2 + $0x8] sm:$0x1]  ;;  %v6508_v22 = vld [vmem:[%s8265_s3 + $0x120] sm:$0xff]  }
  0x6b   : > { %v589_v38 = vor.u32 %v587_v24, %v586_v28  ;;  %v590_v39 = vrot.slane %v586_v28, 4  ;;  %v1255_v41 = vrot.slane %v1254_v31, 4  ;;  %v5637_v45 = vrot.slane %v6928_v30, 9  ;;  %v6486_v60 = vld [vmem:[#allocation2 + $0x24] sm:$0xff]   ;;  %v886_v19 = vld [vmem:[#allocation2 + $0x3c] sm:$0xf]  ;;  %6138 = vmatpush3.bf16.msra.mxu0 %v6508_v22 }
  0x6c   : > { %v5881_v44 = vpack.c.bf16 %v355_v36, %v355_v36  ;;  %v1245_v46 = vrot.slane %v1244_v37, 4  ;;  %v1159_v47 = vld [vmem:[#allocation2 + $0xb4] sm:$0xf]  ;;  %v597_v48 = vor.u32 %v595_v34, %v594_v40  ;;  %v599_v49 = vrot.slane %v594_v40, 4  ;;  %v6960_v28 = vld [vmem:[%s8263_s1] ss:$0 sm:$0xff] }
  0x6d   : > { %v880_v50 = vsel %vm6734_vm9, %v589_v38, %v879_v35  ;;  %v1260_v51 = vsel %vm6689_vm2, %v1255_v41, %v1259_v32  ;;  %v1160_v52 = vld [vmem:[#allocation2 + $0xb8] sm:$0xf]  ;;  %v1526_v54 = vshrl.u32 %v1159_v47, 16  ;;  %v1529_v55 = vshll.u32 %v1159_v47, 16  ;;  %v6970_v35 = vld [vmem:[%s8264_s2] ss:$0 sm:$0xff] }
  0x6e   : > { %v1161_v53 = vld [vmem:[#allocation2 + $0xbc] sm:$0x1]  ;;  %881 = vst [vmem:[#allocation2 + $0x30] sm:$0xf] %v880_v50  ;;  %v5882_v56 = vpack.c.bf16 %v356_v43, %v356_v43  ;;  %v1250_v59 = vsel %vm6689_vm2, %v1245_v46, %v1249_v20  ;;  %v1535_v61 = vshll.u32 %v1160_v52, 16  ;;  %v1539_v63 = vshrl.u32 %v1160_v52, 16 }
  0x6f   : > { %v1545_v0 = vshll.u32 %v1161_v53, 16  ;;  %v5624_v1 = vcombine.low %v1250_v59, %v1260_v51  ;;  %v1528_v2 = vrot.slane %v1526_v54, 4  ;;  %v1531_v4 = vrot.slane %v1529_v55, 5  ;;  %v890_v40 = vld [vmem:[#allocation2 + $0x44] sm:$0x1]  ;;  %v6497_v43 = vld [vmem:[#allocation2 + $0xc] sm:$0xff]  }
  0x70   : > { %v598_v5 = vsel %vm6726_vm8, %v590_v39, %v597_v48  ;;  %v1537_v6 = vrot.slane %v1535_v61, 5  ;;  %v1541_v8 = vrot.slane %v1539_v63, 4  ;;  %v884_v11 = vsel %vm6741_vm10, %v599_v49, %v883_v42  ;;  %v6491_v42 = vld [vmem:[#allocation2 + $0xb4] sm:$0xff]   ;;  %v1632_v47 = vld [vmem:[#allocation2 + $0xc] sm:$0xe] }
  0x71   : > { %v1547_v9 = vrot.slane %v1545_v0, 5  ;;  %882 = vst [vmem:[#allocation2 + $0x34] sm:$0xf] %v598_v5  ;;  %4585 = vmatprep.mubr.bf16.mxu0 %v5624_v1  ;;  %v1532_v13 = vor.u32 %v1531_v4, %v1528_v2  ;;  %885 = vst [vmem:[#allocation2 + $0x38] sm:$0x1] %v884_v11  ;;  %v601_v14 = vshrl.u32 %v5881_v44, 16  ;;  %v288_v29 = vmul.f32 %v6960_v28, %v250_v12 }
  0x72   : > { %v604_v16 = vshll.u32 %v5881_v44, 16  ;;  %v609_v17 = vshrl.u32 %v5882_v56, 16  ;;  %4586 = vmatmul.mubr.bf16.gmra.mrb[12].mxu0 %v6486_v60  ;;  %v1542_v10 = vor.u32 %v1541_v8, %v1537_v6  ;;  %v612_v3 = vshll.u32 %v5882_v56, 16  ;;  %v6989_v63 = vld [vmem:[#allocation2 + $0x14] sm:$0x1]  ;;  %v251_v0 = vld [vmem:[%s6666_s22 + $0x60] sm:$0xff] }
  0x73   : > { %v1730_v20 = vrot.slane %v1630_v57, 5  ;;  %v1733_v21 = vrot.slane %v6938_v58, 5  ;;  %v1533_v24 = vrot.slane %v1532_v13, 4  ;;  %v603_v25 = vrot.slane %v601_v14, 7  ;;  %v6984_v57 = vld [vmem:[#allocation2 + $0x10] sm:$0xf] }
  0x74   : > { %v611_v26 = vrot.slane %v609_v17, 7  ;;  %v1543_v30 = vrot.slane %v1542_v10, 4  ;;  %v325_v36 = vadd.f32 %v6970_v35, %v6926_v27  ;;  %v326_v61 = vadd.f32 %v6970_v35, %v288_v29  ;;  %v253_v22 = vld [vmem:[%s6666_s22 + $0x70] sm:$0xff] }
  0x75   : > { %v1126_v31 = vld [vmem:[#allocation2 + $0x30] sm:$0xf]  ;;  %v6965_v32 = vsel %vm6949_vm13, %v5637_v45, %v1730_v20  ;;  %v1732_v34 = vrot.slane %v1730_v20, 4  ;;  %v1538_v23 = vsel %vm6689_vm2, %v1533_v24, %v1537_v6  ;;  %v606_v39 = vor.u32 %v604_v16, %v603_v25  ;;  %v252_v6 = vld [vmem:[%s6666_s22 + $0x68] sm:$0xff] }
  0x76   : > { %v1262_v37 = vshrl.u32 %v1126_v31, 16  ;;  %v1265_v38 = vshll.u32 %v1126_v31, 16  ;;  %v1548_v41 = vsel %vm6689_vm2, %v1543_v30, %v1547_v9  ;;  %v607_v44 = vrot.slane %v603_v25, 4 }
  0x77   : > { %v614_v45 = vor.u32 %v612_v3, %v611_v26  ;;  %v616_v46 = vrot.slane %v611_v26, 4  ;;  %v5636_v48 = vcombine.low %v1538_v23, %v1548_v41  ;;  %v887_v51 = vsel %vm6734_vm9, %v606_v39, %v886_v19  ;;  %v6499_v3 = vld [vmem:[%s8265_s3 + $0x180] sm:$0xff]   ;;  %v6503_v26 = vld [vmem:[#allocation2 + $0x18] sm:$0xff]  }
  0x78   : > { %v1127_v49 = vld [vmem:[#allocation2 + $0x34] sm:$0xf]  ;;  %v1264_v27 = vrot.slane %v1262_v37, 4  ;;  %v1267_v50 = vrot.slane %v1265_v38, 5  ;;  %v1128_v52 = vld [vmem:[#allocation2 + $0x38] sm:$0x1]  ;;  %v1734_v60 = vsel %vm6949_vm13, %v1732_v34, %v1733_v21  ;;  %v289_v20 = vmul.f32 %v6960_v28, %v251_v0 }
  0x79   : > { %v1271_v53 = vshll.u32 %v1127_v49, 16  ;;  %v1275_v54 = vshrl.u32 %v1127_v49, 16  ;;  %v615_v55 = vsel %vm6726_vm8, %v607_v44, %v614_v45  ;;  %888 = vst [vmem:[#allocation2 + $0x3c] sm:$0xf] %v887_v51  ;;  %v891_v56 = vsel %vm6741_vm10, %v616_v46, %v890_v40  ;;  %4681 = vmatprep.mubr.bf16.mxu1 %v5636_v48  ;;  %v6494_v25 = vld [vmem:[#allocation2 + $0x30] sm:$0xff]  }
  0x7a   : > { %v1268_v58 = vor.u32 %v1267_v50, %v1264_v27  ;;  %v1281_v59 = vshll.u32 %v1128_v52, 16  ;;  %889 = vst [vmem:[#allocation2 + $0x40] sm:$0xf] %v615_v55  ;;  %892 = vst [vmem:[#allocation2 + $0x44] sm:$0x1] %v891_v56  ;;  %4682 = vmatmul.mubr.bf16.gmra.mrb[12].mxu1 %v6491_v42  ;;  %v5653_v4 = vcombine.low %v6965_v32, %v1734_v60  ;;  %v357_v5 = vmax.f32 %v325_v36, 0.0 }
  0x7b   : > { %v1273_v1 = vrot.slane %v1271_v53, 5  ;;  %v1277_v2 = vrot.slane %v1275_v54, 4  ;;  %4722 = vmatprep.mubr.bf16.mxu1 %v6497_v43  ;;  %v358_v11 = vmax.f32 %v326_v61, 0.0  ;;  %v5638_v12 = vrot.slane %v1632_v47, 9  ;;  %v6513_v32 = vld [vmem:[%s8265_s3 + $0x168] sm:$0xff]  }
  0x7c   : > { %v1269_v8 = vrot.slane %v1268_v58, 4  ;;  %v1283_v9 = vrot.slane %v1281_v59, 5  ;;  %v5883_v14 = vpack.c.bf16 %v357_v5, %v357_v5  ;;  %v1737_v16 = vrot.slane %v6984_v57, 5  ;;  %6139 = vmatprep.subr.bf16.mxu0 %v6513_v32  ;;  %v893_v49 = vld [vmem:[#allocation2 + $0x48] sm:$0xf] }
  0x7d   : > { %v1278_v13 = vor.u32 %v1277_v2, %v1273_v1  ;;  %v1740_v17 = vrot.slane %v6989_v63, 5  ;;  %v5884_v19 = vpack.c.bf16 %v358_v11, %v358_v11  ;;  %v290_v21 = vmul.f32 %v6960_v28, %v252_v6  ;;  %v6507_v27 = vld [vmem:[%s8265_s3 + $0x1c8] sm:$0xff]   ;;  %v897_v54 = vld [vmem:[#allocation2 + $0x50] sm:$0x1]  ;;  %v1635_v60 = vld [vmem:[#allocation2 + $0x18] sm:$0xe] }
  0x7e   : > { %v1274_v10 = vsel %vm6689_vm2, %v1269_v8, %v1273_v1  ;;  %v618_v29 = vshrl.u32 %v5883_v14, 16  ;;  %v621_v30 = vshll.u32 %v5883_v14, 16  ;;  %v7006_v31 = vsel %vm6949_vm13, %v5638_v12, %v1737_v16  ;;  %v6509_v55 = vld [vmem:[%s8265_s3 + $0x188] sm:$0xff]   ;;  %v1636_v61 = vld [vmem:[#allocation2 + $0x1c] sm:$0xf] }
  0x7f   : > { %v1279_v24 = vrot.slane %v1278_v13, 4  ;;  %v626_v36 = vshrl.u32 %v5884_v19, 16  ;;  %v629_v23 = vshll.u32 %v5884_v19, 16  ;;  %v327_v37 = vadd.f32 %v6970_v35, %v289_v20  ;;  %v1637_v63 = vld [vmem:[#allocation2 + $0x20] sm:$0x1]  ;;  %v6514_v5 = vld [vmem:[%s8265_s3 + $0x128] sm:$0xff]  }
  0x80   : > { %v1129_v34 = vld [vmem:[#allocation2 + $0x3c] sm:$0xf]  ;;  %v7013_v38 = vadd.f32 %v6970_v35, %v290_v21  ;;  %v7018_v44 = vmul.f32 %v6960_v28, %v253_v22  ;;  %v620_v52 = vrot.slane %v618_v29, 7  ;;  %v1739_v59 = vrot.slane %v1737_v16, 4  ;;  %v6505_v11 = vld [vmem:[#allocation2 + $0x24] sm:$0xff]   ;;  %6140 = vmatpush3.bf16.msra.mxu0 %v6514_v5 }
  0x81   : > { %v1284_v39 = vsel %vm6689_vm2, %v1279_v24, %v1283_v9  ;;  %v1130_v40 = vld [vmem:[#allocation2 + $0x40] sm:$0xf]  ;;  %v1131_v41 = vld [vmem:[#allocation2 + $0x44] sm:$0x1]  ;;  %v1286_v42 = vshrl.u32 %v1129_v34, 16  ;;  %v1289_v43 = vshll.u32 %v1129_v34, 16 }
  0x82   : > { %v5625_v45 = vcombine.low %v1274_v10, %v1284_v39  ;;  %v1295_v46 = vshll.u32 %v1130_v40, 16  ;;  %v1299_v47 = vshrl.u32 %v1130_v40, 16  ;;  %v1305_v48 = vshll.u32 %v1131_v41, 16  ;;  %4723 = vmatmul.mubr.bf16.vlgmr.msra.gmra.mrb[16].mxu1 %v5653_v4  ;;  %v1638_v29 = vld [vmem:[#allocation2 + $0x24] sm:$0xe]  ;;  %v6500_v32 = vld [vmem:[#allocation2 + $0x3c] sm:$0xff]  }
  0x83   : > { %v1288_v50 = vrot.slane %v1286_v42, 4  ;;  %v1291_v51 = vrot.slane %v1289_v43, 5  ;;  %v628_v53 = vrot.slane %v626_v36, 7  ;;  %6242 = vmatpush3.bf16.msra.mxu1 %v6499_v3  ;;  %4730 = vmatprep.mubr.bf16.mxu1 %v6503_v26  ;;  %v623_v1 = vor.u32 %v621_v30, %v620_v52  ;;  %v254_v3 = vld [vmem:[%s6666_s22 + $0x78] sm:$0xff]  ;;  %v6516_v30 = vld [vmem:[%s8265_s3 + $0x1d0] sm:$0xff]  }
  0x84   : > { %4593 = vmatprep.mubr.bf16.mxu0 %v5625_v45  ;;  %v1297_v56 = vrot.slane %v1295_v46, 5  ;;  %v1301_v57 = vrot.slane %v1299_v47, 4  ;;  %v1307_v58 = vrot.slane %v1305_v48, 5  ;;  %v624_v2 = vrot.slane %v620_v52, 4  ;;  %6243 = vmatprep.subr.bf16.mxu1 %v6507_v27  ;;  %v6517_v41 = vld [vmem:[%s8265_s3 + $0x190] sm:$0xff]   ;;  %v255_v48 = vld [vmem:[%s6666_s22 + $0x80] sm:$0xff] }
  0x85   : > { %4594 = vmatmul.mubr.bf16.gmra.mrb[16].mxu0 %v6494_v25  ;;  %v1292_v0 = vor.u32 %v1291_v51, %v1288_v50  ;;  %v631_v4 = vor.u32 %v629_v23, %v628_v53  ;;  %v633_v8 = vrot.slane %v628_v53, 4  ;;  %v1741_v9 = vsel %vm6949_vm13, %v1739_v59, %v1740_v17  ;;  %v900_v46 = vld [vmem:[#allocation2 + $0x54] sm:$0xf] }
  0x86   : > { %v1302_v6 = vor.u32 %v1301_v57, %v1297_v56  ;;  %v359_v12 = vmax.f32 %v327_v37, 0.0  ;;  %v894_v16 = vsel %vm6734_vm9, %v623_v1, %v893_v49  ;;  %v5654_v10 = vcombine.low %v7006_v31, %v1741_v9  ;;  %v7047_v37 = vld [vmem:[#allocation2 + $0x28] sm:$0xf]  ;;  %v6520_v27 = vld [vmem:[%s8265_s3 + $0x170] sm:$0xff]   ;;  %v904_v57 = vld [vmem:[#allocation2 + $0x5c] sm:$0x1] }
  0x87   : > { %v1293_v13 = vrot.slane %v1292_v0, 4  ;;  %v632_v14 = vsel %vm6726_vm8, %v624_v2, %v631_v4  ;;  %895 = vst [vmem:[#allocation2 + $0x48] sm:$0xf] %v894_v16  ;;  %v898_v17 = vsel %vm6741_vm10, %v633_v8, %v897_v54  ;;  %v360_v20 = vmax.f32 %v7013_v38, 0.0  ;;  %6244 = vmatpush3.bf16.msra.mxu1 %v6509_v55  ;;  %v256_v49 = vld [vmem:[%s6666_s22 + $0x88] sm:$0xff]  ;;  %6141 = vmatprep.subr.bf16.mxu0 %v6520_v27 }
  0x88   : > { %v1303_v19 = vrot.slane %v1302_v6, 4  ;;  %896 = vst [vmem:[#allocation2 + $0x4c] sm:$0xf] %v632_v14  ;;  %v5885_v21 = vpack.c.bf16 %v359_v12, %v359_v12  ;;  %899 = vst [vmem:[#allocation2 + $0x50] sm:$0x1] %v898_v17  ;;  %v5639_v24 = vrot.slane %v1635_v60, 9  ;;  %v292_v40 = vmul.f32 %v6960_v28, %v254_v3  ;;  %6245 = vmatprep.subr.bf16.mxu1 %v6516_v30 }
  0x89   : > { %v1298_v22 = vsel %vm6689_vm2, %v1293_v13, %v1297_v56  ;;  %v1744_v25 = vrot.slane %v1636_v61, 5  ;;  %v1747_v26 = vrot.slane %v1637_v63, 5  ;;  %v5886_v34 = vpack.c.bf16 %v360_v20, %v360_v20  ;;  %v1640_v14 = vld [vmem:[#allocation2 + $0x2c] sm:$0x1] }
  0x8a   : > { %v1308_v31 = vsel %vm6689_vm2, %v1303_v19, %v1307_v58  ;;  %v635_v36 = vshrl.u32 %v5885_v21, 16  ;;  %v638_v23 = vshll.u32 %v5885_v21, 16  ;;  %4731 = vmatmul.mubr.bf16.gmra.mrb[20].mxu1 %v5654_v10  ;;  %v329_v51 = vadd.f32 %v6970_v35, %v7018_v44  ;;  %v6511_v58 = vld [vmem:[#allocation2 + $0x30] sm:$0xff]  }
  0x8b   : > { %v5626_v38 = vcombine.low %v1298_v22, %v1308_v31  ;;  %v1746_v39 = vrot.slane %v1744_v25, 4  ;;  %4738 = vmatprep.mubr.bf16.mxu1 %v6505_v11  ;;  %v643_v43 = vshrl.u32 %v5886_v34, 16  ;;  %v646_v45 = vshll.u32 %v5886_v34, 16  ;;  %6246 = vmatpush3.bf16.msra.mxu1 %v6517_v41  ;;  %v6515_v41 = vld [vmem:[#allocation2 + $0x3c] sm:$0xff]  }
  0x8c   : > { %v637_v42 = vrot.slane %v635_v36, 7  ;;  %v1745_v47 = vsel %vm6949_vm13, %v5639_v24, %v1744_v25  ;;  %v5640_v52 = vrot.slane %v1638_v29, 9  ;;  %v1751_v53 = vrot.slane %v7047_v37, 5  ;;  %v7078_v24 = vld [vmem:[#allocation2 + $0x30] sm:$0xe] }
  0x8d   : > { %4601 = vmatprep.mubr.bf16.mxu0 %v5626_v38  ;;  %v1748_v50 = vsel %vm6949_vm13, %v1746_v39, %v1747_v26  ;;  %v645_v56 = vrot.slane %v643_v43, 7  ;;  %v330_v59 = vadd.f32 %v6970_v35, %v292_v40  ;;  %v293_v44 = vmul.f32 %v6960_v28, %v255_v48  ;;  %v6524_v43 = vld [vmem:[%s8265_s3 + $0x1d8] sm:$0xff]  }
  0x8e   : > { %4602 = vmatmul.mubr.bf16.gmra.mrb[20].mxu0 %v6500_v32  ;;  %v640_v54 = vor.u32 %v638_v23, %v637_v42  ;;  %v641_v55 = vrot.slane %v637_v42, 4  ;;  %v1132_v60 = vld [vmem:[#allocation2 + $0x48] sm:$0xf]  ;;  %v5655_v63 = vcombine.low %v1745_v47, %v1748_v50  ;;  %v7068_v0 = vsel %vm6949_vm13, %v5640_v52, %v1751_v53  ;;  %v6521_v23 = vld [vmem:[%s8265_s3 + $0x130] sm:$0xff]   ;;  %6247 = vmatprep.subr.bf16.mxu1 %v6524_v43 }
  0x8f   : > { %v1133_v61 = vld [vmem:[#allocation2 + $0x4c] sm:$0xf]  ;;  %v294_v1 = vmul.f32 %v6960_v28, %v256_v49  ;;  %v1134_v2 = vld [vmem:[#allocation2 + $0x50] sm:$0x1]  ;;  %v1310_v4 = vshrl.u32 %v1132_v60, 16  ;;  %v1313_v5 = vshll.u32 %v1132_v60, 16  ;;  %v648_v11 = vor.u32 %v646_v45, %v645_v56  ;;  %6142 = vmatpush3.bf16.msra.mxu0 %v6521_v23 }
  0x90   : > { %v1319_v6 = vshll.u32 %v1133_v61, 16  ;;  %v1323_v8 = vshrl.u32 %v1133_v61, 16  ;;  %v1329_v9 = vshll.u32 %v1134_v2, 16  ;;  %v650_v12 = vrot.slane %v645_v56, 4  ;;  %v6504_v39 = vld [vmem:[#allocation2 + $0x48] sm:$0xff]   ;;  %v257_v49 = vld [vmem:[%s6666_s22 + $0x90] sm:$0xff] }
  0x91   : > { %v901_v13 = vsel %vm6734_vm9, %v640_v54, %v900_v46  ;;  %v1312_v16 = vrot.slane %v1310_v4, 4  ;;  %v1315_v10 = vrot.slane %v1313_v5, 5  ;;  %v649_v20 = vsel %vm6726_vm8, %v641_v55, %v648_v11  ;;  %v907_v56 = vld [vmem:[#allocation2 + $0x60] sm:$0xf] }
  0x92   : > { %v1321_v3 = vrot.slane %v1319_v6, 5  ;;  %v1325_v19 = vrot.slane %v1323_v8, 4  ;;  %902 = vst [vmem:[#allocation2 + $0x54] sm:$0xf] %v901_v13  ;;  %v1331_v17 = vrot.slane %v1329_v9, 5  ;;  %v905_v21 = vsel %vm6741_vm10, %v650_v12, %v904_v57  ;;  %4739 = vmatmul.mubr.bf16.gmra.mrb[24].mxu1 %v5655_v63 }
  0x93   : > { %v361_v22 = vmax.f32 %v329_v51, 0.0  ;;  %v1316_v25 = vor.u32 %v1315_v10, %v1312_v16  ;;  %903 = vst [vmem:[#allocation2 + $0x58] sm:$0xf] %v649_v20  ;;  %906 = vst [vmem:[#allocation2 + $0x5c] sm:$0x1] %v905_v21  ;;  %4746 = vmatprep.mubr.bf16.mxu1 %v6511_v58  ;;  %v362_v29 = vmax.f32 %v330_v59, 0.0  ;;  %v331_v34 = vadd.f32 %v6970_v35, %v293_v44 }
  0x94   : > { %v1326_v26 = vor.u32 %v1325_v19, %v1321_v3  ;;  %v1753_v30 = vrot.slane %v1751_v53, 4  ;;  %v1754_v32 = vrot.slane %v1640_v14, 5  ;;  %v332_v36 = vadd.f32 %v6970_v35, %v294_v1  ;;  %v911_v63 = vld [vmem:[#allocation2 + $0x68] sm:$0x1] }
  0x95   : > { %v5887_v31 = vpack.c.bf16 %v361_v22, %v361_v22  ;;  %v1317_v37 = vrot.slane %v1316_v25, 4  ;;  %v5888_v40 = vpack.c.bf16 %v362_v29, %v362_v29  ;;  %v5641_v42 = vrot.slane %v7078_v24, 9  ;;  %v1643_v22 = vld [vmem:[#allocation2 + $0x38] sm:$0x1] }
  0x96   : > { %v1327_v38 = vrot.slane %v1326_v26, 4  ;;  %v1755_v47 = vsel %vm6949_vm13, %v1753_v30, %v1754_v32  ;;  %v363_v48 = vmax.f32 %v331_v34, 0.0  ;;  %v364_v58 = vmax.f32 %v332_v36, 0.0 }
  0x97   : > { %v652_v45 = vshrl.u32 %v5887_v31, 16  ;;  %v655_v46 = vshll.u32 %v5887_v31, 16  ;;  %v1322_v27 = vsel %vm6689_vm2, %v1317_v37, %v1321_v3  ;;  %v660_v51 = vshrl.u32 %v5888_v40, 16  ;;  %v6525_v3 = vld [vmem:[%s8265_s3 + $0x198] sm:$0xff]   ;;  %v914_v37 = vld [vmem:[#allocation2 + $0x6c] sm:$0xf] }
  0x98   : > { %v1332_v50 = vsel %vm6689_vm2, %v1327_v38, %v1331_v17  ;;  %v663_v52 = vshll.u32 %v5888_v40, 16  ;;  %v5656_v57 = vcombine.low %v7068_v0, %v1755_v47  ;;  %v5889_v44 = vpack.c.bf16 %v363_v48, %v363_v48  ;;  %v1642_v0 = vld [vmem:[#allocation2 + $0x34] sm:$0xf]  ;;  %v258_v31 = vld [vmem:[%s6666_s22 + $0x98] sm:$0xff]  ;;  %6248 = vmatpush3.bf16.msra.mxu1 %v6525_v3 }
  0x99   : > { %v5627_v53 = vcombine.low %v1322_v27, %v1332_v50  ;;  %v1135_v54 = vld [vmem:[#allocation2 + $0x54] sm:$0xf]  ;;  %v654_v55 = vrot.slane %v652_v45, 7  ;;  %v662_v61 = vrot.slane %v660_v51, 7  ;;  %v5890_v5 = vpack.c.bf16 %v364_v58, %v364_v58  ;;  %v6527_v38 = vld [vmem:[%s8265_s3 + $0x178] sm:$0xff]   ;;  %v259_v50 = vld [vmem:[%s6666_s22 + $0xa0] sm:$0xff] }
  0x9a   : > { %v1334_v59 = vshrl.u32 %v1135_v54, 16  ;;  %v1337_v60 = vshll.u32 %v1135_v54, 16  ;;  %v1136_v1 = vld [vmem:[#allocation2 + $0x58] sm:$0xf]  ;;  %v1137_v2 = vld [vmem:[#allocation2 + $0x5c] sm:$0x1]  ;;  %4747 = vmatmul.mubr.bf16.gmra.mrb[28].mxu1 %v5656_v57  ;;  %v295_v6 = vmul.f32 %v6960_v28, %v257_v49  ;;  %v296_v27 = vmul.f32 %v6960_v28, %v258_v31  ;;  %6143 = vmatprep.subr.bf16.mxu0 %v6527_v38 }
  0x9b   : > { %4609 = vmatprep.mubr.bf16.mxu0 %v5627_v53  ;;  %v657_v4 = vor.u32 %v655_v46, %v654_v55  ;;  %v1343_v11 = vshll.u32 %v1136_v1, 16  ;;  %v1347_v12 = vshrl.u32 %v1136_v1, 16  ;;  %4754 = vmatprep.mubr.bf16.mxu1 %v6515_v41  ;;  %v1353_v13 = vshll.u32 %v1137_v2, 16  ;;  %v918_v41 = vld [vmem:[#allocation2 + $0x74] sm:$0x1]  ;;  %v260_v1 = vld [vmem:[%s6666_s22 + $0xa8] sm:$0xff] }
  0x9c   : > { %4610 = vmatmul.mubr.bf16.gmra.mrb[24].mxu0 %v6504_v39  ;;  %v1336_v8 = vrot.slane %v1334_v59, 4  ;;  %v1339_v9 = vrot.slane %v1337_v60, 5  ;;  %v658_v14 = vrot.slane %v654_v55, 4  ;;  %v665_v16 = vor.u32 %v663_v52, %v662_v61  ;;  %v6510_v48 = vld [vmem:[#allocation2 + $0x54] sm:$0xff]   ;;  %v7148_v38 = vld [vmem:[%s8265_s3 + $0x200] sm:$0xff]  }
  0x9d   : > { %v667_v10 = vrot.slane %v662_v61, 4  ;;  %v1345_v17 = vrot.slane %v1343_v11, 5  ;;  %v1349_v20 = vrot.slane %v1347_v12, 4  ;;  %v908_v21 = vsel %vm6734_vm9, %v657_v4, %v907_v56  ;;  %v6528_v59 = vld [vmem:[%s8265_s3 + $0x138] sm:$0xff]   ;;  %v6531_v11 = vld [vmem:[%s8265_s3 + $0x1e0] sm:$0xff]  }
  0x9e   : > { %v1340_v19 = vor.u32 %v1339_v9, %v1336_v8  ;;  %v1355_v25 = vrot.slane %v1353_v13, 5  ;;  %v666_v26 = vsel %vm6726_vm8, %v658_v14, %v665_v16  ;;  %909 = vst [vmem:[#allocation2 + $0x60] sm:$0xf] %v908_v21  ;;  %v669_v30 = vshrl.u32 %v5889_v44, 16  ;;  %v7135_v9 = vld [vmem:[#allocation2 + $0x40] sm:$0xf]  ;;  %6144 = vmatpush3.bf16.msra.mxu0 %v6528_v59  ;;  %6249 = vmatprep.subr.bf16.mxu1 %v6531_v11 }
  0x9f   : > { %v912_v29 = vsel %vm6741_vm10, %v667_v10, %v911_v63  ;;  %v1350_v34 = vor.u32 %v1349_v20, %v1345_v17  ;;  %910 = vst [vmem:[#allocation2 + $0x64] sm:$0xf] %v666_v26  ;;  %v672_v36 = vshll.u32 %v5889_v44, 16  ;;  %v677_v23 = vshrl.u32 %v5890_v5, 16  ;;  %v1644_v44 = vld [vmem:[#allocation2 + $0x3c] sm:$0xe]  ;;  %6377 = vmatprep.subr.bf16.mxu0 %v7148_v38 }
  0xa0   : > { %v1341_v32 = vrot.slane %v1340_v19, 4  ;;  %913 = vst [vmem:[#allocation2 + $0x68] sm:$0x1] %v912_v29  ;;  %v671_v39 = vrot.slane %v669_v30, 7  ;;  %v680_v40 = vshll.u32 %v5890_v5, 16  ;;  %v1758_v43 = vrot.slane %v1642_v0, 5 }
  0xa1   : > { %v1761_v45 = vrot.slane %v1643_v22, 5  ;;  %v1351_v47 = vrot.slane %v1350_v34, 4  ;;  %v679_v49 = vrot.slane %v677_v23, 7  ;;  %v333_v58 = vadd.f32 %v6970_v35, %v295_v6  ;;  %v7140_v16 = vld [vmem:[#allocation2 + $0x44] sm:$0x1] }
  0xa2   : > { %v1346_v46 = vsel %vm6689_vm2, %v1341_v32, %v1345_v17  ;;  %v674_v51 = vor.u32 %v672_v36, %v671_v39  ;;  %v675_v52 = vrot.slane %v671_v39, 4  ;;  %v1759_v53 = vsel %vm6949_vm13, %v5641_v42, %v1758_v43  ;;  %v6519_v42 = vld [vmem:[#allocation2 + $0x48] sm:$0xff]   ;;  %v925_v11 = vld [vmem:[#allocation2 + $0x80] sm:$0x1] }
  0xa3   : > { %v1760_v54 = vrot.slane %v1758_v43, 4  ;;  %v1356_v55 = vsel %vm6689_vm2, %v1351_v47, %v1355_v25  ;;  %v682_v56 = vor.u32 %v680_v40, %v679_v49  ;;  %v684_v57 = vrot.slane %v679_v49, 4 }
  0xa4   : > { %v5628_v60 = vcombine.low %v1346_v46, %v1356_v55  ;;  %v915_v61 = vsel %vm6734_vm9, %v674_v51, %v914_v37  ;;  %v334_v63 = vadd.f32 %v6970_v35, %v296_v27  ;;  %v365_v8 = vmax.f32 %v333_v58, 0.0 }
  0xa5   : > { %v1762_v24 = vsel %vm6949_vm13, %v1760_v54, %v1761_v45  ;;  %v1138_v2 = vld [vmem:[#allocation2 + $0x60] sm:$0xf]  ;;  %v683_v4 = vsel %vm6726_vm8, %v675_v52, %v682_v56  ;;  %916 = vst [vmem:[#allocation2 + $0x6c] sm:$0xf] %v915_v61  ;;  %v919_v5 = vsel %vm6741_vm10, %v684_v57, %v918_v41  ;;  %v297_v10 = vmul.f32 %v6960_v28, %v259_v50 }
  0xa6   : > { %v5657_v6 = vcombine.low %v1759_v53, %v1762_v24  ;;  %4617 = vmatprep.mubr.bf16.mxu0 %v5628_v60  ;;  %v1139_v12 = vld [vmem:[#allocation2 + $0x64] sm:$0xf]  ;;  %v1358_v13 = vshrl.u32 %v1138_v2, 16  ;;  %v1361_v14 = vshll.u32 %v1138_v2, 16  ;;  %917 = vst [vmem:[#allocation2 + $0x70] sm:$0xf] %v683_v4  ;;  %v5891_v20 = vpack.c.bf16 %v365_v8, %v365_v8 }
  0xa7   : > { %v1140_v0 = vld [vmem:[#allocation2 + $0x68] sm:$0x1]  ;;  %920 = vst [vmem:[#allocation2 + $0x74] sm:$0x1] %v919_v5  ;;  %4618 = vmatmul.mubr.bf16.gmra.mrb[28].mxu0 %v6510_v48  ;;  %v1367_v3 = vshll.u32 %v1139_v12, 16  ;;  %v1371_v19 = vshrl.u32 %v1139_v12, 16  ;;  %v298_v32 = vmul.f32 %v6960_v28, %v260_v1  ;;  %v335_v49 = vadd.f32 %v6970_v35, %v297_v10 }
  0xa8   : > { %v1377_v17 = vshll.u32 %v1140_v0, 16  ;;  %4755 = vmatmul.mubr.bf16.gmra.mrb[32].mxu1 %v5657_v6  ;;  %v1360_v21 = vrot.slane %v1358_v13, 4  ;;  %v1363_v22 = vrot.slane %v1361_v14, 5  ;;  %v366_v25 = vmax.f32 %v334_v63, 0.0  ;;  %v921_v48 = vld [vmem:[#allocation2 + $0x78] sm:$0xf] }
  0xa9   : > { %4762 = vmatprep.mubr.bf16.mxu1 %v6519_v42  ;;  %v5642_v26 = vrot.slane %v1644_v44, 9  ;;  %v1369_v29 = vrot.slane %v1367_v3, 5  ;;  %v1373_v30 = vrot.slane %v1371_v19, 4  ;;  %v686_v31 = vshrl.u32 %v5891_v20, 16  ;;  %v6512_v60 = vld [vmem:[#allocation2 + $0x60] sm:$0xff]   ;;  %v6536_v12 = vld [vmem:[%s8265_s3 + $0x1e8] sm:$0xff]  }
  0xaa   : > { %v1364_v34 = vor.u32 %v1363_v22, %v1360_v21  ;;  %v5892_v36 = vpack.c.bf16 %v366_v25, %v366_v25  ;;  %v689_v23 = vshll.u32 %v5891_v20, 16  ;;  %v1765_v37 = vrot.slane %v7135_v9, 5  ;;  %v1647_v4 = vld [vmem:[#allocation2 + $0x48] sm:$0xe]  ;;  %v1648_v10 = vld [vmem:[#allocation2 + $0x4c] sm:$0xf] }
  0xab   : > { %v1374_v39 = vor.u32 %v1373_v30, %v1369_v29  ;;  %v1379_v40 = vrot.slane %v1377_v17, 5  ;;  %v688_v41 = vrot.slane %v686_v31, 7  ;;  %v1768_v43 = vrot.slane %v7140_v16, 5  ;;  %v6523_v17 = vld [vmem:[#allocation2 + $0x54] sm:$0xff]  }
  0xac   : > { %v1365_v45 = vrot.slane %v1364_v34, 4  ;;  %v1141_v46 = vld [vmem:[#allocation2 + $0x6c] sm:$0xf]  ;;  %v694_v47 = vshrl.u32 %v5892_v36, 16  ;;  %v7153_v28 = vsel %vm6949_vm13, %v5642_v26, %v1765_v37  ;;  %v336_v54 = vadd.f32 %v6970_v35, %v298_v32  ;;  %v6533_v35 = vld [vmem:[%s8265_s3 + $0x1a0] sm:$0xff]  }
  0xad   : > { %v1375_v27 = vrot.slane %v1374_v39, 4  ;;  %v1142_v50 = vld [vmem:[#allocation2 + $0x70] sm:$0xf]  ;;  %v1382_v52 = vshrl.u32 %v1141_v46, 16  ;;  %v691_v53 = vor.u32 %v689_v23, %v688_v41  ;;  %v1385_v56 = vshll.u32 %v1141_v46, 16  ;;  %6250 = vmatpush3.bf16.msra.mxu1 %v6533_v35 }
  0xae   : > { %v1143_v51 = vld [vmem:[#allocation2 + $0x74] sm:$0x1]  ;;  %v1370_v55 = vsel %vm6689_vm2, %v1365_v45, %v1369_v29  ;;  %v1391_v57 = vshll.u32 %v1142_v50, 16  ;;  %v1395_v58 = vshrl.u32 %v1142_v50, 16  ;;  %v692_v42 = vrot.slane %v688_v41, 4  ;;  %6251 = vmatprep.subr.bf16.mxu1 %v6536_v12  ;;  %v6518_v45 = vld [vmem:[#allocation2 + $0x6c] sm:$0xff]  }
  0xaf   : > { %v1380_v59 = vsel %vm6689_vm2, %v1375_v27, %v1379_v40  ;;  %v1384_v61 = vrot.slane %v1382_v52, 4  ;;  %v1401_v24 = vshll.u32 %v1143_v51, 16  ;;  %v1387_v44 = vrot.slane %v1385_v56, 5  ;;  %v1650_v23 = vld [vmem:[#allocation2 + $0x54] sm:$0xe] }
  0xb0   : > { %v5629_v63 = vcombine.low %v1370_v55, %v1380_v59  ;;  %v1393_v1 = vrot.slane %v1391_v57, 5  ;;  %v1397_v2 = vrot.slane %v1395_v58, 4  ;;  %v696_v6 = vrot.slane %v694_v47, 7  ;;  %v932_v50 = vld [vmem:[#allocation2 + $0x8c] sm:$0x1] }
  0xb1   : > { %v1403_v5 = vrot.slane %v1401_v24, 5  ;;  %v697_v8 = vshll.u32 %v5892_v36, 16  ;;  %v922_v9 = vsel %vm6734_vm9, %v691_v53, %v921_v48  ;;  %v1388_v0 = vor.u32 %v1387_v44, %v1384_v61  ;;  %v1649_v36 = vld [vmem:[#allocation2 + $0x50] sm:$0x1]  ;;  %v928_v48 = vld [vmem:[#allocation2 + $0x84] sm:$0xf] }
  0xb2   : > { %4625 = vmatprep.mubr.bf16.mxu0 %v5629_v63  ;;  %v1398_v13 = vor.u32 %v1397_v2, %v1393_v1  ;;  %923 = vst [vmem:[#allocation2 + $0x78] sm:$0xf] %v922_v9  ;;  %v1767_v14 = vrot.slane %v1765_v37, 4  ;;  %v367_v16 = vmax.f32 %v335_v49, 0.0  ;;  %v701_v19 = vrot.slane %v696_v6, 4  ;;  %v6538_v49 = vld [vmem:[%s8265_s3 + $0x1a8] sm:$0xff]  }
  0xb3   : > { %4626 = vmatmul.mubr.bf16.gmra.mrb[32].mxu0 %v6512_v60  ;;  %v699_v3 = vor.u32 %v697_v8, %v696_v6  ;;  %v368_v20 = vmax.f32 %v336_v54, 0.0  ;;  %v5643_v21 = vrot.slane %v1647_v4, 9  ;;  %v1389_v22 = vrot.slane %v1388_v0, 4  ;;  %v1651_v52 = vld [vmem:[#allocation2 + $0x58] sm:$0xf]  ;;  %6252 = vmatpush3.bf16.msra.mxu1 %v6538_v49  ;;  %v6529_v24 = vld [vmem:[#allocation2 + $0x60] sm:$0xff]  }
  0xb4   : > { %v1399_v25 = vrot.slane %v1398_v13, 4  ;;  %v1769_v26 = vsel %vm6949_vm13, %v1767_v14, %v1768_v43  ;;  %v5893_v29 = vpack.c.bf16 %v367_v16, %v367_v16  ;;  %v926_v31 = vsel %vm6741_vm10, %v701_v19, %v925_v11  ;;  %v2576_v4 = vld [vmem:[#allocation2 + $0xc] sm:$0xe]  ;;  %v2577_v9 = vld [vmem:[#allocation2 + $0x10] sm:$0xf] }
  0xb5   : > { %v700_v30 = vsel %vm6726_vm8, %v692_v42, %v699_v3  ;;  %v5658_v32 = vcombine.low %v7153_v28, %v1769_v26  ;;  %v5894_v34 = vpack.c.bf16 %v368_v20, %v368_v20  ;;  %v1394_v37 = vsel %vm6689_vm2, %v1389_v22, %v1393_v1  ;;  %927 = vst [vmem:[#allocation2 + $0x80] sm:$0x1] %v926_v31  ;;  %v1652_v42 = vld [vmem:[#allocation2 + $0x5c] sm:$0x1]  ;;  %v2578_v11 = vld [vmem:[#allocation2 + $0x14] sm:$0x1] }
  0xb6   : > { %v1404_v39 = vsel %vm6689_vm2, %v1399_v25, %v1403_v5  ;;  %924 = vst [vmem:[#allocation2 + $0x7c] sm:$0xf] %v700_v30  ;;  %v703_v40 = vshrl.u32 %v5893_v29, 16  ;;  %v706_v41 = vshll.u32 %v5893_v29, 16  ;;  %v1772_v28 = vrot.slane %v1648_v10, 5  ;;  %v6530_v49 = vld [vmem:[#allocation2 + $0x6c] sm:$0xff]  }
  0xb7   : > { %v5630_v43 = vcombine.low %v1394_v37, %v1404_v39  ;;  %4763 = vmatmul.mubr.bf16.gmra.mrb[36].mxu1 %v5658_v32  ;;  %v711_v46 = vshrl.u32 %v5894_v34, 16  ;;  %v714_v47 = vshll.u32 %v5894_v34, 16  ;;  %v1775_v51 = vrot.slane %v1649_v36, 5  ;;  %v2064_v10 = vld [vmem:[#allocation2 + $0xc] sm:$0xf]  ;;  %v6541_v34 = vld [vmem:[%s8265_s3 + $0x1f0] sm:$0xff]  }
  0xb8   : > { %4770 = vmatprep.mubr.bf16.mxu1 %v6523_v17  ;;  %v705_v27 = vrot.slane %v703_v40, 7  ;;  %v5644_v53 = vrot.slane %v1650_v23, 9  ;;  %v1773_v56 = vsel %vm6949_vm13, %v5643_v21, %v1772_v28  ;;  %v1774_v57 = vrot.slane %v1772_v28, 4  ;;  %v2065_v32 = vld [vmem:[#allocation2 + $0x10] sm:$0xf]  ;;  %6253 = vmatprep.subr.bf16.mxu1 %v6541_v34 }
  0xb9   : > { %4633 = vmatprep.mubr.bf16.mxu0 %v5630_v43  ;;  %v1144_v54 = vld [vmem:[#allocation2 + $0x78] sm:$0xf]  ;;  %v713_v55 = vrot.slane %v711_v46, 7  ;;  %v1779_v2 = vrot.slane %v1651_v52, 5  ;;  %v1782_v22 = vrot.slane %v1652_v42, 5  ;;  %v5701_v25 = vrot.slane %v2576_v4, 9 }
  0xba   : > { %v1406_v58 = vshrl.u32 %v1144_v54, 16  ;;  %v1409_v59 = vshll.u32 %v1144_v54, 16  ;;  %v708_v60 = vor.u32 %v706_v41, %v705_v27  ;;  %v709_v61 = vrot.slane %v705_v27, 4  ;;  %v6543_v27 = vld [vmem:[%s8265_s3 + $0x1b0] sm:$0xff]  }
  0xbb   : > { %4634 = vmatmul.mubr.bf16.gmra.mrb[36].mxu0 %v6518_v45  ;;  %v716_v63 = vor.u32 %v714_v47, %v713_v55  ;;  %v718_v44 = vrot.slane %v713_v55, 4  ;;  %v1776_v1 = vsel %vm6949_vm13, %v1774_v57, %v1775_v51  ;;  %v1780_v16 = vsel %vm6949_vm13, %v5644_v53, %v1779_v2  ;;  %v2066_v53 = vld [vmem:[#allocation2 + $0x14] sm:$0x1]  ;;  %6254 = vmatpush3.bf16.msra.mxu1 %v6543_v27 }
  0xbc   : > { %v1408_v35 = vrot.slane %v1406_v58, 4  ;;  %v1411_v5 = vrot.slane %v1409_v59, 5  ;;  %v929_v6 = vsel %vm6734_vm9, %v708_v60, %v928_v48  ;;  %v5659_v8 = vcombine.low %v1773_v56, %v1776_v1  ;;  %v1146_v0 = vld [vmem:[#allocation2 + $0x80] sm:$0x1]  ;;  %v1653_v60 = vld [vmem:[#allocation2 + $0x60] sm:$0xe] }
  0xbd   : > { %v1145_v12 = vld [vmem:[#allocation2 + $0x7c] sm:$0xf]  ;;  %v717_v13 = vsel %vm6726_vm8, %v709_v61, %v716_v63  ;;  %930 = vst [vmem:[#allocation2 + $0x84] sm:$0xf] %v929_v6  ;;  %v933_v14 = vsel %vm6741_vm10, %v718_v44, %v932_v50  ;;  %v1425_v20 = vshll.u32 %v1146_v0, 16  ;;  %v1781_v21 = vrot.slane %v1779_v2, 4 }
  0xbe   : > { %v1412_v3 = vor.u32 %v1411_v5, %v1408_v35  ;;  %v1415_v19 = vshll.u32 %v1145_v12, 16  ;;  %v1419_v17 = vshrl.u32 %v1145_v12, 16  ;;  %931 = vst [vmem:[#allocation2 + $0x88] sm:$0xf] %v717_v13  ;;  %934 = vst [vmem:[#allocation2 + $0x8c] sm:$0x1] %v933_v14 }
  0xbf   : > { %4771 = vmatmul.mubr.bf16.gmra.mrb[40].mxu1 %v5659_v8  ;;  %v2674_v26 = vrot.slane %v2577_v9, 5  ;;  %v1427_v36 = vrot.slane %v1425_v20, 5  ;;  %v1783_v23 = vsel %vm6949_vm13, %v1781_v21, %v1782_v22  ;;  %v2677_v39 = vrot.slane %v2578_v11, 5  ;;  %v1654_v61 = vld [vmem:[#allocation2 + $0x64] sm:$0xf]  ;;  %v6522_v63 = vld [vmem:[#allocation2 + $0x78] sm:$0xff]  }
  0xc0   : > { %v1413_v29 = vrot.slane %v1412_v3, 4  ;;  %v1417_v30 = vrot.slane %v1415_v19, 5  ;;  %v1421_v31 = vrot.slane %v1419_v17, 4  ;;  %4778 = vmatprep.mubr.bf16.mxu1 %v6529_v24  ;;  %v5660_v41 = vcombine.low %v1780_v16, %v1783_v23  ;;  %v1655_v24 = vld [vmem:[#allocation2 + $0x68] sm:$0x1] }
  0xc1   : > { %v2676_v37 = vrot.slane %v2674_v26, 4  ;;  %v7203_v43 = vsel %vm6949_vm13, %v5701_v25, %v2674_v26  ;;  %v2113_v45 = vshrl.u32 %v2064_v10, 16  ;;  %v2116_v47 = vshll.u32 %v2064_v10, 16  ;;  %v2579_v8 = vld [vmem:[#allocation2 + $0x18] sm:$0xe] }
  0xc2   : > { %v1422_v40 = vor.u32 %v1421_v31, %v1417_v30  ;;  %v2122_v48 = vshll.u32 %v2065_v32, 16  ;;  %v2126_v28 = vshrl.u32 %v2065_v32, 16  ;;  %v1418_v50 = vsel %vm6689_vm2, %v1413_v29, %v1417_v30  ;;  %v2580_v13 = vld [vmem:[#allocation2 + $0x1c] sm:$0xf]  ;;  %v2581_v19 = vld [vmem:[#allocation2 + $0x20] sm:$0x1] }
  0xc3   : > { %v7207_v46 = vsel %vm6949_vm13, %v2676_v37, %v2677_v39  ;;  %v2115_v54 = vrot.slane %v2113_v45, 4  ;;  %v2118_v6 = vrot.slane %v2116_v47, 5  ;;  %v2132_v3 = vshll.u32 %v2066_v53, 16  ;;  %v2067_v17 = vld [vmem:[#allocation2 + $0x18] sm:$0xf] }
  0xc4   : > { %v1423_v51 = vrot.slane %v1422_v40, 4  ;;  %v1147_v52 = vld [vmem:[#allocation2 + $0x84] sm:$0xf]  ;;  %v5717_v59 = vcombine.low %v7203_v43, %v7207_v46  ;;  %v2124_v0 = vrot.slane %v2122_v48, 5  ;;  %v2128_v10 = vrot.slane %v2126_v28, 4  ;;  %v6534_v53 = vld [vmem:[#allocation2 + $0x78] sm:$0xff]  }
  0xc5   : > { %v1148_v55 = vld [vmem:[#allocation2 + $0x88] sm:$0xf]  ;;  %v1149_v56 = vld [vmem:[#allocation2 + $0x8c] sm:$0x1]  ;;  %v1430_v57 = vshrl.u32 %v1147_v52, 16  ;;  %v1433_v58 = vshll.u32 %v1147_v52, 16  ;;  %v2119_v16 = vor.u32 %v2118_v6, %v2115_v54 }
  0xc6   : > { %v1428_v42 = vsel %vm6689_vm2, %v1423_v51, %v1427_v36  ;;  %v1439_v44 = vshll.u32 %v1148_v55, 16  ;;  %v1443_v1 = vshrl.u32 %v1148_v55, 16  ;;  %v1449_v2 = vshll.u32 %v1149_v56, 16  ;;  %v2068_v37 = vld [vmem:[#allocation2 + $0x1c] sm:$0xf]  ;;  %v6526_v27 = vld [vmem:[#allocation2 + $0x84] sm:$0xff]  }
  0xc7   : > { %v5631_v4 = vcombine.low %v1418_v50, %v1428_v42  ;;  %v1432_v35 = vrot.slane %v1430_v57, 4  ;;  %v1435_v5 = vrot.slane %v1433_v58, 5  ;;  %4779 = vmatmul.mubr.bf16.gmra.mrb[44].mxu1 %v5660_v41  ;;  %v5645_v21 = vrot.slane %v1653_v60, 9  ;;  %v2069_v39 = vld [vmem:[#allocation2 + $0x20] sm:$0x1]  ;;  %v6546_v41 = vld [vmem:[%s8265_s3 + $0x1f8] sm:$0xff]  }
  0xc8   : > { %v1441_v9 = vrot.slane %v1439_v44, 5  ;;  %v1445_v11 = vrot.slane %v1443_v1, 4  ;;  %v1451_v12 = vrot.slane %v1449_v2, 5  ;;  %4786 = vmatprep.mubr.bf16.mxu1 %v6530_v49  ;;  %v1786_v22 = vrot.slane %v1654_v61, 5  ;;  %v1656_v40 = vld [vmem:[#allocation2 + $0x6c] sm:$0xe]  ;;  %6255 = vmatprep.subr.bf16.mxu1 %v6546_v41 }
  0xc9   : > { %4641 = vmatprep.mubr.bf16.mxu0 %v5631_v4  ;;  %v1436_v14 = vor.u32 %v1435_v5, %v1432_v35  ;;  %v1789_v25 = vrot.slane %v1655_v24, 5  ;;  %v2120_v29 = vrot.slane %v2119_v16, 4  ;;  %v2129_v30 = vor.u32 %v2128_v10, %v2124_v0  ;;  %v1657_v58 = vld [vmem:[#allocation2 + $0x70] sm:$0xf]  ;;  %v1658_v60 = vld [vmem:[#allocation2 + $0x74] sm:$0x1] }
  0xca   : > { %4642 = vmatmul.mubr.bf16.gmra.mrb[40].mxu0 %v6522_v63  ;;  %v1446_v20 = vor.u32 %v1445_v11, %v1441_v9  ;;  %v2134_v31 = vrot.slane %v2132_v3, 5  ;;  %v1787_v34 = vsel %vm6949_vm13, %v5645_v21, %v1786_v22  ;;  %v1788_v36 = vrot.slane %v1786_v22, 4  ;;  %v2582_v61 = vld [vmem:[#allocation2 + $0x24] sm:$0xe]  ;;  %v2583_v1 = vld [vmem:[#allocation2 + $0x28] sm:$0xf] }
  0xcb   : > { %v1437_v26 = vrot.slane %v1436_v14, 4  ;;  %v5702_v23 = vrot.slane %v2579_v8, 9  ;;  %v2125_v47 = vsel %vm6689_vm2, %v2120_v29, %v2124_v0  ;;  %v2130_v48 = vrot.slane %v2129_v30, 4  ;;  %v2584_v2 = vld [vmem:[#allocation2 + $0x2c] sm:$0x1]  ;;  %v6548_v14 = vld [vmem:[%s8265_s3 + $0x1b8] sm:$0xff]  }
  0xcc   : > { %v1447_v32 = vrot.slane %v1446_v20, 4  ;;  %v2681_v28 = vrot.slane %v2580_v13, 5  ;;  %v1790_v50 = vsel %vm6949_vm13, %v1788_v36, %v1789_v25  ;;  %v2684_v51 = vrot.slane %v2581_v19, 5  ;;  %v2070_v4 = vld [vmem:[#allocation2 + $0x24] sm:$0xf]  ;;  %6256 = vmatpush3.bf16.msra.mxu1 %v6548_v14  ;;  %v6539_v14 = vld [vmem:[#allocation2 + $0x90] sm:$0xff]  }
  0xcd   : > { %v1442_v45 = vsel %vm6689_vm2, %v1437_v26, %v1441_v9  ;;  %v2137_v52 = vshrl.u32 %v2067_v17, 16  ;;  %v2135_v55 = vsel %vm6689_vm2, %v2130_v48, %v2134_v31  ;;  %v5661_v56 = vcombine.low %v1787_v34, %v1790_v50  ;;  %v2071_v9 = vld [vmem:[#allocation2 + $0x28] sm:$0xf]  ;;  %v2072_v25 = vld [vmem:[#allocation2 + $0x2c] sm:$0x1] }
  0xce   : > { %v1452_v49 = vsel %vm6689_vm2, %v1447_v32, %v1451_v12  ;;  %v7235_v57 = vsel %vm6949_vm13, %v5702_v23, %v2681_v28  ;;  %v5685_v24 = vcombine.low %v2125_v47, %v2135_v55  ;;  %v2683_v42 = vrot.slane %v2681_v28, 4  ;;  %v1659_v32 = vld [vmem:[#allocation2 + $0x78] sm:$0xe]  ;;  %v6535_v36 = vld [vmem:[#allocation2 + $0x84] sm:$0xff]   ;;  %v1660_v23 = vld [vmem:[#allocation2 + $0x7c] sm:$0xf] }
  0xcf   : > { %v5632_v54 = vcombine.low %v1442_v45, %v1452_v49  ;;  %v2139_v63 = vrot.slane %v2137_v52, 4  ;;  %v2140_v44 = vshll.u32 %v2067_v17, 16  ;;  %4787 = vmatmul.mubr.bf16.gmra.mrb[48].mxu1 %v5661_v56  ;;  %v2146_v35 = vshll.u32 %v2068_v37, 16  ;;  %v1661_v45 = vld [vmem:[#allocation2 + $0x80] sm:$0x1] }
  0xd0   : > { %v2150_v5 = vshrl.u32 %v2068_v37, 16  ;;  %v2156_v6 = vshll.u32 %v2069_v39, 16  ;;  %v5646_v8 = vrot.slane %v1656_v40, 9  ;;  %v2685_v11 = vsel %vm6949_vm13, %v2683_v42, %v2684_v51  ;;  %4794 = vmatprep.mubr.bf16.mxu1 %v6534_v53  ;;  %v2585_v50 = vld [vmem:[#allocation2 + $0x30] sm:$0xe] }
  0xd1   : > { %4649 = vmatprep.mubr.bf16.mxu0 %v5632_v54  ;;  %v2142_v12 = vrot.slane %v2140_v44, 5  ;;  %v1793_v0 = vrot.slane %v1657_v58, 5  ;;  %v1796_v13 = vrot.slane %v1658_v60, 5  ;;  %v5718_v16 = vcombine.low %v7235_v57, %v2685_v11  ;;  %v2586_v55 = vld [vmem:[#allocation2 + $0x34] sm:$0xf] }
  0xd2   : > { %4650 = vmatmul.mubr.bf16.gmra.mrb[44].mxu0 %v6526_v27  ;;  %v2148_v10 = vrot.slane %v2146_v35, 5  ;;  %v2152_v3 = vrot.slane %v2150_v5, 4  ;;  %v2158_v19 = vrot.slane %v2156_v6, 5  ;;  %v5703_v22 = vrot.slane %v2582_v61, 9  ;;  %v6537_v27 = vld [vmem:[%s8265_s3 + $0x208] sm:$0xff]  }
  0xd3   : > { %4883 = vmatprep.mubr.bf16.mxu0 %v5717_v59  ;;  %v2143_v17 = vor.u32 %v2142_v12, %v2139_v63  ;;  %v1794_v20 = vsel %vm6949_vm13, %v5646_v8, %v1793_v0  ;;  %v1795_v21 = vrot.slane %v1793_v0, 4  ;;  %v2688_v29 = vrot.slane %v2583_v1, 5  ;;  %v2587_v56 = vld [vmem:[#allocation2 + $0x38] sm:$0x1]  ;;  %v2073_v42 = vld [vmem:[#allocation2 + $0x30] sm:$0xf] }
  0xd4   : > { %v2153_v26 = vor.u32 %v2152_v3, %v2148_v10  ;;  %v2691_v30 = vrot.slane %v2584_v2, 5  ;;  %v2161_v31 = vshrl.u32 %v2070_v4, 16  ;;  %v2164_v59 = vshll.u32 %v2070_v4, 16  ;;  %v6542_v63 = vld [vmem:[%s8265_s3 + $0x210] sm:$0xff]  }
  0xd5   : > { %v2144_v43 = vrot.slane %v2143_v17, 4  ;;  %v1797_v46 = vsel %vm6949_vm13, %v1795_v21, %v1796_v13  ;;  %v2170_v34 = vshll.u32 %v2071_v9, 16  ;;  %v7252_v40 = vsel %vm6949_vm13, %v5703_v22, %v2688_v29  ;;  %v1663_v17 = vld [vmem:[#allocation2 + $0x88] sm:$0xf]  ;;  %v2588_v21 = vld [vmem:[#allocation2 + $0x3c] sm:$0xe] }
  0xd6   : > { %v2154_v37 = vrot.slane %v2153_v26, 4  ;;  %v5662_v39 = vcombine.low %v1794_v20, %v1797_v46  ;;  %v2690_v41 = vrot.slane %v2688_v29, 4  ;;  %v2163_v48 = vrot.slane %v2161_v31, 4  ;;  %v1664_v20 = vld [vmem:[#allocation2 + $0x8c] sm:$0x1] }
  0xd7   : > { %v2149_v47 = vsel %vm6689_vm2, %v2144_v43, %v2148_v10  ;;  %v2166_v28 = vrot.slane %v2164_v59, 5  ;;  %v7256_v49 = vrot.slane %v2170_v34, 5  ;;  %v2174_v53 = vshrl.u32 %v2071_v9, 16  ;;  %v2075_v9 = vld [vmem:[#allocation2 + $0x38] sm:$0x1] }
  0xd8   : > { %v2159_v51 = vsel %vm6689_vm2, %v2154_v37, %v2158_v19  ;;  %4795 = vmatmul.mubr.bf16.gmra.mrb[52].mxu1 %v5662_v39  ;;  %v7265_v52 = vsel %vm6949_vm13, %v2690_v41, %v2691_v30  ;;  %v2180_v54 = vshll.u32 %v2072_v25, 16  ;;  %v5647_v61 = vrot.slane %v1659_v32, 9  ;;  %v6547_v30 = vld [vmem:[%s8265_s3 + $0x218] sm:$0xff]   ;;  %v2589_v37 = vld [vmem:[#allocation2 + $0x40] sm:$0xf] }
  0xd9   : > { %v5686_v57 = vcombine.low %v2149_v47, %v2159_v51  ;;  %v5719_v58 = vcombine.low %v7252_v40, %v7265_v52  ;;  %v2167_v60 = vor.u32 %v2166_v28, %v2163_v48  ;;  %4802 = vmatprep.mubr.bf16.mxu1 %v6535_v36  ;;  %v2176_v44 = vrot.slane %v2174_v53, 4  ;;  %v2590_v39 = vld [vmem:[#allocation2 + $0x44] sm:$0x1]  ;;  %v2076_v48 = vld [vmem:[#allocation2 + $0x3c] sm:$0xf] }
  0xda   : > { %4884 = vmatmul.mubr.bf16.vlgmr.msra.gmra.mrb[48].mxu0 %v5685_v24  ;;  %v2182_v1 = vrot.slane %v2180_v54, 5  ;;  %v1800_v2 = vrot.slane %v1660_v23, 5  ;;  %v1803_v4 = vrot.slane %v1661_v45, 5  ;;  %v2074_v24 = vld [vmem:[#allocation2 + $0x34] sm:$0xf]  ;;  %v5704_v5 = vrot.slane %v2585_v50, 9 }
  0xdb   : > { %4891 = vmatprep.mubr.bf16.mxu0 %v5718_v16  ;;  %6378 = vmatpush3.bf16.msra.mxu0 %v7148_v38  ;;  %v2168_v35 = vrot.slane %v2167_v60, 4  ;;  %v2695_v6 = vrot.slane %v2586_v55, 5  ;;  %v2698_v8 = vrot.slane %v2587_v56, 5  ;;  %v2177_v11 = vor.u32 %v2176_v44, %v7256_v49  ;;  %v1662_v38 = vld [vmem:[#allocation2 + $0x84] sm:$0xe] }
  0xdc   : > { %6379 = vmatprep.subr.bf16.mxu0 %v6537_v27  ;;  %v1801_v12 = vsel %vm6949_vm13, %v5647_v61, %v1800_v2  ;;  %v1802_v0 = vrot.slane %v1800_v2, 4  ;;  %v2185_v13 = vshrl.u32 %v2073_v42, 16  ;;  %v2188_v19 = vshll.u32 %v2073_v42, 16  ;;  %v2077_v55 = vld [vmem:[#allocation2 + $0x40] sm:$0xf] }
  0xdd   : > { %v2173_v16 = vsel %vm6689_vm2, %v2168_v35, %v7256_v49  ;;  %v7281_v10 = vsel %vm6949_vm13, %v5704_v5, %v2695_v6  ;;  %v2697_v3 = vrot.slane %v2695_v6, 4  ;;  %v2178_v22 = vrot.slane %v2177_v11, 4  ;;  %v2078_v60 = vld [vmem:[#allocation2 + $0x44] sm:$0x1]  ;;  %v1665_v44 = vld [vmem:[#allocation2 + $0x90] sm:$0xe] }
  0xde   : > { %v1804_v25 = vsel %vm6949_vm13, %v1802_v0, %v1803_v4  ;;  %v2187_v26 = vrot.slane %v2185_v13, 4  ;;  %v2194_v29 = vshll.u32 %v2074_v24, 16  ;;  %v2190_v43 = vrot.slane %v2188_v19, 5  ;;  %v1667_v35 = vld [vmem:[#allocation2 + $0x98] sm:$0x1]  ;;  %v6540_v11 = vld [vmem:[#allocation2 + $0x9c] sm:$0xff]  }
  0xdf   : > { %6380 = vmatpush3.bf16.msra.mxu0 %v6537_v27  ;;  %v5663_v31 = vcombine.low %v1801_v12, %v1804_v25  ;;  %v7290_v32 = vsel %vm6949_vm13, %v2697_v3, %v2698_v8  ;;  %v2198_v46 = vshrl.u32 %v2074_v24, 16  ;;  %v2183_v59 = vsel %vm6689_vm2, %v2178_v22, %v2182_v1  ;;  %v6550_v1 = vld [vmem:[%s8265_s3 + $0x220] sm:$0xff]   ;;  %v2591_v12 = vld [vmem:[#allocation2 + $0x48] sm:$0xe] }
  0xe0   : > { %6381 = vmatprep.subr.bf16.mxu0 %v6542_v63  ;;  %v5720_v34 = vcombine.low %v7281_v10, %v7290_v32  ;;  %v2196_v36 = vrot.slane %v2194_v29, 5  ;;  %v2204_v23 = vshll.u32 %v2075_v9, 16  ;;  %v5687_v40 = vcombine.low %v2173_v16, %v2183_v59  ;;  %v2592_v16 = vld [vmem:[#allocation2 + $0x4c] sm:$0xf] }
  0xe1   : > { %4803 = vmatmul.mubr.bf16.gmra.mrb[56].mxu1 %v5663_v31  ;;  %v2191_v41 = vor.u32 %v2190_v43, %v2187_v26  ;;  %v2200_v45 = vrot.slane %v2198_v46, 4  ;;  %v5648_v47 = vrot.slane %v1662_v38, 9  ;;  %v1807_v49 = vrot.slane %v1663_v17, 5  ;;  %v6553_v22 = vld [vmem:[%s8265_s3 + $0x228] sm:$0xff]  }
  0xe2   : > { %4892 = vmatmul.mubr.bf16.gmra.mrb[52].mxu0 %v5686_v57  ;;  %v2206_v28 = vrot.slane %v2204_v23, 5  ;;  %4810 = vmatprep.mubr.bf16.mxu1 %v6539_v14  ;;  %v1810_v27 = vrot.slane %v1664_v20, 5  ;;  %v5705_v50 = vrot.slane %v2588_v21, 9  ;;  %v2702_v53 = vrot.slane %v2589_v37, 5  ;;  %v2593_v21 = vld [vmem:[#allocation2 + $0x50] sm:$0x1] }
  0xe3   : > { %4899 = vmatprep.mubr.bf16.mxu0 %v5719_v58  ;;  %v2192_v51 = vrot.slane %v2191_v41, 4  ;;  %v2201_v52 = vor.u32 %v2200_v45, %v2196_v36  ;;  %v2705_v54 = vrot.slane %v2590_v39, 5  ;;  %6382 = vmatpush3.bf16.msra.mxu0 %v6542_v63  ;;  %v1808_v56 = vsel %vm6949_vm13, %v5648_v47, %v1807_v49  ;;  %v1666_v58 = vld [vmem:[#allocation2 + $0x94] sm:$0xf]  ;;  %v2079_v43 = vld [vmem:[#allocation2 + $0x48] sm:$0xf] }
  0xe4   : > { %v1809_v57 = vrot.slane %v1807_v49, 4  ;;  %v2209_v61 = vshrl.u32 %v2076_v48, 16  ;;  %v2212_v42 = vshll.u32 %v2076_v48, 16  ;;  %6383 = vmatprep.subr.bf16.mxu0 %v6547_v30  ;;  %v7305_v63 = vsel %vm6949_vm13, %v5705_v50, %v2702_v53  ;;  %v2080_v23 = vld [vmem:[#allocation2 + $0x4c] sm:$0xf]  ;;  %v6556_v47 = vld [vmem:[%s8265_s3 + $0x230] sm:$0xff]  }
  0xe5   : > { %v2197_v2 = vsel %vm6689_vm2, %v2192_v51, %v2196_v36  ;;  %v2202_v4 = vrot.slane %v2201_v52, 4  ;;  %v2704_v24 = vrot.slane %v2702_v53, 4  ;;  %v2218_v9 = vshll.u32 %v2077_v55, 16  ;;  %v2081_v45 = vld [vmem:[#allocation2 + $0x50] sm:$0x1] }
  0xe6   : > { %v1811_v5 = vsel %vm6949_vm13, %v1809_v57, %v1810_v27  ;;  %v2211_v6 = vrot.slane %v2209_v61, 4  ;;  %v2214_v8 = vrot.slane %v2212_v42, 5  ;;  %v2222_v38 = vshrl.u32 %v2077_v55, 16  ;;  %v1669_v49 = vld [vmem:[#allocation2 + $0xa0] sm:$0xf] }
  0xe7   : > { %v2207_v0 = vsel %vm6689_vm2, %v2202_v4, %v2206_v28  ;;  %v5664_v13 = vcombine.low %v1808_v56, %v1811_v5  ;;  %v7313_v14 = vsel %vm6949_vm13, %v2704_v24, %v2705_v54  ;;  %6384 = vmatpush3.bf16.msra.mxu0 %v6547_v30  ;;  %v2220_v20 = vrot.slane %v2218_v9, 5  ;;  %v1668_v28 = vld [vmem:[#allocation2 + $0x9c] sm:$0xe]  ;;  %v1670_v27 = vld [vmem:[#allocation2 + $0xa4] sm:$0x1]  ;;  %v6544_v54 = vld [vmem:[#allocation2 + $0xa8] sm:$0xff]  }
  0xe8   : > { %v5688_v3 = vcombine.low %v2197_v2, %v2207_v0  ;;  %v5721_v19 = vcombine.low %v7305_v63, %v7313_v14  ;;  %v2215_v17 = vor.u32 %v2214_v8, %v2211_v6  ;;  %6385 = vmatprep.subr.bf16.mxu0 %v6550_v1  ;;  %v2224_v25 = vrot.slane %v2222_v38, 4  ;;  %v2594_v55 = vld [vmem:[#allocation2 + $0x54] sm:$0xe]  ;;  %v2595_v56 = vld [vmem:[#allocation2 + $0x58] sm:$0xf] }
  0xe9   : > { %4811 = vmatmul.mubr.bf16.gmra.mrb[60].mxu1 %v5664_v13  ;;  %v2228_v26 = vshll.u32 %v2078_v60, 16  ;;  %v5649_v29 = vrot.slane %v1665_v44, 9  ;;  %v1814_v31 = vrot.slane %v1666_v58, 5  ;;  %v1817_v46 = vrot.slane %v1667_v35, 5  ;;  %v2596_v44 = vld [vmem:[#allocation2 + $0x5c] sm:$0x1] }
  0xea   : > { %4900 = vmatmul.mubr.bf16.gmra.mrb[56].mxu0 %v5687_v40  ;;  %v2216_v30 = vrot.slane %v2215_v17, 4  ;;  %4818 = vmatprep.mubr.bf16.mxu1 %v6540_v11  ;;  %v5706_v59 = vrot.slane %v2591_v12, 9  ;;  %v2709_v36 = vrot.slane %v2592_v16, 5  ;;  %v2225_v37 = vor.u32 %v2224_v25, %v2220_v20  ;;  %v2082_v24 = vld [vmem:[#allocation2 + $0x54] sm:$0xf]  ;;  %v6559_v11 = vld [vmem:[%s8265_s3 + $0x238] sm:$0xff]  }
  0xeb   : > { %4907 = vmatprep.mubr.bf16.mxu0 %v5720_v34  ;;  %v2230_v39 = vrot.slane %v2228_v26, 5  ;;  %v1815_v40 = vsel %vm6949_vm13, %v5649_v29, %v1814_v31  ;;  %v1816_v41 = vrot.slane %v1814_v31, 4  ;;  %6386 = vmatpush3.bf16.msra.mxu0 %v6550_v1  ;;  %v2712_v48 = vrot.slane %v2593_v21, 5  ;;  %v2083_v9 = vld [vmem:[#allocation2 + $0x58] sm:$0xf] }
  0xec   : > { %v2221_v10 = vsel %vm6689_vm2, %v2216_v30, %v2220_v20  ;;  %v7332_v32 = vsel %vm6949_vm13, %v5706_v59, %v2709_v36  ;;  %v2711_v34 = vrot.slane %v2709_v36, 4  ;;  %6387 = vmatprep.subr.bf16.mxu0 %v6553_v22  ;;  %v2226_v50 = vrot.slane %v2225_v37, 4  ;;  %v2084_v29 = vld [vmem:[#allocation2 + $0x5c] sm:$0x1]  ;;  %v1673_v37 = vld [vmem:[#allocation2 + $0xb0] sm:$0x1] }
  0xed   : > { %v1818_v51 = vsel %vm6949_vm13, %v1816_v41, %v1817_v46  ;;  %v2233_v52 = vshrl.u32 %v2079_v43, 16  ;;  %v2236_v53 = vshll.u32 %v2079_v43, 16  ;;  %v2242_v61 = vshll.u32 %v2080_v23, 16 }
  0xee   : > { %v5665_v57 = vcombine.low %v1815_v40, %v1818_v51  ;;  %v7338_v60 = vsel %vm6949_vm13, %v2711_v34, %v2712_v48  ;;  %v2246_v42 = vshrl.u32 %v2080_v23, 16  ;;  %v2231_v58 = vsel %vm6689_vm2, %v2226_v50, %v2230_v39  ;;  %v1672_v23 = vld [vmem:[#allocation2 + $0xac] sm:$0xf]  ;;  %v2598_v34 = vld [vmem:[#allocation2 + $0x64] sm:$0xf] }
  0xef   : > { %v5722_v1 = vcombine.low %v7332_v32, %v7338_v60  ;;  %v2235_v2 = vrot.slane %v2233_v52, 4  ;;  %v2238_v4 = vrot.slane %v2236_v53, 5  ;;  %6388 = vmatpush3.bf16.msra.mxu0 %v6553_v22  ;;  %v5689_v35 = vcombine.low %v2221_v10, %v2231_v58  ;;  %v2597_v10 = vld [vmem:[#allocation2 + $0x60] sm:$0xe]  ;;  %v2087_v60 = vld [vmem:[#allocation2 + $0x68] sm:$0x1] }
  0xf0   : > { %v2244_v5 = vrot.slane %v2242_v61, 5  ;;  %v2248_v6 = vrot.slane %v2246_v42, 4  ;;  %v2252_v8 = vshll.u32 %v2081_v45, 16  ;;  %6389 = vmatprep.subr.bf16.mxu0 %v6556_v47  ;;  %v5650_v0 = vrot.slane %v1668_v28, 9  ;;  %v2085_v42 = vld [vmem:[#allocation2 + $0x60] sm:$0xf] }
  0xf1   : > { %4819 = vmatmul.mubr.bf16.gmra.mrb[64].mxu1 %v5665_v57  ;;  %v2239_v12 = vor.u32 %v2238_v4, %v2235_v2  ;;  %v1821_v13 = vrot.slane %v1669_v49, 5  ;;  %v1824_v38 = vrot.slane %v1670_v27, 5  ;;  %v5707_v20 = vrot.slane %v2594_v55, 9 }
  0xf2   : > { %4908 = vmatmul.mubr.bf16.gmra.mrb[60].mxu0 %v5688_v3  ;;  %v2249_v16 = vor.u32 %v2248_v6, %v2244_v5  ;;  %v2254_v17 = vrot.slane %v2252_v8, 5  ;;  %4826 = vmatprep.mubr.bf16.mxu1 %v6544_v54  ;;  %v2716_v21 = vrot.slane %v2595_v56, 5  ;;  %v2719_v3 = vrot.slane %v2596_v44, 5  ;;  %v2599_v54 = vld [vmem:[#allocation2 + $0x68] sm:$0x1] }
  0xf3   : > { %4915 = vmatprep.mubr.bf16.mxu0 %v5721_v19  ;;  %v2240_v22 = vrot.slane %v2239_v12, 4  ;;  %v1822_v25 = vsel %vm6949_vm13, %v5650_v0, %v1821_v13  ;;  %v1823_v26 = vrot.slane %v1821_v13, 4  ;;  %6390 = vmatpush3.bf16.msra.mxu0 %v6556_v47  ;;  %v2257_v14 = vshrl.u32 %v2082_v24, 16  ;;  %v1671_v19 = vld [vmem:[#allocation2 + $0xa8] sm:$0xe]  ;;  %v6545_v47 = vld [vmem:[#allocation2 + $0xb4] sm:$0xff]  }
  0xf4   : > { %v2250_v31 = vrot.slane %v2249_v16, 4  ;;  %v7354_v43 = vsel %vm6949_vm13, %v5707_v20, %v2716_v21  ;;  %v2718_v63 = vrot.slane %v2716_v21, 4  ;;  %6391 = vmatprep.subr.bf16.mxu0 %v6559_v11  ;;  %v2260_v59 = vshll.u32 %v2082_v24, 16  ;;  %v2086_v24 = vld [vmem:[#allocation2 + $0x64] sm:$0xf]  ;;  %v269_v12 = vld [vmem:[%s6666_s22 + $0xf0] sm:$0xff] }
  0xf5   : > { %v2245_v30 = vsel %vm6689_vm2, %v2240_v22, %v2244_v5  ;;  %v1825_v46 = vsel %vm6949_vm13, %v1823_v26, %v1824_v38  ;;  %v2266_v36 = vshll.u32 %v2083_v9, 16  ;;  %v2259_v45 = vrot.slane %v2257_v14, 4  ;;  %v1674_v20 = vld [vmem:[#allocation2 + $0xb4] sm:$0xe]  ;;  %v6572_v14 = vld [vmem:[%s8263_s1] ss:$0 sm:$0xff] }
  0xf6   : > { %v2255_v39 = vsel %vm6689_vm2, %v2250_v31, %v2254_v17  ;;  %v5666_v40 = vcombine.low %v1822_v25, %v1825_v46  ;;  %v7364_v41 = vsel %vm6949_vm13, %v2718_v63, %v2719_v3  ;;  %v2262_v49 = vrot.slane %v2260_v59, 5  ;;  %v270_v17 = vld [vmem:[%s6666_s22 + $0xf8] sm:$0xff] }
  0xf7   : > { %v5690_v48 = vcombine.low %v2245_v30, %v2255_v39  ;;  %v5723_v28 = vcombine.low %v7354_v43, %v7364_v41  ;;  %v2268_v27 = vrot.slane %v2266_v36, 5  ;;  %6392 = vmatpush3.bf16.msra.mxu0 %v6559_v11  ;;  %v2270_v50 = vshrl.u32 %v2083_v9, 16  ;;  %v1675_v3 = vld [vmem:[#allocation2 + $0xb8] sm:$0xf]  ;;  %v1676_v30 = vld [vmem:[#allocation2 + $0xbc] sm:$0x1] }
  0xf8   : > { %v2276_v51 = vshll.u32 %v2084_v29, 16  ;;  %v5651_v52 = vrot.slane %v1671_v19, 9  ;;  %v1828_v53 = vrot.slane %v1672_v23, 5  ;;  %v2263_v55 = vor.u32 %v2262_v49, %v2259_v45  ;;  %v2601_v39 = vld [vmem:[#allocation2 + $0x70] sm:$0xf] }
  0xf9   : > { %4827 = vmatmul.mubr.bf16.gmra.mrb[68].mxu1 %v5666_v40  ;;  %v1831_v56 = vrot.slane %v1673_v37, 5  ;;  %v5708_v57 = vrot.slane %v2597_v10, 9  ;;  %v2723_v61 = vrot.slane %v2598_v34, 5  ;;  %v2272_v44 = vrot.slane %v2270_v50, 4  ;;  %v2600_v37 = vld [vmem:[#allocation2 + $0x6c] sm:$0xe] }
  0xfa   : > { %4916 = vmatmul.mubr.bf16.gmra.mrb[64].mxu0 %v5689_v35  ;;  %v2278_v58 = vrot.slane %v2276_v51, 5  ;;  %4834 = vmatprep.mubr.bf16.mxu1 %v6545_v47  ;;  %v1829_v2 = vsel %vm6949_vm13, %v5651_v52, %v1828_v53  ;;  %v1830_v4 = vrot.slane %v1828_v53, 4  ;;  %v2264_v35 = vrot.slane %v2263_v55, 4  ;;  %v6573_v34 = vld [vmem:[%s8264_s2] ss:$0 sm:$0xff] }
  0xfb   : > { %4923 = vmatprep.mubr.bf16.mxu0 %v5722_v1  ;;  %v7375_v5 = vsel %vm6949_vm13, %v5708_v57, %v2723_v61  ;;  %v2725_v6 = vrot.slane %v2723_v61, 4  ;;  %v2726_v8 = vrot.slane %v2599_v54, 5  ;;  %v2273_v9 = vor.u32 %v2272_v44, %v2268_v27  ;;  %v2602_v53 = vld [vmem:[#allocation2 + $0x74] sm:$0x1]  ;;  %v2088_v61 = vld [vmem:[#allocation2 + $0x6c] sm:$0xf] }
  0xfc   : > { %v1832_v32 = vsel %vm6949_vm13, %v1830_v4, %v1831_v56  ;;  %v2281_v1 = vshrl.u32 %v2085_v42, 16  ;;  %v2284_v11 = vshll.u32 %v2085_v42, 16  ;;  %v2269_v0 = vsel %vm6689_vm2, %v2264_v35, %v2268_v27 }
  0xfd   : > { %v5667_v13 = vcombine.low %v1829_v2, %v1832_v32  ;;  %v7384_v38 = vsel %vm6949_vm13, %v2725_v6, %v2726_v8  ;;  %v2290_v16 = vshll.u32 %v2086_v24, 16  ;;  %v2274_v21 = vrot.slane %v2273_v9, 4  ;;  %v2089_v9 = vld [vmem:[#allocation2 + $0x70] sm:$0xf] }
  0xfe   : > { %v5724_v22 = vcombine.low %v7375_v5, %v7384_v38  ;;  %v2283_v25 = vrot.slane %v2281_v1, 4  ;;  %v2286_v26 = vrot.slane %v2284_v11, 5  ;;  %v2294_v31 = vshrl.u32 %v2086_v24, 16 }
  0xff   : > { %v2292_v29 = vrot.slane %v2290_v16, 5  ;;  %v2300_v63 = vshll.u32 %v2087_v60, 16  ;;  %v307_v19 = vmul.f32 %v6572_v14, %v269_v12  ;;  %v2279_v46 = vsel %vm6689_vm2, %v2274_v21, %v2278_v58  ;;  %v3009_v21 = vld [vmem:[#allocation2 + $0x18] sm:$0xf] }
 0x100   : > { %v2287_v59 = vor.u32 %v2286_v26, %v2283_v25  ;;  %v308_v36 = vmul.f32 %v6572_v14, %v270_v17  ;;  %v5652_v23 = vrot.slane %v1674_v20, 9  ;;  %v5691_v45 = vcombine.low %v2269_v0, %v2279_v46  ;;  %v2090_v0 = vld [vmem:[#allocation2 + $0x74] sm:$0x1]  ;;  %v963_v26 = vld [vmem:[#allocation2 + $0xc0] sm:$0xf] }
 0x101   : > { %v7394_v40 = vpop.f32.mrb[0].mxu0  ;;  %4835 = vmatmul.mubr.bf16.gmra.mrb[72].mxu1 %v5667_v13  ;;  %v2296_v47 = vrot.slane %v2294_v31, 4  ;;  %v2302_v10 = vrot.slane %v2300_v63, 5  ;;  %v345_v49 = vadd.f32 %v6573_v34, %v307_v19  ;;  %v1835_v51 = vrot.slane %v1675_v3, 5 }
 0x102   : > { %4924 = vmatmul.mubr.bf16.gmra.mrb[68].mxu0 %v5690_v48  ;;  %v2288_v27 = vrot.slane %v2287_v59, 4  ;;  %v346_v50 = vadd.f32 %v6573_v34, %v308_v36  ;;  %v1838_v52 = vrot.slane %v1676_v30, 5  ;;  %v7402_v54 = vpop.f32.mrb[1].mxu0  ;;  %v5709_v56 = vrot.slane %v2600_v37, 9  ;;  %v3010_v59 = vld [vmem:[#allocation2 + $0x1c] sm:$0xf] }
 0x103   : > { %4931 = vmatprep.mubr.bf16.mxu0 %v5723_v28  ;;  %v2297_v48 = vor.u32 %v2296_v47, %v2292_v29  ;;  %v377_v55 = vmax.f32 %v345_v49, 0.0  ;;  %v2730_v57 = vrot.slane %v2601_v39, 5  ;;  %v7404_v42 = vpop.f32.mrb[2].mxu0  ;;  %v7410_v43 = vsel %vm6949_vm13, %v5652_v23, %v1835_v51  ;;  %v3011_v39 = vld [vmem:[#allocation2 + $0x20] sm:$0x1] }
 0x104   : > { %v2293_v44 = vsel %vm6689_vm2, %v2288_v27, %v2292_v29  ;;  %v378_v58 = vmax.f32 %v346_v50, 0.0  ;;  %v1837_v41 = vrot.slane %v1835_v51, 4  ;;  %v2733_v8 = vrot.slane %v2602_v53, 5  ;;  %v7427_v63 = vpop.f32.mrb[3].mxu0  ;;  %v2603_v27 = vld [vmem:[#allocation2 + $0x78] sm:$0xe] }
 0x105   : > { %v2298_v28 = vrot.slane %v2297_v48, 4  ;;  %v5903_v2 = vpack.c.bf16 %v377_v55, %v377_v55  ;;  %v7414_v4 = vsel %vm6949_vm13, %v5709_v56, %v2730_v57  ;;  %v2732_v24 = vrot.slane %v2730_v57, 4  ;;  %v2604_v51 = vld [vmem:[#allocation2 + $0x7c] sm:$0xf] }
 0x106   : > { %v5904_v35 = vpack.c.bf16 %v378_v58, %v378_v58  ;;  %v7418_v6 = vsel %vm6949_vm13, %v1837_v41, %v1838_v52  ;;  %v2305_v32 = vshrl.u32 %v2088_v61, 16  ;;  %v2308_v31 = vshll.u32 %v2088_v61, 16  ;;  %v2605_v52 = vld [vmem:[#allocation2 + $0x80] sm:$0x1] }
 0x107   : > { %v2303_v60 = vsel %vm6689_vm2, %v2298_v28, %v2302_v10  ;;  %v788_v1 = vshrl.u32 %v5903_v2, 16  ;;  %v791_v11 = vshll.u32 %v5903_v2, 16  ;;  %v5668_v12 = vcombine.low %v7410_v43, %v7418_v6 }
 0x108   : > { %v5692_v13 = vcombine.low %v2293_v44, %v2303_v60  ;;  %v796_v16 = vshrl.u32 %v5904_v35, 16  ;;  %v799_v17 = vshll.u32 %v5904_v35, 16  ;;  %v2734_v20 = vsel %vm6949_vm13, %v2732_v24, %v2733_v8 }
 0x109   : > { %v790_v25 = vrot.slane %v788_v1, 7  ;;  %v5725_v3 = vcombine.low %v7414_v4, %v2734_v20  ;;  %v2307_v29 = vrot.slane %v2305_v32, 4  ;;  %v2314_v19 = vshll.u32 %v2089_v9, 16  ;;  %v2091_v4 = vld [vmem:[#allocation2 + $0x78] sm:$0xf] }
 0x10a   : > { %4932 = vmatmul.mubr.bf16.gmra.mrb[72].mxu0 %v5691_v45  ;;  %v7432_v14 = vrot.slane %v796_v16, 7  ;;  %v2318_v30 = vshrl.u32 %v2089_v9, 16  ;;  %v2324_v46 = vshll.u32 %v2090_v0, 16  ;;  %v2310_v37 = vrot.slane %v2308_v31, 5  ;;  %v2092_v9 = vld [vmem:[#allocation2 + $0x7c] sm:$0xf] }
 0x10b   : > { %4939 = vmatprep.mubr.bf16.mxu0 %v5724_v22  ;;  %v793_v36 = vor.u32 %v791_v11, %v790_v25  ;;  %v794_v23 = vrot.slane %v790_v25, 4  ;;  %v3058_v45 = vshrl.u32 %v3009_v21, 16  ;;  %v2316_v34 = vrot.slane %v2314_v19, 5  ;;  %v2093_v0 = vld [vmem:[#allocation2 + $0x80] sm:$0x1] }
 0x10c   : > { %v801_v47 = vor.u32 %v799_v17, %v7432_v14  ;;  %v803_v10 = vrot.slane %v7432_v14, 4  ;;  %v2320_v49 = vrot.slane %v2318_v30, 4  ;;  %v2311_v38 = vor.u32 %v2310_v37, %v2307_v29  ;;  %v3012_v16 = vld [vmem:[#allocation2 + $0x24] sm:$0xf]  ;;  %v3013_v25 = vld [vmem:[#allocation2 + $0x28] sm:$0xf] }
 0x10d   : > { %v964_v5 = vsel %vm6734_vm9, %v793_v36, %v963_v26  ;;  %v2326_v22 = vrot.slane %v2324_v46, 5  ;;  %v3060_v50 = vrot.slane %v3058_v45, 4  ;;  %v3061_v55 = vshll.u32 %v3009_v21, 16  ;;  %v3014_v36 = vld [vmem:[#allocation2 + $0x2c] sm:$0x1] }
 0x10e   : > { %v802_v53 = vsel %vm6726_vm8, %v794_v23, %v801_v47  ;;  %965 = vst [vmem:[#allocation2 + $0xc0] sm:$0xf] %v964_v5  ;;  %v2321_v48 = vor.u32 %v2320_v49, %v2316_v34  ;;  %v3067_v56 = vshll.u32 %v3010_v59, 16  ;;  %v2312_v57 = vrot.slane %v2311_v38, 4  ;;  %v2606_v23 = vld [vmem:[#allocation2 + $0x84] sm:$0xe] }
 0x10f   : > { %966 = vst [vmem:[#allocation2 + $0xc4] sm:$0xf] %v802_v53  ;;  %v3071_v61 = vshrl.u32 %v3010_v59, 16  ;;  %v3077_v44 = vshll.u32 %v3011_v39, 16  ;;  %v5710_v58 = vrot.slane %v2603_v27, 9  ;;  %v3063_v7 = vrot.slane %v3061_v55, 5 }
 0x110   : > { %v2322_v41 = vrot.slane %v2321_v48, 4  ;;  %v3069_v28 = vrot.slane %v3067_v56, 5  ;;  %v2737_v2 = vrot.slane %v2604_v51, 5  ;;  %v2317_v24 = vsel %vm6689_vm2, %v2312_v57, %v2316_v34  ;;  %v2094_v55 = vld [vmem:[#allocation2 + $0x84] sm:$0xf] }
 0x111   : > { %v3073_v62 = vrot.slane %v3071_v61, 4  ;;  %v3079_v35 = vrot.slane %v3077_v44, 5  ;;  %v2740_v8 = vrot.slane %v2605_v52, 5  ;;  %v3064_v60 = vor.u32 %v3063_v7, %v3060_v50  ;;  %v2608_v50 = vld [vmem:[#allocation2 + $0x8c] sm:$0x1] }
 0x112   : > { %4940 = vmatmul.mubr.bf16.gmra.mrb[76].mxu0 %v5692_v13  ;;  %v2327_v32 = vsel %vm6689_vm2, %v2322_v41, %v2326_v22  ;;  %v2738_v1 = vsel %vm6949_vm13, %v5710_v58, %v2737_v2  ;;  %v2739_v11 = vrot.slane %v2737_v2, 4  ;;  %v2329_v20 = vshrl.u32 %v2091_v4, 16  ;;  %v2607_v22 = vld [vmem:[#allocation2 + $0x88] sm:$0xf] }
 0x113   : > { %4947 = vmatprep.mubr.bf16.mxu0 %v5725_v3  ;;  %v5693_v17 = vcombine.low %v2317_v24, %v2327_v32  ;;  %v3074_v13 = vor.u32 %v3073_v62, %v3069_v28  ;;  %v2332_v21 = vshll.u32 %v2091_v4, 16  ;;  %v3065_v26 = vrot.slane %v3064_v60, 4  ;;  %v6551_v60 = vld [vmem:[#allocation2 + $0x18] sm:$0xff]  }
 0x114   : > { %v2741_v29 = vsel %vm6949_vm13, %v2739_v11, %v2740_v8  ;;  %v2338_v3 = vshll.u32 %v2092_v9, 16  ;;  %v2342_v31 = vshrl.u32 %v2092_v9, 16  ;;  %v2331_v46 = vrot.slane %v2329_v20, 4  ;;  %v2096_v8 = vld [vmem:[#allocation2 + $0x8c] sm:$0x1] }
 0x115   : > { %v3075_v19 = vrot.slane %v3074_v13, 4  ;;  %v5726_v30 = vcombine.low %v2738_v1, %v2741_v29  ;;  %v2334_v59 = vrot.slane %v2332_v21, 5  ;;  %v3070_v39 = vsel %vm6689_vm2, %v3065_v26, %v3069_v28  ;;  %v3016_v29 = vld [vmem:[#allocation2 + $0x34] sm:$0xf] }
 0x116   : > { %v6549_v37 = vld [vmem:[#allocation2 + $0xc0] sm:$0xff]   ;;  %v2340_v45 = vrot.slane %v2338_v3, 5  ;;  %v2344_v47 = vrot.slane %v2342_v31, 4  ;;  %v2348_v34 = vshll.u32 %v2093_v0, 16  ;;  %v3082_v5 = vshrl.u32 %v3012_v16, 16 }
 0x117   : > { %v3080_v49 = vsel %vm6689_vm2, %v3075_v19, %v3079_v35  ;;  %v2335_v27 = vor.u32 %v2334_v59, %v2331_v46  ;;  %v3085_v38 = vshll.u32 %v3012_v16, 16  ;;  %4842 = vmatprep.mubr.bf16.mxu1 %v6549_v37  ;;  %v3091_v48 = vshll.u32 %v3013_v25, 16  ;;  %v2095_v35 = vld [vmem:[#allocation2 + $0x88] sm:$0xf]  ;;  %v3017_v3 = vld [vmem:[#allocation2 + $0x38] sm:$0x1] }
 0x118   : > { %v5749_v51 = vcombine.low %v3070_v39, %v3080_v49  ;;  %v2345_v52 = vor.u32 %v2344_v47, %v2340_v45  ;;  %v2350_v53 = vrot.slane %v2348_v34, 5  ;;  %4843 = vmatmul.mubr.bf16.gmra.mrb[76].mxu1 %v5668_v12  ;;  %v3084_v57 = vrot.slane %v3082_v5, 4  ;;  %v2609_v59 = vld [vmem:[#allocation2 + $0x90] sm:$0xe]  ;;  %v2610_v47 = vld [vmem:[#allocation2 + $0x94] sm:$0xf] }
 0x119   : > { %v2336_v56 = vrot.slane %v2335_v27, 4  ;;  %v3087_v61 = vrot.slane %v3085_v38, 5  ;;  %v3095_v44 = vshrl.u32 %v3013_v25, 16  ;;  %v3093_v41 = vrot.slane %v3091_v48, 5  ;;  %v2110_v15 = vld [vmem:[#allocation2 + $0xc4] sm:$0xf] }
 0x11a   : > { %4948 = vmatmul.mubr.bf16.gmra.mrb[80].mxu0 %v5693_v17  ;;  %5044 = vmatprep.mubr.bf16.mxu1 %v5749_v51  ;;  %v2346_v58 = vrot.slane %v2345_v52, 4  ;;  %v3101_v7 = vshll.u32 %v3014_v36, 16  ;;  %v5711_v28 = vrot.slane %v2606_v23, 9  ;;  %v2744_v62 = vrot.slane %v2607_v22, 5  ;;  %v7459_v32 = vpop.f32.mrb[0].mxu1 }
 0x11b   : > { %4955 = vmatprep.mubr.bf16.mxu0 %v5726_v30  ;;  %v2341_v2 = vsel %vm6689_vm2, %v2336_v56, %v2340_v45  ;;  %v3088_v4 = vor.u32 %v3087_v61, %v3084_v57  ;;  %v3097_v24 = vrot.slane %v3095_v44, 4  ;;  %v2747_v12 = vrot.slane %v2608_v50, 5  ;;  %v3015_v17 = vld [vmem:[#allocation2 + $0x30] sm:$0xf]  ;;  %v7463_v13 = vpop.f32.mrb[1].mxu1 }
 0x11c   : > { %v2351_v43 = vsel %vm6689_vm2, %v2346_v58, %v2350_v53  ;;  %v3103_v6 = vrot.slane %v3101_v7, 5  ;;  %v2353_v9 = vshrl.u32 %v2094_v55, 16  ;;  %v2745_v16 = vsel %vm6949_vm13, %v5711_v28, %v2744_v62  ;;  %v7467_v36 = vpop.f32.mrb[2].mxu1  ;;  %v6552_v53 = vld [vmem:[#allocation2 + $0x24] sm:$0xff]   ;;  %v2611_v61 = vld [vmem:[#allocation2 + $0x98] sm:$0x1] }
 0x11d   : > { %v5694_v1 = vcombine.low %v2341_v2, %v2351_v43  ;;  %v3089_v11 = vrot.slane %v3088_v4, 4  ;;  %v3098_v0 = vor.u32 %v3097_v24, %v3093_v41  ;;  %v2746_v20 = vrot.slane %v2744_v62, 4  ;;  %v7471_v34 = vpop.f32.mrb[3].mxu1  ;;  %v2097_v2 = vld [vmem:[#allocation2 + $0x90] sm:$0xf] }
 0x11e   : > { %v2355_v21 = vrot.slane %v2353_v9, 4  ;;  %v2356_v25 = vshll.u32 %v2094_v55, 16  ;;  %v2362_v26 = vshll.u32 %v2095_v35, 16  ;;  %v2366_v30 = vshrl.u32 %v2095_v35, 16  ;;  %v2098_v43 = vld [vmem:[#allocation2 + $0x94] sm:$0xf] }
 0x11f   : > { %v3094_v31 = vsel %vm6689_vm2, %v3089_v11, %v3093_v41  ;;  %v3099_v19 = vrot.slane %v3098_v0, 4  ;;  %v2372_v46 = vshll.u32 %v2096_v8, 16  ;;  %v2748_v23 = vsel %vm6949_vm13, %v2746_v20, %v2747_v12  ;;  %v7475_v44 = vpop.f32.mrb[4].mxu0 }
 0x120   : > { %v2358_v37 = vrot.slane %v2356_v25, 5  ;;  %v2364_v39 = vrot.slane %v2362_v26, 5  ;;  %v3106_v45 = vshrl.u32 %v3015_v17, 16  ;;  %5045 = vmatmul.mubr.bf16.vlgmr.msra.gmra.mrb[80].mxu1 %v6551_v60  ;;  %v5727_v27 = vcombine.low %v2745_v16, %v2748_v23  ;;  %v7481_v60 = vpop.f32.mrb[5].mxu0  ;;  %v2099_v16 = vld [vmem:[#allocation2 + $0x98] sm:$0x1] }
 0x121   : > { %v3104_v49 = vsel %vm6689_vm2, %v3099_v19, %v3103_v6  ;;  %v2368_v5 = vrot.slane %v2366_v30, 4  ;;  %v2374_v38 = vrot.slane %v2372_v46, 5  ;;  %v3109_v52 = vshll.u32 %v3015_v17, 16 }
 0x122   : > { %4956 = vmatmul.mubr.bf16.gmra.mrb[84].mxu0 %v5694_v1  ;;  %v5750_v22 = vcombine.low %v3094_v31, %v3104_v49  ;;  %v2359_v50 = vor.u32 %v2358_v37, %v2355_v21  ;;  %v3108_v51 = vrot.slane %v3106_v45, 4  ;;  %v3115_v55 = vshll.u32 %v3016_v29, 16 }
 0x123   : > { %4963 = vmatprep.mubr.bf16.mxu0 %v5727_v27  ;;  %v2369_v48 = vor.u32 %v2368_v5, %v2364_v39  ;;  %v3119_v56 = vshrl.u32 %v3016_v29, 16  ;;  %v3125_v57 = vshll.u32 %v3017_v3, 16  ;;  %v3111_v41 = vrot.slane %v3109_v52, 5  ;;  %v3018_v29 = vld [vmem:[#allocation2 + $0x3c] sm:$0xf]  ;;  %v7485_v3 = vpop.f32.mrb[6].mxu0 }
 0x124   : > { %5052 = vmatprep.mubr.bf16.mxu1 %v5750_v22  ;;  %v2360_v58 = vrot.slane %v2359_v50, 4  ;;  %v5712_v7 = vrot.slane %v2609_v59, 9  ;;  %v2751_v28 = vrot.slane %v2610_v47, 5  ;;  %v3117_v24 = vrot.slane %v3115_v55, 5  ;;  %v3019_v59 = vld [vmem:[#allocation2 + $0x40] sm:$0xf] }
 0x125   : > { %v2370_v4 = vrot.slane %v2369_v48, 4  ;;  %v3121_v62 = vrot.slane %v3119_v56, 4  ;;  %v3127_v35 = vrot.slane %v3125_v57, 5  ;;  %v3112_v12 = vor.u32 %v3111_v41, %v3108_v51  ;;  %v7489_v23 = vpop.f32.mrb[7].mxu0  ;;  %v6554_v27 = vld [vmem:[#allocation2 + $0x30] sm:$0xff]  }
 0x126   : > { %v2365_v6 = vsel %vm6689_vm2, %v2360_v58, %v2364_v39  ;;  %v2752_v8 = vsel %vm6949_vm13, %v5712_v7, %v2751_v28  ;;  %v2753_v9 = vrot.slane %v2751_v28, 4  ;;  %v2754_v0 = vrot.slane %v2611_v61, 5  ;;  %v3020_v22 = vld [vmem:[#allocation2 + $0x44] sm:$0x1]  ;;  %v2612_v56 = vld [vmem:[#allocation2 + $0x9c] sm:$0xe] }
 0x127   : > { %v2375_v1 = vsel %vm6689_vm2, %v2370_v4, %v2374_v38  ;;  %v3122_v11 = vor.u32 %v3121_v62, %v3117_v24  ;;  %v2377_v17 = vshrl.u32 %v2097_v2, 16  ;;  %v3113_v21 = vrot.slane %v3112_v12, 4  ;;  %v2613_v57 = vld [vmem:[#allocation2 + $0xa0] sm:$0xf]  ;;  %v2614_v28 = vld [vmem:[#allocation2 + $0xa4] sm:$0x1] }
 0x128   : > { %v5695_v20 = vcombine.low %v2365_v6, %v2375_v1  ;;  %v2380_v25 = vshll.u32 %v2097_v2, 16  ;;  %v2386_v26 = vshll.u32 %v2098_v43, 16  ;;  %5053 = vmatmul.mubr.bf16.gmra.mrb[84].mxu1 %v6552_v53  ;;  %v2755_v19 = vsel %vm6949_vm13, %v2753_v9, %v2754_v0  ;;  %v7495_v51 = vpop.f32.mrb[4].mxu1  ;;  %v2100_v9 = vld [vmem:[#allocation2 + $0x9c] sm:$0xf] }
 0x129   : > { %v3123_v31 = vrot.slane %v3122_v11, 4  ;;  %v2379_v30 = vrot.slane %v2377_v17, 4  ;;  %v2390_v46 = vshrl.u32 %v2098_v43, 16  ;;  %v3118_v37 = vsel %vm6689_vm2, %v3113_v21, %v3117_v24  ;;  %v7497_v2 = vpop.f32.mrb[5].mxu1  ;;  %v2101_v17 = vld [vmem:[#allocation2 + $0xa0] sm:$0xf] }
 0x12a   : > { %4964 = vmatmul.mubr.bf16.gmra.mrb[88].mxu0 %v5695_v20  ;;  %v5728_v39 = vcombine.low %v2752_v8, %v2755_v19  ;;  %v2382_v45 = vrot.slane %v2380_v25, 5  ;;  %v2388_v47 = vrot.slane %v2386_v26, 5  ;;  %v2396_v38 = vshll.u32 %v2099_v16, 16  ;;  %v2102_v20 = vld [vmem:[#allocation2 + $0xa4] sm:$0x1]  ;;  %v7505_v19 = vpop.f32.mrb[6].mxu1 }
 0x12b   : > { %v3128_v49 = vsel %vm6689_vm2, %v3123_v31, %v3127_v35  ;;  %v2392_v5 = vrot.slane %v2390_v46, 4  ;;  %v3130_v50 = vshrl.u32 %v3018_v29, 16  ;;  %v3133_v48 = vshll.u32 %v3018_v29, 16  ;;  %v3021_v31 = vld [vmem:[#allocation2 + $0x48] sm:$0xf] }
 0x12c   : > { %v5751_v52 = vcombine.low %v3118_v37, %v3128_v49  ;;  %4971 = vmatprep.mubr.bf16.mxu0 %v5728_v39  ;;  %v2383_v53 = vor.u32 %v2382_v45, %v2379_v30  ;;  %v3139_v55 = vshll.u32 %v3019_v59, 16  ;;  %v2398_v58 = vrot.slane %v2396_v38, 5  ;;  %v7507_v39 = vpop.f32.mrb[7].mxu1  ;;  %v6555_v49 = vld [vmem:[#allocation2 + $0x3c] sm:$0xff]   ;;  %v3022_v38 = vld [vmem:[#allocation2 + $0x4c] sm:$0xf] }
 0x12d   : > { %v2393_v61 = vor.u32 %v2392_v5, %v2388_v47  ;;  %v3132_v41 = vrot.slane %v3130_v50, 4  ;;  %v3143_v7 = vshrl.u32 %v3019_v59, 16  ;;  %v3135_v24 = vrot.slane %v3133_v48, 5 }
 0x12e   : > { %5060 = vmatprep.mubr.bf16.mxu1 %v5751_v52  ;;  %v2384_v4 = vrot.slane %v2383_v53, 4  ;;  %v3141_v62 = vrot.slane %v3139_v55, 5  ;;  %v3149_v35 = vshll.u32 %v3020_v22, 16  ;;  %v5713_v12 = vrot.slane %v2612_v56, 9  ;;  %v3023_v55 = vld [vmem:[#allocation2 + $0x50] sm:$0x1] }
 0x12f   : > { %v2394_v43 = vrot.slane %v2393_v61, 4  ;;  %v3145_v6 = vrot.slane %v3143_v7, 4  ;;  %v2758_v8 = vrot.slane %v2613_v57, 5  ;;  %v3136_v11 = vor.u32 %v3135_v24, %v3132_v41  ;;  %v2615_v56 = vld [vmem:[#allocation2 + $0xa8] sm:$0xe] }
 0x130   : > { %v2389_v1 = vsel %vm6689_vm2, %v2384_v4, %v2388_v47  ;;  %v3151_v0 = vrot.slane %v3149_v35, 5  ;;  %v2761_v16 = vrot.slane %v2614_v28, 5  ;;  %5061 = vmatmul.mubr.bf16.gmra.mrb[88].mxu1 %v6554_v27  ;;  %v2401_v59 = vshrl.u32 %v2100_v9, 16  ;;  %v2616_v7 = vld [vmem:[#allocation2 + $0xac] sm:$0xf] }
 0x131   : > { %v2399_v21 = vsel %vm6689_vm2, %v2394_v43, %v2398_v58  ;;  %v3146_v25 = vor.u32 %v3145_v6, %v3141_v62  ;;  %v2759_v26 = vsel %vm6949_vm13, %v5713_v12, %v2758_v8  ;;  %v2760_v29 = vrot.slane %v2758_v8, 4  ;;  %v7511_v22 = vpop.f32.mrb[8].mxu0  ;;  %v2103_v6 = vld [vmem:[#allocation2 + $0xa8] sm:$0xf] }
 0x132   : > { %v5696_v30 = vcombine.low %v2389_v1, %v2399_v21  ;;  %v3137_v46 = vrot.slane %v3136_v11, 4  ;;  %v2404_v37 = vshll.u32 %v2100_v9, 16  ;;  %v2410_v27 = vshll.u32 %v2101_v17, 16  ;;  %v7517_v28 = vpop.f32.mrb[9].mxu0 }
 0x133   : > { %v3147_v45 = vrot.slane %v3146_v25, 4  ;;  %v2762_v47 = vsel %vm6949_vm13, %v2760_v29, %v2761_v16  ;;  %v2414_v5 = vshrl.u32 %v2101_v17, 16  ;;  %v2403_v53 = vrot.slane %v2401_v59, 4  ;;  %v7519_v11 = vpop.f32.mrb[10].mxu0 }
 0x134   : > { %4972 = vmatmul.mubr.bf16.gmra.mrb[92].mxu0 %v5696_v30  ;;  %v3142_v50 = vsel %vm6689_vm2, %v3137_v46, %v3141_v62  ;;  %v5729_v52 = vcombine.low %v2759_v26, %v2762_v47  ;;  %v2406_v48 = vrot.slane %v2404_v37, 5  ;;  %v2412_v61 = vrot.slane %v2410_v27, 5  ;;  %v2617_v62 = vld [vmem:[#allocation2 + $0xb0] sm:$0x1]  ;;  %v2104_v37 = vld [vmem:[#allocation2 + $0xac] sm:$0xf] }
 0x135   : > { %v3152_v57 = vsel %vm6689_vm2, %v3147_v45, %v3151_v0  ;;  %v2416_v58 = vrot.slane %v2414_v5, 4  ;;  %v2420_v41 = vshll.u32 %v2102_v20, 16  ;;  %v3154_v35 = vshrl.u32 %v3021_v31, 16  ;;  %v2105_v45 = vld [vmem:[#allocation2 + $0xb0] sm:$0x1] }
 0x136   : > { %v5752_v4 = vcombine.low %v3142_v50, %v3152_v57  ;;  %4979 = vmatprep.mubr.bf16.mxu0 %v5729_v52  ;;  %v2407_v24 = vor.u32 %v2406_v48, %v2403_v53  ;;  %v3157_v43 = vshll.u32 %v3021_v31, 16  ;;  %v3163_v9 = vshll.u32 %v3022_v38, 16  ;;  %v3024_v48 = vld [vmem:[#allocation2 + $0x54] sm:$0xf] }
 0x137   : > { %v2417_v12 = vor.u32 %v2416_v58, %v2412_v61  ;;  %v2422_v8 = vrot.slane %v2420_v41, 5  ;;  %v3167_v1 = vshrl.u32 %v3022_v38, 16  ;;  %v3156_v16 = vrot.slane %v3154_v35, 4  ;;  %v3025_v41 = vld [vmem:[#allocation2 + $0x58] sm:$0xf] }
 0x138   : > { %5068 = vmatprep.mubr.bf16.mxu1 %v5752_v4  ;;  %v2408_v0 = vrot.slane %v2407_v24, 4  ;;  %v3159_v17 = vrot.slane %v3157_v43, 5  ;;  %v3173_v20 = vshll.u32 %v3023_v55, 16  ;;  %v3165_v25 = vrot.slane %v3163_v9, 5  ;;  %v3026_v43 = vld [vmem:[#allocation2 + $0x5c] sm:$0x1] }
 0x139   : > { %5069 = vmatmul.mubr.bf16.gmra.mrb[92].mxu1 %v6555_v49  ;;  %v2418_v21 = vrot.slane %v2417_v12, 4  ;;  %v3169_v26 = vrot.slane %v3167_v1, 4  ;;  %v5714_v29 = vrot.slane %v2615_v56, 9  ;;  %v2765_v59 = vrot.slane %v2616_v7, 5  ;;  %v6557_v56 = vld [vmem:[#allocation2 + $0x48] sm:$0xff]  }
 0x13a   : > { %v2413_v31 = vsel %vm6689_vm2, %v2408_v0, %v2412_v61  ;;  %v3160_v30 = vor.u32 %v3159_v17, %v3156_v16  ;;  %v3175_v46 = vrot.slane %v3173_v20, 5  ;;  %v2768_v5 = vrot.slane %v2617_v62, 5  ;;  %v2618_v62 = vld [vmem:[#allocation2 + $0xb4] sm:$0xe]  ;;  %v2619_v20 = vld [vmem:[#allocation2 + $0xb8] sm:$0xf] }
 0x13b   : > { %v2423_v47 = vsel %vm6689_vm2, %v2418_v21, %v2422_v8  ;;  %v3170_v27 = vor.u32 %v3169_v26, %v3165_v25  ;;  %v2425_v38 = vshrl.u32 %v2103_v6, 16  ;;  %v2766_v52 = vsel %vm6949_vm13, %v5714_v29, %v2765_v59  ;;  %v7533_v21 = vpop.f32.mrb[11].mxu0 }
 0x13c   : > { %v5697_v50 = vcombine.low %v2413_v31, %v2423_v47  ;;  %v3161_v49 = vrot.slane %v3160_v30, 4  ;;  %v2767_v53 = vrot.slane %v2765_v59, 4  ;;  %v2428_v61 = vshll.u32 %v2103_v6, 16  ;;  %v2620_v30 = vld [vmem:[#allocation2 + $0xbc] sm:$0x1]  ;;  %v7535_v59 = vpop.f32.mrb[8].mxu1 }
 0x13d   : > { %v3171_v55 = vrot.slane %v3170_v27, 4  ;;  %v2427_v57 = vrot.slane %v2425_v38, 4  ;;  %v2434_v58 = vshll.u32 %v2104_v37, 16  ;;  %v2438_v24 = vshrl.u32 %v2104_v37, 16  ;;  %v2106_v27 = vld [vmem:[#allocation2 + $0xb4] sm:$0xf] }
 0x13e   : > { %4980 = vmatmul.mubr.bf16.gmra.mrb[96].mxu0 %v5697_v50  ;;  %v3166_v7 = vsel %vm6689_vm2, %v3161_v49, %v3165_v25  ;;  %v2769_v4 = vsel %vm6949_vm13, %v2767_v53, %v2768_v5  ;;  %v2444_v35 = vshll.u32 %v2105_v45, 16  ;;  %v2430_v9 = vrot.slane %v2428_v61, 5  ;;  %v7537_v5 = vpop.f32.mrb[9].mxu1 }
 0x13f   : > { %v3176_v12 = vsel %vm6689_vm2, %v3171_v55, %v3175_v46  ;;  %v5730_v8 = vcombine.low %v2766_v52, %v2769_v4  ;;  %v2436_v1 = vrot.slane %v2434_v58, 5  ;;  %v2440_v0 = vrot.slane %v2438_v24, 4  ;;  %v2108_v4 = vld [vmem:[#allocation2 + $0xbc] sm:$0x1] }
 0x140   : > { %v5753_v6 = vcombine.low %v3166_v7, %v3176_v12  ;;  %v2446_v16 = vrot.slane %v2444_v35, 5  ;;  %v3178_v17 = vshrl.u32 %v3024_v48, 16  ;;  %v2431_v25 = vor.u32 %v2430_v9, %v2427_v57  ;;  %v2107_v7 = vld [vmem:[#allocation2 + $0xb8] sm:$0xf]  ;;  %v7541_v35 = vpop.f32.mrb[10].mxu1 }
 0x141   : > { %4987 = vmatprep.mubr.bf16.mxu0 %v5730_v8  ;;  %v3181_v26 = vshll.u32 %v3024_v48, 16  ;;  %v3187_v29 = vshll.u32 %v3025_v41, 16  ;;  %v3191_v31 = vshrl.u32 %v3025_v41, 16  ;;  %v2441_v46 = vor.u32 %v2440_v0, %v2436_v1  ;;  %v3027_v8 = vld [vmem:[#allocation2 + $0x60] sm:$0xf] }
 0x142   : > { %5076 = vmatprep.mubr.bf16.mxu1 %v5753_v6  ;;  %v3180_v37 = vrot.slane %v3178_v17, 4  ;;  %v3197_v45 = vshll.u32 %v3026_v43, 16  ;;  %v5715_v47 = vrot.slane %v2618_v62, 9  ;;  %v2432_v38 = vrot.slane %v2431_v25, 4  ;;  %v3028_v9 = vld [vmem:[#allocation2 + $0x64] sm:$0xf] }
 0x143   : > { %5077 = vmatmul.mubr.bf16.gmra.mrb[96].mxu1 %v6557_v56  ;;  %v3183_v50 = vrot.slane %v3181_v26, 5  ;;  %v3189_v49 = vrot.slane %v3187_v29, 5  ;;  %v3193_v52 = vrot.slane %v3191_v31, 4  ;;  %v2442_v53 = vrot.slane %v2441_v46, 4 }
 0x144   : > { %v3199_v48 = vrot.slane %v3197_v45, 5  ;;  %v2772_v55 = vrot.slane %v2619_v20, 5  ;;  %v2775_v57 = vrot.slane %v2620_v30, 5  ;;  %v2437_v61 = vsel %vm6689_vm2, %v2432_v38, %v2436_v1  ;;  %v7547_v20 = vpop.f32.mrb[11].mxu1  ;;  %v6558_v45 = vld [vmem:[#allocation2 + $0x54] sm:$0xff]  }
 0x145   : > { %v3184_v58 = vor.u32 %v3183_v50, %v3180_v37  ;;  %v3194_v41 = vor.u32 %v3193_v52, %v3189_v49  ;;  %v2449_v24 = vshrl.u32 %v2106_v27, 16  ;;  %v2447_v56 = vsel %vm6689_vm2, %v2442_v53, %v2446_v16  ;;  %v7551_v16 = vpop.f32.mrb[12].mxu0 }
 0x146   : > { %v2773_v43 = vsel %vm6949_vm13, %v5715_v47, %v2772_v55  ;;  %v2774_v62 = vrot.slane %v2772_v55, 4  ;;  %v2452_v12 = vshll.u32 %v2106_v27, 16  ;;  %v5698_v6 = vcombine.low %v2437_v61, %v2447_v56  ;;  %v3029_v27 = vld [vmem:[#allocation2 + $0x68] sm:$0x1]  ;;  %v7557_v38 = vpop.f32.mrb[13].mxu0 }
 0x147   : > { %v3185_v0 = vrot.slane %v3184_v58, 4  ;;  %v3195_v1 = vrot.slane %v3194_v41, 4  ;;  %v2451_v17 = vrot.slane %v2449_v24, 4  ;;  %v2458_v29 = vshll.u32 %v2107_v7, 16 }
 0x148   : > { %v2776_v25 = vsel %vm6949_vm13, %v2774_v62, %v2775_v57  ;;  %v2454_v26 = vrot.slane %v2452_v12, 5  ;;  %v2462_v31 = vshrl.u32 %v2107_v7, 16  ;;  %4988 = vmatmul.mubr.bf16.gmra.mrb[100].mxu0 %v5698_v6  ;;  %v2468_v47 = vshll.u32 %v2108_v4, 16  ;;  %v967_v57 = vld [vmem:[#allocation2 + $0xc8] sm:$0x1]  ;;  %v7559_v62 = vpop.f32.mrb[14].mxu0 }
 0x149   : > { %v3190_v30 = vsel %vm6689_vm2, %v3185_v0, %v3189_v49  ;;  %v3200_v46 = vsel %vm6689_vm2, %v3195_v1, %v3199_v48  ;;  %v5731_v37 = vcombine.low %v2773_v43, %v2776_v25  ;;  %v2460_v53 = vrot.slane %v2458_v29, 5  ;;  %v2621_v49 = vld [vmem:[#allocation2 + $0xc0] sm:$0xe]  ;;  %v2622_v4 = vld [vmem:[#allocation2 + $0xc4] sm:$0xf] }
 0x14a   : > { %v5754_v50 = vcombine.low %v3190_v30, %v3200_v46  ;;  %v2455_v52 = vor.u32 %v2454_v26, %v2451_v17  ;;  %v2464_v55 = vrot.slane %v2462_v31, 4  ;;  %v2470_v61 = vrot.slane %v2468_v47, 5  ;;  %v7565_v17 = vpop.f32.mrb[15].mxu0 }
 0x14b   : > { %4995 = vmatprep.mubr.bf16.mxu0 %v5731_v37  ;;  %v3202_v58 = vshrl.u32 %v3027_v8, 16  ;;  %v3205_v41 = vshll.u32 %v3027_v8, 16  ;;  %v3211_v7 = vshll.u32 %v3028_v9, 16  ;;  %v3215_v56 = vshrl.u32 %v3028_v9, 16  ;;  %v2109_v8 = vld [vmem:[#allocation2 + $0xc0] sm:$0xf] }
 0x14c   : > { %5084 = vmatprep.mubr.bf16.mxu1 %v5754_v50  ;;  %v2456_v24 = vrot.slane %v2455_v52, 4  ;;  %v2465_v48 = vor.u32 %v2464_v55, %v2460_v53  ;;  %v3221_v43 = vshll.u32 %v3029_v27, 16  ;;  %v968_v1 = vsel %vm6741_vm10, %v803_v10, %v967_v57 }
 0x14d   : > { %5085 = vmatmul.mubr.bf16.gmra.mrb[100].mxu1 %v6558_v45  ;;  %v3204_v12 = vrot.slane %v3202_v58, 4  ;;  %v3207_v6 = vrot.slane %v3205_v41, 5  ;;  %v3213_v0 = vrot.slane %v3211_v7, 5  ;;  %v3217_v26 = vrot.slane %v3215_v56, 4  ;;  %969 = vst [vmem:[#allocation2 + $0xc8] sm:$0x1] %v968_v1 }
 0x14e   : > { %v2461_v25 = vsel %vm6689_vm2, %v2456_v24, %v2460_v53  ;;  %v2466_v9 = vrot.slane %v2465_v48, 4  ;;  %v3223_v29 = vrot.slane %v3221_v43, 5  ;;  %v7569_v31 = vpop.f32.mrb[12].mxu1  ;;  %v5716_v46 = vrot.slane %v2621_v49, 9  ;;  %v3030_v49 = vld [vmem:[#allocation2 + $0x6c] sm:$0xf] }
 0x14f   : > { %v3208_v30 = vor.u32 %v3207_v6, %v3204_v12  ;;  %v2779_v37 = vrot.slane %v2622_v4, 5  ;;  %v7573_v14 = vadd.f32 %v7402_v54, %v7394_v40  ;;  %v3218_v45 = vor.u32 %v3217_v26, %v3213_v0  ;;  %v7589_v48 = vpop.f32.mrb[13].mxu1  ;;  %v6560_v43 = vld [vmem:[#allocation2 + $0x60] sm:$0xff]   ;;  %v3522_v26 = vld [vmem:[#allocation2 + $0x1c] sm:$0xf] }
 0x150   : > { %v2471_v10 = vsel %vm6689_vm2, %v2466_v9, %v2470_v61  ;;  %v2473_v47 = vshrl.u32 %v2109_v8, 16  ;;  %v2476_v27 = vshll.u32 %v2109_v8, 16  ;;  %v2482_v7 = vshll.u32 %v2110_v15, 16  ;;  %v7597_v1 = vpop.f32.mrb[14].mxu1  ;;  %v3521_v9 = vld [vmem:[#allocation2 + $0x18] sm:$0xe] }
 0x151   : > { %v5699_v50 = vcombine.low %v2461_v25, %v2471_v10  ;;  %v3209_v52 = vrot.slane %v3208_v30, 4  ;;  %v2780_v53 = vsel %vm6949_vm13, %v5716_v46, %v2779_v37  ;;  %v2781_v55 = vrot.slane %v2779_v37, 4 }
 0x152   : > { %v3219_v57 = vrot.slane %v3218_v45, 4  ;;  %v2475_v58 = vrot.slane %v2473_v47, 4  ;;  %v2478_v41 = vrot.slane %v2476_v27, 5  ;;  %v2486_v54 = vshrl.u32 %v2110_v15, 16  ;;  %v7603_v15 = vpop.f32.mrb[15].mxu1 }
 0x153   : > { %4996 = vmatmul.mubr.bf16.gmra.mrb[104].mxu0 %v5699_v50  ;;  %v3214_v40 = vsel %vm6689_vm2, %v3209_v52, %v3213_v0  ;;  %v7583_v61 = vadd.f32 %v7427_v63, %v7404_v42  ;;  %v7587_v24 = vadd.f32 %v7463_v13, %v7459_v32  ;;  %v2484_v12 = vrot.slane %v2482_v7, 5  ;;  %v3031_v0 = vld [vmem:[#allocation2 + $0x70] sm:$0xf]  ;;  %v3032_v13 = vld [vmem:[#allocation2 + $0x74] sm:$0x1] }
 0x154   : > { %v3224_v56 = vsel %vm6689_vm2, %v3219_v57, %v3223_v29  ;;  %v2479_v4 = vor.u32 %v2478_v41, %v2475_v58  ;;  %v7595_v6 = vadd.f32 %v7471_v34, %v7467_v36  ;;  %v2623_v63 = vld [vmem:[#allocation2 + $0xc8] sm:$0x1]  ;;  %v2488_v32 = vrot.slane %v2486_v54, 4  ;;  %v3523_v34 = vld [vmem:[#allocation2 + $0x20] sm:$0x1] }
 0x155   : > { %8278 = vst [vmem:[#allocation4_spill] sm:$0xff] %v7587_v24  ;;  %v5755_v42 = vcombine.low %v3214_v40, %v3224_v56  ;;  %v2111_v8 = vld [vmem:[#allocation2 + $0xc8] sm:$0x1]  ;;  %v3226_v25 = vshrl.u32 %v3030_v49, 16  ;;  %v7601_v29 = vadd.f32 %v7481_v60, %v7475_v44  ;;  %v2782_v30 = vrot.slane %v2623_v63, 5 }
 0x156   : > { %8279 = vst [vmem:[#allocation5_spill] sm:$0xff] %v7595_v6  ;;  %v2480_v46 = vrot.slane %v2479_v4, 4  ;;  %v2492_v37 = vshll.u32 %v2111_v8, 16  ;;  %v3229_v36 = vshll.u32 %v3030_v49, 16  ;;  %v2489_v45 = vor.u32 %v2488_v32, %v2484_v12  ;;  %v3524_v52 = vld [vmem:[#allocation2 + $0x24] sm:$0xe] }
 0x157   : > { %5092 = vmatprep.mubr.bf16.mxu1 %v5755_v42  ;;  %v3228_v47 = vrot.slane %v3226_v25, 4  ;;  %v3235_v27 = vshll.u32 %v3031_v0, 16  ;;  %v3239_v50 = vshrl.u32 %v3031_v0, 16  ;;  %v2783_v44 = vsel %vm6949_vm13, %v2781_v55, %v2782_v30  ;;  %v3525_v56 = vld [vmem:[#allocation2 + $0x28] sm:$0xf] }
 0x158   : > { %v7605_v10 = vpop.f32.mrb[16].mxu0  ;;  %5093 = vmatmul.mubr.bf16.gmra.mrb[104].mxu1 %v6560_v43  ;;  %v2485_v60 = vsel %vm6689_vm2, %v2480_v46, %v2484_v12  ;;  %v2494_v58 = vrot.slane %v2492_v37, 5  ;;  %v3231_v41 = vrot.slane %v3229_v36, 5  ;;  %v5732_v7 = vcombine.low %v2780_v53, %v2783_v44  ;;  %v3526_v32 = vld [vmem:[#allocation2 + $0x2c] sm:$0x1]  ;;  %v7621_v44 = vpop.f32.mrb[16].mxu1 }
 0x159   : > { %v7607_v57 = vpop.f32.mrb[17].mxu0  ;;  %v2490_v49 = vrot.slane %v2489_v45, 4  ;;  %v3237_v40 = vrot.slane %v3235_v27, 5  ;;  %v3241_v54 = vrot.slane %v3239_v50, 4  ;;  %v3245_v42 = vshll.u32 %v3032_v13, 16 }
 0x15a   : > { %v7613_v4 = vpop.f32.mrb[18].mxu0  ;;  %v3232_v0 = vor.u32 %v3231_v41, %v3228_v47  ;;  %v5765_v63 = vrot.slane %v3521_v9, 9  ;;  %v3619_v8 = vrot.slane %v3522_v26, 5  ;;  %5003 = vmatprep.mubr.bf16.mxu0 %v5732_v7  ;;  %v3622_v12 = vrot.slane %v3523_v34, 5  ;;  %v3033_v30 = vld [vmem:[#allocation2 + $0x78] sm:$0xf] }
 0x15b   : > { %v7615_v25 = vpop.f32.mrb[19].mxu0  ;;  %v2495_v55 = vsel %vm6689_vm2, %v2490_v49, %v2494_v58  ;;  %v3242_v43 = vor.u32 %v3241_v54, %v3237_v40  ;;  %v5766_v53 = vrot.slane %v3524_v52, 9  ;;  %v3247_v36 = vrot.slane %v3245_v42, 5  ;;  %v3034_v13 = vld [vmem:[#allocation2 + $0x7c] sm:$0xf]  ;;  %v7637_v49 = vpop.f32.mrb[17].mxu1 }
 0x15c   : > { %v5700_v46 = vcombine.low %v2485_v60, %v2495_v55  ;;  %v3233_v37 = vrot.slane %v3232_v0, 4  ;;  %v3620_v45 = vsel %vm6949_vm13, %v5765_v63, %v3619_v8  ;;  %v3035_v9 = vld [vmem:[#allocation2 + $0x80] sm:$0x1]  ;;  %v3621_v47 = vrot.slane %v3619_v8, 4  ;;  %v3527_v41 = vld [vmem:[#allocation2 + $0x30] sm:$0xe] }
 0x15d   : > { %v3243_v26 = vrot.slane %v3242_v43, 4  ;;  %v3626_v27 = vrot.slane %v3525_v56, 5  ;;  %v3629_v50 = vrot.slane %v3526_v32, 5  ;;  %v7627_v52 = vadd.f32 %v7489_v23, %v7485_v3  ;;  %v3528_v7 = vld [vmem:[#allocation2 + $0x34] sm:$0xf]  ;;  %v7645_v0 = vpop.f32.mrb[18].mxu1 }
 0x15e   : > { %5004 = vmatmul.mubr.bf16.gmra.mrb[108].mxu0 %v5700_v46  ;;  %v3238_v34 = vsel %vm6689_vm2, %v3233_v37, %v3237_v40  ;;  %v7631_v60 = vadd.f32 %v7497_v2, %v7495_v51  ;;  %v7635_v58 = vadd.f32 %v7507_v39, %v7505_v19  ;;  %v6561_v40 = vld [vmem:[#allocation2 + $0x6c] sm:$0xff]   ;;  %v3623_v3 = vsel %vm6949_vm13, %v3621_v47, %v3622_v12  ;;  %v3529_v2 = vld [vmem:[#allocation2 + $0x38] sm:$0x1]  ;;  %v3530_v56 = vld [vmem:[#allocation2 + $0x3c] sm:$0xe]  ;;  %v7649_v32 = vpop.f32.mrb[19].mxu1 }
 0x15f   : > { %v3248_v54 = vsel %vm6689_vm2, %v3243_v26, %v3247_v36  ;;  %v3627_v23 = vsel %vm6949_vm13, %v5766_v53, %v3626_v27  ;;  %v3628_v51 = vrot.slane %v3626_v27, 4  ;;  %v5781_v42 = vcombine.low %v3620_v45, %v3623_v3  ;;  %v3531_v27 = vld [vmem:[#allocation2 + $0x40] sm:$0xf] }
 0x160   : > { %8280 = vst [vmem:[#allocation6_spill] sm:$0xff] %v7631_v60  ;;  %8281 = vst [vmem:[#allocation7_spill] sm:$0xff] %v7635_v58  ;;  %v5756_v39 = vcombine.low %v3238_v34, %v3248_v54  ;;  %v3250_v63 = vshrl.u32 %v3033_v30, 16  ;;  %v3253_v8 = vshll.u32 %v3033_v30, 16  ;;  %v3259_v12 = vshll.u32 %v3034_v13, 16 }
 0x161   : > { %v7647_v19 = vpop.f32.mrb[20].mxu0  ;;  %v3630_v43 = vsel %vm6949_vm13, %v3628_v51, %v3629_v50  ;;  %v3263_v53 = vshrl.u32 %v3034_v13, 16  ;;  %v3269_v46 = vshll.u32 %v3035_v9, 16  ;;  %6393 = vmatprep.mubr.bf16.mxu0 %v5781_v42  ;;  %v5767_v45 = vrot.slane %v3527_v41, 9  ;;  %v3532_v50 = vld [vmem:[#allocation2 + $0x44] sm:$0x1] }
 0x162   : > { %v7651_v55 = vpop.f32.mrb[21].mxu0  ;;  %5100 = vmatprep.mubr.bf16.mxu1 %v5756_v39  ;;  %v5782_v36 = vcombine.low %v3627_v23, %v3630_v43  ;;  %v3252_v26 = vrot.slane %v3250_v63, 4  ;;  %v3255_v47 = vrot.slane %v3253_v8, 5  ;;  %v3261_v34 = vrot.slane %v3259_v12, 5  ;;  %v3036_v8 = vld [vmem:[#allocation2 + $0x84] sm:$0xf] }
 0x163   : > { %v7655_v37 = vpop.f32.mrb[22].mxu0  ;;  %5101 = vmatmul.mubr.bf16.gmra.mrb[108].mxu1 %v6561_v40  ;;  %v3265_v54 = vrot.slane %v3263_v53, 4  ;;  %v3271_v3 = vrot.slane %v3269_v46, 5  ;;  %v3633_v58 = vrot.slane %v3528_v7, 5  ;;  %v3636_v13 = vrot.slane %v3529_v2, 5 }
 0x164   : > { %v7657_v30 = vpop.f32.mrb[23].mxu0  ;;  %v3256_v51 = vor.u32 %v3255_v47, %v3252_v26  ;;  %v7661_v9 = vadd.f32 %v7517_v28, %v7511_v22  ;;  %v5768_v39 = vrot.slane %v3530_v56, 9  ;;  %v3640_v63 = vrot.slane %v3531_v27, 5  ;;  %v3037_v40 = vld [vmem:[#allocation2 + $0x88] sm:$0xf]  ;;  %v7673_v56 = vpop.f32.mrb[20].mxu1 }
 0x165   : > { %v3266_v23 = vor.u32 %v3265_v54, %v3261_v34  ;;  %v3634_v41 = vsel %vm6949_vm13, %v5767_v45, %v3633_v58  ;;  %v3635_v42 = vrot.slane %v3633_v58, 4  ;;  %v3643_v12 = vrot.slane %v3532_v50, 5  ;;  %v3038_v28 = vld [vmem:[#allocation2 + $0x8c] sm:$0x1]  ;;  %v3533_v2 = vld [vmem:[#allocation2 + $0x48] sm:$0xe] }
 0x166   : > { %6394 = vmatmul.mubr.bf16.vlgmr.msra.gmra.mrb[112].mxu0 %v5782_v36  ;;  %v3257_v43 = vrot.slane %v3256_v51, 4  ;;  %v7667_v7 = vadd.f32 %v7533_v21, %v7519_v11  ;;  %v7671_v22 = vadd.f32 %v7537_v5, %v7535_v59  ;;  %v3641_v46 = vsel %vm6949_vm13, %v5768_v39, %v3640_v63  ;;  %v3534_v26 = vld [vmem:[#allocation2 + $0x4c] sm:$0xf]  ;;  %v7679_v47 = vpop.f32.mrb[21].mxu1  ;;  %v3535_v45 = vld [vmem:[#allocation2 + $0x50] sm:$0x1] }
 0x167   : > { %v3267_v53 = vrot.slane %v3266_v23, 4  ;;  %v3637_v58 = vsel %vm6949_vm13, %v3635_v42, %v3636_v13  ;;  %v3642_v36 = vrot.slane %v3640_v63, 4  ;;  %v7685_v59 = vadd.f32 %v7547_v20, %v7541_v35  ;;  %v7687_v27 = vpop.f32.mrb[22].mxu1  ;;  %v6562_v50 = vld [vmem:[#allocation2 + $0x78] sm:$0xff]   ;;  %v3536_v42 = vld [vmem:[#allocation2 + $0x54] sm:$0xe] }
 0x168   : > { %8282 = vst [vmem:[#allocation8_spill] sm:$0xff] %v7671_v22  ;;  %v3262_v11 = vsel %vm6689_vm2, %v3257_v43, %v3261_v34  ;;  %v5783_v21 = vcombine.low %v3634_v41, %v3637_v58  ;;  %v3274_v5 = vshrl.u32 %v3036_v8, 16  ;;  %v3277_v13 = vshll.u32 %v3036_v8, 16  ;;  %v7693_v23 = vpop.f32.mrb[23].mxu1  ;;  %v3537_v63 = vld [vmem:[#allocation2 + $0x58] sm:$0xf] }
 0x169   : > { %8283 = vst [vmem:[#allocation9_spill] sm:$0xff] %v7685_v59  ;;  %v3272_v54 = vsel %vm6689_vm2, %v3267_v53, %v3271_v3  ;;  %v3644_v51 = vsel %vm6949_vm13, %v3642_v36, %v3643_v12  ;;  %v3283_v39 = vshll.u32 %v3037_v40, 16  ;;  %v3287_v20 = vshrl.u32 %v3037_v40, 16  ;;  %v3538_v3 = vld [vmem:[#allocation2 + $0x5c] sm:$0x1] }
 0x16a   : > { %v5757_v34 = vcombine.low %v3262_v11, %v3272_v54  ;;  %6397 = vmatprep.mubr.bf16.mxu0 %v5783_v21  ;;  %v5784_v41 = vcombine.low %v3641_v46, %v3644_v51  ;;  %v3276_v35 = vrot.slane %v3274_v5, 4  ;;  %v3279_v43 = vrot.slane %v3277_v13, 5  ;;  %v3039_v36 = vld [vmem:[#allocation2 + $0x90] sm:$0xf]  ;;  %v7699_v11 = vpop.f32.mrb[24].mxu1 }
 0x16b   : > { %v3285_v58 = vrot.slane %v3283_v39, 5  ;;  %v3293_v59 = vshll.u32 %v3038_v28, 16  ;;  %v5769_v22 = vrot.slane %v3533_v2, 9  ;;  %v3289_v53 = vrot.slane %v3287_v20, 4  ;;  %v3040_v54 = vld [vmem:[#allocation2 + $0x94] sm:$0xf] }
 0x16c   : > { %5108 = vmatprep.mubr.bf16.mxu1 %v5757_v34  ;;  %v3647_v60 = vrot.slane %v3534_v26, 5  ;;  %v3650_v12 = vrot.slane %v3535_v45, 5  ;;  %v7697_v8 = vadd.f32 %v7557_v38, %v7551_v16  ;;  %v3280_v40 = vor.u32 %v3279_v43, %v3276_v35  ;;  %v3041_v16 = vld [vmem:[#allocation2 + $0x98] sm:$0x1]  ;;  %v7707_v13 = vpop.f32.mrb[25].mxu1  ;;  %v6563_v20 = vld [vmem:[#allocation2 + $0x84] sm:$0xff]  }
 0x16d   : > { %5109 = vmatmul.mubr.bf16.gmra.mrb[112].mxu1 %v6562_v50  ;;  %v3295_v46 = vrot.slane %v3293_v59, 5  ;;  %v5770_v21 = vrot.slane %v3536_v42, 9  ;;  %v3654_v5 = vrot.slane %v3537_v63, 5  ;;  %v3290_v2 = vor.u32 %v3289_v53, %v3285_v58 }
 0x16e   : > { %8284 = vst [vmem:[#allocation10_spill] sm:$0xff] %v7697_v8  ;;  %6398 = vmatmul.mubr.bf16.gmra.mrb[116].mxu0 %v5784_v41  ;;  %v3648_v26 = vsel %vm6949_vm13, %v5769_v22, %v3647_v60  ;;  %v3649_v45 = vrot.slane %v3647_v60, 4  ;;  %v3657_v51 = vrot.slane %v3538_v3, 5  ;;  %v3281_v50 = vrot.slane %v3280_v40, 4  ;;  %v3539_v41 = vld [vmem:[#allocation2 + $0x60] sm:$0xe] }
 0x16f   : > { %v7701_v28 = vpop.f32.mrb[24].mxu0  ;;  %v3655_v59 = vsel %vm6949_vm13, %v5770_v21, %v3654_v5  ;;  %v3656_v39 = vrot.slane %v3654_v5, 4  ;;  %v7713_v34 = vadd.f32 %v7565_v17, %v7559_v62  ;;  %v7717_v22 = vpop.f32.mrb[26].mxu1  ;;  %v3291_v60 = vrot.slane %v3290_v2, 4  ;;  %v3540_v62 = vld [vmem:[#allocation2 + $0x64] sm:$0xf] }
 0x170   : > { %v7705_v38 = vpop.f32.mrb[25].mxu0  ;;  %v3651_v42 = vsel %vm6949_vm13, %v3649_v45, %v3650_v12  ;;  %v7723_v63 = vadd.f32 %v7589_v48, %v7569_v31  ;;  %v7727_v43 = vadd.f32 %v7603_v15, %v7597_v1  ;;  %v7731_v3 = vpop.f32.mrb[27].mxu1  ;;  %v3286_v53 = vsel %vm6689_vm2, %v3281_v50, %v3285_v58  ;;  %v3541_v5 = vld [vmem:[#allocation2 + $0x68] sm:$0x1]  ;;  %v3542_v45 = vld [vmem:[#allocation2 + $0x6c] sm:$0xe] }
 0x171   : > { %8285 = vst [vmem:[#allocation11_spill] sm:$0xff] %v7713_v34  ;;  %v7715_v35 = vpop.f32.mrb[26].mxu0  ;;  %v5785_v40 = vcombine.low %v3648_v26, %v3651_v42  ;;  %v3658_v12 = vsel %vm6949_vm13, %v3656_v39, %v3657_v51  ;;  %v3298_v21 = vshrl.u32 %v3039_v36, 16  ;;  %v7737_v31 = vpop.f32.mrb[28].mxu1  ;;  %v3296_v48 = vsel %vm6689_vm2, %v3291_v60, %v3295_v46  ;;  %v3543_v26 = vld [vmem:[#allocation2 + $0x70] sm:$0xf] }
 0x172   : > { %8286 = vst [vmem:[#allocation12_spill] sm:$0xff] %v7723_v63  ;;  %8287 = vst [vmem:[#allocation13_spill] sm:$0xff] %v7727_v43  ;;  %v7729_v17 = vpop.f32.mrb[27].mxu0  ;;  %v5786_v1 = vcombine.low %v3655_v59, %v3658_v12  ;;  %v3301_v15 = vshll.u32 %v3039_v36, 16  ;;  %v3307_v2 = vshll.u32 %v3040_v54, 16  ;;  %v5758_v43 = vcombine.low %v3286_v53, %v3296_v48  ;;  %v7741_v50 = vpop.f32.mrb[29].mxu1 }
 0x173   : > { %6401 = vmatprep.mubr.bf16.mxu0 %v5785_v40  ;;  %v3300_v63 = vrot.slane %v3298_v21, 4  ;;  %v3311_v6 = vshrl.u32 %v3040_v54, 16  ;;  %v3317_v58 = vshll.u32 %v3041_v16, 16  ;;  %v5771_v42 = vrot.slane %v3539_v41, 9  ;;  %v3544_v34 = vld [vmem:[#allocation2 + $0x74] sm:$0x1] }
 0x174   : > { %v3303_v51 = vrot.slane %v3301_v15, 5  ;;  %v3309_v39 = vrot.slane %v3307_v2, 5  ;;  %v3661_v24 = vrot.slane %v3540_v62, 5  ;;  %5116 = vmatprep.mubr.bf16.mxu1 %v5758_v43  ;;  %v3664_v59 = vrot.slane %v3541_v5, 5  ;;  %v7747_v60 = vpop.f32.mrb[30].mxu1  ;;  %v6564_v48 = vld [vmem:[#allocation2 + $0x90] sm:$0xff]  }
 0x175   : > { %v3313_v8 = vrot.slane %v3311_v6, 4  ;;  %v3319_v46 = vrot.slane %v3317_v58, 5  ;;  %v7745_v36 = vadd.f32 %v7607_v57, %v7605_v10  ;;  %5117 = vmatmul.mubr.bf16.gmra.mrb[116].mxu1 %v6563_v20  ;;  %v5772_v41 = vrot.slane %v3542_v45, 9  ;;  %v3042_v62 = vld [vmem:[#allocation2 + $0x9c] sm:$0xf]  ;;  %v7755_v57 = vpop.f32.mrb[31].mxu1 }
 0x176   : > { %6402 = vmatmul.mubr.bf16.gmra.mrb[120].mxu0 %v5786_v1  ;;  %v3304_v54 = vor.u32 %v3303_v51, %v3300_v63  ;;  %v3662_v16 = vsel %vm6949_vm13, %v5771_v42, %v3661_v24  ;;  %v3663_v53 = vrot.slane %v3661_v24, 4  ;;  %v3668_v43 = vrot.slane %v3543_v26, 5  ;;  %v3043_v10 = vld [vmem:[#allocation2 + $0xa0] sm:$0xf]  ;;  %v3545_v5 = vld [vmem:[#allocation2 + $0x78] sm:$0xe] }
 0x177   : > { %v3314_v40 = vor.u32 %v3313_v8, %v3309_v39  ;;  %v3671_v6 = vrot.slane %v3544_v34, 5  ;;  %v7753_v12 = vadd.f32 %v7615_v25, %v7613_v4  ;;  %v6035_v63 = vadd.f32 %v7637_v49, %v7621_v44  ;;  %v3044_v8 = vld [vmem:[#allocation2 + $0xa4] sm:$0x1]  ;;  %v3546_v15 = vld [vmem:[#allocation2 + $0x7c] sm:$0xf] }
 0x178   : > { %v3305_v21 = vrot.slane %v3304_v54, 4  ;;  %v3665_v20 = vsel %vm6949_vm13, %v3663_v53, %v3664_v59  ;;  %v6038_v24 = vadd.f32 %v7649_v32, %v7645_v0  ;;  %v3669_v4 = vsel %vm6949_vm13, %v5772_v41, %v3668_v43  ;;  %v3547_v58 = vld [vmem:[#allocation2 + $0x80] sm:$0x1] }
 0x179   : > { %v3315_v34 = vrot.slane %v3314_v40, 4  ;;  %v5787_v1 = vcombine.low %v3662_v16, %v3665_v20  ;;  %v3670_v25 = vrot.slane %v3668_v43, 4  ;;  %v7772_v49 = vadd.f32 %v6035_v63, %v7573_v14  ;;  %v3549_v43 = vld [vmem:[#allocation2 + $0x88] sm:$0xf] }
 0x17a   : > { %v7765_v2 = vpop.f32.mrb[28].mxu0  ;;  %v3310_v44 = vsel %vm6689_vm2, %v3305_v21, %v3309_v39  ;;  %v7775_v0 = vadd.f32 %v6038_v24, %v7583_v61  ;;  %v3322_v32 = vshrl.u32 %v3042_v62, 16  ;;  %v3325_v59 = vshll.u32 %v3042_v62, 16  ;;  %v3548_v39 = vld [vmem:[#allocation2 + $0x84] sm:$0xe] }
 0x17b   : > { %v7767_v45 = vpop.f32.mrb[32].mxu1  ;;  %v7777_v26 = vpop.f32.mrb[29].mxu0  ;;  %v3320_v51 = vsel %vm6689_vm2, %v3315_v34, %v3319_v46  ;;  %6405 = vmatprep.mubr.bf16.mxu0 %v5787_v1  ;;  %v3672_v42 = vsel %vm6949_vm13, %v3670_v25, %v3671_v6  ;;  %v3331_v54 = vshll.u32 %v3043_v10, 16  ;;  %v3335_v40 = vshrl.u32 %v3043_v10, 16  ;;  %v3550_v62 = vld [vmem:[#allocation2 + $0x8c] sm:$0x1] }
 0x17c   : > { %v7783_v16 = vpop.f32.mrb[30].mxu0  ;;  %v7785_v14 = vpop.f32.mrb[33].mxu1  ;;  %v5759_v61 = vcombine.low %v3310_v44, %v3320_v51  ;;  %v5788_v53 = vcombine.low %v3669_v4, %v3672_v42  ;;  %v3324_v41 = vrot.slane %v3322_v32, 4  ;;  %v3327_v46 = vrot.slane %v3325_v59, 5 }
 0x17d   : > { %v7787_v21 = vpop.f32.mrb[31].mxu0  ;;  %v7789_v20 = vpop.f32.mrb[34].mxu1  ;;  %v3333_v63 = vrot.slane %v3331_v54, 5  ;;  %v3341_v24 = vshll.u32 %v3044_v8, 16  ;;  %v5773_v6 = vrot.slane %v3545_v5, 9  ;;  %v3337_v34 = vrot.slane %v3335_v40, 4 }
 0x17e   : > { %5124 = vmatprep.mubr.bf16.mxu1 %v5759_v61  ;;  %6406 = vmatmul.mubr.bf16.gmra.mrb[124].mxu0 %v5788_v53  ;;  %v3675_v1 = vrot.slane %v3546_v15, 5  ;;  %v3678_v25 = vrot.slane %v3547_v58, 5  ;;  %v7793_v4 = vadd.f32 %v7651_v55, %v7647_v19  ;;  %v7795_v10 = vpop.f32.mrb[35].mxu1  ;;  %v3328_v44 = vor.u32 %v3327_v46, %v3324_v41  ;;  %v3045_v61 = vld [vmem:[#allocation2 + $0xa8] sm:$0xf] }
 0x17f   : > { %5125 = vmatmul.mubr.bf16.gmra.mrb[120].mxu1 %v6564_v48  ;;  %v3343_v32 = vrot.slane %v3341_v24, 5  ;;  %v5774_v51 = vrot.slane %v3548_v39, 9  ;;  %v3682_v42 = vrot.slane %v3549_v43, 5  ;;  %v3338_v59 = vor.u32 %v3337_v34, %v3333_v63  ;;  %v3046_v48 = vld [vmem:[#allocation2 + $0xac] sm:$0xf]  ;;  %v6565_v24 = vld [vmem:[#allocation2 + $0x9c] sm:$0xff]  }
 0x180   : > { %v3676_v8 = vsel %vm6949_vm13, %v5773_v6, %v3675_v1  ;;  %v3677_v5 = vrot.slane %v3675_v1, 4  ;;  %v3685_v54 = vrot.slane %v3550_v62, 5  ;;  %v3329_v15 = vrot.slane %v3328_v44, 4  ;;  %v3047_v43 = vld [vmem:[#allocation2 + $0xb0] sm:$0x1] }
 0x181   : > { %v3683_v58 = vsel %vm6949_vm13, %v5774_v51, %v3682_v42  ;;  %v3684_v19 = vrot.slane %v3682_v42, 4  ;;  %v7803_v55 = vadd.f32 %v7657_v30, %v7655_v37  ;;  %v3339_v53 = vrot.slane %v3338_v59, 4  ;;  %v3551_v62 = vld [vmem:[#allocation2 + $0x90] sm:$0xe]  ;;  %v3552_v34 = vld [vmem:[#allocation2 + $0x94] sm:$0xf] }
 0x182   : > { %v3679_v39 = vsel %vm6949_vm13, %v3677_v5, %v3678_v25  ;;  %v6041_v41 = vadd.f32 %v7679_v47, %v7673_v56  ;;  %v6044_v40 = vadd.f32 %v7693_v23, %v7687_v27  ;;  %v3334_v46 = vsel %vm6689_vm2, %v3329_v15, %v3333_v63  ;;  %v3553_v27 = vld [vmem:[#allocation2 + $0x98] sm:$0x1]  ;;  %v3554_v23 = vld [vmem:[#allocation2 + $0x9c] sm:$0xe]  ;;  %v3555_v63 = vld [vmem:[#allocation2 + $0xa0] sm:$0xf] }
 0x183   : > { %v5789_v6 = vcombine.low %v3676_v8, %v3679_v39  ;;  %v3686_v37 = vsel %vm6949_vm13, %v3684_v19, %v3685_v54  ;;  %v3346_v30 = vshrl.u32 %v3045_v61, 16  ;;  %v3344_v1 = vsel %vm6689_vm2, %v3339_v53, %v3343_v32  ;;  %v3556_v8 = vld [vmem:[#allocation2 + $0xa4] sm:$0x1] }
 0x184   : > { %v5790_v25 = vcombine.low %v3683_v58, %v3686_v37  ;;  %v7818_v56 = vadd.f32 %v6041_v41, %v7601_v29  ;;  %v7821_v47 = vadd.f32 %v6044_v40, %v7627_v52  ;;  %v5760_v44 = vcombine.low %v3334_v46, %v3344_v1 }
 0x185   : > { %6409 = vmatprep.mubr.bf16.mxu0 %v5789_v6  ;;  %v3348_v51 = vrot.slane %v3346_v30, 4  ;;  %v3349_v42 = vshll.u32 %v3045_v61, 16  ;;  %v3355_v59 = vshll.u32 %v3046_v48, 16  ;;  %v3359_v32 = vshrl.u32 %v3046_v48, 16 }
 0x186   : > { %v7823_v5 = vpop.f32.mrb[32].mxu0  ;;  %6410 = vmatmul.mubr.bf16.gmra.mrb[128].mxu0 %v5790_v25  ;;  %v3365_v54 = vshll.u32 %v3047_v43, 16  ;;  %v5775_v15 = vrot.slane %v3551_v62, 9  ;;  %v3689_v29 = vrot.slane %v3552_v34, 5  ;;  %5132 = vmatprep.mubr.bf16.mxu1 %v5760_v44  ;;  %v3692_v53 = vrot.slane %v3553_v27, 5 }
 0x187   : > { %v7825_v58 = vpop.f32.mrb[33].mxu0  ;;  %v3351_v52 = vrot.slane %v3349_v42, 5  ;;  %v3357_v19 = vrot.slane %v3355_v59, 5  ;;  %v7829_v39 = vadd.f32 %v7705_v38, %v7701_v28  ;;  %5133 = vmatmul.mubr.bf16.gmra.mrb[124].mxu1 %v6565_v24  ;;  %v3361_v41 = vrot.slane %v3359_v32, 4  ;;  %v3048_v34 = vld [vmem:[#allocation2 + $0xb4] sm:$0xf] }
 0x188   : > { %v7831_v61 = vpop.f32.mrb[34].mxu0  ;;  %v3367_v40 = vrot.slane %v3365_v54, 5  ;;  %v3690_v48 = vsel %vm6949_vm13, %v5775_v15, %v3689_v29  ;;  %v3691_v43 = vrot.slane %v3689_v29, 4  ;;  %v5776_v37 = vrot.slane %v3554_v23, 9  ;;  %v3049_v27 = vld [vmem:[#allocation2 + $0xb8] sm:$0xf] }
 0x189   : > { %v7835_v46 = vpop.f32.mrb[35].mxu0  ;;  %v3352_v6 = vor.u32 %v3351_v52, %v3348_v51  ;;  %v3696_v30 = vrot.slane %v3555_v63, 5  ;;  %v3699_v62 = vrot.slane %v3556_v8, 5  ;;  %v3362_v28 = vor.u32 %v3361_v41, %v3357_v19  ;;  %v3050_v59 = vld [vmem:[#allocation2 + $0xbc] sm:$0x1]  ;;  %v6566_v52 = vld [vmem:[#allocation2 + $0xa8] sm:$0xff]  }
 0x18a   : > { %v7837_v1 = vpop.f32.mrb[36].mxu1  ;;  %v3693_v38 = vsel %vm6949_vm13, %v3691_v43, %v3692_v53  ;;  %v7843_v24 = vadd.f32 %v7729_v17, %v7715_v35  ;;  %v6047_v25 = vadd.f32 %v7707_v13, %v7699_v11  ;;  %v3557_v8 = vld [vmem:[#allocation2 + $0xa8] sm:$0xe]  ;;  %v6050_v11 = vadd.f32 %v7731_v3, %v7717_v22  ;;  %v3558_v17 = vld [vmem:[#allocation2 + $0xac] sm:$0xf] }
 0x18b   : > { %v7847_v44 = vpop.f32.mrb[37].mxu1  ;;  %v3353_v23 = vrot.slane %v3352_v6, 4  ;;  %v5791_v63 = vcombine.low %v3690_v48, %v3693_v38  ;;  %v3697_v51 = vsel %vm6949_vm13, %v5776_v37, %v3696_v30  ;;  %v3698_v42 = vrot.slane %v3696_v30, 4  ;;  %v3559_v43 = vld [vmem:[#allocation2 + $0xb0] sm:$0x1] }
 0x18c   : > { %v7851_v32 = vpop.f32.mrb[38].mxu1  ;;  %v3363_v54 = vrot.slane %v3362_v28, 4  ;;  %v7854_v35 = vadd.f32 %v6047_v25, %v7661_v9  ;;  %v3370_v13 = vshrl.u32 %v3048_v34, 16  ;;  %v3373_v41 = vshll.u32 %v3048_v34, 16  ;;  %v3560_v30 = vld [vmem:[#allocation2 + $0xb4] sm:$0xe] }
 0x18d   : > { %v7858_v15 = vpop.f32.mrb[39].mxu1  ;;  %v3358_v29 = vsel %vm6689_vm2, %v3353_v23, %v3357_v19  ;;  %6413 = vmatprep.mubr.bf16.mxu0 %v5791_v63  ;;  %v3700_v53 = vsel %vm6949_vm13, %v3698_v42, %v3699_v62  ;;  %v3379_v48 = vshll.u32 %v3049_v27, 16  ;;  %v7869_v6 = vadd.f32 %v6050_v11, %v7667_v7  ;;  %v3561_v19 = vld [vmem:[#allocation2 + $0xb8] sm:$0xf]  ;;  %v3562_v23 = vld [vmem:[#allocation2 + $0xbc] sm:$0x1] }
 0x18e   : > { %8288 = vst [vmem:[#allocation14_spill] sm:$0xff] %v7854_v35  ;;  %v7864_v9 = vpop.f32.mrb[36].mxu0  ;;  %v3368_v22 = vsel %vm6689_vm2, %v3363_v54, %v3367_v40  ;;  %v5792_v3 = vcombine.low %v3697_v51, %v3700_v53  ;;  %v3372_v37 = vrot.slane %v3370_v13, 4  ;;  %v3375_v25 = vrot.slane %v3373_v41, 5 }
 0x18f   : > { %v7871_v28 = vpop.f32.mrb[37].mxu0  ;;  %v5761_v38 = vcombine.low %v3358_v29, %v3368_v22  ;;  %v3381_v62 = vrot.slane %v3379_v48, 5  ;;  %v3383_v34 = vshrl.u32 %v3049_v27, 16  ;;  %v3389_v42 = vshll.u32 %v3050_v59, 16 }
 0x190   : > { %v7873_v63 = vpop.f32.mrb[38].mxu0  ;;  %6414 = vmatmul.mubr.bf16.gmra.mrb[132].mxu0 %v5792_v3  ;;  %v5777_v35 = vrot.slane %v3557_v8, 9  ;;  %v3703_v40 = vrot.slane %v3558_v17, 5  ;;  %v3706_v51 = vrot.slane %v3559_v43, 5  ;;  %v3376_v7 = vor.u32 %v3375_v25, %v3372_v37 }
 0x191   : > { %v7875_v54 = vpop.f32.mrb[39].mxu0  ;;  %5140 = vmatprep.mubr.bf16.mxu1 %v5761_v38  ;;  %v3385_v11 = vrot.slane %v3383_v34, 4  ;;  %v7879_v13 = vadd.f32 %v7777_v26, %v7765_v2  ;;  %v5778_v29 = vrot.slane %v3560_v30, 9  ;;  %v3391_v27 = vrot.slane %v3389_v42, 5  ;;  %v3051_v2 = vld [vmem:[#allocation2 + $0xc0] sm:$0xf] }
 0x192   : > { %v7881_v53 = vpop.f32.mrb[40].mxu1  ;;  %5141 = vmatmul.mubr.bf16.gmra.mrb[128].mxu1 %v6566_v52  ;;  %v3704_v59 = vsel %vm6949_vm13, %v5777_v35, %v3703_v40  ;;  %v3705_v8 = vrot.slane %v3703_v40, 4  ;;  %v3710_v17 = vrot.slane %v3561_v19, 5  ;;  %v3377_v48 = vrot.slane %v3376_v7, 4  ;;  %v3052_v19 = vld [vmem:[#allocation2 + $0xc4] sm:$0xf] }
 0x193   : > { %v7885_v41 = vpop.f32.mrb[41].mxu1  ;;  %v3386_v43 = vor.u32 %v3385_v11, %v3381_v62  ;;  %v3713_v22 = vrot.slane %v3562_v23, 5  ;;  %v7889_v3 = vadd.f32 %v7787_v21, %v7783_v16  ;;  %v6053_v30 = vadd.f32 %v7741_v50, %v7737_v31  ;;  %v8289_v42 = vld [vmem:[#allocation10_spill] sm:$0xff]  ;;  %v3563_v50 = vld [vmem:[#allocation2 + $0xc0] sm:$0xe] }
 0x194   : > { %v7891_v26 = vpop.f32.mrb[42].mxu1  ;;  %v3707_v52 = vsel %vm6949_vm13, %v3705_v8, %v3706_v51  ;;  %v3711_v35 = vsel %vm6949_vm13, %v5778_v29, %v3710_v17  ;;  %v3712_v37 = vrot.slane %v3710_v17, 4  ;;  %v3382_v16 = vsel %vm6689_vm2, %v3377_v48, %v3381_v62  ;;  %v3053_v51 = vld [vmem:[#allocation2 + $0xc8] sm:$0x1]  ;;  %v6567_v29 = vld [vmem:[#allocation2 + $0xb4] sm:$0xff]  }
 0x195   : > { %v7899_v38 = vpop.f32.mrb[43].mxu1  ;;  %v3387_v21 = vrot.slane %v3386_v43, 4  ;;  %v5793_v25 = vcombine.low %v3704_v59, %v3707_v52  ;;  %v6056_v34 = vadd.f32 %v7755_v57, %v7747_v60  ;;  %v7908_v40 = vadd.f32 %v6053_v30, %v8289_v42  ;;  %v8290_v59 = vld [vmem:[#allocation11_spill] sm:$0xff]  ;;  %v3564_v57 = vld [vmem:[#allocation2 + $0xc4] sm:$0xf] }
 0x196   : > { %v3714_v23 = vsel %vm6949_vm13, %v3712_v37, %v3713_v22  ;;  %v3394_v7 = vshrl.u32 %v3051_v2, 16  ;;  %v3397_v31 = vshll.u32 %v3051_v2, 16  ;;  %v3403_v60 = vshll.u32 %v3052_v19, 16  ;;  %v3565_v17 = vld [vmem:[#allocation2 + $0xc8] sm:$0x1] }
 0x197   : > { %v3392_v11 = vsel %vm6689_vm2, %v3387_v21, %v3391_v27  ;;  %6417 = vmatprep.mubr.bf16.mxu0 %v5793_v25  ;;  %v5794_v62 = vcombine.low %v3711_v35, %v3714_v23  ;;  %v7913_v8 = vadd.f32 %v6056_v34, %v8290_v59  ;;  %v3407_v52 = vshrl.u32 %v3052_v19, 16  ;;  %v3566_v37 = vld [vmem:[#allocation2 + $0xcc] sm:$0xe]  ;;  %v3567_v21 = vld [vmem:[#allocation2 + $0xd0] sm:$0xf] }
 0x198   : > { %v5762_v48 = vcombine.low %v3382_v16, %v3392_v11  ;;  %v3396_v43 = vrot.slane %v3394_v7, 4  ;;  %v3399_v22 = vrot.slane %v3397_v31, 5  ;;  %v3405_v2 = vrot.slane %v3403_v60, 5  ;;  %v3568_v42 = vld [vmem:[#allocation2 + $0xd4] sm:$0x1] }
 0x199   : > { %6418 = vmatmul.mubr.bf16.gmra.mrb[136].mxu0 %v5794_v62  ;;  %v3413_v30 = vshll.u32 %v3053_v51, 16  ;;  %v7917_v27 = vadd.f32 %v7825_v58, %v7823_v5  ;;  %v7921_v35 = vadd.f32 %v7835_v46, %v7831_v61  ;;  %v3409_v34 = vrot.slane %v3407_v52, 4  ;;  %v3054_v61 = vld [vmem:[#allocation2 + $0xcc] sm:$0xf] }
 0x19a   : > { %v7923_v25 = vpop.f32.mrb[44].mxu1  ;;  %5148 = vmatprep.mubr.bf16.mxu1 %v5762_v48  ;;  %v3400_v16 = vor.u32 %v3399_v22, %v3396_v43  ;;  %v5779_v23 = vrot.slane %v3563_v50, 9  ;;  %v3717_v19 = vrot.slane %v3564_v57, 5  ;;  %v3720_v31 = vrot.slane %v3565_v17, 5 }
 0x19b   : > { %v7925_v7 = vpop.f32.mrb[45].mxu1  ;;  %5149 = vmatmul.mubr.bf16.gmra.mrb[132].mxu1 %v6567_v29  ;;  %v3415_v51 = vrot.slane %v3413_v30, 5  ;;  %v6059_v5 = vadd.f32 %v7785_v14, %v7767_v45  ;;  %v5780_v58 = vrot.slane %v3566_v37, 9  ;;  %v3410_v62 = vor.u32 %v3409_v34, %v3405_v2  ;;  %v3055_v14 = vld [vmem:[#allocation2 + $0xd0] sm:$0xf] }
 0x19c   : > { %v7929_v46 = vpop.f32.mrb[46].mxu1  ;;  %v3401_v11 = vrot.slane %v3400_v16, 4  ;;  %v3718_v59 = vsel %vm6949_vm13, %v5779_v23, %v3717_v19  ;;  %v3719_v50 = vrot.slane %v3717_v19, 4  ;;  %v3724_v29 = vrot.slane %v3567_v21, 5  ;;  %v3056_v30 = vld [vmem:[#allocation2 + $0xd4] sm:$0x1] }
 0x19d   : > { %v5981_v60 = vpop.f32.mrb[40].mxu0  ;;  %v6079_v57 = vpop.f32.mrb[47].mxu1  ;;  %v7934_v48 = vadd.f32 %v6059_v5, %v7745_v36  ;;  %v3727_v17 = vrot.slane %v3568_v42, 5  ;;  %v6062_v45 = vadd.f32 %v7795_v10, %v7789_v20  ;;  %v3411_v52 = vrot.slane %v3410_v62, 4 }
 0x19e   : > { %v5982_v43 = vpop.f32.mrb[41].mxu0  ;;  %v3406_v22 = vsel %vm6689_vm2, %v3401_v11, %v3405_v2  ;;  %v3721_v37 = vsel %vm6949_vm13, %v3719_v50, %v3720_v31  ;;  %v3418_v16 = vshrl.u32 %v3054_v61, 16  ;;  %v3725_v36 = vsel %vm6949_vm13, %v5780_v58, %v3724_v29  ;;  %v6568_v2 = vld [vmem:[#allocation2 + $0xc0] sm:$0xff]  }
 0x19f   : > { %v5984_v34 = vpop.f32.mrb[42].mxu0  ;;  %v5795_v23 = vcombine.low %v3718_v59, %v3721_v37  ;;  %v3726_v21 = vrot.slane %v3724_v29, 4  ;;  %v7945_v19 = vadd.f32 %v6062_v45, %v7753_v12  ;;  %v3416_v10 = vsel %vm6689_vm2, %v3411_v52, %v3415_v51 }
 0x1a0   : > { %v5985_v20 = vpop.f32.mrb[43].mxu0  ;;  %v3420_v42 = vrot.slane %v3418_v16, 4  ;;  %v3421_v5 = vshll.u32 %v3054_v61, 16  ;;  %v3427_v11 = vshll.u32 %v3055_v14, 16  ;;  %v5763_v31 = vcombine.low %v3406_v22, %v3416_v10 }
 0x1a1   : > { %6421 = vmatprep.mubr.bf16.mxu0 %v5795_v23  ;;  %v3728_v62 = vsel %vm6949_vm13, %v3726_v21, %v3727_v17  ;;  %v3431_v59 = vshrl.u32 %v3055_v14, 16  ;;  %v3437_v50 = vshll.u32 %v3056_v30, 16  ;;  %v5977_v12 = vadd.f32 %v7871_v28, %v7864_v9 }
 0x1a2   : > { %v5796_v58 = vcombine.low %v3725_v36, %v3728_v62  ;;  %v3423_v29 = vrot.slane %v3421_v5, 5  ;;  %v3429_v37 = vrot.slane %v3427_v11, 5  ;;  %5156 = vmatprep.mubr.bf16.mxu1 %v5763_v31  ;;  %v5980_v51 = vadd.f32 %v7875_v54, %v7873_v63  ;;  %v6081_v22 = vpop.f32.mrb[48].mxu1 }
 0x1a3   : > { %v3433_v45 = vrot.slane %v3431_v59, 4  ;;  %v6065_v61 = vadd.f32 %v7847_v44, %v7837_v1  ;;  %5157 = vmatmul.mubr.bf16.gmra.mrb[136].mxu1 %v6568_v2  ;;  %v3439_v17 = vrot.slane %v3437_v50, 5  ;;  %v6068_v14 = vadd.f32 %v7858_v15, %v7851_v32  ;;  %v6082_v16 = vpop.f32.mrb[49].mxu1  ;;  %v6569_v2 = vld [vmem:[#allocation2 + $0xcc] sm:$0xff]  }
 0x1a4   : > { %6422 = vmatmul.mubr.bf16.gmra.mrb[140].mxu0 %v5796_v58  ;;  %v3424_v18 = vor.u32 %v3423_v29, %v3420_v42  ;;  %v5983_v52 = vadd.f32 %v5982_v43, %v5981_v60  ;;  %v5986_v23 = vadd.f32 %v5985_v20, %v5984_v34  ;;  %v6071_v63 = vadd.f32 %v7885_v41, %v7881_v53  ;;  %v6084_v44 = vpop.f32.mrb[50].mxu1 }
 0x1a5   : > { %v5987_v30 = vpop.f32.mrb[44].mxu0  ;;  %v3434_v9 = vor.u32 %v3433_v45, %v3429_v37  ;;  %v7960_v28 = vadd.f32 %v6065_v61, %v7793_v4  ;;  %v7965_v36 = vadd.f32 %v6068_v14, %v7803_v55  ;;  %v6074_v32 = vadd.f32 %v7899_v38, %v7891_v26  ;;  %v6085_v43 = vpop.f32.mrb[51].mxu1 }
 0x1a6   : > { %v5988_v1 = vpop.f32.mrb[45].mxu0  ;;  %v3425_v54 = vrot.slane %v3424_v18, 4  ;;  %v7972_v4 = vadd.f32 %v6071_v63, %v7829_v39  ;;  %v6077_v53 = vadd.f32 %v7925_v7, %v7923_v25  ;;  %v6080_v41 = vadd.f32 %v6079_v57, %v7929_v46 }
 0x1a7   : > { %v7969_v15 = vadd.f32 %v5988_v1, %v5987_v30  ;;  %v5990_v60 = vpop.f32.mrb[46].mxu0  ;;  %v3435_v21 = vrot.slane %v3434_v9, 4  ;;  %v7980_v20 = vadd.f32 %v6074_v32, %v7843_v24  ;;  %v6083_v38 = vadd.f32 %v6082_v16, %v6081_v22 }
 0x1a8   : > { %v5991_v34 = vpop.f32.mrb[47].mxu0  ;;  %v3430_v55 = vsel %vm6689_vm2, %v3425_v54, %v3429_v37  ;;  %v7985_v39 = vadd.f32 %v6077_v53, %v7879_v13  ;;  %v7988_v42 = vadd.f32 %v6080_v41, %v7889_v3  ;;  %v6086_v25 = vadd.f32 %v6085_v43, %v6084_v44 }
 0x1a9   : > { %v5992_v26 = vadd.f32 %v5991_v34, %v5990_v60  ;;  %v3440_v10 = vsel %vm6689_vm2, %v3435_v21, %v3439_v17  ;;  %v7991_v46 = vadd.f32 %v6083_v38, %v7917_v27 }
 0x1aa   : > { %v5764_v7 = vcombine.low %v3430_v55, %v3440_v10  ;;  %v7994_v24 = vadd.f32 %v6086_v25, %v7921_v35  ;;  %v8291_v10 = vld [vmem:[#allocation14_spill] sm:$0xff] }
 0x1ab   : > { %v6087_v57 = vpop.f32.mrb[52].mxu1 }
 0x1ac   : > { %5164 = vmatprep.mubr.bf16.mxu1 %v5764_v7  ;;  %v6088_v33 = vpop.f32.mrb[53].mxu1 }
 0x1ad   : > { %v6145_v5 = vpop.f32.mrb[48].mxu0  ;;  %5165 = vmatmul.mubr.bf16.gmra.mrb[140].mxu1 %v6569_v2  ;;  %v6089_v31 = vadd.f32 %v6088_v33, %v6087_v57  ;;  %v6090_v13 = vpop.f32.mrb[54].mxu1 }
 0x1ae   : > { %v6146_v11 = vpop.f32.mrb[49].mxu0  ;;  %v6091_v3 = vpop.f32.mrb[55].mxu1 }
 0x1af   : > { %v6147_v62 = vadd.f32 %v6146_v11, %v6145_v5  ;;  %v6148_v59 = vpop.f32.mrb[50].mxu0  ;;  %v7996_v58 = vadd.f32 %v6089_v31, %v5977_v12  ;;  %v6092_v29 = vadd.f32 %v6091_v3, %v6090_v13 }
 0x1b0   : > { %v6149_v50 = vpop.f32.mrb[51].mxu0 }
 0x1b1   : > { %v7999_v27 = vadd.f32 %v6147_v62, %v7772_v49  ;;  %v6150_v35 = vadd.f32 %v6149_v50, %v6148_v59  ;;  %v8001_v37 = vadd.f32 %v6092_v29, %v5980_v51 }
 0x1b3   : > { %v8004_v45 = vadd.f32 %v6150_v35, %v7775_v0  ;;  %v8292_v35 = vld [vmem:[#allocation4_spill] sm:$0xff] }
 0x1b4   : > { %v6093_v22 = vpop.f32.mrb[56].mxu1 }
 0x1b5   : > { %v6151_v61 = vpop.f32.mrb[52].mxu0  ;;  %v6094_v17 = vpop.f32.mrb[57].mxu1 }
 0x1b6   : > { %v6152_v18 = vpop.f32.mrb[53].mxu0  ;;  %v6095_v16 = vadd.f32 %v6094_v17, %v6093_v22  ;;  %v6096_v9 = vpop.f32.mrb[58].mxu1  ;;  %v8293_v22 = vld [vmem:[#allocation5_spill] sm:$0xff] }
 0x1b7   : > { %v6153_v14 = vadd.f32 %v6152_v18, %v6151_v61  ;;  %v6154_v30 = vpop.f32.mrb[54].mxu0  ;;  %v6097_v63 = vpop.f32.mrb[59].mxu1 }
 0x1b8   : > { %v6155_v12 = vpop.f32.mrb[55].mxu0  ;;  %v8009_v44 = vadd.f32 %v6095_v16, %v5983_v52  ;;  %v6098_v51 = vadd.f32 %v6097_v63, %v6096_v9 }
 0x1b9   : > { %v8007_v1 = vadd.f32 %v6153_v14, %v7818_v56  ;;  %v6156_v49 = vadd.f32 %v6155_v12, %v6154_v30 }
 0x1ba   : > { %v8014_v54 = vadd.f32 %v6098_v51, %v5986_v23 }
 0x1bb   : > { %v8012_v0 = vadd.f32 %v6156_v49, %v7821_v47 }
 0x1bc   : > { %v6099_v60 = vpop.f32.mrb[60].mxu1 }
 0x1bd   : > { %v6157_v32 = vpop.f32.mrb[56].mxu0  ;;  %v6100_v21 = vpop.f32.mrb[61].mxu1 }
 0x1be   : > { %v6158_v43 = vpop.f32.mrb[57].mxu0  ;;  %v6101_v41 = vadd.f32 %v6100_v21, %v6099_v60  ;;  %v6102_v55 = vpop.f32.mrb[62].mxu1 }
 0x1bf   : > { %v6159_v34 = vadd.f32 %v6158_v43, %v6157_v32  ;;  %v6160_v53 = vpop.f32.mrb[58].mxu0  ;;  %v6103_v56 = vpop.f32.mrb[63].mxu1  ;;  %v8294_v43 = vld [vmem:[#allocation6_spill] sm:$0xff] }
 0x1c0   : > { %v6161_v38 = vpop.f32.mrb[59].mxu0  ;;  %v8020_v25 = vadd.f32 %v6101_v41, %v7969_v15  ;;  %v6104_v47 = vadd.f32 %v6103_v56, %v6102_v55 }
 0x1c1   : > { %v8017_v2 = vadd.f32 %v6159_v34, %v8291_v10  ;;  %v6162_v52 = vadd.f32 %v6161_v38, %v6160_v53  ;;  %v8295_v53 = vld [vmem:[#allocation7_spill] sm:$0xff] }
 0x1c2   : > { %v8025_v7 = vadd.f32 %v6104_v47, %v5992_v26 }
 0x1c3   : > { %v8023_v23 = vadd.f32 %v6162_v52, %v7869_v6 }
 0x1c4   : > { %v6105_v5 = vpop.f32.mrb[64].mxu1 }
 0x1c5   : > { %v6163_v57 = vpop.f32.mrb[60].mxu0  ;;  %v6106_v11 = vpop.f32.mrb[65].mxu1 }
 0x1c6   : > { %v6164_v33 = vpop.f32.mrb[61].mxu0  ;;  %v6107_v62 = vadd.f32 %v6106_v11, %v6105_v5  ;;  %v6108_v59 = vpop.f32.mrb[66].mxu1 }
 0x1c7   : > { %v6165_v31 = vadd.f32 %v6164_v33, %v6163_v57  ;;  %v6166_v13 = vpop.f32.mrb[62].mxu0  ;;  %v6109_v50 = vpop.f32.mrb[67].mxu1 }
 0x1c8   : > { %v6167_v3 = vpop.f32.mrb[63].mxu0  ;;  %v8031_v61 = vadd.f32 %v6107_v62, %v8292_v35  ;;  %v6110_v6 = vadd.f32 %v6109_v50, %v6108_v59 }
 0x1c9   : > { %v8028_v29 = vadd.f32 %v6165_v31, %v7908_v40  ;;  %v6168_v15 = vadd.f32 %v6167_v3, %v6166_v13  ;;  %v8296_v13 = vld [vmem:[#allocation8_spill] sm:$0xff]  ;;  %v8297_v3 = vld [vmem:[#allocation9_spill] sm:$0xff] }
 0x1ca   : > { %v8037_v18 = vadd.f32 %v6110_v6, %v8293_v22 }
 0x1cb   : > { %v8034_v26 = vadd.f32 %v6168_v15, %v7913_v8 }
 0x1cc   : > { %v6111_v14 = vpop.f32.mrb[68].mxu1 }
 0x1cd   : > { %v6169_v17 = vpop.f32.mrb[64].mxu0  ;;  %v6112_v16 = vpop.f32.mrb[69].mxu1 }
 0x1ce   : > { %v6170_v30 = vpop.f32.mrb[65].mxu0  ;;  %v6113_v63 = vadd.f32 %v6112_v16, %v6111_v14  ;;  %v6114_v40 = vpop.f32.mrb[70].mxu1 }
 0x1cf   : > { %v6171_v9 = vadd.f32 %v6170_v30, %v6169_v17  ;;  %v6172_v12 = vpop.f32.mrb[66].mxu0  ;;  %v6115_v51 = vpop.f32.mrb[71].mxu1 }
 0x1d0   : > { %v6173_v49 = vpop.f32.mrb[67].mxu0  ;;  %v8043_v8 = vadd.f32 %v6113_v63, %v8294_v43  ;;  %v6116_v21 = vadd.f32 %v6115_v51, %v6114_v40 }
 0x1d1   : > { %v8040_v32 = vadd.f32 %v6171_v9, %v7934_v48  ;;  %v6174_v60 = vadd.f32 %v6173_v49, %v6172_v12 }
 0x1d2   : > { %v8049_v41 = vadd.f32 %v6116_v21, %v8295_v53 }
 0x1d3   : > { %v8046_v34 = vadd.f32 %v6174_v60, %v7945_v19 }
 0x1d4   : > { %v6117_v38 = vpop.f32.mrb[72].mxu1 }
 0x1d5   : > { %v6175_v55 = vpop.f32.mrb[68].mxu0  ;;  %v6118_v10 = vpop.f32.mrb[73].mxu1 }
 0x1d6   : > { %v6176_v56 = vpop.f32.mrb[69].mxu0  ;;  %v6119_v57 = vadd.f32 %v6118_v10, %v6117_v38  ;;  %v6120_v48 = vpop.f32.mrb[74].mxu1 }
 0x1d7   : > { %v6177_v52 = vadd.f32 %v6176_v56, %v6175_v55  ;;  %v6178_v47 = vpop.f32.mrb[70].mxu0  ;;  %v6121_v33 = vpop.f32.mrb[75].mxu1 }
 0x1d8   : > { %v6179_v5 = vpop.f32.mrb[71].mxu0  ;;  %v8055_v19 = vadd.f32 %v6119_v57, %v8296_v13  ;;  %v6122_v62 = vadd.f32 %v6121_v33, %v6120_v48 }
 0x1d9   : > { %v8052_v11 = vadd.f32 %v6177_v52, %v7960_v28  ;;  %v6180_v31 = vadd.f32 %v6179_v5, %v6178_v47  ;;  %v8298_v52 = vld [vmem:[#allocation12_spill] sm:$0xff] }
 0x1da   : > { %v8061_v50 = vadd.f32 %v6122_v62, %v8297_v3 }
 0x1db   : > { %v8058_v59 = vadd.f32 %v6180_v31, %v7965_v36 }
 0x1dd   : > { %v6181_v15 = vpop.f32.mrb[72].mxu0 }
 0x1de   : > { %v6182_v35 = vpop.f32.mrb[73].mxu0 }
 0x1df   : > { %v6183_v6 = vadd.f32 %v6182_v35, %v6181_v15  ;;  %v6184_v22 = vpop.f32.mrb[74].mxu0 }
 0x1e0   : > { %v6185_v17 = vpop.f32.mrb[75].mxu0 }
 0x1e1   : > { %v8064_v14 = vadd.f32 %v6183_v6, %v7972_v4  ;;  %v6186_v28 = vadd.f32 %v6185_v17, %v6184_v22 }
 0x1e3   : > { %v8067_v30 = vadd.f32 %v6186_v28, %v7980_v20 }
 0x1e5   : > { %v6187_v16 = vpop.f32.mrb[76].mxu0 }
 0x1e6   : > { %v6188_v9 = vpop.f32.mrb[77].mxu0 }
 0x1e7   : > { %v6189_v12 = vadd.f32 %v6188_v9, %v6187_v16  ;;  %v6190_v36 = vpop.f32.mrb[78].mxu0 }
 0x1e8   : > { %v6191_v63 = vpop.f32.mrb[79].mxu0 }
 0x1e9   : > { %v8070_v40 = vadd.f32 %v6189_v12, %v7985_v39  ;;  %v6192_v49 = vadd.f32 %v6191_v63, %v6190_v36 }
 0x1eb   : > { %v8073_v51 = vadd.f32 %v6192_v49, %v7988_v42  ;;  %v6123_v60 = vpop.f32.mrb[76].mxu1  ;;  %v8299_v42 = vld [vmem:[#allocation13_spill] sm:$0xff] }
 0x1ec   : > { %v6124_v4 = vpop.f32.mrb[77].mxu1 }
 0x1ed   : > { %v6193_v43 = vpop.f32.mrb[80].mxu0  ;;  %v6125_v53 = vadd.f32 %v6124_v4, %v6123_v60  ;;  %v6126_v55 = vpop.f32.mrb[78].mxu1 }
 0x1ee   : > { %v6194_v21 = vpop.f32.mrb[81].mxu0  ;;  %v6127_v56 = vpop.f32.mrb[79].mxu1 }
 0x1ef   : > { %v6195_v20 = vadd.f32 %v6194_v21, %v6193_v43  ;;  %v6196_v38 = vpop.f32.mrb[82].mxu0  ;;  %v8076_v47 = vadd.f32 %v6125_v53, %v8298_v52  ;;  %v6128_v57 = vadd.f32 %v6127_v56, %v6126_v55 }
 0x1f0   : > { %v6197_v10 = vpop.f32.mrb[83].mxu0 }
 0x1f1   : > { %v8079_v39 = vadd.f32 %v6195_v20, %v7991_v46  ;;  %v6198_v48 = vadd.f32 %v6197_v10, %v6196_v38  ;;  %v8082_v5 = vadd.f32 %v6128_v57, %v8299_v42 }
 0x1f3   : > { %v8085_v33 = vadd.f32 %v6198_v48, %v7994_v24  ;;  %v6257_v31 = vpop.f32.mrb[80].mxu1 }
 0x1f4   : > { %v6258_v62 = vpop.f32.mrb[81].mxu1 }
 0x1f5   : > { %v6199_v13 = vpop.f32.mrb[84].mxu0  ;;  %v6259_v15 = vadd.f32 %v6258_v62, %v6257_v31  ;;  %v6260_v6 = vpop.f32.mrb[82].mxu1 }
 0x1f6   : > { %v6200_v3 = vpop.f32.mrb[85].mxu0  ;;  %v6261_v17 = vpop.f32.mrb[83].mxu1 }
 0x1f7   : > { %v6201_v35 = vadd.f32 %v6200_v3, %v6199_v13  ;;  %v6202_v22 = vpop.f32.mrb[86].mxu0  ;;  %v6262_v16 = vadd.f32 %v6261_v17, %v6260_v6  ;;  %v8091_v12 = vadd.f32 %v6259_v15, %v7999_v27 }
 0x1f8   : > { %v6203_v28 = vpop.f32.mrb[87].mxu0 }
 0x1f9   : > { %v8088_v46 = vadd.f32 %v6201_v35, %v7996_v58  ;;  %v6204_v9 = vadd.f32 %v6203_v28, %v6202_v22  ;;  %v8097_v36 = vadd.f32 %v6262_v16, %v8004_v45 }
 0x1fb   : > { %v8094_v24 = vadd.f32 %v6204_v9, %v8001_v37  ;;  %v6263_v63 = vpop.f32.mrb[84].mxu1 }
 0x1fc   : > { %v6264_v60 = vpop.f32.mrb[85].mxu1 }
 0x1fd   : > { %v6205_v49 = vpop.f32.mrb[88].mxu0  ;;  %v6265_v43 = vadd.f32 %v6264_v60, %v6263_v63  ;;  %v6266_v21 = vpop.f32.mrb[86].mxu1 }
 0x1fe   : > { %v6206_v4 = vpop.f32.mrb[89].mxu0  ;;  %v6267_v55 = vpop.f32.mrb[87].mxu1 }
 0x1ff   : > { %v6207_v53 = vadd.f32 %v6206_v4, %v6205_v49  ;;  %v6208_v58 = vpop.f32.mrb[90].mxu0  ;;  %v6268_v20 = vadd.f32 %v6267_v55, %v6266_v21  ;;  %v8100_v27 = vadd.f32 %v6265_v43, %v8007_v1 }
 0x200   : > { %v6209_v38 = vpop.f32.mrb[91].mxu0 }
 0x201   : > { %v8103_v37 = vadd.f32 %v6207_v53, %v8009_v44  ;;  %v6210_v56 = vadd.f32 %v6209_v38, %v6208_v58  ;;  %v8106_v45 = vadd.f32 %v6268_v20, %v8012_v0 }
 0x203   : > { %v8109_v10 = vadd.f32 %v6210_v56, %v8014_v54  ;;  %v6269_v52 = vpop.f32.mrb[88].mxu1 }
 0x204   : > { %v6270_v57 = vpop.f32.mrb[89].mxu1 }
 0x205   : > { %v6271_v48 = vadd.f32 %v6270_v57, %v6269_v52  ;;  %v6272_v42 = vpop.f32.mrb[90].mxu1 }
 0x206   : > { %v6273_v13 = vpop.f32.mrb[91].mxu1 }
 0x207   : > { %v6211_v31 = vpop.f32.mrb[92].mxu0  ;;  %v6274_v3 = vadd.f32 %v6273_v13, %v6272_v42  ;;  %v8112_v1 = vadd.f32 %v6271_v48, %v8017_v2 }
 0x208   : > { %v6212_v62 = vpop.f32.mrb[93].mxu0 }
 0x209   : > { %v6213_v44 = vadd.f32 %v6212_v62, %v6211_v31  ;;  %v6214_v15 = vpop.f32.mrb[94].mxu0  ;;  %v8115_v0 = vadd.f32 %v6274_v3, %v8023_v23 }
 0x20a   : > { %v6215_v35 = vpop.f32.mrb[95].mxu0 }
 0x20b   : > { %v8118_v54 = vadd.f32 %v6213_v44, %v8020_v25  ;;  %v6216_v6 = vadd.f32 %v6215_v35, %v6214_v15 }
 0x20c   : > { %v6275_v22 = vpop.f32.mrb[92].mxu1 }
 0x20d   : > { %v8121_v17 = vadd.f32 %v6216_v6, %v8025_v7  ;;  %v6276_v28 = vpop.f32.mrb[93].mxu1 }
 0x20e   : > { %v6277_v16 = vadd.f32 %v6276_v28, %v6275_v22  ;;  %v6278_v9 = vpop.f32.mrb[94].mxu1 }
 0x20f   : > { %v6279_v63 = vpop.f32.mrb[95].mxu1 }
 0x210   : > { %v6280_v2 = vadd.f32 %v6279_v63, %v6278_v9  ;;  %v8124_v49 = vadd.f32 %v6277_v16, %v8028_v29 }
 0x211   : > { %v6217_v60 = vpop.f32.mrb[96].mxu0 }
 0x212   : > { %v6218_v43 = vpop.f32.mrb[97].mxu0  ;;  %v8127_v23 = vadd.f32 %v6280_v2, %v8034_v26 }
 0x213   : > { %v6219_v25 = vadd.f32 %v6218_v43, %v6217_v60  ;;  %v6220_v4 = vpop.f32.mrb[98].mxu0 }
 0x214   : > { %v6221_v21 = vpop.f32.mrb[99].mxu0 }
 0x215   : > { %v8130_v53 = vadd.f32 %v6219_v25, %v8031_v61  ;;  %v6222_v7 = vadd.f32 %v6221_v21, %v6220_v4 }
 0x216   : > { %v6281_v58 = vpop.f32.mrb[96].mxu1 }
 0x217   : > { %v8133_v55 = vadd.f32 %v6222_v7, %v8037_v18  ;;  %v6282_v20 = vpop.f32.mrb[97].mxu1 }
 0x218   : > { %v6283_v38 = vadd.f32 %v6282_v20, %v6281_v58  ;;  %v6284_v29 = vpop.f32.mrb[98].mxu1 }
 0x219   : > { %v6285_v56 = vpop.f32.mrb[99].mxu1 }
 0x21a   : > { %v6286_v52 = vadd.f32 %v6285_v56, %v6284_v29  ;;  %v8136_v57 = vadd.f32 %v6283_v38, %v8040_v32 }
 0x21b   : > { %v6223_v26 = vpop.f32.mrb[100].mxu0 }
 0x21c   : > { %v8139_v48 = vadd.f32 %v6286_v52, %v8046_v34  ;;  %v6224_v42 = vpop.f32.mrb[101].mxu0 }
 0x21d   : > { %v6225_v61 = vadd.f32 %v6224_v42, %v6223_v26  ;;  %v6226_v31 = vpop.f32.mrb[102].mxu0 }
 0x21e   : > { %v6227_v13 = vpop.f32.mrb[103].mxu0 }
 0x21f   : > { %v8142_v62 = vadd.f32 %v6225_v61, %v8043_v8  ;;  %v6228_v18 = vadd.f32 %v6227_v13, %v6226_v31 }
 0x220   : > { %v6287_v3 = vpop.f32.mrb[100].mxu1 }
 0x221   : > { %v6288_v44 = vpop.f32.mrb[101].mxu1  ;;  %v8145_v15 = vadd.f32 %v6228_v18, %v8049_v41 }
 0x222   : > { %v6289_v35 = vadd.f32 %v6288_v44, %v6287_v3  ;;  %v6290_v32 = vpop.f32.mrb[102].mxu1 }
 0x223   : > { %v6291_v6 = vpop.f32.mrb[103].mxu1 }
 0x224   : > { %v6292_v22 = vadd.f32 %v6291_v6, %v6290_v32  ;;  %v8148_v34 = vadd.f32 %v6289_v35, %v8052_v11 }
 0x226   : > { %v6229_v28 = vpop.f32.mrb[104].mxu0  ;;  %v8151_v16 = vadd.f32 %v6292_v22, %v8058_v59 }
 0x227   : > { %v6230_v9 = vpop.f32.mrb[105].mxu0 }
 0x228   : > { %v6231_v8 = vadd.f32 %v6230_v9, %v6229_v28  ;;  %v6232_v63 = vpop.f32.mrb[106].mxu0 }
 0x229   : > { %v6233_v2 = vpop.f32.mrb[107].mxu0 }
 0x22a   : > { %v8154_v60 = vadd.f32 %v6231_v8, %v8055_v19  ;;  %v6234_v41 = vadd.f32 %v6233_v2, %v6232_v63 }
 0x22b   : > { %v6293_v43 = vpop.f32.mrb[104].mxu1 }
 0x22c   : > { %v8157_v25 = vadd.f32 %v6234_v41, %v8061_v50  ;;  %v6294_v4 = vpop.f32.mrb[105].mxu1 }
 0x22d   : > { %v6295_v21 = vadd.f32 %v6294_v4, %v6293_v43  ;;  %v6296_v11 = vpop.f32.mrb[106].mxu1 }
 0x22e   : > { %v6297_v7 = vpop.f32.mrb[107].mxu1 }
 0x22f   : > { %v6298_v58 = vadd.f32 %v6297_v7, %v6296_v11  ;;  %v8160_v59 = vadd.f32 %v6295_v21, %v8064_v14 }
 0x231   : > { %v6235_v20 = vpop.f32.mrb[108].mxu0  ;;  %v8163_v38 = vadd.f32 %v6298_v58, %v8067_v30 }
 0x232   : > { %v6236_v19 = vpop.f32.mrb[109].mxu0 }
 0x233   : > { %v6237_v29 = vadd.f32 %v6236_v19, %v6235_v20  ;;  %v6238_v56 = vpop.f32.mrb[110].mxu0 }
 0x234   : > { %v6239_v52 = vpop.f32.mrb[111].mxu0 }
 0x235   : > { %v8166_v50 = vadd.f32 %v6237_v29, %v8076_v47  ;;  %v6240_v26 = vadd.f32 %v6239_v52, %v6238_v56 }
 0x236   : > { %v6299_v42 = vpop.f32.mrb[108].mxu1 }
 0x237   : > { %v8169_v61 = vadd.f32 %v6240_v26, %v8082_v5  ;;  %v6300_v31 = vpop.f32.mrb[109].mxu1 }
 0x238   : > { %v6301_v13 = vadd.f32 %v6300_v31, %v6299_v42  ;;  %v6302_v14 = vpop.f32.mrb[110].mxu1 }
 0x239   : > { %v6395_v30 = vpop.f32.mrb[112].mxu0  ;;  %v6303_v47 = vpop.f32.mrb[111].mxu1 }
 0x23a   : > { %v5216_v18 = vadd.f32 %v6395_v30, %v8100_v27  ;;  %v5207_v3 = vpop.f32.mrb[113].mxu0  ;;  %v6304_v5 = vadd.f32 %v6303_v47, %v6302_v14  ;;  %v8180_v44 = vadd.f32 %v6301_v13, %v8070_v40 }
 0x23b   : > { %v5208_v35 = vadd.f32 %v5207_v3, %v8091_v12  ;;  %v6396_v32 = vpop.f32.mrb[114].mxu0 }
 0x23c   : > { %5336 = vst [vmem:[%s8176_s7 + $0x10] sm:$0xff] %v5216_v18  ;;  %v5219_v6 = vadd.f32 %v6396_v32, %v8106_v45  ;;  %v5210_v22 = vpop.f32.mrb[115].mxu0  ;;  %v8186_v28 = vadd.f32 %v6304_v5, %v8073_v51  ;;  %v5405_v2 = vmul.f32 %v5216_v18, %v5216_v18 }
 0x23d   : > { %5334 = vst [vmem:[%s8176_s7] sm:$0xff] %v5208_v35  ;;  %v5211_v9 = vadd.f32 %v5210_v22, %v8097_v36  ;;  %v5403_v27 = vmul.f32 %v5208_v35, %v5208_v35 }
 0x23e   : > { %5337 = vst [vmem:[%s8176_s7 + $0x18] sm:$0xff] %v5219_v6  ;;  %v5406_v7 = vmul.f32 %v5219_v6, %v5219_v6 }
 0x23f   : > { %5335 = vst [vmem:[%s8176_s7 + $0x8] sm:$0xff] %v5211_v9  ;;  %v5366_v8 = vadd.f32 %v5211_v9, %v5208_v35  ;;  %v5404_v63 = vmul.f32 %v5211_v9, %v5211_v9 }
 0x240   : > { %v6305_v40 = vpop.f32.mrb[112].mxu1 }
 0x241   : > { %v5367_v12 = vadd.f32 %v5366_v8, %v5216_v18  ;;  %v5435_v41 = vadd.f32 %v5404_v63, %v5403_v27  ;;  %v6306_v43 = vpop.f32.mrb[113].mxu1  ;;  %v6399_v4 = vpop.f32.mrb[116].mxu0 }
 0x242   : > { %v6307_v45 = vadd.f32 %v6306_v43, %v6305_v40  ;;  %v5232_v51 = vadd.f32 %v6399_v4, %v8124_v49  ;;  %v6308_v21 = vpop.f32.mrb[114].mxu1  ;;  %v5223_v11 = vpop.f32.mrb[117].mxu0 }
 0x243   : > { %v5436_v36 = vadd.f32 %v5435_v41, %v5405_v2  ;;  %v5224_v58 = vadd.f32 %v5223_v11, %v8112_v1  ;;  %v5368_v20 = vadd.f32 %v5367_v12, %v5219_v6  ;;  %v6309_v19 = vpop.f32.mrb[115].mxu1  ;;  %v6400_v29 = vpop.f32.mrb[118].mxu0 }
 0x244   : > { %5340 = vst [vmem:[%s8176_s7 + $0x30] sm:$0xff] %v5232_v51  ;;  %v6310_v56 = vadd.f32 %v6309_v19, %v6308_v21  ;;  %v5235_v52 = vadd.f32 %v6400_v29, %v8127_v23  ;;  %v5226_v26 = vpop.f32.mrb[119].mxu0  ;;  %v8197_v42 = vadd.f32 %v6307_v45, %v8079_v39  ;;  %v5409_v23 = vmul.f32 %v5232_v51, %v5232_v51 }
 0x245   : > { %5338 = vst [vmem:[%s8176_s7 + $0x20] sm:$0xff] %v5224_v58  ;;  %v5369_v49 = vadd.f32 %v5368_v20, %v5224_v58  ;;  %v5407_v31 = vmul.f32 %v5224_v58, %v5224_v58  ;;  %v5437_v13 = vadd.f32 %v5436_v36, %v5406_v7  ;;  %v5227_v14 = vadd.f32 %v5226_v26, %v8115_v0 }
 0x246   : > { %5341 = vst [vmem:[%s8176_s7 + $0x38] sm:$0xff] %v5235_v52  ;;  %v8203_v1 = vadd.f32 %v6310_v56, %v8085_v33  ;;  %v5410_v32 = vmul.f32 %v5235_v52, %v5235_v52 }
 0x247   : > { %v5438_v30 = vadd.f32 %v5437_v13, %v5407_v31  ;;  %5339 = vst [vmem:[%s8176_s7 + $0x28] sm:$0xff] %v5227_v14  ;;  %v5370_v47 = vadd.f32 %v5369_v49, %v5227_v14  ;;  %v5408_v18 = vmul.f32 %v5227_v14, %v5227_v14 }
 0x248   : > { %v6311_v39 = vpop.f32.mrb[116].mxu1 }
 0x249   : > { %v5371_v3 = vadd.f32 %v5370_v47, %v5232_v51  ;;  %v5439_v5 = vadd.f32 %v5438_v30, %v5408_v18  ;;  %v6403_v35 = vpop.f32.mrb[120].mxu0  ;;  %v6312_v6 = vpop.f32.mrb[117].mxu1 }
 0x24a   : > { %v5248_v22 = vadd.f32 %v6403_v35, %v8148_v34  ;;  %v5239_v0 = vpop.f32.mrb[121].mxu0  ;;  %v6313_v33 = vadd.f32 %v6312_v6, %v6311_v39  ;;  %v6314_v27 = vpop.f32.mrb[118].mxu1 }
 0x24b   : > { %v5440_v9 = vadd.f32 %v5439_v5, %v5409_v23  ;;  %v5240_v8 = vadd.f32 %v5239_v0, %v8136_v57  ;;  %v5372_v63 = vadd.f32 %v5371_v3, %v5235_v52  ;;  %v6404_v40 = vpop.f32.mrb[122].mxu0  ;;  %v6315_v2 = vpop.f32.mrb[119].mxu1 }
 0x24c   : > { %5344 = vst [vmem:[%s8176_s7 + $0x50] sm:$0xff] %v5248_v22  ;;  %v5251_v12 = vadd.f32 %v6404_v40, %v8151_v16  ;;  %v5242_v41 = vpop.f32.mrb[123].mxu0  ;;  %v6316_v34 = vadd.f32 %v6315_v2, %v6314_v27  ;;  %v5119_v21 = vadd.f32 %v6313_v33, %v8088_v46  ;;  %v5413_v16 = vmul.f32 %v5248_v22, %v5248_v22 }
 0x24d   : > { %5342 = vst [vmem:[%s8176_s7 + $0x40] sm:$0xff] %v5240_v8  ;;  %v5373_v43 = vadd.f32 %v5372_v63, %v5240_v8  ;;  %v5411_v4 = vmul.f32 %v5240_v8, %v5240_v8  ;;  %v5441_v45 = vadd.f32 %v5440_v9, %v5410_v32  ;;  %v5243_v51 = vadd.f32 %v5242_v41, %v8139_v48 }
 0x24e   : > { %5345 = vst [vmem:[%s8176_s7 + $0x58] sm:$0xff] %v5251_v12  ;;  %v5122_v57 = vadd.f32 %v6316_v34, %v8094_v24  ;;  %v5414_v49 = vmul.f32 %v5251_v12, %v5251_v12 }
 0x24f   : > { %v5442_v11 = vadd.f32 %v5441_v45, %v5411_v4  ;;  %5343 = vst [vmem:[%s8176_s7 + $0x48] sm:$0xff] %v5243_v51  ;;  %v5374_v7 = vadd.f32 %v5373_v43, %v5243_v51  ;;  %v5412_v36 = vmul.f32 %v5243_v51, %v5243_v51 }
 0x251   : > { %v6407_v58 = vpop.f32.mrb[124].mxu0  ;;  %v5375_v20 = vadd.f32 %v5374_v7, %v5248_v22  ;;  %v5443_v19 = vadd.f32 %v5442_v11, %v5412_v36 }
 0x252   : > { %v6317_v29 = vpop.f32.mrb[120].mxu1  ;;  %v5264_v56 = vadd.f32 %v6407_v58, %v8180_v44  ;;  %v5255_v52 = vpop.f32.mrb[125].mxu0 }
 0x253   : > { %v6318_v26 = vpop.f32.mrb[121].mxu1  ;;  %v5256_v48 = vadd.f32 %v5255_v52, %v8160_v59  ;;  %v6408_v46 = vpop.f32.mrb[126].mxu0  ;;  %v5444_v24 = vadd.f32 %v5443_v19, %v5413_v16  ;;  %v5376_v14 = vadd.f32 %v5375_v20, %v5251_v12 }
 0x254   : > { %v6319_v31 = vadd.f32 %v6318_v26, %v6317_v29  ;;  %5348 = vst [vmem:[%s8176_s7 + $0x70] sm:$0xff] %v5264_v56  ;;  %v6320_v13 = vpop.f32.mrb[122].mxu1  ;;  %v5258_v30 = vpop.f32.mrb[127].mxu0  ;;  %v5267_v23 = vadd.f32 %v6408_v46, %v8186_v28  ;;  %v5417_v9 = vmul.f32 %v5264_v56, %v5264_v56 }
 0x255   : > { %5346 = vst [vmem:[%s8176_s7 + $0x60] sm:$0xff] %v5256_v48  ;;  %v5415_v47 = vmul.f32 %v5256_v48, %v5256_v48  ;;  %v6321_v18 = vpop.f32.mrb[123].mxu1  ;;  %v5259_v44 = vadd.f32 %v5258_v30, %v8163_v38  ;;  %v5377_v3 = vadd.f32 %v5376_v14, %v5256_v48  ;;  %v5445_v5 = vadd.f32 %v5444_v24, %v5414_v49 }
 0x256   : > { %v6322_v59 = vadd.f32 %v6321_v18, %v6320_v13  ;;  %v5127_v39 = vadd.f32 %v6319_v31, %v8103_v37  ;;  %5349 = vst [vmem:[%s8176_s7 + $0x78] sm:$0xff] %v5267_v23  ;;  %v5418_v37 = vmul.f32 %v5267_v23, %v5267_v23 }
 0x257   : > { %5347 = vst [vmem:[%s8176_s7 + $0x68] sm:$0xff] %v5259_v44  ;;  %v5416_v35 = vmul.f32 %v5259_v44, %v5259_v44  ;;  %v5446_v32 = vadd.f32 %v5445_v5, %v5415_v47  ;;  %v5378_v6 = vadd.f32 %v5377_v3, %v5259_v44 }
 0x258   : > { %v5130_v22 = vadd.f32 %v6322_v59, %v8109_v10 }
 0x259   : > { %v6411_v0 = vpop.f32.mrb[128].mxu0  ;;  %v5379_v33 = vadd.f32 %v5378_v6, %v5264_v56  ;;  %v5447_v28 = vadd.f32 %v5446_v32, %v5416_v35 }
 0x25a   : > { %v5280_v27 = vadd.f32 %v6411_v0, %v5119_v21  ;;  %v5271_v38 = vpop.f32.mrb[129].mxu0  ;;  %v6323_v8 = vpop.f32.mrb[124].mxu1 }
 0x25b   : > { %v5272_v63 = vadd.f32 %v5271_v38, %v8197_v42  ;;  %v6412_v40 = vpop.f32.mrb[130].mxu0  ;;  %v5448_v2 = vadd.f32 %v5447_v28, %v5417_v9  ;;  %v6324_v12 = vpop.f32.mrb[125].mxu1  ;;  %v5380_v41 = vadd.f32 %v5379_v33, %v5267_v23 }
 0x25c   : > { %5352 = vst [vmem:[%s8176_s7 + $0x90] sm:$0xff] %v5280_v27  ;;  %v5283_v43 = vadd.f32 %v6412_v40, %v5122_v57  ;;  %v5274_v10 = vpop.f32.mrb[131].mxu0  ;;  %v6325_v4 = vadd.f32 %v6324_v12, %v6323_v8  ;;  %v6326_v45 = vpop.f32.mrb[126].mxu1  ;;  %v5421_v19 = vmul.f32 %v5280_v27, %v5280_v27 }
 0x25d   : > { %5350 = vst [vmem:[%s8176_s7 + $0x80] sm:$0xff] %v5272_v63  ;;  %v5419_v34 = vmul.f32 %v5272_v63, %v5272_v63  ;;  %v5275_v51 = vadd.f32 %v5274_v10, %v8203_v1  ;;  %v5381_v21 = vadd.f32 %v5380_v41, %v5272_v63  ;;  %v5449_v11 = vadd.f32 %v5448_v2, %v5418_v37  ;;  %v6327_v7 = vpop.f32.mrb[127].mxu1 }
 0x25e   : > { %5353 = vst [vmem:[%s8176_s7 + $0x98] sm:$0xff] %v5283_v43  ;;  %v6328_v42 = vadd.f32 %v6327_v7, %v6326_v45  ;;  %v5135_v58 = vadd.f32 %v6325_v4, %v8118_v54  ;;  %v5422_v1 = vmul.f32 %v5283_v43, %v5283_v43 }
 0x25f   : > { %5351 = vst [vmem:[%s8176_s7 + $0x88] sm:$0xff] %v5275_v51  ;;  %v5420_v36 = vmul.f32 %v5275_v51, %v5275_v51  ;;  %v5450_v16 = vadd.f32 %v5449_v11, %v5419_v34  ;;  %v5382_v20 = vadd.f32 %v5381_v21, %v5275_v51 }
 0x260   : > { %v5138_v57 = vadd.f32 %v6328_v42, %v8121_v17 }
 0x261   : > { %v5383_v29 = vadd.f32 %v5382_v20, %v5280_v27  ;;  %v5451_v56 = vadd.f32 %v5450_v16, %v5420_v36 }
 0x263   : > { %v6415_v52 = vpop.f32.mrb[132].mxu0  ;;  %v5452_v26 = vadd.f32 %v5451_v56, %v5421_v19  ;;  %v5384_v49 = vadd.f32 %v5383_v29, %v5283_v43 }
 0x264   : > { %v5296_v48 = vadd.f32 %v6415_v52, %v5135_v58  ;;  %v5287_v46 = vpop.f32.mrb[133].mxu0 }
 0x265   : > { %v6329_v24 = vpop.f32.mrb[128].mxu1  ;;  %v5288_v31 = vadd.f32 %v5287_v46, %v5127_v39  ;;  %v6416_v13 = vpop.f32.mrb[134].mxu0  ;;  %v5453_v14 = vadd.f32 %v5452_v26, %v5422_v1 }
 0x266   : > { %v6330_v54 = vpop.f32.mrb[129].mxu1  ;;  %5356 = vst [vmem:[%s8176_s7 + $0xb0] sm:$0xff] %v5296_v48  ;;  %v5299_v30 = vadd.f32 %v6416_v13, %v5138_v57  ;;  %v5290_v17 = vpop.f32.mrb[135].mxu0  ;;  %v5425_v0 = vmul.f32 %v5296_v48, %v5296_v48 }
 0x267   : > { %v6331_v47 = vadd.f32 %v6330_v54, %v6329_v24  ;;  %v6332_v18 = vpop.f32.mrb[130].mxu1  ;;  %5354 = vst [vmem:[%s8176_s7 + $0xa0] sm:$0xff] %v5288_v31  ;;  %v5385_v23 = vadd.f32 %v5384_v49, %v5288_v31  ;;  %v5423_v44 = vmul.f32 %v5288_v31, %v5288_v31  ;;  %v5291_v3 = vadd.f32 %v5290_v17, %v5130_v22 }
 0x268   : > { %v6333_v5 = vpop.f32.mrb[131].mxu1  ;;  %5357 = vst [vmem:[%s8176_s7 + $0xb8] sm:$0xff] %v5299_v30  ;;  %v5426_v38 = vmul.f32 %v5299_v30, %v5299_v30 }
 0x269   : > { %v5454_v59 = vadd.f32 %v5453_v14, %v5423_v44  ;;  %v6334_v35 = vadd.f32 %v6333_v5, %v6332_v18  ;;  %5355 = vst [vmem:[%s8176_s7 + $0xa8] sm:$0xff] %v5291_v3  ;;  %v5386_v32 = vadd.f32 %v5385_v23, %v5291_v3  ;;  %v5424_v39 = vmul.f32 %v5291_v3, %v5291_v3 }
 0x26a   : > { %v5143_v6 = vadd.f32 %v6331_v47, %v8130_v53 }
 0x26b   : > { %v5387_v9 = vadd.f32 %v5386_v32, %v5296_v48  ;;  %v5455_v33 = vadd.f32 %v5454_v59, %v5424_v39  ;;  %v5146_v28 = vadd.f32 %v6334_v35, %v8133_v55 }
 0x26c   : > { %v6419_v27 = vpop.f32.mrb[136].mxu0 }
 0x26d   : > { %v5456_v8 = vadd.f32 %v5455_v33, %v5425_v0  ;;  %v5303_v63 = vpop.f32.mrb[137].mxu0  ;;  %v5388_v22 = vadd.f32 %v5387_v9, %v5299_v30 }
 0x26e   : > { %v6335_v40 = vpop.f32.mrb[132].mxu1  ;;  %v5304_v37 = vadd.f32 %v5303_v63, %v5143_v6  ;;  %v6420_v2 = vpop.f32.mrb[138].mxu0 }
 0x26f   : > { %v6336_v12 = vpop.f32.mrb[133].mxu1  ;;  %v5457_v41 = vadd.f32 %v5456_v8, %v5426_v38  ;;  %v5306_v43 = vpop.f32.mrb[139].mxu0 }
 0x270   : > { %v6337_v10 = vadd.f32 %v6336_v12, %v6335_v40  ;;  %v6338_v53 = vpop.f32.mrb[134].mxu1  ;;  %5358 = vst [vmem:[%s8176_s7 + $0xc0] sm:$0xff] %v5304_v37  ;;  %v5389_v4 = vadd.f32 %v5388_v22, %v5304_v37  ;;  %v5427_v45 = vmul.f32 %v5304_v37, %v5304_v37  ;;  %v5307_v34 = vadd.f32 %v5306_v43, %v5146_v28 }
 0x271   : > { %v6339_v55 = vpop.f32.mrb[135].mxu1 }
 0x272   : > { %v5151_v51 = vadd.f32 %v6337_v10, %v8142_v62  ;;  %v5458_v21 = vadd.f32 %v5457_v41, %v5427_v45  ;;  %v6340_v11 = vadd.f32 %v6339_v55, %v6338_v53  ;;  %5359 = vst [vmem:[%s8176_s7 + $0xc8] sm:$0xff] %v5307_v34  ;;  %v5390_v7 = vadd.f32 %v5389_v4, %v5307_v34 }
 0x273   : > { %v5428_v42 = vmul.f32 %v5307_v34, %v5307_v34 }
 0x274   : > { %v5312_v36 = vadd.f32 %v6419_v27, %v5151_v51  ;;  %v5154_v58 = vadd.f32 %v6340_v11, %v8145_v15 }
 0x275   : > { %v5459_v16 = vadd.f32 %v5458_v21, %v5428_v42 }
 0x276   : > { %5360 = vst [vmem:[%s8176_s7 + $0xd0] sm:$0xff] %v5312_v36  ;;  %v5429_v20 = vmul.f32 %v5312_v36, %v5312_v36  ;;  %v5315_v57 = vadd.f32 %v6420_v2, %v5154_v58  ;;  %v5391_v19 = vadd.f32 %v5390_v7, %v5312_v36  ;;  %v6341_v29 = vpop.f32.mrb[136].mxu1 }
 0x277   : > { %v6423_v56 = vpop.f32.mrb[140].mxu0  ;;  %v6342_v62 = vpop.f32.mrb[137].mxu1 }
 0x278   : > { %5361 = vst [vmem:[%s8176_s7 + $0xd8] sm:$0xff] %v5315_v57  ;;  %v5430_v52 = vmul.f32 %v5315_v57, %v5315_v57  ;;  %v5460_v1 = vadd.f32 %v5459_v16, %v5429_v20  ;;  %v5319_v26 = vpop.f32.mrb[141].mxu0  ;;  %v5392_v48 = vadd.f32 %v5391_v19, %v5315_v57  ;;  %v6343_v46 = vadd.f32 %v6342_v62, %v6341_v29  ;;  %v6344_v49 = vpop.f32.mrb[138].mxu1 }
 0x279   : > { %v6424_v24 = vpop.f32.mrb[142].mxu0  ;;  %v6345_v31 = vpop.f32.mrb[139].mxu1 }
 0x27a   : > { %v5461_v15 = vadd.f32 %v5460_v1, %v5430_v52  ;;  %v5322_v13 = vpop.f32.mrb[143].mxu0  ;;  %v6346_v54 = vadd.f32 %v6345_v31, %v6344_v49  ;;  %v5159_v14 = vadd.f32 %v6343_v46, %v8154_v60 }
 0x27c   : > { %v5320_v30 = vadd.f32 %v5319_v26, %v5159_v14  ;;  %v5162_v17 = vadd.f32 %v6346_v54, %v8157_v25 }
 0x27e   : > { %5362 = vst [vmem:[%s8176_s7 + $0xe0] sm:$0xff] %v5320_v30  ;;  %v5393_v47 = vadd.f32 %v5392_v48, %v5320_v30  ;;  %v5431_v18 = vmul.f32 %v5320_v30, %v5320_v30  ;;  %v5323_v23 = vadd.f32 %v5322_v13, %v5162_v17 }
 0x280   : > { %v6347_v44 = vpop.f32.mrb[140].mxu1  ;;  %v5462_v3 = vadd.f32 %v5461_v15, %v5431_v18  ;;  %5363 = vst [vmem:[%s8176_s7 + $0xe8] sm:$0xff] %v5323_v23  ;;  %v5394_v5 = vadd.f32 %v5393_v47, %v5323_v23  ;;  %v5432_v59 = vmul.f32 %v5323_v23, %v5323_v23 }
 0x281   : > { %v6348_v35 = vpop.f32.mrb[141].mxu1 }
 0x282   : > { %v6349_v32 = vadd.f32 %v6348_v35, %v6347_v44  ;;  %v6350_v39 = vpop.f32.mrb[142].mxu1  ;;  %v5463_v6 = vadd.f32 %v5462_v3, %v5432_v59 }
 0x283   : > { %v6351_v0 = vpop.f32.mrb[143].mxu1 }
 0x284   : > { %v5167_v60 = vadd.f32 %v6349_v32, %v8166_v50  ;;  %v6352_v9 = vadd.f32 %v6351_v0, %v6350_v39 }
 0x286   : > { %v5328_v25 = vadd.f32 %v6423_v56, %v5167_v60  ;;  %v5170_v33 = vadd.f32 %v6352_v9, %v8169_v61 }
 0x288   : > { %5364 = vst [vmem:[%s8176_s7 + $0xf0] sm:$0xff] %v5328_v25  ;;  %v5395_v28 = vadd.f32 %v5394_v5, %v5328_v25  ;;  %v5433_v27 = vmul.f32 %v5328_v25, %v5328_v25  ;;  %v5331_v38 = vadd.f32 %v6424_v24, %v5170_v33 }
 0x28a   : > { %v5464_v8 = vadd.f32 %v5463_v6, %v5433_v27  ;;  %5365 = vst [vmem:[%s8176_s7 + $0xf8] sm:$0xff] %v5331_v38  ;;  %v5396_v63 = vadd.f32 %v5395_v28, %v5331_v38  ;;  %v5434_v22 = vmul.f32 %v5331_v38, %v5331_v38 }
 0x28c   : > { %v5397_v40 = vrot.slane %v5396_v63, 4  ;;  %v5465_v37 = vadd.f32 %v5464_v8, %v5434_v22 }
 0x28e   : > { %v5398_v2 = vadd.f32 %v5397_v40, %v5396_v63  ;;  %v5466_v12 = vrot.slane %v5465_v37, 4 }
 0x290   : > { %v5399_v41 = vrot.slane %v5398_v2, 2  ;;  %v5467_v43 = vadd.f32 %v5466_v12, %v5465_v37 }
 0x292   : > { %v5400_v50 = vadd.f32 %v5399_v41, %v5398_v2  ;;  %v5468_v10 = vrot.slane %v5467_v43, 2 }
 0x294   : > { %v5401_v53 = vrot.slane %v5400_v50, 1  ;;  %v5469_v4 = vadd.f32 %v5468_v10, %v5467_v43 }
 0x296   : > { %v5470_v61 = vrot.slane %v5469_v4, 1  ;;  %v5402_v45 = vadd.f32 %v5401_v53, %v5400_v50 }
 0x298   : > { %v5471_v34 = vadd.f32 %v5470_v61, %v5469_v4 }
 0x29a   : > { %v5473_v55 = vsel %vm860_vm7, %v5402_v45, %v5471_v34 }
 0x29b   : > { %5474 = vst [vmem:[%s235_s10] sm:$0x3] %v5473_v55 }
 0x29c PF: > { %s16_s18 = sadd.s32 1, %s6580_s18  }
 0x29d   : > { %p13_p4 = scmp.ge.s32.totalorder %s16_s18, 4  }
 0x29f   :  { %15 = sbr.rel (!%p13_p4) target bundleno = 1 (0x1), region = 80 }

</bundles_post_ra>
